<compile_context>
chip_gen: v6e
topology: v6e:2x2x1
jax: 0.10.0
libtpu: 0.0.40
codegen_flags: <defaults>
</compile_context>

<pallas_src>
import numpy as np
import jax
import jax.numpy as jnp
from jax.experimental import pallas as pl
from jax.experimental.pallas import tpu as pltpu

EPS = 1e-5
C_FIXED = 9   # SpatialConfiguration hard-codes 9 channels internally.
CP = 16       # channel rows padded to 16 sublanes (zero extra vregs for C=9 f32 rows)


def _round_up(a, b):
    return ((a + b - 1) // b) * b


def _make_kernel(C, D, H, W, NB):
    Do, Ho, Wo = (D - 1) // 2 + 1, (H - 1) // 2 + 1, (W - 1) // 2 + 1
    Wp = _round_up(Wo + 2, 8)      # padded row spacing (16 at test shapes -> FA = 128)
    Hp2 = Ho + 2
    NP = Hp2 * Wp                  # one zero-padded pooled depth slab, flat over (h, w)
    FA = Ho * Wp                   # accumulator width per depth slab (lane-dense)
    Dp2 = Do + 2
    NBC = NB * CP                  # folded-batch channel rows
    inv_cnt = 1.0 / float(Do * Ho * Wo)

    def kernel(x_ref, q_ref, pk_ref, pw_ref, o_ref, p_scr):
        # ---- packed per-row constants: 1 DMA instead of 8 ------------------------
        pk = pk_ref[...]                                   # (NBC, 128)
        dw_cols = [pk[:, k:k + 1] for k in range(27)]      # 27 depthwise taps
        dwb, g1, b1 = pk[:, 27:28], pk[:, 28:29], pk[:, 29:30]
        pwb, g2, b2 = pk[:, 30:31], pk[:, 31:32], pk[:, 32:33]

        # ---- Stage 1: AvgPool3d(3, s=2, p=1) (count_include_pad=True) ------------
        # Depth pooling by slab adds; H/W pooling + zero borders via one small GEMM
        # per (item, depth) written straight into 16-aligned scratch rows (no concat,
        # no misaligned slices, no tail zero-fill).
        p_scr[0] = jnp.zeros((NBC, NP), jnp.float32)        # depth zero-pad slabs only
        p_scr[Dp2 - 1] = jnp.zeros((NBC, NP), jnp.float32)
        qv = q_ref[...]                                     # (H*W, NP), entries 1/27
        for t in range(Do):
            idxs = [i for i in (2 * t - 1, 2 * t, 2 * t + 1) if 0 <= i < D]
            ds = x_ref[:, :, idxs[0], :]
            for i in idxs[1:]:
                ds = ds + x_ref[:, :, i, :]                 # (NB, C, H*W)
            for n in range(NB):
                pooled = jnp.dot(ds[n], qv,
                                 preferred_element_type=jnp.float32)   # (C, NP)
                p_scr[t + 1, n * CP:n * CP + C, :] = pooled

        # ---- Stage 2: depthwise Conv3d(3x3x3, groups=C) + bias + IN + ReLU -------
        # 9 base loads, kw taps via pltpu.roll (wrapped lanes only land on junk
        # positions since Wp >= Wo+2); 3 partial accumulators break the add chain.
        lane = jax.lax.broadcasted_iota(jnp.int32, (1, FA), 1)
        m1 = ((lane % Wp) < Wo).astype(jnp.float32)         # valid-lane mask (in-kernel)

        accs = []
        for kd in range(3):
            acc_kd = None
            for kh in range(3):
                base = p_scr[kd:kd + Do, :, kh * Wp:kh * Wp + FA]      # (Do, NBC, FA)
                for kw in range(3):
                    tap = base if kw == 0 else pltpu.roll(base, FA - kw, axis=2)
                    term = dw_cols[kd * 9 + kh * 3 + kw] * tap
                    acc_kd = term if acc_kd is None else acc_kd + term
            accs.append(acc_kd)
        acc = (accs[0] + accs[1]) + (accs[2] + dwb)          # (Do, NBC, FA)

        am = acc * m1
        s1 = jnp.sum(am, axis=(0, 2), keepdims=True)         # (1, NBC, 1)
        s2 = jnp.sum(am * acc, axis=(0, 2), keepdims=True)
        mu = s1 * inv_cnt
        var = s2 * inv_cnt - mu * mu                         # biased var (matches IN)
        y = (acc - mu) * jax.lax.rsqrt(var + EPS) * g1 + b1
        y = jnp.maximum(y, 0.0)                              # (Do, NBC, FA)

        # Padded channel rows come from uninitialized scratch; force them to zero so
        # the cross-channel matmul below cannot pick up NaN/Inf garbage (0 * NaN = NaN).
        rid = jax.lax.broadcasted_iota(jnp.int32, (NBC, 1), 0)
        y = jnp.where((rid % CP) < C, y, 0.0)

        # ---- Stage 3: pointwise Conv3d(1x1x1) + bias + IN + ReLU -----------------
        # One block-diagonal (NBC,NBC)@(NBC,FA) MXU matmul per depth; stats
        # accumulated per depth (no concatenate), mask m1 reused.
        pw = pw_ref[...]                                     # (NBC, NBC)
        t1 = jnp.zeros((NBC, 1), jnp.float32)
        t2 = jnp.zeros((NBC, 1), jnp.float32)
        zs = []
        for d in range(Do):
            z_d = jnp.dot(pw, y[d], preferred_element_type=jnp.float32) + pwb
            zm = z_d * m1
            t1 = t1 + jnp.sum(zm, axis=1, keepdims=True)
            t2 = t2 + jnp.sum(zm * z_d, axis=1, keepdims=True)
            zs.append(z_d)
        mu2 = t1 * inv_cnt
        var2 = t2 * inv_cnt - mu2 * mu2
        scale2 = jax.lax.rsqrt(var2 + EPS) * g2
        for d in range(Do):
            o_d = jnp.maximum((zs[d] - mu2) * scale2 + b2, 0.0)        # (NBC, FA)
            for n in range(NB):
                # lane-dense store: 128-lane-aligned slice of the Do*FA output row
                o_ref[n, :, d * FA:(d + 1) * FA] = o_d[n * CP:n * CP + C, :]

    return kernel, (Do, Ho, Wo, Wp, Hp2, NP, FA, Dp2, NBC)


def _pooling_matrix(H, W, Ho, Wo, Wp, Hp2):
    """Kronecker H/W pooling+padding matrix; output layout already zero-padded."""
    ph = np.zeros((Hp2, H), np.float32)
    for oh in range(Ho):
        for k in range(3):
            h = 2 * oh + k - 1
            if 0 <= h < H:
                ph[oh + 1, h] = 1.0
    pwm = np.zeros((W, Wp), np.float32)
    for ow in range(Wo):
        for k in range(3):
            w = 2 * ow + k - 1
            if 0 <= w < W:
                pwm[w, ow + 1] = 1.0
    # 1/27 folds the whole AvgPool divisor (count_include_pad=True semantics).
    return np.einsum('ah,wb->hwab', ph, pwm).reshape(H * W, Hp2 * Wp) / 27.0


def _num_batch_blocks(N):
    # Dual-TensorCore chips (v7x / v4 / v5p): split the batch across cores.
    # Single-TC chips (v5e / v6e): fold the whole batch into one grid step.
    try:
        kind = jax.devices()[0].device_kind.lower()
    except Exception:
        kind = ""
    two_tc = any(t in kind for t in ("v7", "v4", "v5p"))
    return 2 if (two_tc and N >= 2 and N % 2 == 0) else 1


def spatial_configuration(x, params, num_blocks=None):
    N, C, D, H, W = x.shape
    assert C == C_FIXED, "module hard-codes 9 channels"
    if num_blocks is None:
        num_blocks = _num_batch_blocks(N)
    if N % num_blocks != 0:
        num_blocks = 1
    NB = N // num_blocks                       # batch items folded per grid step

    kernel, dims = _make_kernel(C, D, H, W, NB)
    Do, Ho, Wo, Wp, Hp2, NP, FA, Dp2, NBC = dims

    q = jnp.asarray(_pooling_matrix(H, W, Ho, Wo, Wp, Hp2))
    x_flat = x.reshape(N, C, D, H * W)         # free reshape, no padding copy

    f32 = jnp.float32
    # Pack all per-channel parameters into ONE (NBC, 128) array (1 DMA instead of 8).
    base = jnp.zeros((CP, 128), f32)
    base = base.at[:C, 0:27].set(jnp.asarray(params["dw_w"], f32))
    base = base.at[:C, 27].set(jnp.asarray(params["dw_b"], f32))
    base = base.at[:C, 28].set(jnp.asarray(params["g1"], f32))
    base = base.at[:C, 29].set(jnp.asarray(params["b1"], f32))
    base = base.at[:C, 30].set(jnp.asarray(params["pw_b"], f32))
    base = base.at[:C, 31].set(jnp.asarray(params["g2"], f32))
    base = base.at[:C, 32].set(jnp.asarray(params["b2"], f32))
    pk = jnp.tile(base, (NB, 1))                                        # (NBC, 128)

    # Block-diagonal pointwise weights over the folded batch items.
    pw_pad = jnp.zeros((CP, CP), f32).at[:C, :C].set(jnp.asarray(params["pw_w"], f32))
    pw_bd = jnp.kron(jnp.eye(NB, dtype=f32), pw_pad)                    # (NBC, NBC)

    grid_spec = pltpu.PrefetchScalarGridSpec(
        num_scalar_prefetch=0,
        grid=(num_blocks,),
        in_specs=[
            pl.BlockSpec((NB, C, D, H * W), lambda b: (b, 0, 0, 0)),    # x (flat H*W)
            pl.BlockSpec((H * W, NP), lambda b: (0, 0)),                # pooling matrix
            pl.BlockSpec((NBC, 128), lambda b: (0, 0)),                 # packed params
            pl.BlockSpec((NBC, NBC), lambda b: (0, 0)),                 # block-diag pw_w
        ],
        out_specs=pl.BlockSpec((NB, C, Do * FA), lambda b: (b, 0, 0)),
        scratch_shapes=[pltpu.VMEM((Dp2, NBC, NP), jnp.float32)],
    )
    fn = pl.pallas_call(
        kernel,
        out_shape=jax.ShapeDtypeStruct((N, C, Do * FA), jnp.float32),
        grid_spec=grid_spec,
        compiler_params=pltpu.CompilerParams(dimension_semantics=("parallel",)),
    )
    out = fn(x_flat, q, pk, pw_bd)
    # Drop the junk W-padding lanes per row (pure layout plumbing).
    return out.reshape(N, C, Do, Ho, Wp)[..., :Wo]


# ---------------- pure-JAX reference (for verification only) ----------------
def _instance_norm(x, g, b):
    mu = jnp.mean(x, axis=(2, 3, 4), keepdims=True)
    var = jnp.mean((x - mu) ** 2, axis=(2, 3, 4), keepdims=True)
    return (x - mu) * jax.lax.rsqrt(var + EPS) * g.reshape(1, -1, 1, 1, 1) + b.reshape(1, -1, 1, 1, 1)


def reference(x, p):
    s = jax.lax.reduce_window(x, 0.0, jax.lax.add,
                              window_dimensions=(1, 1, 3, 3, 3),
                              window_strides=(1, 1, 2, 2, 2),
                              padding=((0, 0), (0, 0), (1, 1), (1, 1), (1, 1)))
    y = s / 27.0
    w1 = p["dw_w"].reshape(9, 1, 3, 3, 3)
    y = jax.lax.conv_general_dilated(y, w1, (1, 1, 1), ((1, 1), (1, 1), (1, 1)),
                                     dimension_numbers=("NCDHW", "OIDHW", "NCDHW"),
                                     feature_group_count=9)
    y = y + p["dw_b"].reshape(1, 9, 1, 1, 1)
    y = jnp.maximum(_instance_norm(y, p["g1"], p["b1"]), 0.0)
    w2 = p["pw_w"].reshape(9, 9, 1, 1, 1)
    z = jax.lax.conv_general_dilated(y, w2, (1, 1, 1), ((0, 0), (0, 0), (0, 0)),
                                     dimension_numbers=("NCDHW", "OIDHW", "NCDHW"))
    z = z + p["pw_b"].reshape(1, 9, 1, 1, 1)
    z = jnp.maximum(_instance_norm(z, p["g2"], p["b2"]), 0.0)
    return z


if __name__ == "__main__":
    key = jax.random.PRNGKey(0)
    ks = jax.random.split(key, 9)
    params = {
        "dw_w": jax.random.normal(ks[0], (9, 27), jnp.float32) / np.sqrt(27.0),  # (9,1,3,3,3) flat
        "dw_b": 0.1 * jax.random.normal(ks[1], (9,), jnp.float32),
        "g1":   1.0 + 0.1 * jax.random.normal(ks[2], (9,), jnp.float32),
        "b1":   0.1 * jax.random.normal(ks[3], (9,), jnp.float32),
        "pw_w": jax.random.normal(ks[4], (9, 9), jnp.float32) / 3.0,              # (9,9,1,1,1) flat
        "pw_b": 0.1 * jax.random.normal(ks[5], (9,), jnp.float32),
        "g2":   1.0 + 0.1 * jax.random.normal(ks[6], (9,), jnp.float32),
        "b2":   0.1 * jax.random.normal(ks[7], (9,), jnp.float32),
    }
    x = jax.random.normal(ks[8], (2, 9, 8, 16, 16), jnp.float32)   # N, C=9, D, H, W

    out = jax.block_until_ready(spatial_configuration(x, params))
    ref = jax.block_until_ready(reference(x, params))
    assert out.shape == (2, 9, 4, 8, 8), out.shape
    np.testing.assert_allclose(np.asarray(out), np.asarray(ref), rtol=1e-3, atol=1e-3)
    print("KERNEL_OK")
</pallas_src>

<mosaic_0001>
module attributes {stable_mosaic.version = 11 : i64} {
  func.func @kernel(%arg0: i32, %arg1: memref<2x9x8x256xf32, #tpu.memory_space<vmem>>, %arg2: memref<256x160xf32, #tpu.memory_space<vmem>>, %arg3: memref<32x128xf32, #tpu.memory_space<vmem>>, %arg4: memref<32x32xf32, #tpu.memory_space<vmem>>, %arg5: memref<2x9x512xf32, #tpu.memory_space<vmem>>, %arg6: memref<6x32x160xf32, #tpu.memory_space<vmem>>) attributes {dimension_semantics = [#tpu.dimension_semantics<parallel>], iteration_bounds = array<i64: 1>, scalar_prefetch = 0 : i64, scratch_operands = 1 : i64, tpu.core_type = #tpu.core_type<tc>, window_params = [{transform_indices = @transform_0, window_bounds = array<i64: 2, 9, 8, 256>}, {pipeline_mode = #tpu.pipeline_mode<synchronous>, transform_indices = @transform_1, window_bounds = array<i64: 256, 160>}, {pipeline_mode = #tpu.pipeline_mode<synchronous>, transform_indices = @transform_2, window_bounds = array<i64: 32, 128>}, {pipeline_mode = #tpu.pipeline_mode<synchronous>, transform_indices = @transform_3, window_bounds = array<i64: 32, 32>}, {transform_indices = @transform_4, window_bounds = array<i64: 2, 9, 512>}]} {
    %c0 = arith.constant 0 : index
    %c0_0 = arith.constant 0 : index
    %0 = vector.load %arg3[%c0, %c0_0] : memref<32x128xf32, #tpu.memory_space<vmem>>, vector<32x128xf32>
    %1 = vector.extract_strided_slice %0 {offsets = [0, 0], sizes = [32, 1], strides = [1, 1]} : vector<32x128xf32> to vector<32x1xf32>
    %2 = vector.extract_strided_slice %0 {offsets = [0, 1], sizes = [32, 1], strides = [1, 1]} : vector<32x128xf32> to vector<32x1xf32>
    %3 = vector.extract_strided_slice %0 {offsets = [0, 2], sizes = [32, 1], strides = [1, 1]} : vector<32x128xf32> to vector<32x1xf32>
    %4 = vector.extract_strided_slice %0 {offsets = [0, 3], sizes = [32, 1], strides = [1, 1]} : vector<32x128xf32> to vector<32x1xf32>
    %5 = vector.extract_strided_slice %0 {offsets = [0, 4], sizes = [32, 1], strides = [1, 1]} : vector<32x128xf32> to vector<32x1xf32>
    %6 = vector.extract_strided_slice %0 {offsets = [0, 5], sizes = [32, 1], strides = [1, 1]} : vector<32x128xf32> to vector<32x1xf32>
    %7 = vector.extract_strided_slice %0 {offsets = [0, 6], sizes = [32, 1], strides = [1, 1]} : vector<32x128xf32> to vector<32x1xf32>
    %8 = vector.extract_strided_slice %0 {offsets = [0, 7], sizes = [32, 1], strides = [1, 1]} : vector<32x128xf32> to vector<32x1xf32>
    %9 = vector.extract_strided_slice %0 {offsets = [0, 8], sizes = [32, 1], strides = [1, 1]} : vector<32x128xf32> to vector<32x1xf32>
    %10 = vector.extract_strided_slice %0 {offsets = [0, 9], sizes = [32, 1], strides = [1, 1]} : vector<32x128xf32> to vector<32x1xf32>
    %11 = vector.extract_strided_slice %0 {offsets = [0, 10], sizes = [32, 1], strides = [1, 1]} : vector<32x128xf32> to vector<32x1xf32>
    %12 = vector.extract_strided_slice %0 {offsets = [0, 11], sizes = [32, 1], strides = [1, 1]} : vector<32x128xf32> to vector<32x1xf32>
    %13 = vector.extract_strided_slice %0 {offsets = [0, 12], sizes = [32, 1], strides = [1, 1]} : vector<32x128xf32> to vector<32x1xf32>
    %14 = vector.extract_strided_slice %0 {offsets = [0, 13], sizes = [32, 1], strides = [1, 1]} : vector<32x128xf32> to vector<32x1xf32>
    %15 = vector.extract_strided_slice %0 {offsets = [0, 14], sizes = [32, 1], strides = [1, 1]} : vector<32x128xf32> to vector<32x1xf32>
    %16 = vector.extract_strided_slice %0 {offsets = [0, 15], sizes = [32, 1], strides = [1, 1]} : vector<32x128xf32> to vector<32x1xf32>
    %17 = vector.extract_strided_slice %0 {offsets = [0, 16], sizes = [32, 1], strides = [1, 1]} : vector<32x128xf32> to vector<32x1xf32>
    %18 = vector.extract_strided_slice %0 {offsets = [0, 17], sizes = [32, 1], strides = [1, 1]} : vector<32x128xf32> to vector<32x1xf32>
    %19 = vector.extract_strided_slice %0 {offsets = [0, 18], sizes = [32, 1], strides = [1, 1]} : vector<32x128xf32> to vector<32x1xf32>
    %20 = vector.extract_strided_slice %0 {offsets = [0, 19], sizes = [32, 1], strides = [1, 1]} : vector<32x128xf32> to vector<32x1xf32>
    %21 = vector.extract_strided_slice %0 {offsets = [0, 20], sizes = [32, 1], strides = [1, 1]} : vector<32x128xf32> to vector<32x1xf32>
    %22 = vector.extract_strided_slice %0 {offsets = [0, 21], sizes = [32, 1], strides = [1, 1]} : vector<32x128xf32> to vector<32x1xf32>
    %23 = vector.extract_strided_slice %0 {offsets = [0, 22], sizes = [32, 1], strides = [1, 1]} : vector<32x128xf32> to vector<32x1xf32>
    %24 = vector.extract_strided_slice %0 {offsets = [0, 23], sizes = [32, 1], strides = [1, 1]} : vector<32x128xf32> to vector<32x1xf32>
    %25 = vector.extract_strided_slice %0 {offsets = [0, 24], sizes = [32, 1], strides = [1, 1]} : vector<32x128xf32> to vector<32x1xf32>
    %26 = vector.extract_strided_slice %0 {offsets = [0, 25], sizes = [32, 1], strides = [1, 1]} : vector<32x128xf32> to vector<32x1xf32>
    %27 = vector.extract_strided_slice %0 {offsets = [0, 26], sizes = [32, 1], strides = [1, 1]} : vector<32x128xf32> to vector<32x1xf32>
    %28 = vector.extract_strided_slice %0 {offsets = [0, 27], sizes = [32, 1], strides = [1, 1]} : vector<32x128xf32> to vector<32x1xf32>
    %29 = vector.extract_strided_slice %0 {offsets = [0, 28], sizes = [32, 1], strides = [1, 1]} : vector<32x128xf32> to vector<32x1xf32>
    %30 = vector.extract_strided_slice %0 {offsets = [0, 29], sizes = [32, 1], strides = [1, 1]} : vector<32x128xf32> to vector<32x1xf32>
    %31 = vector.extract_strided_slice %0 {offsets = [0, 30], sizes = [32, 1], strides = [1, 1]} : vector<32x128xf32> to vector<32x1xf32>
    %32 = vector.extract_strided_slice %0 {offsets = [0, 31], sizes = [32, 1], strides = [1, 1]} : vector<32x128xf32> to vector<32x1xf32>
    %33 = vector.extract_strided_slice %0 {offsets = [0, 32], sizes = [32, 1], strides = [1, 1]} : vector<32x128xf32> to vector<32x1xf32>
    %cst = arith.constant 0.000000e+00 : f32
    %34 = vector.broadcast %cst : f32 to vector<32x160xf32>
    %c0_1 = arith.constant 0 : index
    %c0_2 = arith.constant 0 : index
    %c0_3 = arith.constant 0 : index
    %35 = vector.load %arg6[%c0_1, %c0_2, %c0_3] : memref<6x32x160xf32, #tpu.memory_space<vmem>>, vector<1x32x160xf32>
    %36 = vector.shape_cast %35 : vector<1x32x160xf32> to vector<32x160xf32>
    %37 = vector.shape_cast %34 : vector<32x160xf32> to vector<1x32x160xf32>
    tpu.vector_store %arg6[%c0_1, %c0_2, %c0_3], %37 {strides = array<i32>} : memref<6x32x160xf32, #tpu.memory_space<vmem>>, vector<1x32x160xf32>,
    %cst_4 = arith.constant 0.000000e+00 : f32
    %38 = vector.broadcast %cst_4 : f32 to vector<32x160xf32>
    %c5 = arith.constant 5 : index
    %c0_5 = arith.constant 0 : index
    %c0_6 = arith.constant 0 : index
    %39 = vector.load %arg6[%c5, %c0_5, %c0_6] : memref<6x32x160xf32, #tpu.memory_space<vmem>>, vector<1x32x160xf32>
    %40 = vector.shape_cast %39 : vector<1x32x160xf32> to vector<32x160xf32>
    %41 = vector.shape_cast %38 : vector<32x160xf32> to vector<1x32x160xf32>
    tpu.vector_store %arg6[%c5, %c0_5, %c0_6], %41 {strides = array<i32>} : memref<6x32x160xf32, #tpu.memory_space<vmem>>, vector<1x32x160xf32>,
    %c0_7 = arith.constant 0 : index
    %c0_8 = arith.constant 0 : index
    %42 = vector.load %arg2[%c0_7, %c0_8] : memref<256x160xf32, #tpu.memory_space<vmem>>, vector<256x160xf32>
    %c0_9 = arith.constant 0 : index
    %c0_10 = arith.constant 0 : index
    %c0_11 = arith.constant 0 : index
    %c0_12 = arith.constant 0 : index
    %43 = vector.load %arg1[%c0_9, %c0_10, %c0_11, %c0_12] : memref<2x9x8x256xf32, #tpu.memory_space<vmem>>, vector<2x9x1x256xf32>
    %44 = vector.shape_cast %43 : vector<2x9x1x256xf32> to vector<2x9x256xf32>
    %c0_13 = arith.constant 0 : index
    %c0_14 = arith.constant 0 : index
    %c1 = arith.constant 1 : index
    %c0_15 = arith.constant 0 : index
    %45 = vector.load %arg1[%c0_13, %c0_14, %c1, %c0_15] : memref<2x9x8x256xf32, #tpu.memory_space<vmem>>, vector<2x9x1x256xf32>
    %46 = vector.shape_cast %45 : vector<2x9x1x256xf32> to vector<2x9x256xf32>
    %47 = arith.addf %44, %46 : vector<2x9x256xf32>
    %48 = vector.extract_strided_slice %47 {offsets = [0, 0, 0], sizes = [1, 9, 256], strides = [1, 1, 1]} : vector<2x9x256xf32> to vector<1x9x256xf32>
    %49 = vector.shape_cast %48 : vector<1x9x256xf32> to vector<9x256xf32>
    %cst_16 = arith.constant dense<0.000000e+00> : vector<9x160xf32>
    %50 = tpu.matmul %49, %42, %cst_16 {dimension_numbers = #tpu.dot_dimension_numbers<[1], [0], [0], [1], [0, 0, 1, 1], [], []>} : vector<9x256xf32>, vector<256x160xf32>, vector<9x160xf32> -> vector<9x160xf32>
    %c1_17 = arith.constant 1 : index
    %c0_18 = arith.constant 0 : index
    %c0_19 = arith.constant 0 : index
    %51 = vector.load %arg6[%c1_17, %c0_18, %c0_19] : memref<6x32x160xf32, #tpu.memory_space<vmem>>, vector<1x9x160xf32>
    %52 = vector.shape_cast %51 : vector<1x9x160xf32> to vector<9x160xf32>
    %53 = vector.shape_cast %50 : vector<9x160xf32> to vector<1x9x160xf32>
    tpu.vector_store %arg6[%c1_17, %c0_18, %c0_19], %53 {strides = array<i32>} : memref<6x32x160xf32, #tpu.memory_space<vmem>>, vector<1x9x160xf32>,
    %54 = vector.extract_strided_slice %47 {offsets = [1, 0, 0], sizes = [1, 9, 256], strides = [1, 1, 1]} : vector<2x9x256xf32> to vector<1x9x256xf32>
    %55 = vector.shape_cast %54 : vector<1x9x256xf32> to vector<9x256xf32>
    %cst_20 = arith.constant dense<0.000000e+00> : vector<9x160xf32>
    %56 = tpu.matmul %55, %42, %cst_20 {dimension_numbers = #tpu.dot_dimension_numbers<[1], [0], [0], [1], [0, 0, 1, 1], [], []>} : vector<9x256xf32>, vector<256x160xf32>, vector<9x160xf32> -> vector<9x160xf32>
    %c1_21 = arith.constant 1 : index
    %c16 = arith.constant 16 : index
    %c0_22 = arith.constant 0 : index
    %57 = vector.load %arg6[%c1_21, %c16, %c0_22] : memref<6x32x160xf32, #tpu.memory_space<vmem>>, vector<1x9x160xf32>
    %58 = vector.shape_cast %57 : vector<1x9x160xf32> to vector<9x160xf32>
    %59 = vector.shape_cast %56 : vector<9x160xf32> to vector<1x9x160xf32>
    tpu.vector_store %arg6[%c1_21, %c16, %c0_22], %59 {strides = array<i32>} : memref<6x32x160xf32, #tpu.memory_space<vmem>>, vector<1x9x160xf32>,
    %c0_23 = arith.constant 0 : index
    %c0_24 = arith.constant 0 : index
    %c1_25 = arith.constant 1 : index
    %c0_26 = arith.constant 0 : index
    %60 = vector.load %arg1[%c0_23, %c0_24, %c1_25, %c0_26] : memref<2x9x8x256xf32, #tpu.memory_space<vmem>>, vector<2x9x1x256xf32>
    %61 = vector.shape_cast %60 : vector<2x9x1x256xf32> to vector<2x9x256xf32>
    %c0_27 = arith.constant 0 : index
    %c0_28 = arith.constant 0 : index
    %c2 = arith.constant 2 : index
    %c0_29 = arith.constant 0 : index
    %62 = vector.load %arg1[%c0_27, %c0_28, %c2, %c0_29] : memref<2x9x8x256xf32, #tpu.memory_space<vmem>>, vector<2x9x1x256xf32>
    %63 = vector.shape_cast %62 : vector<2x9x1x256xf32> to vector<2x9x256xf32>
    %64 = arith.addf %61, %63 : vector<2x9x256xf32>
    %c0_30 = arith.constant 0 : index
    %c0_31 = arith.constant 0 : index
    %c3 = arith.constant 3 : index
    %c0_32 = arith.constant 0 : index
    %65 = vector.load %arg1[%c0_30, %c0_31, %c3, %c0_32] : memref<2x9x8x256xf32, #tpu.memory_space<vmem>>, vector<2x9x1x256xf32>
    %66 = vector.shape_cast %65 : vector<2x9x1x256xf32> to vector<2x9x256xf32>
    %67 = arith.addf %64, %66 : vector<2x9x256xf32>
    %68 = vector.extract_strided_slice %67 {offsets = [0, 0, 0], sizes = [1, 9, 256], strides = [1, 1, 1]} : vector<2x9x256xf32> to vector<1x9x256xf32>
    %69 = vector.shape_cast %68 : vector<1x9x256xf32> to vector<9x256xf32>
    %cst_33 = arith.constant dense<0.000000e+00> : vector<9x160xf32>
    %70 = tpu.matmul %69, %42, %cst_33 {dimension_numbers = #tpu.dot_dimension_numbers<[1], [0], [0], [1], [0, 0, 1, 1], [], []>} : vector<9x256xf32>, vector<256x160xf32>, vector<9x160xf32> -> vector<9x160xf32>
    %c2_34 = arith.constant 2 : index
    %c0_35 = arith.constant 0 : index
    %c0_36 = arith.constant 0 : index
    %71 = vector.load %arg6[%c2_34, %c0_35, %c0_36] : memref<6x32x160xf32, #tpu.memory_space<vmem>>, vector<1x9x160xf32>
    %72 = vector.shape_cast %71 : vector<1x9x160xf32> to vector<9x160xf32>
    %73 = vector.shape_cast %70 : vector<9x160xf32> to vector<1x9x160xf32>
    tpu.vector_store %arg6[%c2_34, %c0_35, %c0_36], %73 {strides = array<i32>} : memref<6x32x160xf32, #tpu.memory_space<vmem>>, vector<1x9x160xf32>,
    %74 = vector.extract_strided_slice %67 {offsets = [1, 0, 0], sizes = [1, 9, 256], strides = [1, 1, 1]} : vector<2x9x256xf32> to vector<1x9x256xf32>
    %75 = vector.shape_cast %74 : vector<1x9x256xf32> to vector<9x256xf32>
    %cst_37 = arith.constant dense<0.000000e+00> : vector<9x160xf32>
    %76 = tpu.matmul %75, %42, %cst_37 {dimension_numbers = #tpu.dot_dimension_numbers<[1], [0], [0], [1], [0, 0, 1, 1], [], []>} : vector<9x256xf32>, vector<256x160xf32>, vector<9x160xf32> -> vector<9x160xf32>
    %c2_38 = arith.constant 2 : index
    %c16_39 = arith.constant 16 : index
    %c0_40 = arith.constant 0 : index
    %77 = vector.load %arg6[%c2_38, %c16_39, %c0_40] : memref<6x32x160xf32, #tpu.memory_space<vmem>>, vector<1x9x160xf32>
    %78 = vector.shape_cast %77 : vector<1x9x160xf32> to vector<9x160xf32>
    %79 = vector.shape_cast %76 : vector<9x160xf32> to vector<1x9x160xf32>
    tpu.vector_store %arg6[%c2_38, %c16_39, %c0_40], %79 {strides = array<i32>} : memref<6x32x160xf32, #tpu.memory_space<vmem>>, vector<1x9x160xf32>,
    %c0_41 = arith.constant 0 : index
    %c0_42 = arith.constant 0 : index
    %c3_43 = arith.constant 3 : index
    %c0_44 = arith.constant 0 : index
    %80 = vector.load %arg1[%c0_41, %c0_42, %c3_43, %c0_44] : memref<2x9x8x256xf32, #tpu.memory_space<vmem>>, vector<2x9x1x256xf32>
    %81 = vector.shape_cast %80 : vector<2x9x1x256xf32> to vector<2x9x256xf32>
    %c0_45 = arith.constant 0 : index
    %c0_46 = arith.constant 0 : index
    %c4 = arith.constant 4 : index
    %c0_47 = arith.constant 0 : index
    %82 = vector.load %arg1[%c0_45, %c0_46, %c4, %c0_47] : memref<2x9x8x256xf32, #tpu.memory_space<vmem>>, vector<2x9x1x256xf32>
    %83 = vector.shape_cast %82 : vector<2x9x1x256xf32> to vector<2x9x256xf32>
    %84 = arith.addf %81, %83 : vector<2x9x256xf32>
    %c0_48 = arith.constant 0 : index
    %c0_49 = arith.constant 0 : index
    %c5_50 = arith.constant 5 : index
    %c0_51 = arith.constant 0 : index
    %85 = vector.load %arg1[%c0_48, %c0_49, %c5_50, %c0_51] : memref<2x9x8x256xf32, #tpu.memory_space<vmem>>, vector<2x9x1x256xf32>
    %86 = vector.shape_cast %85 : vector<2x9x1x256xf32> to vector<2x9x256xf32>
    %87 = arith.addf %84, %86 : vector<2x9x256xf32>
    %88 = vector.extract_strided_slice %87 {offsets = [0, 0, 0], sizes = [1, 9, 256], strides = [1, 1, 1]} : vector<2x9x256xf32> to vector<1x9x256xf32>
    %89 = vector.shape_cast %88 : vector<1x9x256xf32> to vector<9x256xf32>
    %cst_52 = arith.constant dense<0.000000e+00> : vector<9x160xf32>
    %90 = tpu.matmul %89, %42, %cst_52 {dimension_numbers = #tpu.dot_dimension_numbers<[1], [0], [0], [1], [0, 0, 1, 1], [], []>} : vector<9x256xf32>, vector<256x160xf32>, vector<9x160xf32> -> vector<9x160xf32>
    %c3_53 = arith.constant 3 : index
    %c0_54 = arith.constant 0 : index
    %c0_55 = arith.constant 0 : index
    %91 = vector.load %arg6[%c3_53, %c0_54, %c0_55] : memref<6x32x160xf32, #tpu.memory_space<vmem>>, vector<1x9x160xf32>
    %92 = vector.shape_cast %91 : vector<1x9x160xf32> to vector<9x160xf32>
    %93 = vector.shape_cast %90 : vector<9x160xf32> to vector<1x9x160xf32>
    tpu.vector_store %arg6[%c3_53, %c0_54, %c0_55], %93 {strides = array<i32>} : memref<6x32x160xf32, #tpu.memory_space<vmem>>, vector<1x9x160xf32>,
    %94 = vector.extract_strided_slice %87 {offsets = [1, 0, 0], sizes = [1, 9, 256], strides = [1, 1, 1]} : vector<2x9x256xf32> to vector<1x9x256xf32>
    %95 = vector.shape_cast %94 : vector<1x9x256xf32> to vector<9x256xf32>
    %cst_56 = arith.constant dense<0.000000e+00> : vector<9x160xf32>
    %96 = tpu.matmul %95, %42, %cst_56 {dimension_numbers = #tpu.dot_dimension_numbers<[1], [0], [0], [1], [0, 0, 1, 1], [], []>} : vector<9x256xf32>, vector<256x160xf32>, vector<9x160xf32> -> vector<9x160xf32>
    %c3_57 = arith.constant 3 : index
    %c16_58 = arith.constant 16 : index
    %c0_59 = arith.constant 0 : index
    %97 = vector.load %arg6[%c3_57, %c16_58, %c0_59] : memref<6x32x160xf32, #tpu.memory_space<vmem>>, vector<1x9x160xf32>
    %98 = vector.shape_cast %97 : vector<1x9x160xf32> to vector<9x160xf32>
    %99 = vector.shape_cast %96 : vector<9x160xf32> to vector<1x9x160xf32>
    tpu.vector_store %arg6[%c3_57, %c16_58, %c0_59], %99 {strides = array<i32>} : memref<6x32x160xf32, #tpu.memory_space<vmem>>, vector<1x9x160xf32>,
    %c0_60 = arith.constant 0 : index
    %c0_61 = arith.constant 0 : index
    %c5_62 = arith.constant 5 : index
    %c0_63 = arith.constant 0 : index
    %100 = vector.load %arg1[%c0_60, %c0_61, %c5_62, %c0_63] : memref<2x9x8x256xf32, #tpu.memory_space<vmem>>, vector<2x9x1x256xf32>
    %101 = vector.shape_cast %100 : vector<2x9x1x256xf32> to vector<2x9x256xf32>
    %c0_64 = arith.constant 0 : index
    %c0_65 = arith.constant 0 : index
    %c6 = arith.constant 6 : index
    %c0_66 = arith.constant 0 : index
    %102 = vector.load %arg1[%c0_64, %c0_65, %c6, %c0_66] : memref<2x9x8x256xf32, #tpu.memory_space<vmem>>, vector<2x9x1x256xf32>
    %103 = vector.shape_cast %102 : vector<2x9x1x256xf32> to vector<2x9x256xf32>
    %104 = arith.addf %101, %103 : vector<2x9x256xf32>
    %c0_67 = arith.constant 0 : index
    %c0_68 = arith.constant 0 : index
    %c7 = arith.constant 7 : index
    %c0_69 = arith.constant 0 : index
    %105 = vector.load %arg1[%c0_67, %c0_68, %c7, %c0_69] : memref<2x9x8x256xf32, #tpu.memory_space<vmem>>, vector<2x9x1x256xf32>
    %106 = vector.shape_cast %105 : vector<2x9x1x256xf32> to vector<2x9x256xf32>
    %107 = arith.addf %104, %106 : vector<2x9x256xf32>
    %108 = vector.extract_strided_slice %107 {offsets = [0, 0, 0], sizes = [1, 9, 256], strides = [1, 1, 1]} : vector<2x9x256xf32> to vector<1x9x256xf32>
    %109 = vector.shape_cast %108 : vector<1x9x256xf32> to vector<9x256xf32>
    %cst_70 = arith.constant dense<0.000000e+00> : vector<9x160xf32>
    %110 = tpu.matmul %109, %42, %cst_70 {dimension_numbers = #tpu.dot_dimension_numbers<[1], [0], [0], [1], [0, 0, 1, 1], [], []>} : vector<9x256xf32>, vector<256x160xf32>, vector<9x160xf32> -> vector<9x160xf32>
    %c4_71 = arith.constant 4 : index
    %c0_72 = arith.constant 0 : index
    %c0_73 = arith.constant 0 : index
    %111 = vector.load %arg6[%c4_71, %c0_72, %c0_73] : memref<6x32x160xf32, #tpu.memory_space<vmem>>, vector<1x9x160xf32>
    %112 = vector.shape_cast %111 : vector<1x9x160xf32> to vector<9x160xf32>
    %113 = vector.shape_cast %110 : vector<9x160xf32> to vector<1x9x160xf32>
    tpu.vector_store %arg6[%c4_71, %c0_72, %c0_73], %113 {strides = array<i32>} : memref<6x32x160xf32, #tpu.memory_space<vmem>>, vector<1x9x160xf32>,
    %114 = vector.extract_strided_slice %107 {offsets = [1, 0, 0], sizes = [1, 9, 256], strides = [1, 1, 1]} : vector<2x9x256xf32> to vector<1x9x256xf32>
    %115 = vector.shape_cast %114 : vector<1x9x256xf32> to vector<9x256xf32>
    %cst_74 = arith.constant dense<0.000000e+00> : vector<9x160xf32>
    %116 = tpu.matmul %115, %42, %cst_74 {dimension_numbers = #tpu.dot_dimension_numbers<[1], [0], [0], [1], [0, 0, 1, 1], [], []>} : vector<9x256xf32>, vector<256x160xf32>, vector<9x160xf32> -> vector<9x160xf32>
    %c4_75 = arith.constant 4 : index
    %c16_76 = arith.constant 16 : index
    %c0_77 = arith.constant 0 : index
    %117 = vector.load %arg6[%c4_75, %c16_76, %c0_77] : memref<6x32x160xf32, #tpu.memory_space<vmem>>, vector<1x9x160xf32>
    %118 = vector.shape_cast %117 : vector<1x9x160xf32> to vector<9x160xf32>
    %119 = vector.shape_cast %116 : vector<9x160xf32> to vector<1x9x160xf32>
    tpu.vector_store %arg6[%c4_75, %c16_76, %c0_77], %119 {strides = array<i32>} : memref<6x32x160xf32, #tpu.memory_space<vmem>>, vector<1x9x160xf32>,
    %120 = tpu.iota {dimensions = array<i32: 1>} : vector<1x128xi32>
    %c16_i32 = arith.constant 16 : i32
    %c0_i32 = arith.constant 0 : i32
    %121 = arith.cmpi eq, %c16_i32, %c0_i32 : i32
    %c1_i32 = arith.constant 1 : i32
    %122 = arith.select %121, %c1_i32, %c16_i32 : i32
    %123 = vector.broadcast %122 : i32 to vector<1x128xi32>
    %124 = arith.remsi %120, %123 : vector<1x128xi32>
    %c0_i32_78 = arith.constant 0 : i32
    %125 = vector.broadcast %c0_i32_78 : i32 to vector<1x128xi32>
    %126 = arith.cmpi ne, %124, %125 : vector<1x128xi32>
    %c0_i32_79 = arith.constant 0 : i32
    %127 = vector.broadcast %c0_i32_79 : i32 to vector<1x128xi32>
    %128 = arith.cmpi slt, %124, %127 : vector<1x128xi32>
    %c0_i32_80 = arith.constant 0 : i32
    %129 = arith.cmpi slt, %122, %c0_i32_80 : i32
    %130 = vector.broadcast %129 : i1 to vector<1x128xi1>
    %131 = vector.broadcast %130 : vector<1x128xi1> to vector<1x128xi1>
    %132 = arith.xori %128, %131 : vector<1x128xi1>
    %133 = arith.andi %132, %126 : vector<1x128xi1>
    %134 = vector.broadcast %122 : i32 to vector<1x128xi32>
    %135 = arith.addi %124, %134 : vector<1x128xi32>
    %136 = arith.select %133, %135, %124 : vector<1x128xi1>, vector<1x128xi32>
    %c8_i32 = arith.constant 8 : i32
    %137 = vector.broadcast %c8_i32 : i32 to vector<1x128xi32>
    %138 = arith.cmpi slt, %136, %137 : vector<1x128xi32>
    %139 = arith.extui %138 : vector<1x128xi1> to vector<1x128xi32>
    %140 = arith.sitofp %139 : vector<1x128xi32> to vector<1x128xf32>
    %c0_81 = arith.constant 0 : index
    %c0_82 = arith.constant 0 : index
    %c0_83 = arith.constant 0 : index
    %141 = vector.load %arg6[%c0_81, %c0_82, %c0_83] : memref<6x32x160xf32, #tpu.memory_space<vmem>>, vector<4x32x128xf32>
    %142 = vector.shape_cast %1 : vector<32x1xf32> to vector<1x32x1xf32>
    %143 = vector.broadcast %142 : vector<1x32x1xf32> to vector<4x32x128xf32>
    %144 = arith.mulf %143, %141 : vector<4x32x128xf32>
    %c127_i32 = arith.constant 127 : i32
    %145 = tpu.dynamic_rotate %141 by %c127_i32 dim 2 : vector<4x32x128xf32>, i32 -> vector<4x32x128xf32>
    %146 = vector.shape_cast %2 : vector<32x1xf32> to vector<1x32x1xf32>
    %147 = vector.broadcast %146 : vector<1x32x1xf32> to vector<4x32x128xf32>
    %148 = arith.mulf %147, %145 : vector<4x32x128xf32>
    %149 = arith.addf %144, %148 : vector<4x32x128xf32>
    %c126_i32 = arith.constant 126 : i32
    %150 = tpu.dynamic_rotate %141 by %c126_i32 dim 2 : vector<4x32x128xf32>, i32 -> vector<4x32x128xf32>
    %151 = vector.shape_cast %3 : vector<32x1xf32> to vector<1x32x1xf32>
    %152 = vector.broadcast %151 : vector<1x32x1xf32> to vector<4x32x128xf32>
    %153 = arith.mulf %152, %150 : vector<4x32x128xf32>
    %154 = arith.addf %149, %153 : vector<4x32x128xf32>
    %c0_84 = arith.constant 0 : index
    %c0_85 = arith.constant 0 : index
    %c16_86 = arith.constant 16 : index
    %155 = vector.load %arg6[%c0_84, %c0_85, %c16_86] : memref<6x32x160xf32, #tpu.memory_space<vmem>>, vector<4x32x128xf32>
    %156 = vector.shape_cast %4 : vector<32x1xf32> to vector<1x32x1xf32>
    %157 = vector.broadcast %156 : vector<1x32x1xf32> to vector<4x32x128xf32>
    %158 = arith.mulf %157, %155 : vector<4x32x128xf32>
    %159 = arith.addf %154, %158 : vector<4x32x128xf32>
    %c127_i32_87 = arith.constant 127 : i32
    %160 = tpu.dynamic_rotate %155 by %c127_i32_87 dim 2 : vector<4x32x128xf32>, i32 -> vector<4x32x128xf32>
    %161 = vector.shape_cast %5 : vector<32x1xf32> to vector<1x32x1xf32>
    %162 = vector.broadcast %161 : vector<1x32x1xf32> to vector<4x32x128xf32>
    %163 = arith.mulf %162, %160 : vector<4x32x128xf32>
    %164 = arith.addf %159, %163 : vector<4x32x128xf32>
    %c126_i32_88 = arith.constant 126 : i32
    %165 = tpu.dynamic_rotate %155 by %c126_i32_88 dim 2 : vector<4x32x128xf32>, i32 -> vector<4x32x128xf32>
    %166 = vector.shape_cast %6 : vector<32x1xf32> to vector<1x32x1xf32>
    %167 = vector.broadcast %166 : vector<1x32x1xf32> to vector<4x32x128xf32>
    %168 = arith.mulf %167, %165 : vector<4x32x128xf32>
    %169 = arith.addf %164, %168 : vector<4x32x128xf32>
    %c0_89 = arith.constant 0 : index
    %c0_90 = arith.constant 0 : index
    %c32 = arith.constant 32 : index
    %170 = vector.load %arg6[%c0_89, %c0_90, %c32] : memref<6x32x160xf32, #tpu.memory_space<vmem>>, vector<4x32x128xf32>
    %171 = vector.shape_cast %7 : vector<32x1xf32> to vector<1x32x1xf32>
    %172 = vector.broadcast %171 : vector<1x32x1xf32> to vector<4x32x128xf32>
    %173 = arith.mulf %172, %170 : vector<4x32x128xf32>
    %174 = arith.addf %169, %173 : vector<4x32x128xf32>
    %c127_i32_91 = arith.constant 127 : i32
    %175 = tpu.dynamic_rotate %170 by %c127_i32_91 dim 2 : vector<4x32x128xf32>, i32 -> vector<4x32x128xf32>
    %176 = vector.shape_cast %8 : vector<32x1xf32> to vector<1x32x1xf32>
    %177 = vector.broadcast %176 : vector<1x32x1xf32> to vector<4x32x128xf32>
    %178 = arith.mulf %177, %175 : vector<4x32x128xf32>
    %179 = arith.addf %174, %178 : vector<4x32x128xf32>
    %c126_i32_92 = arith.constant 126 : i32
    %180 = tpu.dynamic_rotate %170 by %c126_i32_92 dim 2 : vector<4x32x128xf32>, i32 -> vector<4x32x128xf32>
    %181 = vector.shape_cast %9 : vector<32x1xf32> to vector<1x32x1xf32>
    %182 = vector.broadcast %181 : vector<1x32x1xf32> to vector<4x32x128xf32>
    %183 = arith.mulf %182, %180 : vector<4x32x128xf32>
    %184 = arith.addf %179, %183 : vector<4x32x128xf32>
    %c1_93 = arith.constant 1 : index
    %c0_94 = arith.constant 0 : index
    %c0_95 = arith.constant 0 : index
    %185 = vector.load %arg6[%c1_93, %c0_94, %c0_95] : memref<6x32x160xf32, #tpu.memory_space<vmem>>, vector<4x32x128xf32>
    %186 = vector.shape_cast %10 : vector<32x1xf32> to vector<1x32x1xf32>
    %187 = vector.broadcast %186 : vector<1x32x1xf32> to vector<4x32x128xf32>
    %188 = arith.mulf %187, %185 : vector<4x32x128xf32>
    %c127_i32_96 = arith.constant 127 : i32
    %189 = tpu.dynamic_rotate %185 by %c127_i32_96 dim 2 : vector<4x32x128xf32>, i32 -> vector<4x32x128xf32>
    %190 = vector.shape_cast %11 : vector<32x1xf32> to vector<1x32x1xf32>
    %191 = vector.broadcast %190 : vector<1x32x1xf32> to vector<4x32x128xf32>
    %192 = arith.mulf %191, %189 : vector<4x32x128xf32>
    %193 = arith.addf %188, %192 : vector<4x32x128xf32>
    %c126_i32_97 = arith.constant 126 : i32
    %194 = tpu.dynamic_rotate %185 by %c126_i32_97 dim 2 : vector<4x32x128xf32>, i32 -> vector<4x32x128xf32>
    %195 = vector.shape_cast %12 : vector<32x1xf32> to vector<1x32x1xf32>
    %196 = vector.broadcast %195 : vector<1x32x1xf32> to vector<4x32x128xf32>
    %197 = arith.mulf %196, %194 : vector<4x32x128xf32>
    %198 = arith.addf %193, %197 : vector<4x32x128xf32>
    %c1_98 = arith.constant 1 : index
    %c0_99 = arith.constant 0 : index
    %c16_100 = arith.constant 16 : index
    %199 = vector.load %arg6[%c1_98, %c0_99, %c16_100] : memref<6x32x160xf32, #tpu.memory_space<vmem>>, vector<4x32x128xf32>
    %200 = vector.shape_cast %13 : vector<32x1xf32> to vector<1x32x1xf32>
    %201 = vector.broadcast %200 : vector<1x32x1xf32> to vector<4x32x128xf32>
    %202 = arith.mulf %201, %199 : vector<4x32x128xf32>
    %203 = arith.addf %198, %202 : vector<4x32x128xf32>
    %c127_i32_101 = arith.constant 127 : i32
    %204 = tpu.dynamic_rotate %199 by %c127_i32_101 dim 2 : vector<4x32x128xf32>, i32 -> vector<4x32x128xf32>
    %205 = vector.shape_cast %14 : vector<32x1xf32> to vector<1x32x1xf32>
    %206 = vector.broadcast %205 : vector<1x32x1xf32> to vector<4x32x128xf32>
    %207 = arith.mulf %206, %204 : vector<4x32x128xf32>
    %208 = arith.addf %203, %207 : vector<4x32x128xf32>
    %c126_i32_102 = arith.constant 126 : i32
    %209 = tpu.dynamic_rotate %199 by %c126_i32_102 dim 2 : vector<4x32x128xf32>, i32 -> vector<4x32x128xf32>
    %210 = vector.shape_cast %15 : vector<32x1xf32> to vector<1x32x1xf32>
    %211 = vector.broadcast %210 : vector<1x32x1xf32> to vector<4x32x128xf32>
    %212 = arith.mulf %211, %209 : vector<4x32x128xf32>
    %213 = arith.addf %208, %212 : vector<4x32x128xf32>
    %c1_103 = arith.constant 1 : index
    %c0_104 = arith.constant 0 : index
    %c32_105 = arith.constant 32 : index
    %214 = vector.load %arg6[%c1_103, %c0_104, %c32_105] : memref<6x32x160xf32, #tpu.memory_space<vmem>>, vector<4x32x128xf32>
    %215 = vector.shape_cast %16 : vector<32x1xf32> to vector<1x32x1xf32>
    %216 = vector.broadcast %215 : vector<1x32x1xf32> to vector<4x32x128xf32>
    %217 = arith.mulf %216, %214 : vector<4x32x128xf32>
    %218 = arith.addf %213, %217 : vector<4x32x128xf32>
    %c127_i32_106 = arith.constant 127 : i32
    %219 = tpu.dynamic_rotate %214 by %c127_i32_106 dim 2 : vector<4x32x128xf32>, i32 -> vector<4x32x128xf32>
    %220 = vector.shape_cast %17 : vector<32x1xf32> to vector<1x32x1xf32>
    %221 = vector.broadcast %220 : vector<1x32x1xf32> to vector<4x32x128xf32>
    %222 = arith.mulf %221, %219 : vector<4x32x128xf32>
    %223 = arith.addf %218, %222 : vector<4x32x128xf32>
    %c126_i32_107 = arith.constant 126 : i32
    %224 = tpu.dynamic_rotate %214 by %c126_i32_107 dim 2 : vector<4x32x128xf32>, i32 -> vector<4x32x128xf32>
    %225 = vector.shape_cast %18 : vector<32x1xf32> to vector<1x32x1xf32>
    %226 = vector.broadcast %225 : vector<1x32x1xf32> to vector<4x32x128xf32>
    %227 = arith.mulf %226, %224 : vector<4x32x128xf32>
    %228 = arith.addf %223, %227 : vector<4x32x128xf32>
    %c2_108 = arith.constant 2 : index
    %c0_109 = arith.constant 0 : index
    %c0_110 = arith.constant 0 : index
    %229 = vector.load %arg6[%c2_108, %c0_109, %c0_110] : memref<6x32x160xf32, #tpu.memory_space<vmem>>, vector<4x32x128xf32>
    %230 = vector.shape_cast %19 : vector<32x1xf32> to vector<1x32x1xf32>
    %231 = vector.broadcast %230 : vector<1x32x1xf32> to vector<4x32x128xf32>
    %232 = arith.mulf %231, %229 : vector<4x32x128xf32>
    %c127_i32_111 = arith.constant 127 : i32
    %233 = tpu.dynamic_rotate %229 by %c127_i32_111 dim 2 : vector<4x32x128xf32>, i32 -> vector<4x32x128xf32>
    %234 = vector.shape_cast %20 : vector<32x1xf32> to vector<1x32x1xf32>
    %235 = vector.broadcast %234 : vector<1x32x1xf32> to vector<4x32x128xf32>
    %236 = arith.mulf %235, %233 : vector<4x32x128xf32>
    %237 = arith.addf %232, %236 : vector<4x32x128xf32>
    %c126_i32_112 = arith.constant 126 : i32
    %238 = tpu.dynamic_rotate %229 by %c126_i32_112 dim 2 : vector<4x32x128xf32>, i32 -> vector<4x32x128xf32>
    %239 = vector.shape_cast %21 : vector<32x1xf32> to vector<1x32x1xf32>
    %240 = vector.broadcast %239 : vector<1x32x1xf32> to vector<4x32x128xf32>
    %241 = arith.mulf %240, %238 : vector<4x32x128xf32>
    %242 = arith.addf %237, %241 : vector<4x32x128xf32>
    %c2_113 = arith.constant 2 : index
    %c0_114 = arith.constant 0 : index
    %c16_115 = arith.constant 16 : index
    %243 = vector.load %arg6[%c2_113, %c0_114, %c16_115] : memref<6x32x160xf32, #tpu.memory_space<vmem>>, vector<4x32x128xf32>
    %244 = vector.shape_cast %22 : vector<32x1xf32> to vector<1x32x1xf32>
    %245 = vector.broadcast %244 : vector<1x32x1xf32> to vector<4x32x128xf32>
    %246 = arith.mulf %245, %243 : vector<4x32x128xf32>
    %247 = arith.addf %242, %246 : vector<4x32x128xf32>
    %c127_i32_116 = arith.constant 127 : i32
    %248 = tpu.dynamic_rotate %243 by %c127_i32_116 dim 2 : vector<4x32x128xf32>, i32 -> vector<4x32x128xf32>
    %249 = vector.shape_cast %23 : vector<32x1xf32> to vector<1x32x1xf32>
    %250 = vector.broadcast %249 : vector<1x32x1xf32> to vector<4x32x128xf32>
    %251 = arith.mulf %250, %248 : vector<4x32x128xf32>
    %252 = arith.addf %247, %251 : vector<4x32x128xf32>
    %c126_i32_117 = arith.constant 126 : i32
    %253 = tpu.dynamic_rotate %243 by %c126_i32_117 dim 2 : vector<4x32x128xf32>, i32 -> vector<4x32x128xf32>
    %254 = vector.shape_cast %24 : vector<32x1xf32> to vector<1x32x1xf32>
    %255 = vector.broadcast %254 : vector<1x32x1xf32> to vector<4x32x128xf32>
    %256 = arith.mulf %255, %253 : vector<4x32x128xf32>
    %257 = arith.addf %252, %256 : vector<4x32x128xf32>
    %c2_118 = arith.constant 2 : index
    %c0_119 = arith.constant 0 : index
    %c32_120 = arith.constant 32 : index
    %258 = vector.load %arg6[%c2_118, %c0_119, %c32_120] : memref<6x32x160xf32, #tpu.memory_space<vmem>>, vector<4x32x128xf32>
    %259 = vector.shape_cast %25 : vector<32x1xf32> to vector<1x32x1xf32>
    %260 = vector.broadcast %259 : vector<1x32x1xf32> to vector<4x32x128xf32>
    %261 = arith.mulf %260, %258 : vector<4x32x128xf32>
    %262 = arith.addf %257, %261 : vector<4x32x128xf32>
    %c127_i32_121 = arith.constant 127 : i32
    %263 = tpu.dynamic_rotate %258 by %c127_i32_121 dim 2 : vector<4x32x128xf32>, i32 -> vector<4x32x128xf32>
    %264 = vector.shape_cast %26 : vector<32x1xf32> to vector<1x32x1xf32>
    %265 = vector.broadcast %264 : vector<1x32x1xf32> to vector<4x32x128xf32>
    %266 = arith.mulf %265, %263 : vector<4x32x128xf32>
    %267 = arith.addf %262, %266 : vector<4x32x128xf32>
    %c126_i32_122 = arith.constant 126 : i32
    %268 = tpu.dynamic_rotate %258 by %c126_i32_122 dim 2 : vector<4x32x128xf32>, i32 -> vector<4x32x128xf32>
    %269 = vector.shape_cast %27 : vector<32x1xf32> to vector<1x32x1xf32>
    %270 = vector.broadcast %269 : vector<1x32x1xf32> to vector<4x32x128xf32>
    %271 = arith.mulf %270, %268 : vector<4x32x128xf32>
    %272 = arith.addf %267, %271 : vector<4x32x128xf32>
    %273 = arith.addf %184, %228 : vector<4x32x128xf32>
    %274 = vector.shape_cast %28 : vector<32x1xf32> to vector<1x32x1xf32>
    %275 = vector.broadcast %274 : vector<1x32x1xf32> to vector<4x32x128xf32>
    %276 = arith.addf %272, %275 : vector<4x32x128xf32>
    %277 = arith.addf %273, %276 : vector<4x32x128xf32>
    %278 = vector.shape_cast %140 : vector<1x128xf32> to vector<1x1x128xf32>
    %279 = vector.broadcast %278 : vector<1x1x128xf32> to vector<4x32x128xf32>
    %280 = arith.mulf %277, %279 : vector<4x32x128xf32>
    %cst_123 = arith.constant dense<0.000000e+00> : vector<32xf32>
    %281 = vector.multi_reduction <add>, %280, %cst_123 [0, 2] : vector<4x32x128xf32> to vector<32xf32>
    %282 = vector.shape_cast %281 : vector<32xf32> to vector<1x32x1xf32>
    %283 = arith.mulf %280, %277 : vector<4x32x128xf32>
    %cst_124 = arith.constant dense<0.000000e+00> : vector<32xf32>
    %284 = vector.multi_reduction <add>, %283, %cst_124 [0, 2] : vector<4x32x128xf32> to vector<32xf32>
    %285 = vector.shape_cast %284 : vector<32xf32> to vector<1x32x1xf32>
    %cst_125 = arith.constant 3.906250e-03 : f32
    %286 = vector.broadcast %cst_125 : f32 to vector<1x32x1xf32>
    %287 = arith.mulf %282, %286 : vector<1x32x1xf32>
    %cst_126 = arith.constant 3.906250e-03 : f32
    %288 = vector.broadcast %cst_126 : f32 to vector<1x32x1xf32>
    %289 = arith.mulf %285, %288 : vector<1x32x1xf32>
    %290 = arith.mulf %287, %287 : vector<1x32x1xf32>
    %291 = arith.subf %289, %290 : vector<1x32x1xf32>
    %292 = vector.broadcast %287 : vector<1x32x1xf32> to vector<4x32x128xf32>
    %293 = arith.subf %277, %292 : vector<4x32x128xf32>
    %cst_127 = arith.constant 9.99999974E-6 : f32
    %294 = vector.broadcast %cst_127 : f32 to vector<1x32x1xf32>
    %295 = arith.addf %291, %294 : vector<1x32x1xf32>
    %296 = math.rsqrt %295 : vector<1x32x1xf32>
    %297 = vector.broadcast %296 : vector<1x32x1xf32> to vector<4x32x128xf32>
    %298 = arith.mulf %293, %297 : vector<4x32x128xf32>
    %299 = vector.shape_cast %29 : vector<32x1xf32> to vector<1x32x1xf32>
    %300 = vector.broadcast %299 : vector<1x32x1xf32> to vector<4x32x128xf32>
    %301 = arith.mulf %298, %300 : vector<4x32x128xf32>
    %302 = vector.shape_cast %30 : vector<32x1xf32> to vector<1x32x1xf32>
    %303 = vector.broadcast %302 : vector<1x32x1xf32> to vector<4x32x128xf32>
    %304 = arith.addf %301, %303 : vector<4x32x128xf32>
    %cst_128 = arith.constant 0.000000e+00 : f32
    %305 = vector.broadcast %cst_128 : f32 to vector<4x32x128xf32>
    %306 = arith.maximumf %304, %305 : vector<4x32x128xf32>
    %307 = tpu.iota {dimensions = array<i32: 0>} : vector<32x1xi32>
    %c16_i32_129 = arith.constant 16 : i32
    %c0_i32_130 = arith.constant 0 : i32
    %308 = arith.cmpi eq, %c16_i32_129, %c0_i32_130 : i32
    %c1_i32_131 = arith.constant 1 : i32
    %309 = arith.select %308, %c1_i32_131, %c16_i32_129 : i32
    %310 = vector.broadcast %309 : i32 to vector<32x1xi32>
    %311 = arith.remsi %307, %310 : vector<32x1xi32>
    %c0_i32_132 = arith.constant 0 : i32
    %312 = vector.broadcast %c0_i32_132 : i32 to vector<32x1xi32>
    %313 = arith.cmpi ne, %311, %312 : vector<32x1xi32>
    %c0_i32_133 = arith.constant 0 : i32
    %314 = vector.broadcast %c0_i32_133 : i32 to vector<32x1xi32>
    %315 = arith.cmpi slt, %311, %314 : vector<32x1xi32>
    %c0_i32_134 = arith.constant 0 : i32
    %316 = arith.cmpi slt, %309, %c0_i32_134 : i32
    %317 = vector.broadcast %316 : i1 to vector<32x1xi1>
    %318 = vector.broadcast %317 : vector<32x1xi1> to vector<32x1xi1>
    %319 = arith.xori %315, %318 : vector<32x1xi1>
    %320 = arith.andi %319, %313 : vector<32x1xi1>
    %321 = vector.broadcast %309 : i32 to vector<32x1xi32>
    %322 = arith.addi %311, %321 : vector<32x1xi32>
    %323 = arith.select %320, %322, %311 : vector<32x1xi1>, vector<32x1xi32>
    %c9_i32 = arith.constant 9 : i32
    %324 = vector.broadcast %c9_i32 : i32 to vector<32x1xi32>
    %325 = arith.cmpi slt, %323, %324 : vector<32x1xi32>
    %cst_135 = arith.constant 0.000000e+00 : f32
    %326 = vector.shape_cast %325 : vector<32x1xi1> to vector<1x32x1xi1>
    %327 = vector.broadcast %326 : vector<1x32x1xi1> to vector<4x32x128xi1>
    %328 = vector.broadcast %cst_135 : f32 to vector<4x32x128xf32>
    %329 = arith.select %327, %306, %328 : vector<4x32x128xi1>, vector<4x32x128xf32>
    %c0_136 = arith.constant 0 : index
    %c0_137 = arith.constant 0 : index
    %330 = vector.load %arg4[%c0_136, %c0_137] : memref<32x32xf32, #tpu.memory_space<vmem>>, vector<32x32xf32>
    %cst_138 = arith.constant 0.000000e+00 : f32
    %331 = vector.broadcast %cst_138 : f32 to vector<32x1xf32>
    %cst_139 = arith.constant 0.000000e+00 : f32
    %332 = vector.broadcast %cst_139 : f32 to vector<32x1xf32>
    %333 = vector.extract_strided_slice %329 {offsets = [0, 0, 0], sizes = [1, 32, 128], strides = [1, 1, 1]} : vector<4x32x128xf32> to vector<1x32x128xf32>
    %334 = vector.shape_cast %333 : vector<1x32x128xf32> to vector<32x128xf32>
    %cst_140 = arith.constant dense<0.000000e+00> : vector<32x128xf32>
    %335 = tpu.matmul %330, %334, %cst_140 {dimension_numbers = #tpu.dot_dimension_numbers<[1], [0], [0], [1], [0, 0, 1, 1], [], []>} : vector<32x32xf32>, vector<32x128xf32>, vector<32x128xf32> -> vector<32x128xf32>
    %336 = vector.broadcast %31 : vector<32x1xf32> to vector<32x128xf32>
    %337 = arith.addf %335, %336 : vector<32x128xf32>
    %338 = vector.broadcast %140 : vector<1x128xf32> to vector<32x128xf32>
    %339 = arith.mulf %337, %338 : vector<32x128xf32>
    %cst_141 = arith.constant dense<0.000000e+00> : vector<32xf32>
    %340 = vector.multi_reduction <add>, %339, %cst_141 [1] : vector<32x128xf32> to vector<32xf32>
    %341 = vector.shape_cast %340 : vector<32xf32> to vector<32x1xf32>
    %342 = arith.addf %331, %341 : vector<32x1xf32>
    %343 = arith.mulf %339, %337 : vector<32x128xf32>
    %cst_142 = arith.constant dense<0.000000e+00> : vector<32xf32>
    %344 = vector.multi_reduction <add>, %343, %cst_142 [1] : vector<32x128xf32> to vector<32xf32>
    %345 = vector.shape_cast %344 : vector<32xf32> to vector<32x1xf32>
    %346 = arith.addf %332, %345 : vector<32x1xf32>
    %347 = vector.extract_strided_slice %329 {offsets = [1, 0, 0], sizes = [1, 32, 128], strides = [1, 1, 1]} : vector<4x32x128xf32> to vector<1x32x128xf32>
    %348 = vector.shape_cast %347 : vector<1x32x128xf32> to vector<32x128xf32>
    %cst_143 = arith.constant dense<0.000000e+00> : vector<32x128xf32>
    %349 = tpu.matmul %330, %348, %cst_143 {dimension_numbers = #tpu.dot_dimension_numbers<[1], [0], [0], [1], [0, 0, 1, 1], [], []>} : vector<32x32xf32>, vector<32x128xf32>, vector<32x128xf32> -> vector<32x128xf32>
    %350 = vector.broadcast %31 : vector<32x1xf32> to vector<32x128xf32>
    %351 = arith.addf %349, %350 : vector<32x128xf32>
    %352 = vector.broadcast %140 : vector<1x128xf32> to vector<32x128xf32>
    %353 = arith.mulf %351, %352 : vector<32x128xf32>
    %cst_144 = arith.constant dense<0.000000e+00> : vector<32xf32>
    %354 = vector.multi_reduction <add>, %353, %cst_144 [1] : vector<32x128xf32> to vector<32xf32>
    %355 = vector.shape_cast %354 : vector<32xf32> to vector<32x1xf32>
    %356 = arith.addf %342, %355 : vector<32x1xf32>
    %357 = arith.mulf %353, %351 : vector<32x128xf32>
    %cst_145 = arith.constant dense<0.000000e+00> : vector<32xf32>
    %358 = vector.multi_reduction <add>, %357, %cst_145 [1] : vector<32x128xf32> to vector<32xf32>
    %359 = vector.shape_cast %358 : vector<32xf32> to vector<32x1xf32>
    %360 = arith.addf %346, %359 : vector<32x1xf32>
    %361 = vector.extract_strided_slice %329 {offsets = [2, 0, 0], sizes = [1, 32, 128], strides = [1, 1, 1]} : vector<4x32x128xf32> to vector<1x32x128xf32>
    %362 = vector.shape_cast %361 : vector<1x32x128xf32> to vector<32x128xf32>
    %cst_146 = arith.constant dense<0.000000e+00> : vector<32x128xf32>
    %363 = tpu.matmul %330, %362, %cst_146 {dimension_numbers = #tpu.dot_dimension_numbers<[1], [0], [0], [1], [0, 0, 1, 1], [], []>} : vector<32x32xf32>, vector<32x128xf32>, vector<32x128xf32> -> vector<32x128xf32>
    %364 = vector.broadcast %31 : vector<32x1xf32> to vector<32x128xf32>
    %365 = arith.addf %363, %364 : vector<32x128xf32>
    %366 = vector.broadcast %140 : vector<1x128xf32> to vector<32x128xf32>
    %367 = arith.mulf %365, %366 : vector<32x128xf32>
    %cst_147 = arith.constant dense<0.000000e+00> : vector<32xf32>
    %368 = vector.multi_reduction <add>, %367, %cst_147 [1] : vector<32x128xf32> to vector<32xf32>
    %369 = vector.shape_cast %368 : vector<32xf32> to vector<32x1xf32>
    %370 = arith.addf %356, %369 : vector<32x1xf32>
    %371 = arith.mulf %367, %365 : vector<32x128xf32>
    %cst_148 = arith.constant dense<0.000000e+00> : vector<32xf32>
    %372 = vector.multi_reduction <add>, %371, %cst_148 [1] : vector<32x128xf32> to vector<32xf32>
    %373 = vector.shape_cast %372 : vector<32xf32> to vector<32x1xf32>
    %374 = arith.addf %360, %373 : vector<32x1xf32>
    %375 = vector.extract_strided_slice %329 {offsets = [3, 0, 0], sizes = [1, 32, 128], strides = [1, 1, 1]} : vector<4x32x128xf32> to vector<1x32x128xf32>
    %376 = vector.shape_cast %375 : vector<1x32x128xf32> to vector<32x128xf32>
    %cst_149 = arith.constant dense<0.000000e+00> : vector<32x128xf32>
    %377 = tpu.matmul %330, %376, %cst_149 {dimension_numbers = #tpu.dot_dimension_numbers<[1], [0], [0], [1], [0, 0, 1, 1], [], []>} : vector<32x32xf32>, vector<32x128xf32>, vector<32x128xf32> -> vector<32x128xf32>
    %378 = vector.broadcast %31 : vector<32x1xf32> to vector<32x128xf32>
    %379 = arith.addf %377, %378 : vector<32x128xf32>
    %380 = vector.broadcast %140 : vector<1x128xf32> to vector<32x128xf32>
    %381 = arith.mulf %379, %380 : vector<32x128xf32>
    %cst_150 = arith.constant dense<0.000000e+00> : vector<32xf32>
    %382 = vector.multi_reduction <add>, %381, %cst_150 [1] : vector<32x128xf32> to vector<32xf32>
    %383 = vector.shape_cast %382 : vector<32xf32> to vector<32x1xf32>
    %384 = arith.addf %370, %383 : vector<32x1xf32>
    %385 = arith.mulf %381, %379 : vector<32x128xf32>
    %cst_151 = arith.constant dense<0.000000e+00> : vector<32xf32>
    %386 = vector.multi_reduction <add>, %385, %cst_151 [1] : vector<32x128xf32> to vector<32xf32>
    %387 = vector.shape_cast %386 : vector<32xf32> to vector<32x1xf32>
    %388 = arith.addf %374, %387 : vector<32x1xf32>
    %cst_152 = arith.constant 3.906250e-03 : f32
    %389 = vector.broadcast %cst_152 : f32 to vector<32x1xf32>
    %390 = arith.mulf %384, %389 : vector<32x1xf32>
    %cst_153 = arith.constant 3.906250e-03 : f32
    %391 = vector.broadcast %cst_153 : f32 to vector<32x1xf32>
    %392 = arith.mulf %388, %391 : vector<32x1xf32>
    %393 = arith.mulf %390, %390 : vector<32x1xf32>
    %394 = arith.subf %392, %393 : vector<32x1xf32>
    %cst_154 = arith.constant 9.99999974E-6 : f32
    %395 = vector.broadcast %cst_154 : f32 to vector<32x1xf32>
    %396 = arith.addf %394, %395 : vector<32x1xf32>
    %397 = math.rsqrt %396 : vector<32x1xf32>
    %398 = arith.mulf %397, %32 : vector<32x1xf32>
    %399 = vector.broadcast %390 : vector<32x1xf32> to vector<32x128xf32>
    %400 = arith.subf %337, %399 : vector<32x128xf32>
    %401 = vector.broadcast %398 : vector<32x1xf32> to vector<32x128xf32>
    %402 = arith.mulf %400, %401 : vector<32x128xf32>
    %403 = vector.broadcast %33 : vector<32x1xf32> to vector<32x128xf32>
    %404 = arith.addf %402, %403 : vector<32x128xf32>
    %cst_155 = arith.constant 0.000000e+00 : f32
    %405 = vector.broadcast %cst_155 : f32 to vector<32x128xf32>
    %406 = arith.maximumf %404, %405 : vector<32x128xf32>
    %407 = vector.extract_strided_slice %406 {offsets = [0, 0], sizes = [9, 128], strides = [1, 1]} : vector<32x128xf32> to vector<9x128xf32>
    %c0_156 = arith.constant 0 : index
    %c0_157 = arith.constant 0 : index
    %c0_158 = arith.constant 0 : index
    %408 = vector.load %arg5[%c0_156, %c0_157, %c0_158] : memref<2x9x512xf32, #tpu.memory_space<vmem>>, vector<1x9x128xf32>
    %409 = vector.shape_cast %408 : vector<1x9x128xf32> to vector<9x128xf32>
    %410 = vector.shape_cast %407 : vector<9x128xf32> to vector<1x9x128xf32>
    tpu.vector_store %arg5[%c0_156, %c0_157, %c0_158], %410 {strides = array<i32>} : memref<2x9x512xf32, #tpu.memory_space<vmem>>, vector<1x9x128xf32>,
    %411 = vector.extract_strided_slice %406 {offsets = [16, 0], sizes = [9, 128], strides = [1, 1]} : vector<32x128xf32> to vector<9x128xf32>
    %c1_159 = arith.constant 1 : index
    %c0_160 = arith.constant 0 : index
    %c0_161 = arith.constant 0 : index
    %412 = vector.load %arg5[%c1_159, %c0_160, %c0_161] : memref<2x9x512xf32, #tpu.memory_space<vmem>>, vector<1x9x128xf32>
    %413 = vector.shape_cast %412 : vector<1x9x128xf32> to vector<9x128xf32>
    %414 = vector.shape_cast %411 : vector<9x128xf32> to vector<1x9x128xf32>
    tpu.vector_store %arg5[%c1_159, %c0_160, %c0_161], %414 {strides = array<i32>} : memref<2x9x512xf32, #tpu.memory_space<vmem>>, vector<1x9x128xf32>,
    %415 = vector.broadcast %390 : vector<32x1xf32> to vector<32x128xf32>
    %416 = arith.subf %351, %415 : vector<32x128xf32>
    %417 = vector.broadcast %398 : vector<32x1xf32> to vector<32x128xf32>
    %418 = arith.mulf %416, %417 : vector<32x128xf32>
    %419 = vector.broadcast %33 : vector<32x1xf32> to vector<32x128xf32>
    %420 = arith.addf %418, %419 : vector<32x128xf32>
    %cst_162 = arith.constant 0.000000e+00 : f32
    %421 = vector.broadcast %cst_162 : f32 to vector<32x128xf32>
    %422 = arith.maximumf %420, %421 : vector<32x128xf32>
    %423 = vector.extract_strided_slice %422 {offsets = [0, 0], sizes = [9, 128], strides = [1, 1]} : vector<32x128xf32> to vector<9x128xf32>
    %c0_163 = arith.constant 0 : index
    %c0_164 = arith.constant 0 : index
    %c128 = arith.constant 128 : index
    %424 = vector.load %arg5[%c0_163, %c0_164, %c128] : memref<2x9x512xf32, #tpu.memory_space<vmem>>, vector<1x9x128xf32>
    %425 = vector.shape_cast %424 : vector<1x9x128xf32> to vector<9x128xf32>
    %426 = vector.shape_cast %423 : vector<9x128xf32> to vector<1x9x128xf32>
    tpu.vector_store %arg5[%c0_163, %c0_164, %c128], %426 {strides = array<i32>} : memref<2x9x512xf32, #tpu.memory_space<vmem>>, vector<1x9x128xf32>,
    %427 = vector.extract_strided_slice %422 {offsets = [16, 0], sizes = [9, 128], strides = [1, 1]} : vector<32x128xf32> to vector<9x128xf32>
    %c1_165 = arith.constant 1 : index
    %c0_166 = arith.constant 0 : index
    %c128_167 = arith.constant 128 : index
    %428 = vector.load %arg5[%c1_165, %c0_166, %c128_167] : memref<2x9x512xf32, #tpu.memory_space<vmem>>, vector<1x9x128xf32>
    %429 = vector.shape_cast %428 : vector<1x9x128xf32> to vector<9x128xf32>
    %430 = vector.shape_cast %427 : vector<9x128xf32> to vector<1x9x128xf32>
    tpu.vector_store %arg5[%c1_165, %c0_166, %c128_167], %430 {strides = array<i32>} : memref<2x9x512xf32, #tpu.memory_space<vmem>>, vector<1x9x128xf32>,
    %431 = vector.broadcast %390 : vector<32x1xf32> to vector<32x128xf32>
    %432 = arith.subf %365, %431 : vector<32x128xf32>
    %433 = vector.broadcast %398 : vector<32x1xf32> to vector<32x128xf32>
    %434 = arith.mulf %432, %433 : vector<32x128xf32>
    %435 = vector.broadcast %33 : vector<32x1xf32> to vector<32x128xf32>
    %436 = arith.addf %434, %435 : vector<32x128xf32>
    %cst_168 = arith.constant 0.000000e+00 : f32
    %437 = vector.broadcast %cst_168 : f32 to vector<32x128xf32>
    %438 = arith.maximumf %436, %437 : vector<32x128xf32>
    %439 = vector.extract_strided_slice %438 {offsets = [0, 0], sizes = [9, 128], strides = [1, 1]} : vector<32x128xf32> to vector<9x128xf32>
    %c0_169 = arith.constant 0 : index
    %c0_170 = arith.constant 0 : index
    %c256 = arith.constant 256 : index
    %440 = vector.load %arg5[%c0_169, %c0_170, %c256] : memref<2x9x512xf32, #tpu.memory_space<vmem>>, vector<1x9x128xf32>
    %441 = vector.shape_cast %440 : vector<1x9x128xf32> to vector<9x128xf32>
    %442 = vector.shape_cast %439 : vector<9x128xf32> to vector<1x9x128xf32>
    tpu.vector_store %arg5[%c0_169, %c0_170, %c256], %442 {strides = array<i32>} : memref<2x9x512xf32, #tpu.memory_space<vmem>>, vector<1x9x128xf32>,
    %443 = vector.extract_strided_slice %438 {offsets = [16, 0], sizes = [9, 128], strides = [1, 1]} : vector<32x128xf32> to vector<9x128xf32>
    %c1_171 = arith.constant 1 : index
    %c0_172 = arith.constant 0 : index
    %c256_173 = arith.constant 256 : index
    %444 = vector.load %arg5[%c1_171, %c0_172, %c256_173] : memref<2x9x512xf32, #tpu.memory_space<vmem>>, vector<1x9x128xf32>
    %445 = vector.shape_cast %444 : vector<1x9x128xf32> to vector<9x128xf32>
    %446 = vector.shape_cast %443 : vector<9x128xf32> to vector<1x9x128xf32>
    tpu.vector_store %arg5[%c1_171, %c0_172, %c256_173], %446 {strides = array<i32>} : memref<2x9x512xf32, #tpu.memory_space<vmem>>, vector<1x9x128xf32>,
    %447 = vector.broadcast %390 : vector<32x1xf32> to vector<32x128xf32>
    %448 = arith.subf %379, %447 : vector<32x128xf32>
    %449 = vector.broadcast %398 : vector<32x1xf32> to vector<32x128xf32>
    %450 = arith.mulf %448, %449 : vector<32x128xf32>
    %451 = vector.broadcast %33 : vector<32x1xf32> to vector<32x128xf32>
    %452 = arith.addf %450, %451 : vector<32x128xf32>
    %cst_174 = arith.constant 0.000000e+00 : f32
    %453 = vector.broadcast %cst_174 : f32 to vector<32x128xf32>
    %454 = arith.maximumf %452, %453 : vector<32x128xf32>
    %455 = vector.extract_strided_slice %454 {offsets = [0, 0], sizes = [9, 128], strides = [1, 1]} : vector<32x128xf32> to vector<9x128xf32>
    %c0_175 = arith.constant 0 : index
    %c0_176 = arith.constant 0 : index
    %c384 = arith.constant 384 : index
    %456 = vector.load %arg5[%c0_175, %c0_176, %c384] : memref<2x9x512xf32, #tpu.memory_space<vmem>>, vector<1x9x128xf32>
    %457 = vector.shape_cast %456 : vector<1x9x128xf32> to vector<9x128xf32>
    %458 = vector.shape_cast %455 : vector<9x128xf32> to vector<1x9x128xf32>
    tpu.vector_store %arg5[%c0_175, %c0_176, %c384], %458 {strides = array<i32>} : memref<2x9x512xf32, #tpu.memory_space<vmem>>, vector<1x9x128xf32>,
    %459 = vector.extract_strided_slice %454 {offsets = [16, 0], sizes = [9, 128], strides = [1, 1]} : vector<32x128xf32> to vector<9x128xf32>
    %c1_177 = arith.constant 1 : index
    %c0_178 = arith.constant 0 : index
    %c384_179 = arith.constant 384 : index
    %460 = vector.load %arg5[%c1_177, %c0_178, %c384_179] : memref<2x9x512xf32, #tpu.memory_space<vmem>>, vector<1x9x128xf32>
    %461 = vector.shape_cast %460 : vector<1x9x128xf32> to vector<9x128xf32>
    %462 = vector.shape_cast %459 : vector<9x128xf32> to vector<1x9x128xf32>
    tpu.vector_store %arg5[%c1_177, %c0_178, %c384_179], %462 {strides = array<i32>} : memref<2x9x512xf32, #tpu.memory_space<vmem>>, vector<1x9x128xf32>,
    return
  }
  func.func @transform_0(%arg0: i32) -> (i32, i32, i32, i32) {
    %c0_i32 = arith.constant 0 : i32
    %c0_i32_0 = arith.constant 0 : i32
    %c0_i32_1 = arith.constant 0 : i32
    %c0_i32_2 = arith.constant 0 : i32
    return %arg0, %c0_i32, %c0_i32_0, %c0_i32_1 : i32, i32, i32, i32
  }
  func.func @transform_1(%arg0: i32) -> (i32, i32) {
    %c0_i32 = arith.constant 0 : i32
    %c0_i32_0 = arith.constant 0 : i32
    %c0_i32_1 = arith.constant 0 : i32
    return %c0_i32, %c0_i32_0 : i32, i32
  }
  func.func @transform_2(%arg0: i32) -> (i32, i32) {
    %c0_i32 = arith.constant 0 : i32
    %c0_i32_0 = arith.constant 0 : i32
    %c0_i32_1 = arith.constant 0 : i32
    return %c0_i32, %c0_i32_0 : i32, i32
  }
  func.func @transform_3(%arg0: i32) -> (i32, i32) {
    %c0_i32 = arith.constant 0 : i32
    %c0_i32_0 = arith.constant 0 : i32
    %c0_i32_1 = arith.constant 0 : i32
    return %c0_i32, %c0_i32_0 : i32, i32
  }
  func.func @transform_4(%arg0: i32) -> (i32, i32, i32) {
    %c0_i32 = arith.constant 0 : i32
    %c0_i32_0 = arith.constant 0 : i32
    %c0_i32_1 = arith.constant 0 : i32
    return %arg0, %c0_i32, %c0_i32_0 : i32, i32, i32
  }
}

</mosaic_0001>

<bundles_post_ra>
// kernel: tpu_custom_call.1
= control target key start
LH: loop header
LB: loop body
LE: loop exit
PB: predicated region body
PF: predicated region fallthrough
CT: control target
= control target key end

     0   :  { %v7233_v0 = vmov 0   ;;  %v14076_v4 = vmov 0.0   ;;  %vm22_vm0 = vcmask 261120   ;;  %s7235_s17 = smov 127   ;;  %v7236_v20 = vmov 1   ;;  %s7237_s19 = smov 126   ;;  %s14070_s1 = inlined_call_operand.vmem [shape: f32[256,160], index: 1, kind: input, shape index: {}]   ;;  %s14071_s2 = inlined_call_operand.vmem [shape: f32[32,128], index: 2, kind: input, shape index: {}]   ;;  %s14072_s0 = inlined_call_operand.vmem [shape: f32[2,9,8,256], index: 0, kind: input, shape index: {}]   ;;  %s14073_s3 = inlined_call_operand.vmem [shape: f32[32,32], index: 3, kind: input, shape index: {}]   ;;  %s14074_s4 = inlined_call_operand.vmem [shape: f32[2,9,512], index: 4, kind: output, shape index: {}]  }
   0x1   :  { %6918 = vset.pattern.permute.xlu1 %v7233_v0  ;;  %v7300_v1 = vld [vmem:[%s14070_s1 + $0xf8] sm:$0xff]  ;;  %v7305_v2 = vld [vmem:[%s14071_s2 + $0x10] sm:$0xff]  ;;  %6917 = vset.pattern.permute.xlu0 %v7233_v0  ;;  %26 = vst [vmem:[#allocation2 + $0x20] sm:$0xff] %v14076_v4  ;;  %v7318_v5 = vld [vmem:[%s14070_s1 + $0xe8] sm:$0xff]  ;;  %v7238_v33 = vmov 2   ;;  %v14075_v44 = vlaneseq  ;;  %v7239_v47 = vmov 3  }
   0x2   :  { %v7310_v3 = vld [vmem:[%s14070_s1 + $0xf0] sm:$0xff]  ;;  %293 = vmatprep.subr.mxu0 %v7300_v1  ;;  %477 = vmatprep.subr.mxu1 %v7300_v1  ;;  %v7323_v6 = vld [vmem:[%s14070_s1 + $0xe0] sm:$0xff]  ;;  %v7330_v7 = vld [vmem:[%s14070_s1 + $0xd8] sm:$0xff]  ;;  %25 = vst.msk [vmem:[#allocation2 + $0x18] sm:$0xff] %vm22_vm0, %v14076_v4  ;;  %s7241_s16 = smov 112   ;;  %vm2436_vm1 = vcmask 916480  }
   0x3   :  { %2076 = vperm.xlu1 %6918, %v7305_v2   ;;  %294 = vmatpush1.msra.mxu0 %v7310_v3  ;;  %23 = vst.msk [vmem:[#allocation2 + $0x8] sm:$0xff] %vm22_vm0, %v14076_v4  ;;  %27 = vst.msk [vmem:[#allocation2 + $0x28] sm:$0xff] %vm22_vm0, %v14076_v4  ;;  %v7353_v8 = vld [vmem:[%s14071_s2 + $0x18] sm:$0xff]  ;;  %v7360_v9 = vld [vmem:[%s14070_s1 + $0xd0] sm:$0xff]  ;;  %v7634_v51 = vshrl.u32 %v14075_v44, 7  ;;  %vm374_vm2 = vcmask 253952  }
   0x4   :  { %29 = vst.msk [vmem:[#allocation2 + $0x38] sm:$0xff] %vm22_vm0, %v14076_v4  ;;  %32 = vst.msk [vmem:[#allocation2 + $0x148] sm:$0xff] %vm22_vm0, %v14076_v4  ;;  %478 = vmatpush1.msra.mxu1 %v7310_v3  ;;  %295 = vmatprep.subr.mxu0 %v7318_v5  ;;  %v7367_v10 = vld [vmem:[%s14070_s1 + $0xc8] sm:$0xff]  ;;  %v7374_v11 = vld [vmem:[%s14070_s1 + $0xc0] sm:$0xff]  ;;  %vm2917_vm3 = vcmask 785408  }
   0x5   :  { %34 = vst.msk [vmem:[#allocation2 + $0x158] sm:$0xff] %vm22_vm0, %v14076_v4  ;;  %36 = vst.msk [vmem:[#allocation2 + $0x168] sm:$0xff] %vm22_vm0, %v14076_v4  ;;  %479 = vmatprep.subr.mxu1 %v7318_v5  ;;  %296 = vmatpush1.msra.mxu0 %v7323_v6  ;;  %v7381_v12 = vld [vmem:[%s14070_s1 + $0xb8] sm:$0xff]  ;;  %v7388_v13 = vld [vmem:[%s14071_s2] sm:$0xff] }
   0x6   :  { %38 = vst.msk [vmem:[#allocation2 + $0x178] sm:$0xff] %vm22_vm0, %v14076_v4  ;;  %480 = vmatpush1.msra.mxu1 %v7323_v6  ;;  %297 = vmatprep.subr.mxu0 %v7330_v7  ;;  %v7395_v14 = vld [vmem:[%s14070_s1 + $0xb0] sm:$0xff]  ;;  %v7402_v15 = vld [vmem:[%s14070_s1 + $0xa8] sm:$0xff]  ;;  %v7410_v16 = vld [vmem:[%s14070_s1 + $0xa0] sm:$0xff] }
   0x7   :  { %481 = vmatprep.subr.mxu1 %v7330_v7  ;;  %2081 = vperm.xlu1 %6918, %v7353_v8   ;;  %v7417_v17 = vld [vmem:[%s14070_s1 + $0x98] sm:$0xff]  ;;  %v7426_v18 = vld [vmem:[%s14071_s2 + $0x8] sm:$0xff]  ;;  %v7431_v19 = vld [vmem:[%s14070_s1 + $0x90] sm:$0xff]  ;;  %14307 = vst [vmem:[#allocation25_spill] sm:$0xff] %v7634_v51 }
   0x8   :  { %298 = vmatpush1.msra.mxu0 %v7360_v9  ;;  %482 = vmatpush1.msra.mxu1 %v7360_v9  ;;  %v7437_v21 = vld [vmem:[%s14070_s1 + $0x88] sm:$0xff]  ;;  %v7444_v22 = vld [vmem:[%s14070_s1 + $0x80] sm:$0xff]  ;;  %v7451_v23 = vld [vmem:[%s14070_s1 + $0x78] sm:$0xff] }
   0x9   :  { %299 = vmatprep.subr.mxu0 %v7367_v10  ;;  %483 = vmatprep.subr.mxu1 %v7367_v10  ;;  %v7460_v24 = vld [vmem:[%s14070_s1 + $0x70] sm:$0xff]  ;;  %v7467_v25 = vld [vmem:[%s14070_s1 + $0x68] sm:$0xff]  ;;  %v7474_v26 = vld [vmem:[%s14070_s1 + $0x60] sm:$0xff] }
   0xa   :  { %300 = vmatpush1.msra.mxu0 %v7374_v11  ;;  %484 = vmatpush1.msra.mxu1 %v7374_v11  ;;  %14285 = vst [vmem:[#allocation3_spill] sm:$0xff] %v7474_v26  ;;  %v7484_v27 = vld [vmem:[%s14070_s1 + $0x58] sm:$0xff]  ;;  %v7492_v28 = vld [vmem:[%s14070_s1 + $0x50] sm:$0xff]  ;;  %v7499_v29 = vld [vmem:[%s14070_s1 + $0x48] sm:$0xff] }
   0xb   :  { %301 = vmatprep.subr.mxu0 %v7381_v12  ;;  %485 = vmatprep.subr.mxu1 %v7381_v12  ;;  %14286 = vst [vmem:[#allocation4_spill] sm:$0xff] %v7484_v27  ;;  %14287 = vst [vmem:[#allocation5_spill] sm:$0xff] %v7492_v28  ;;  %v7507_v30 = vld [vmem:[%s14070_s1 + $0x40] sm:$0xff]  ;;  %v7514_v31 = vld [vmem:[%s14070_s1 + $0x38] sm:$0xff] }
   0xc   :  { %6926 = vrot.lane.b32.xlu1 %v14076_v4, %s7235_s17  ;;  %2066 = vperm.xlu0 %6917, %v7388_v13   ;;  %14288 = vst [vmem:[#allocation6_spill] sm:$0xff] %v7499_v29  ;;  %14289 = vst [vmem:[#allocation7_spill] sm:$0xff] %v7507_v30  ;;  %v7523_v32 = vld [vmem:[%s14070_s1 + $0x30] sm:$0xff]  ;;  %v7529_v34 = vld [vmem:[%s14070_s1 + $0x28] sm:$0xff] }
   0xd   :  { %302 = vmatpush1.msra.mxu0 %v7395_v14  ;;  %486 = vmatpush1.msra.mxu1 %v7395_v14  ;;  %14290 = vst [vmem:[#allocation8_spill] sm:$0xff] %v7514_v31  ;;  %14291 = vst [vmem:[#allocation9_spill] sm:$0xff] %v7523_v32  ;;  %v7536_v35 = vld [vmem:[%s14070_s1 + $0x20] sm:$0xff]  ;;  %v7543_v36 = vld [vmem:[%s14070_s1 + $0x18] sm:$0xff] }
   0xe   :  { %303 = vmatprep.subr.mxu0 %v7402_v15  ;;  %487 = vmatprep.subr.mxu1 %v7402_v15  ;;  %14292 = vst [vmem:[#allocation10_spill] sm:$0xff] %v7529_v34  ;;  %14293 = vst [vmem:[#allocation11_spill] sm:$0xff] %v7536_v35  ;;  %v7552_v37 = vld [vmem:[%s14070_s1 + $0x10] sm:$0xff]  ;;  %v7559_v38 = vld [vmem:[%s14070_s1 + $0x8] sm:$0xff] }
   0xf   :  { %304 = vmatpush1.msra.mxu0 %v7410_v16  ;;  %488 = vmatpush1.msra.mxu1 %v7410_v16  ;;  %14294 = vst [vmem:[#allocation12_spill] sm:$0xff] %v7543_v36  ;;  %14295 = vst [vmem:[#allocation13_spill] sm:$0xff] %v7552_v37  ;;  %v7566_v39 = vld [vmem:[%s14070_s1] sm:$0xff]  ;;  %v7576_v40 = vld [vmem:[%s14070_s1 + $0x1f8] sm:$0xff] }
  0x10   :  { %6930 = vset.pattern.permute.xlu1 %v7236_v20  ;;  %305 = vmatprep.subr.mxu0 %v7417_v17  ;;  %14296 = vst [vmem:[#allocation14_spill] sm:$0xff] %v7559_v38  ;;  %14297 = vst [vmem:[#allocation15_spill] sm:$0xff] %v7566_v39  ;;  %v7584_v41 = vld [vmem:[%s14070_s1 + $0x1f0] sm:$0xff]  ;;  %v7591_v42 = vld [vmem:[%s14070_s1 + $0x1e8] sm:$0xff] }
  0x11   :  { %489 = vmatprep.subr.mxu1 %v7417_v17  ;;  %2137 = vperm.xlu1 %6930, %v7426_v18   ;;  %14298 = vst [vmem:[#allocation16_spill] sm:$0xff] %v7576_v40  ;;  %14299 = vst [vmem:[#allocation17_spill] sm:$0xff] %v7584_v41  ;;  %v7598_v43 = vld [vmem:[%s14070_s1 + $0x1e0] sm:$0xff]  ;;  %v7605_v45 = vld [vmem:[%s14070_s1 + $0x1d8] sm:$0xff] }
  0x12   :  { %2071 = vperm.xlu0 %6917, %v7426_v18   ;;  %306 = vmatpush1.msra.mxu0 %v7431_v19  ;;  %14300 = vst [vmem:[#allocation18_spill] sm:$0xff] %v7591_v42  ;;  %14301 = vst [vmem:[#allocation19_spill] sm:$0xff] %v7598_v43  ;;  %v7614_v46 = vld [vmem:[%s14070_s1 + $0x1d0] sm:$0xff]  ;;  %v7621_v48 = vld [vmem:[%s14070_s1 + $0x1c8] sm:$0xff] }
  0x13   :  { %490 = vmatpush1.msra.mxu1 %v7431_v19  ;;  %307 = vmatprep.subr.mxu0 %v7437_v21  ;;  %14302 = vst [vmem:[#allocation20_spill] sm:$0xff] %v7605_v45  ;;  %14303 = vst [vmem:[#allocation21_spill] sm:$0xff] %v7614_v46  ;;  %v7626_v49 = vld [vmem:[%s14070_s1 + $0x1c0] sm:$0xff]  ;;  %v7631_v50 = vld [vmem:[%s14070_s1 + $0x1b8] sm:$0xff] }
  0x14   :  { %491 = vmatprep.subr.mxu1 %v7437_v21  ;;  %308 = vmatpush1.msra.mxu0 %v7444_v22  ;;  %14304 = vst [vmem:[#allocation22_spill] sm:$0xff] %v7621_v48  ;;  %14305 = vst [vmem:[#allocation23_spill] sm:$0xff] %v7626_v49  ;;  %v7641_v52 = vld [vmem:[%s14070_s1 + $0x1b0] sm:$0xff]  ;;  %v103_v53 = vld [vmem:[%s14072_s0] ss:$8 sm:$0x3] }
  0x15   :  { %492 = vmatpush1.msra.mxu1 %v7444_v22  ;;  %309 = vmatprep.subr.mxu0 %v7451_v23  ;;  %14306 = vst [vmem:[#allocation24_spill] sm:$0xff] %v7631_v50  ;;  %14308 = vst [vmem:[#allocation26_spill] sm:$0xff] %v7641_v52  ;;  %v6577_v54 = vld [vmem:[%s14072_s0 + $0x1] ss:$8 sm:$0x3] }
  0x16   :  { %493 = vmatprep.subr.mxu1 %v7451_v23  ;;  %2141 = vperm.xlu1 %6930, %v7305_v2   ;;  %v6560_v55 = vld [vmem:[%s14072_s0 + $0x10] ss:$8 sm:$0x3]  ;;  %v6561_v56 = vld [vmem:[%s14072_s0 + $0x20] ss:$8 sm:$0x3] }
  0x17   :  { %6920 = vrot.lane.b32.xlu0 %v14076_v4, %s7235_s17  ;;  %310 = vmatpush1.msra.mxu0 %v7460_v24  ;;  %v6562_v57 = vld [vmem:[%s14072_s0 + $0x30] ss:$8 sm:$0x3]  ;;  %v6578_v58 = vld [vmem:[%s14072_s0 + $0x11] ss:$8 sm:$0x3] }
  0x18   :  { %494 = vmatpush1.msra.mxu1 %v7460_v24  ;;  %311 = vmatprep.subr.mxu0 %v7467_v25  ;;  %v6579_v59 = vld [vmem:[%s14072_s0 + $0x21] ss:$8 sm:$0x3]  ;;  %v6580_v60 = vld [vmem:[%s14072_s0 + $0x31] ss:$8 sm:$0x3] }
  0x19   :  { %495 = vmatprep.subr.mxu1 %v7467_v25  ;;  %312 = vmatpush1.msra.mxu0 %v7474_v26  ;;  %v7674_v61 = vld [vmem:[%s14070_s1 + $0x1a8] sm:$0xff]  ;;  %v6564_v63 = vld [vmem:[%s14072_s0 + $0x50] ss:$8 sm:$0x3]  ;;  %v7699_v44 = vld [vmem:[%s14070_s1 + $0x1a0] sm:$0xff] }
  0x1a   :  { %496 = vmatpush1.msra.mxu1 %v7474_v26  ;;  %6924 = vset.pattern.permute.xlu0 %v7236_v20  ;;  %v6563_v62 = vld [vmem:[%s14072_s0 + $0x40] ss:$8 sm:$0x3]  ;;  %v6581_v20 = vld [vmem:[%s14072_s0 + $0x41] ss:$8 sm:$0x3] }
  0x1b   :  { %313 = vmatprep.subr.mxu0 %v7484_v27  ;;  %497 = vmatprep.subr.mxu1 %v7484_v27  ;;  %v6565_v0 = vld [vmem:[%s14072_s0 + $0x60] ss:$8 sm:$0x3] }
  0x1c   :  { %6932 = vrot.lane.b32.xlu1 %v14076_v4, %s7237_s19  ;;  %2133 = vperm.xlu0 %6924, %v7388_v13  }
  0x1d   :  { %314 = vmatpush1.msra.mxu0 %v7492_v28  ;;  %498 = vmatpush1.msra.mxu1 %v7492_v28  ;;  %v178_v28 = vadd.f32 %v6581_v20, %v6563_v62 }
  0x1e   :  { %315 = vmatprep.subr.mxu0 %v7499_v29  ;;  %499 = vmatprep.subr.mxu1 %v7499_v29  ;;  %v6591_v29 = vld [vmem:[%s14072_s0 + $0xe1] ss:$8 sm:$0x3] }
  0x1f   :  { %316 = vmatpush1.msra.mxu0 %v7507_v30  ;;  %500 = vmatpush1.msra.mxu1 %v7507_v30  ;;  %v6590_v30 = vld [vmem:[%s14072_s0 + $0xd1] ss:$8 sm:$0x3] }
  0x20   :  { %6941 = vset.pattern.permute.xlu1 %v7238_v33  ;;  %317 = vmatprep.subr.mxu0 %v7514_v31 }
  0x21   :  { %501 = vmatprep.subr.mxu1 %v7514_v31  ;;  %2213 = vperm.xlu1 %6941, %v7388_v13   ;;  %v177_v31 = vadd.f32 %v6580_v60, %v6562_v57  ;;  %v7780_v57 = vld [vmem:[%s14070_s1 + $0x188] sm:$0xff] }
  0x22   :  { %2145 = vperm.xlu0 %6924, %v7353_v8   ;;  %318 = vmatpush1.msra.mxu0 %v7523_v32 }
  0x23   :  { %502 = vmatpush1.msra.mxu1 %v7523_v32  ;;  %319 = vmatprep.subr.mxu0 %v7529_v34  ;;  %v176_v32 = vadd.f32 %v6579_v59, %v6561_v56  ;;  %v6593_v56 = vld [vmem:[%s14072_s0 + $0x101] ss:$8 sm:$0x3] }
  0x24   :  { %503 = vmatprep.subr.mxu1 %v7529_v34  ;;  %320 = vmatpush1.msra.mxu0 %v7536_v35  ;;  %v6575_v34 = vld [vmem:[%s14072_s0 + $0x100] ss:$8 sm:$0x3] }
  0x25   :  { %504 = vmatpush1.msra.mxu1 %v7536_v35  ;;  %321 = vmatprep.subr.mxu0 %v7543_v36  ;;  %v6574_v35 = vld [vmem:[%s14072_s0 + $0xf0] ss:$8 sm:$0x3] }
  0x26   :  { %505 = vmatprep.subr.mxu1 %v7543_v36  ;;  %2221 = vperm.xlu1 %6941, %v7305_v2   ;;  %v6573_v36 = vld [vmem:[%s14072_s0 + $0xe0] ss:$8 sm:$0x3] }
  0x27   :  { %6937 = vrot.lane.b32.xlu0 %v14076_v4, %s7237_s19  ;;  %322 = vmatpush1.msra.mxu0 %v7552_v37  ;;  %v6566_v4 = vld [vmem:[%s14072_s0 + $0x70] ss:$8 sm:$0x3] }
  0x28   :  { %506 = vmatpush1.msra.mxu1 %v7552_v37  ;;  %323 = vmatprep.subr.mxu0 %v7559_v38  ;;  %v7742_v37 = vadd.f32 %v6577_v54, %v103_v53  ;;  %v6589_v53 = vld [vmem:[%s14072_s0 + $0xc1] ss:$8 sm:$0x3]  ;;  %v175_v54 = vadd.f32 %v6578_v58, %v6560_v55  ;;  %v6592_v55 = vld [vmem:[%s14072_s0 + $0xf1] ss:$8 sm:$0x3] }
  0x29   :  { %507 = vmatprep.subr.mxu1 %v7559_v38  ;;  %324 = vmatpush1.msra.mxu0 %v7566_v39  ;;  %v7740_v38 = vld [vmem:[%s14070_s1 + $0x190] sm:$0xff] }
  0x2a   :  { %508 = vmatpush1.msra.mxu1 %v7566_v39  ;;  %6942 = vset.pattern.permute.xlu0 %v7238_v33  ;;  %v6582_v33 = vld [vmem:[%s14072_s0 + $0x51] ss:$8 sm:$0x3]  ;;  %v6572_v39 = vld [vmem:[%s14072_s0 + $0xd0] ss:$8 sm:$0x3] }
  0x2b   :  { %325 = vmatprep.subr.mxu0 %v7576_v40  ;;  %509 = vmatprep.subr.mxu1 %v7576_v40  ;;  %v6571_v40 = vld [vmem:[%s14072_s0 + $0xc0] ss:$8 sm:$0x3]  ;;  %v179_v27 = vadd.f32 %v6582_v33, %v6564_v63  ;;  %v187_v33 = vadd.f32 %v6590_v30, %v6572_v39  ;;  %v7801_v30 = vld [vmem:[%s14070_s1 + $0x170] sm:$0xff]  ;;  %v14309_v39 = vmov 0.0  }
  0x2c   :  { %2225 = vperm.xlu1 %6941, %v7353_v8   ;;  %2217 = vperm.xlu0 %6942, %v7426_v18   ;;  %v7787_v63 = vld [vmem:[%s14070_s1 + $0x180] sm:$0xff]  ;;  %v186_v20 = vadd.f32 %v6589_v53, %v6571_v40  ;;  %v2263_v40 = vld [vmem:[#allocation2 + $0x18] sm:$0xff]  ;;  %v2265_v53 = vld [vmem:[#allocation2 + $0x28] sm:$0xff] }
  0x2d   :  { %326 = vmatpush2.msra.mxu0 %v7584_v41  ;;  %510 = vmatpush2.msra.mxu1 %v7584_v41  ;;  %v6570_v41 = vld [vmem:[%s14072_s0 + $0xb0] ss:$8 sm:$0x3] }
  0x2e   :  { %327 = vmatprep.subr.mxu0 %v7591_v42  ;;  %511 = vmatprep.subr.mxu1 %v7591_v42 }
  0x2f   :  { %328 = vmatpush2.msra.mxu0 %v7598_v43  ;;  %512 = vmatpush2.msra.mxu1 %v7598_v43  ;;  %v7240_v43 = vmov 1966171168  }
  0x30   :  { %329 = vmatprep.subr.mxu0 %v7605_v45  ;;  %513 = vmatprep.subr.mxu1 %v7605_v45  ;;  %v7718_v45 = vld [vmem:[%s14070_s1 + $0x198] sm:$0xff]  ;;  %v206_v42 = vunpack.c.l.s4 %v7240_v43  ;;  %v6587_v43 = vld [vmem:[%s14072_s0 + $0xa1] ss:$8 sm:$0x3] }
  0x31   :  { %6944 = vset.pattern.permute.xlu1 %v7239_v47  ;;  %6943 = vset.pattern.permute.xlu0 %v7239_v47  ;;  %v6583_v47 = vld [vmem:[%s14072_s0 + $0x61] ss:$8 sm:$0x3] }
  0x32   :  { %330 = vmatpush2.msra.mxu0 %v7614_v46  ;;  %514 = vmatpush2.msra.mxu1 %v7614_v46  ;;  %v6568_v46 = vld [vmem:[%s14072_s0 + $0x90] ss:$8 sm:$0x3]  ;;  %v180_v26 = vadd.f32 %v6583_v47, %v6565_v0  ;;  %v207_v59 = vunpack.c.0.s8 %v206_v42  ;;  %v188_v42 = vadd.f32 %v6591_v29, %v6573_v36  ;;  %v7809_v29 = vld [vmem:[%s14070_s1 + $0x168] sm:$0xff] }
  0x33   :  { %2297 = vperm.xlu1 %6944, %v7426_v18   ;;  %2293 = vperm.xlu0 %6943, %v7388_v13  }
  0x34   :  { %331 = vmatprep.subr.mxu0 %v7621_v48  ;;  %515 = vmatprep.subr.mxu1 %v7621_v48  ;;  %v6584_v48 = vld [vmem:[%s14072_s0 + $0x71] ss:$8 sm:$0x3]  ;;  %v7813_v36 = vsub.s32 %v207_v59, %v7634_v51  ;;  %v7855_v59 = vld [vmem:[%s14070_s1 + $0x140] sm:$0xff] }
  0x35   :  { %332 = vmatpush2.msra.mxu0 %v7626_v49  ;;  %516 = vmatpush2.msra.mxu1 %v7626_v49  ;;  %v6569_v49 = vld [vmem:[%s14072_s0 + $0xa0] ss:$8 sm:$0x3]  ;;  %v181_v58 = vadd.f32 %v6584_v48, %v6566_v4  ;;  %v7794_v4 = vld [vmem:[%s14070_s1 + $0x178] sm:$0xff]  ;;  %v190_v48 = vadd.f32 %v6593_v56, %v6575_v34  ;;  %v201_v34 = vcombine.low %v7742_v37, %v175_v54 }
  0x36   :  { %333 = vmatprep.subr.mxu0 %v7631_v50  ;;  %517 = vmatprep.subr.mxu1 %v7631_v50  ;;  %v6586_v50 = vld [vmem:[%s14072_s0 + $0x91] ss:$8 sm:$0x3]  ;;  %v184_v62 = vadd.f32 %v6587_v43, %v6569_v49  ;;  %v7822_v37 = vld [vmem:[%s14070_s1 + $0x160] sm:$0xff]  ;;  %v7845_v43 = vld [vmem:[%s14070_s1 + $0x148] sm:$0xff] }
  0x37   :  { %334 = vmatpush2.msra.mxu0 %v7641_v52  ;;  %518 = vmatpush2.msra.mxu1 %v7641_v52  ;;  %v6588_v52 = vld [vmem:[%s14072_s0 + $0xb1] ss:$8 sm:$0x3]  ;;  %v183_v60 = vadd.f32 %v6586_v50, %v6568_v46  ;;  %v189_v46 = vadd.f32 %v6592_v55, %v6574_v35  ;;  %v202_v35 = vcombine.low %v176_v32, %v177_v31 }
  0x38   :  { %2301 = vperm.xlu1 %6944, %v7305_v2   ;;  %2305 = vperm.xlu0 %6943, %v7353_v8   ;;  %v185_v0 = vadd.f32 %v6588_v52, %v6570_v41  ;;  %v203_v41 = vcombine.low %v178_v28, %v179_v27  ;;  %v204_v49 = vcombine.low %v180_v26, %v181_v58  ;;  %v7829_v26 = vld [vmem:[%s14070_s1 + $0x158] sm:$0xff]  ;;  %v7836_v27 = vld [vmem:[%s14070_s1 + $0x150] sm:$0xff]  ;;  %v2261_v58 = vld [vmem:[#allocation2 + $0x8] sm:$0xff] }
  0x39   :  { %335 = vmatprep.subr.mxu0 %v7674_v61  ;;  %519 = vmatprep.subr.mxu1 %v7674_v61  ;;  %v385_v50 = vcombine.low %v183_v60, %v184_v62  ;;  %v387_v32 = vcombine.low %v187_v33, %v188_v42  ;;  %v388_v52 = vcombine.low %v189_v46, %v190_v48  ;;  %v7860_v60 = vld [vmem:[%s14070_s1 + $0x138] sm:$0xff]  ;;  %v6567_v33 = vld [vmem:[%s14072_s0 + $0x80] ss:$8 sm:$0x3] }
  0x3a   :  { %336 = vmatpush2.msra.mxu0 %v7699_v44  ;;  %520 = vmatpush2.msra.mxu1 %v7699_v44  ;;  %v386_v31 = vcombine.low %v185_v0, %v186_v20  ;;  %v211_v28 = vrot.slane %v201_v34, %v7813_v36  ;;  %v218_v47 = vrot.slane %v202_v35, %v7813_v36  ;;  %v6585_v42 = vld [vmem:[%s14072_s0 + $0x81] ss:$8 sm:$0x3]  ;;  %v6576_v48 = vld [vmem:[%s14072_s0 + $0x110] ss:$8 sm:$0x3] }
  0x3b   :  { %337 = vmatprep.subr.mxu0 %v7718_v45  ;;  %521 = vmatprep.subr.mxu1 %v7718_v45  ;;  %v225_v54 = vrot.slane %v203_v41, %v7813_v36  ;;  %v232_v55 = vrot.slane %v204_v49, %v7813_v36  ;;  %v395_v56 = vrot.slane %v385_v50, %v7813_v36  ;;  %v6594_v34 = vld [vmem:[%s14072_s0 + $0x111] ss:$8 sm:$0x3]  ;;  %v7893_v50 = vld [vmem:[%s14070_s1 + $0x128] sm:$0xff] }
  0x3c   :  { %338 = vmatpush2.msra.mxu0 %v7740_v38  ;;  %522 = vmatpush2.msra.mxu1 %v7740_v38  ;;  %v402_v62 = vrot.slane %v386_v31, %v7813_v36  ;;  %v409_v0 = vrot.slane %v387_v32, %v7813_v36  ;;  %v416_v20 = vrot.slane %v388_v52, %v7813_v36  ;;  %v7886_v35 = vld [vmem:[%s14070_s1 + $0x130] sm:$0xff] }
  0x3d   :  { %339 = vmatprep.subr.mxu0 %v7780_v57  ;;  %523 = vmatprep.subr.mxu1 %v7780_v57  ;;  %v234_v46 = vcombine.high %v211_v28, %v218_v47  ;;  %v233_v41 = vcombine.low %v211_v28, %v218_v47  ;;  %v235_v49 = vcombine.low %v225_v54, %v232_v55  ;;  %v7902_v47 = vld [vmem:[%s14070_s1 + $0x120] sm:$0xff] }
  0x3e   :  { %6946 = vrot.lane.b32.xlu1 %v14309_v39, %s7241_s16  ;;  %340 = vmatpush2.msra.mxu0 %v7787_v63  ;;  %v418_v31 = vcombine.high %v395_v56, %v402_v62  ;;  %v420_v32 = vcombine.high %v409_v0, %v416_v20  ;;  %v417_v52 = vcombine.low %v395_v56, %v402_v62  ;;  %v7909_v56 = vld [vmem:[%s14070_s1 + $0x118] sm:$0xff] }
  0x3f   :  { %524 = vmatpush2.msra.mxu1 %v7787_v63  ;;  %341 = vmatprep.subr.mxu0 %v7794_v4  ;;  %v191_v28 = vadd.f32 %v6594_v34, %v6576_v48  ;;  %v7930_v34 = vld [vmem:[%s14070_s1 + $0x108] sm:$0xff] }
  0x40   :  { %525 = vmatprep.subr.mxu1 %v7794_v4  ;;  %342 = vmatpush2.msra.mxu0 %v7801_v30  ;;  %v427_v48 = vrot.slane %v417_v52, %v7813_v36 }
  0x41   :  { %526 = vmatpush2.msra.mxu1 %v7801_v30  ;;  %343 = vmatprep.subr.mxu0 %v7809_v29 }
  0x42   :  { %527 = vmatprep.subr.mxu1 %v7809_v29  ;;  %2523 = vrot.lane.b32.xlu1 %v2263_v40, %s7241_s16  ;;  %v236_v40 = vcombine.high %v225_v54, %v232_v55  ;;  %v250_v54 = vrot.slane %v234_v46, %v7813_v36  ;;  %v7242_v55 = vmov 4   ;;  %v448_v46 = vrot.slane %v420_v32, %v7813_v36 }
  0x43   :  { %344 = vmatpush2.msra.mxu0 %v7822_v37  ;;  %528 = vmatpush2.msra.mxu1 %v7822_v37 }
  0x44   :  { %345 = vmatprep.subr.mxu0 %v7829_v26  ;;  %529 = vmatprep.subr.mxu1 %v7829_v26  ;;  %v264_v62 = vrot.slane %v236_v40, %v7813_v36 }
  0x45   :  { %346 = vmatpush2.msra.mxu0 %v7836_v27  ;;  %530 = vmatpush2.msra.mxu1 %v7836_v27 }
  0x46   :  { %347 = vmatprep.subr.mxu0 %v7845_v43  ;;  %531 = vmatprep.subr.mxu1 %v7845_v43  ;;  %v266_v32 = vcombine.low %v250_v54, %v264_v62 }
  0x47   :  { %2527 = vrot.lane.b32.xlu1 %v2265_v53, %s7241_s16  ;;  %2519 = vrot.lane.b32.xlu0 %v2261_v58, %s7241_s16  ;;  %v419_v53 = vcombine.low %v409_v0, %v416_v20  ;;  %v182_v58 = vadd.f32 %v6585_v42, %v6567_v33  ;;  %v243_v0 = vrot.slane %v233_v41, %v7813_v36  ;;  %v7919_v33 = vld [vmem:[%s14070_s1 + $0x110] sm:$0xff] }
  0x48   :  { %348 = vmatpush2.msra.mxu0 %v7855_v59  ;;  %532 = vmatpush2.msra.mxu1 %v7855_v59  ;;  %v257_v20 = vrot.slane %v235_v49, %v7813_v36  ;;  %v434_v42 = vrot.slane %v418_v31, %v7813_v36  ;;  %v457_v49 = vrot.slane %v191_v28, %v7813_v36  ;;  %v7942_v31 = vld [vmem:[%s14070_s1 + $0x100] sm:$0xff] }
  0x49   :  { %349 = vmatprep.subr.mxu0 %v7860_v60  ;;  %533 = vmatprep.subr.mxu1 %v7860_v60  ;;  %v441_v40 = vrot.slane %v419_v53, %v7813_v36  ;;  %v273_v41 = vrot.slane %v182_v58, %v7813_v36 }
  0x4a   :  { %350 = vmatpush2.msra.mxu0 %v7886_v35  ;;  %534 = vmatpush2.msra.mxu1 %v7886_v35  ;;  %v450_v52 = vcombine.low %v434_v42, %v448_v46  ;;  %v265_v53 = vcombine.low %v243_v0, %v257_v20  ;;  %v458_v51 = vcombine.high %v457_v49, %v457_v49  ;;  %v6602_v42 = vld [vmem:[%s14072_s0 + $0x71] ss:$8 sm:$0x3]  ;;  %v6618_v46 = vld [vmem:[%s14072_s0 + $0x52] ss:$8 sm:$0x3] }
  0x4b   :  { %6955 = vset.pattern.permute.xlu1 %v7242_v55  ;;  %351 = vmatprep.subr.mxu0 %v7893_v50  ;;  %v449_v58 = vcombine.low %v427_v48, %v441_v40  ;;  %v274_v28 = vcombine.high %v273_v41, %v273_v41  ;;  %v281_v0 = vrot.slane %v273_v41, %v7813_v36  ;;  %v6619_v48 = vld [vmem:[%s14072_s0 + $0x62] ss:$8 sm:$0x3]  ;;  %v6620_v40 = vld [vmem:[%s14072_s0 + $0x72] ss:$8 sm:$0x3] }
  0x4c   :  { %535 = vmatprep.subr.mxu1 %v7893_v50  ;;  %2646 = vperm.xlu1 %6955, %v7388_v13   ;;  %v472_v62 = vrot.slane %v458_v51, %v7813_v36  ;;  %v465_v20 = vrot.slane %v457_v49, %v7813_v36  ;;  %v6600_v51 = vld [vmem:[%s14072_s0 + $0x51] ss:$8 sm:$0x3]  ;;  %v6631_v41 = vld [vmem:[%s14072_s0 + $0x3] ss:$8 sm:$0x3] }
  0x4d   :  { %6951 = vrot.lane.b32.xlu0 %v14309_v39, %s7241_s16  ;;  %352 = vmatpush2.msra.mxu0 %v7902_v47  ;;  %v2267_v39 = vld [vmem:[#allocation2 + $0x38] sm:$0xff]  ;;  %v288_v54 = vrot.slane %v274_v28, %v7813_v36 }
  0x4e   :  { %536 = vmatpush2.msra.mxu1 %v7902_v47  ;;  %353 = vmatprep.subr.mxu0 %v7909_v56  ;;  %v6632_v49 = vld [vmem:[%s14072_s0 + $0x13] ss:$8 sm:$0x3]  ;;  %v6604_v28 = vld [vmem:[%s14072_s0 + $0x91] ss:$8 sm:$0x3] }
  0x4f   :  { %537 = vmatprep.subr.mxu1 %v7909_v56  ;;  %354 = vmatpush2.msra.mxu0 %v7919_v33 }
  0x50   :  { %538 = vmatpush2.msra.mxu1 %v7919_v33  ;;  %355 = vmatprep.subr.mxu0 %v7930_v34 }
  0x51   :  { %539 = vmatprep.subr.mxu1 %v7930_v34  ;;  %2654 = vperm.xlu1 %6955, %v7305_v2  }
  0x52   :  { %2531 = vrot.lane.b32.xlu0 %v2267_v39, %s7241_s16  ;;  %356 = vmatpush2.msra.mxu0 %v7942_v31  ;;  %v6633_v39 = vld [vmem:[%s14072_s0 + $0x23] ss:$8 sm:$0x3] }
  0x53   :  { %357 = vmatprep.mubr.f32.mxu0 %v266_v32  ;;  %540 = vmatpush2.msra.mxu1 %v7942_v31  ;;  %v14320_v32 = vld [vmem:[#allocation13_spill] sm:$0xff] }
  0x54   :  { %541 = vmatprep.mubr.f32.mxu1 %v450_v52  ;;  %358 = vmatmul.mubr.f32.vlgmr.msra.gmra.mxu0 %v265_v53 }
  0x55   :  { %542 = vmatmul.mubr.f32.vlgmr.msra.gmra.mxu1 %v449_v58  ;;  %785 = vmatprep.subr.mxu0 %v7300_v1 }
  0x56   :  { %968 = vmatprep.subr.mxu1 %v7300_v1  ;;  %786 = vmatpush1.msra.mxu0 %v7310_v3  ;;  %v7243_v1 = vmov 5  }
  0x57   :  { %969 = vmatpush1.msra.mxu1 %v7310_v3  ;;  %787 = vmatprep.subr.mxu0 %v7318_v5  ;;  %v7244_v3 = vmov 6  }
  0x58   :  { %970 = vmatprep.subr.mxu1 %v7318_v5  ;;  %2658 = vperm.xlu1 %6955, %v7353_v8   ;;  %v14310_v5 = vld [vmem:[#allocation3_spill] sm:$0xff] }
  0x59   :  { %363 = vmatprep.mubr.f32.mxu0 %v288_v54  ;;  %547 = vmatprep.mubr.f32.mxu1 %v472_v62  ;;  %v6605_v54 = vld [vmem:[%s14072_s0 + $0xa1] ss:$8 sm:$0x3]  ;;  %v14321_v62 = vld [vmem:[#allocation14_spill] sm:$0xff] }
  0x5a   :  { %788 = vmatpush1.msra.mxu0 %v7323_v6  ;;  %971 = vmatpush1.msra.mxu1 %v7323_v6  ;;  %v14311_v6 = vld [vmem:[#allocation4_spill] sm:$0xff] }
  0x5b   :  { %364 = vmatmul.mubr.f32.gmra.mxu0 %v281_v0  ;;  %548 = vmatmul.mubr.f32.gmra.mxu1 %v465_v20  ;;  %v6606_v20 = vld [vmem:[%s14072_s0 + $0xb1] ss:$8 sm:$0x3] }
  0x5c   :  { %789 = vmatprep.subr.mxu0 %v7330_v7  ;;  %972 = vmatprep.subr.mxu1 %v7330_v7  ;;  %v14312_v7 = vld [vmem:[#allocation5_spill] sm:$0xff] }
  0x5d   :  { %790 = vmatpush1.msra.mxu0 %v7360_v9  ;;  %973 = vmatpush1.msra.mxu1 %v7360_v9  ;;  %v14313_v9 = vld [vmem:[#allocation6_spill] sm:$0xff] }
  0x5e   :  { %6956 = vset.pattern.permute.xlu0 %v7242_v55  ;;  %791 = vmatprep.subr.mxu0 %v7367_v10  ;;  %v6601_v55 = vld [vmem:[%s14072_s0 + $0x61] ss:$8 sm:$0x3] }
  0x5f   :  { %974 = vmatprep.subr.mxu1 %v7367_v10  ;;  %6958 = vset.pattern.permute.xlu1 %v7243_v1  ;;  %v14314_v10 = vld [vmem:[#allocation7_spill] sm:$0xff] }
  0x60   :  { %2650 = vperm.xlu0 %6956, %v7426_v18   ;;  %792 = vmatpush1.msra.mxu0 %v7374_v11 }
  0x61   :  { %975 = vmatpush1.msra.mxu1 %v7374_v11  ;;  %2730 = vperm.xlu1 %6958, %v7426_v18   ;;  %v14315_v11 = vld [vmem:[#allocation8_spill] sm:$0xff] }
  0x62   :  { %793 = vmatprep.subr.mxu0 %v7381_v12  ;;  %976 = vmatprep.subr.mxu1 %v7381_v12  ;;  %v14316_v12 = vld [vmem:[#allocation9_spill] sm:$0xff] }
  0x63   :  { %794 = vmatpush1.msra.mxu0 %v7395_v14  ;;  %977 = vmatpush1.msra.mxu1 %v7395_v14  ;;  %v6596_v14 = vld [vmem:[%s14072_s0 + $0x11] ss:$8 sm:$0x3] }
  0x64   :  { %795 = vmatprep.subr.mxu0 %v7402_v15  ;;  %978 = vmatprep.subr.mxu1 %v7402_v15  ;;  %v6597_v15 = vld [vmem:[%s14072_s0 + $0x21] ss:$8 sm:$0x3] }
  0x65   :  { %6957 = vset.pattern.permute.xlu0 %v7243_v1  ;;  %796 = vmatpush1.msra.mxu0 %v7410_v16  ;;  %v6607_v1 = vld [vmem:[%s14072_s0 + $0xc1] ss:$8 sm:$0x3] }
  0x66   :  { %979 = vmatpush1.msra.mxu1 %v7410_v16  ;;  %2734 = vperm.xlu1 %6958, %v7305_v2   ;;  %v6613_v16 = vld [vmem:[%s14072_s0 + $0x2] ss:$8 sm:$0x3] }
  0x67   :  { %2726 = vperm.xlu0 %6957, %v7388_v13   ;;  %797 = vmatprep.subr.mxu0 %v7417_v17 }
  0x68   :  { %980 = vmatprep.subr.mxu1 %v7417_v17  ;;  %798 = vmatpush1.msra.mxu0 %v7431_v19  ;;  %v6598_v17 = vld [vmem:[%s14072_s0 + $0x31] ss:$8 sm:$0x3] }
  0x69   :  { %981 = vmatpush1.msra.mxu1 %v7431_v19  ;;  %799 = vmatprep.subr.mxu0 %v7437_v21  ;;  %v6615_v19 = vld [vmem:[%s14072_s0 + $0x22] ss:$8 sm:$0x3] }
  0x6a   :  { %982 = vmatprep.subr.mxu1 %v7437_v21  ;;  %800 = vmatpush1.msra.mxu0 %v7444_v22  ;;  %v14318_v21 = vld [vmem:[#allocation11_spill] sm:$0xff]  ;;  %v614_v58 = vadd.f32 %v6615_v19, %v6597_v15  ;;  %v14323_v15 = vld [vmem:[#allocation16_spill] sm:$0xff] }
  0x6b   :  { %983 = vmatpush1.msra.mxu1 %v7444_v22  ;;  %6959 = vset.pattern.permute.xlu1 %v7244_v3  ;;  %v6599_v22 = vld [vmem:[%s14072_s0 + $0x41] ss:$8 sm:$0x3]  ;;  %v6635_v19 = vld [vmem:[%s14072_s0 + $0x43] ss:$8 sm:$0x3] }
  0x6c   :  { %2738 = vperm.xlu0 %6957, %v7353_v8   ;;  %801 = vmatprep.subr.mxu0 %v7451_v23 }
  0x6d   :  { %984 = vmatprep.subr.mxu1 %v7451_v23  ;;  %2774 = vperm.xlu1 %6959, %v7388_v13   ;;  %v6595_v13 = vld [vmem:[%s14072_s0 + $0x1] ss:$8 sm:$0x3]  ;;  %v6616_v23 = vld [vmem:[%s14072_s0 + $0x32] ss:$8 sm:$0x3] }
  0x6e   :  { %802 = vmatpush1.msra.mxu0 %v7460_v24  ;;  %985 = vmatpush1.msra.mxu1 %v7460_v24  ;;  %v6617_v24 = vld [vmem:[%s14072_s0 + $0x42] ss:$8 sm:$0x3]  ;;  %v612_v52 = vadd.f32 %v6613_v16, %v6595_v13  ;;  %v615_v0 = vadd.f32 %v6616_v23, %v6598_v17  ;;  %v6624_v13 = vld [vmem:[%s14072_s0 + $0xb2] ss:$8 sm:$0x3]  ;;  %v618_v17 = vadd.f32 %v6619_v48, %v6601_v55 }
  0x6f   :  { %803 = vmatprep.subr.mxu0 %v7467_v25  ;;  %986 = vmatprep.subr.mxu1 %v7467_v25  ;;  %v14319_v25 = vld [vmem:[#allocation12_spill] sm:$0xff]  ;;  %v6626_v23 = vld [vmem:[%s14072_s0 + $0xd2] ss:$8 sm:$0x3] }
  0x70   :  { %804 = vmatpush1.msra.mxu0 %v14310_v5  ;;  %987 = vmatpush1.msra.mxu1 %v14310_v5  ;;  %v6622_v5 = vld [vmem:[%s14072_s0 + $0x92] ss:$8 sm:$0x3]  ;;  %v8149_v55 = vadd.f32 %v6631_v41, %v612_v52 }
  0x71   :  { %6960 = vset.pattern.permute.xlu0 %v7244_v3  ;;  %805 = vmatprep.subr.mxu0 %v14311_v6  ;;  %v6608_v3 = vld [vmem:[%s14072_s0 + $0xd1] ss:$8 sm:$0x3]  ;;  %v6628_v48 = vld [vmem:[%s14072_s0 + $0xf2] ss:$8 sm:$0x3]  ;;  %v621_v41 = vadd.f32 %v6622_v5, %v6604_v28 }
  0x72   :  { %988 = vmatprep.subr.mxu1 %v14311_v6  ;;  %2778 = vperm.xlu0 %6960, %v7426_v18   ;;  %v6614_v18 = vld [vmem:[%s14072_s0 + $0x12] ss:$8 sm:$0x3]  ;;  %v6623_v6 = vld [vmem:[%s14072_s0 + $0xa2] ss:$8 sm:$0x3] }
  0x73   :  { %806 = vmatpush1.msra.mxu0 %v14312_v7  ;;  %989 = vmatpush1.msra.mxu1 %v14312_v7  ;;  %v613_v53 = vadd.f32 %v6614_v18, %v6596_v14  ;;  %v14322_v7 = vld [vmem:[#allocation15_spill] sm:$0xff]  ;;  %v619_v18 = vadd.f32 %v6620_v40, %v6602_v42  ;;  %v622_v52 = vadd.f32 %v6623_v6, %v6605_v54  ;;  %v14328_v54 = vld [vmem:[#allocation20_spill] sm:$0xff] }
  0x74   :  { %807 = vmatprep.subr.mxu0 %v14313_v9  ;;  %990 = vmatprep.subr.mxu1 %v14313_v9  ;;  %v616_v9 = vadd.f32 %v6617_v24, %v6599_v22  ;;  %v6625_v14 = vld [vmem:[%s14072_s0 + $0xc2] ss:$8 sm:$0x3]  ;;  %v6637_v22 = vld [vmem:[%s14072_s0 + $0x63] ss:$8 sm:$0x3] }
  0x75   :  { %808 = vmatpush1.msra.mxu0 %v14314_v10  ;;  %991 = vmatpush1.msra.mxu1 %v14314_v10  ;;  %v6609_v10 = vld [vmem:[%s14072_s0 + $0xe1] ss:$8 sm:$0x3]  ;;  %v6627_v24 = vld [vmem:[%s14072_s0 + $0xe2] ss:$8 sm:$0x3]  ;;  %v8151_v42 = vadd.f32 %v6632_v49, %v613_v53 }
  0x76   :  { %809 = vmatprep.subr.mxu0 %v14315_v11  ;;  %992 = vmatprep.subr.mxu1 %v14315_v11  ;;  %v6610_v11 = vld [vmem:[%s14072_s0 + $0xf1] ss:$8 sm:$0x3]  ;;  %v6629_v40 = vld [vmem:[%s14072_s0 + $0x102] ss:$8 sm:$0x3] }
  0x77   :  { %2782 = vperm.xlu1 %6959, %v7305_v2   ;;  %810 = vmatpush1.msra.mxu0 %v14316_v12  ;;  %v14317_v2 = vld [vmem:[#allocation10_spill] sm:$0xff]  ;;  %v14327_v53 = vld [vmem:[#allocation19_spill] sm:$0xff]  ;;  %v627_v5 = vadd.f32 %v6628_v48, %v6610_v11 }
  0x78   :  { %993 = vmatpush1.msra.mxu1 %v14316_v12  ;;  %811 = vmatprep.subr.mxu0 %v14317_v2  ;;  %v6611_v12 = vld [vmem:[%s14072_s0 + $0x101] ss:$8 sm:$0x3]  ;;  %v6640_v49 = vld [vmem:[%s14072_s0 + $0x93] ss:$8 sm:$0x3] }
  0x79   :  { %994 = vmatprep.subr.mxu1 %v14317_v2  ;;  %812 = vmatpush1.msra.mxu0 %v14318_v21  ;;  %v617_v2 = vadd.f32 %v6618_v46, %v6600_v51  ;;  %v6638_v51 = vld [vmem:[%s14072_s0 + $0x73] ss:$8 sm:$0x3]  ;;  %v8153_v46 = vadd.f32 %v6633_v39, %v614_v58  ;;  %v6641_v39 = vld [vmem:[%s14072_s0 + $0xa3] ss:$8 sm:$0x3]  ;;  %v623_v58 = vadd.f32 %v6624_v13, %v6606_v20 }
  0x7a   :  { %995 = vmatpush1.msra.mxu1 %v14318_v21  ;;  %813 = vmatprep.subr.mxu0 %v14319_v25  ;;  %v6636_v21 = vld [vmem:[%s14072_s0 + $0x53] ss:$8 sm:$0x3]  ;;  %v6643_v28 = vld [vmem:[%s14072_s0 + $0xc3] ss:$8 sm:$0x3]  ;;  %v628_v6 = vadd.f32 %v6629_v40, %v6611_v12  ;;  %v670_v13 = vadd.f32 %v6635_v19, %v616_v9  ;;  %v676_v48 = vadd.f32 %v6641_v39, %v622_v52 }
  0x7b   :  { %996 = vmatprep.subr.mxu1 %v14319_v25  ;;  %2786 = vperm.xlu1 %6959, %v7353_v8   ;;  %v6634_v8 = vld [vmem:[%s14072_s0 + $0x33] ss:$8 sm:$0x3]  ;;  %v6647_v11 = vld [vmem:[%s14072_s0 + $0x103] ss:$8 sm:$0x3] }
  0x7c   :  { %814 = vmatpush1.msra.mxu0 %v14320_v32  ;;  %997 = vmatpush1.msra.mxu1 %v14320_v32  ;;  %v14325_v25 = vld [vmem:[#allocation17_spill] sm:$0xff]  ;;  %v14326_v32 = vld [vmem:[#allocation18_spill] sm:$0xff]  ;;  %v14332_v9 = vld [vmem:[#allocation23_spill] sm:$0xff] }
  0x7d   :  { %815 = vmatprep.subr.mxu0 %v14321_v62  ;;  %998 = vmatprep.subr.mxu1 %v14321_v62  ;;  %v8163_v62 = vadd.f32 %v6634_v8, %v615_v0  ;;  %v6642_v8 = vld [vmem:[%s14072_s0 + $0xb3] ss:$8 sm:$0x3]  ;;  %v626_v0 = vadd.f32 %v6627_v24, %v6609_v10  ;;  %v673_v24 = vadd.f32 %v6638_v51, %v619_v18 }
  0x7e   :  { %816 = vmatpush1.msra.mxu0 %v14322_v7  ;;  %999 = vmatpush1.msra.mxu1 %v14322_v7  ;;  %v8127_v16 = vpop.permute.xlu1 %2076  ;;  %v624_v7 = vadd.f32 %v6625_v14, %v6607_v1  ;;  %v6644_v20 = vld [vmem:[%s14072_s0 + $0xd3] ss:$8 sm:$0x3]  ;;  %v6645_v1 = vld [vmem:[%s14072_s0 + $0xe3] ss:$8 sm:$0x3]  ;;  %v671_v14 = vadd.f32 %v6636_v21, %v617_v2  ;;  %v677_v2 = vadd.f32 %v6642_v8, %v623_v58 }
  0x7f   :  { %817 = vmatprep.subr.mxu0 %v14323_v15  ;;  %1000 = vmatprep.subr.mxu1 %v14323_v15  ;;  %14324 = vst [vmem:[#allocation3_spill] sm:$0xff] %v8127_v16  ;;  %v625_v15 = vadd.f32 %v6626_v23, %v6608_v3  ;;  %v14329_v3 = vld [vmem:[#allocation21_spill] sm:$0xff]  ;;  %v672_v23 = vadd.f32 %v6637_v22, %v618_v17  ;;  %v14330_v12 = vld [vmem:[#allocation22_spill] sm:$0xff]  ;;  %v14333_v21 = vld [vmem:[#allocation24_spill] sm:$0xff] }
  0x80   :  { %818 = vmatpush2.msra.mxu0 %v14325_v25  ;;  %1001 = vmatpush2.msra.mxu1 %v14325_v25  ;;  %v6646_v10 = vld [vmem:[%s14072_s0 + $0xf3] ss:$8 sm:$0x3]  ;;  %v675_v25 = vadd.f32 %v6640_v49, %v621_v41  ;;  %v678_v17 = vadd.f32 %v6643_v28, %v624_v7  ;;  %v680_v22 = vadd.f32 %v6645_v1, %v626_v0  ;;  %v6685_v16 = vld [vmem:[%s14072_s0 + $0x5] ss:$8 sm:$0x3] }
  0x81   :  { %819 = vmatprep.subr.mxu0 %v14326_v32  ;;  %1002 = vmatprep.subr.mxu1 %v14326_v32  ;;  %v679_v19 = vadd.f32 %v6644_v20, %v625_v15  ;;  %v681_v32 = vadd.f32 %v6646_v10, %v627_v5  ;;  %v693_v18 = vcombine.low %v8149_v55, %v8151_v42  ;;  %v6621_v55 = vld [vmem:[%s14072_s0 + $0x82] ss:$8 sm:$0x3]  ;;  %v6648_v20 = vld [vmem:[%s14072_s0 + $0x113] ss:$8 sm:$0x3] }
  0x82   :  { %820 = vmatpush2.msra.mxu0 %v14327_v53  ;;  %1003 = vmatpush2.msra.mxu1 %v14327_v53  ;;  %v8197_v40 = vpop.permute.xlu1 %2081  ;;  %v682_v53 = vadd.f32 %v6647_v11, %v628_v6  ;;  %v694_v51 = vcombine.low %v8153_v46, %v8163_v62  ;;  %v695_v41 = vcombine.low %v670_v13, %v671_v14  ;;  %v6630_v46 = vld [vmem:[%s14072_s0 + $0x112] ss:$8 sm:$0x3] }
  0x83   :  { %821 = vmatprep.subr.mxu0 %v14328_v54  ;;  %1004 = vmatprep.subr.mxu1 %v14328_v54  ;;  %14331 = vst [vmem:[#allocation4_spill] sm:$0xff] %v8197_v40  ;;  %v14334_v54 = vld [vmem:[#allocation26_spill] sm:$0xff]  ;;  %v696_v52 = vcombine.low %v672_v23, %v673_v24  ;;  %v876_v49 = vcombine.low %v675_v25, %v676_v48  ;;  %v6673_v40 = vld [vmem:[%s14072_s0 + $0x64] ss:$8 sm:$0x3] }
  0x84   :  { %822 = vmatpush2.msra.mxu0 %v14329_v3  ;;  %1005 = vmatpush2.msra.mxu1 %v14329_v3  ;;  %v877_v39 = vcombine.low %v677_v2, %v678_v17  ;;  %v878_v58 = vcombine.low %v679_v19, %v680_v22  ;;  %v710_v42 = vrot.slane %v694_v51, %v7813_v36 }
  0x85   :  { %823 = vmatprep.subr.mxu0 %v14330_v12  ;;  %1006 = vmatprep.subr.mxu1 %v14330_v12  ;;  %v717_v62 = vrot.slane %v695_v41, %v7813_v36  ;;  %v886_v15 = vrot.slane %v876_v49, %v7813_v36  ;;  %v8324_v41 = vld [vmem:[%s14070_s1 + $0xe8] sm:$0xff] }
  0x86   :  { %824 = vmatpush2.msra.mxu0 %v14332_v9  ;;  %1007 = vmatpush2.msra.mxu1 %v14332_v9  ;;  %v8215_v7 = vpop.permute.xlu1 %6926  ;;  %v893_v8 = vrot.slane %v877_v39, %v7813_v36  ;;  %v900_v28 = vrot.slane %v878_v58, %v7813_v36  ;;  %v8335_v39 = vld [vmem:[%s14070_s1 + $0xe0] sm:$0xff]  ;;  %v8342_v58 = vld [vmem:[%s14070_s1 + $0xd8] sm:$0xff] }
  0x87   :  { %825 = vmatprep.subr.mxu0 %v14333_v21  ;;  %1008 = vmatprep.subr.mxu1 %v14333_v21  ;;  %14335 = vst [vmem:[#allocation5_spill] sm:$0xff] %v8215_v7  ;;  %v8255_v1 = vpop.permute.xlu0 %2066  ;;  %v6688_v7 = vld [vmem:[%s14072_s0 + $0x35] ss:$8 sm:$0x3] }
  0x88   :  { %826 = vmatpush2.msra.mxu0 %v14334_v54  ;;  %1009 = vmatpush2.msra.mxu1 %v14334_v54  ;;  %14336 = vst [vmem:[#allocation6_spill] sm:$0xff] %v8255_v1  ;;  %v908_v14 = vcombine.low %v886_v15, %v893_v8  ;;  %v909_v23 = vcombine.high %v886_v15, %v893_v8  ;;  %v8402_v15 = vld [vmem:[%s14070_s1 + $0x98] sm:$0xff] }
  0x89   :  { %827 = vmatprep.subr.mxu0 %v7674_v61  ;;  %1010 = vmatprep.subr.mxu1 %v7674_v61  ;;  %v879_v61 = vcombine.low %v681_v32, %v682_v53 }
  0x8a   :  { %828 = vmatpush2.msra.mxu0 %v7699_v44  ;;  %1011 = vmatpush2.msra.mxu1 %v7699_v44  ;;  %v6603_v44 = vld [vmem:[%s14072_s0 + $0x81] ss:$8 sm:$0x3]  ;;  %v918_v9 = vrot.slane %v908_v14, %v7813_v36  ;;  %v8466_v14 = vld [vmem:[%s14070_s1 + $0x58] sm:$0xff] }
  0x8b   :  { %829 = vmatprep.subr.mxu0 %v7718_v45  ;;  %1012 = vmatprep.subr.mxu1 %v7718_v45  ;;  %v703_v45 = vrot.slane %v693_v18, %v7813_v36  ;;  %v907_v0 = vrot.slane %v879_v61, %v7813_v36  ;;  %v8349_v61 = vld [vmem:[%s14070_s1 + $0xd0] sm:$0xff] }
  0x8c   :  { %830 = vmatpush2.msra.mxu0 %v7740_v38  ;;  %1013 = vmatpush2.msra.mxu1 %v7740_v38  ;;  %v6612_v38 = vld [vmem:[%s14072_s0 + $0x111] ss:$8 sm:$0x3]  ;;  %v8257_v3 = vpop.permute.xlu1 %2137 }
  0x8d   :  { %831 = vmatprep.subr.mxu0 %v7780_v57  ;;  %1014 = vmatprep.subr.mxu1 %v7780_v57  ;;  %v724_v57 = vrot.slane %v696_v52, %v7813_v36  ;;  %v629_v5 = vadd.f32 %v6630_v46, %v6612_v38  ;;  %v726_v6 = vcombine.high %v703_v45, %v710_v42  ;;  %v8278_v2 = vpop.permute.xlu0 %2071  ;;  %v8374_v38 = vld [vmem:[%s14070_s1 + $0xb8] sm:$0xff]  ;;  %v8381_v46 = vld [vmem:[%s14070_s1 + $0xb0] sm:$0xff] }
  0x8e   :  { %832 = vmatpush2.msra.mxu0 %v7787_v63  ;;  %1015 = vmatpush2.msra.mxu1 %v7787_v63  ;;  %v620_v63 = vadd.f32 %v6621_v55, %v6603_v44  ;;  %14337 = vst [vmem:[#allocation7_spill] sm:$0xff] %v8257_v3  ;;  %v911_v10 = vcombine.high %v900_v28, %v907_v0  ;;  %14338 = vst [vmem:[#allocation8_spill] sm:$0xff] %v8278_v2  ;;  %v8356_v44 = vld [vmem:[%s14070_s1 + $0xc8] sm:$0xff]  ;;  %v8622_v2 = vld [vmem:[%s14070_s1 + $0x1f0] sm:$0xff] }
  0x8f   :  { %833 = vmatprep.subr.mxu0 %v7794_v4  ;;  %1016 = vmatprep.subr.mxu1 %v7794_v4  ;;  %v6639_v4 = vld [vmem:[%s14072_s0 + $0x83] ss:$8 sm:$0x3]  ;;  %v727_v13 = vcombine.low %v717_v62, %v724_v57  ;;  %v910_v11 = vcombine.low %v900_v28, %v907_v0  ;;  %v683_v24 = vadd.f32 %v6648_v20, %v629_v5  ;;  %v8413_v0 = vld [vmem:[%s14070_s1 + $0x90] sm:$0xff] }
  0x90   :  { %834 = vmatpush2.msra.mxu0 %v7801_v30  ;;  %1017 = vmatpush2.msra.mxu1 %v7801_v30  ;;  %v725_v30 = vcombine.low %v703_v45, %v710_v42  ;;  %v674_v12 = vadd.f32 %v6639_v4, %v620_v63  ;;  %v8367_v42 = vld [vmem:[%s14070_s1 + $0xc0] sm:$0xff]  ;;  %v8420_v63 = vld [vmem:[%s14070_s1 + $0x88] sm:$0xff]  ;;  %v8443_v20 = vld [vmem:[%s14070_s1 + $0x70] sm:$0xff]  ;;  %14361 = vst [vmem:[#allocation32_spill] sm:$0xff] %v8622_v2 }
  0x91   :  { %835 = vmatprep.subr.mxu0 %v7809_v29  ;;  %1018 = vmatprep.subr.mxu1 %v7809_v29  ;;  %v728_v29 = vcombine.high %v717_v62, %v724_v57  ;;  %v749_v48 = vrot.slane %v727_v13, %v7813_v36  ;;  %v8280_v17 = vpop.permute.xlu1 %2141  ;;  %v8388_v62 = vld [vmem:[%s14070_s1 + $0xa8] sm:$0xff]  ;;  %v8395_v57 = vld [vmem:[%s14070_s1 + $0xa0] sm:$0xff] }
  0x92   :  { %836 = vmatpush2.msra.mxu0 %v7822_v37  ;;  %1019 = vmatpush2.msra.mxu1 %v7822_v37  ;;  %v742_v37 = vrot.slane %v726_v6, %v7813_v36  ;;  %v735_v25 = vrot.slane %v725_v30, %v7813_v36  ;;  %14339 = vst [vmem:[#allocation9_spill] sm:$0xff] %v8280_v17  ;;  %v8427_v5 = vld [vmem:[%s14070_s1 + $0x80] sm:$0xff]  ;;  %v8434_v6 = vld [vmem:[%s14070_s1 + $0x78] sm:$0xff]  ;;  %v8450_v30 = vld [vmem:[%s14070_s1 + $0x68] sm:$0xff] }
  0x93   :  { %837 = vmatprep.subr.mxu0 %v7829_v26  ;;  %1020 = vmatprep.subr.mxu1 %v7829_v26  ;;  %v756_v26 = vrot.slane %v728_v29, %v7813_v36  ;;  %v765_v19 = vrot.slane %v674_v12, %v7813_v36  ;;  %v8459_v29 = vld [vmem:[%s14070_s1 + $0x60] sm:$0xff]  ;;  %v8606_v17 = vld [vmem:[%s14070_s1 + $0x1f8] sm:$0xff] }
  0x94   :  { %838 = vmatpush2.msra.mxu0 %v7836_v27  ;;  %1021 = vmatpush2.msra.mxu1 %v7836_v27  ;;  %v925_v27 = vrot.slane %v909_v23, %v7813_v36  ;;  %v757_v22 = vcombine.low %v735_v25, %v749_v48  ;;  %v8473_v23 = vld [vmem:[%s14070_s1 + $0x50] sm:$0xff]  ;;  %v8489_v12 = vld [vmem:[%s14070_s1 + $0x40] sm:$0xff]  ;;  %v8512_v25 = vld [vmem:[%s14070_s1 + $0x28] sm:$0xff]  ;;  %14360 = vst [vmem:[#allocation31_spill] sm:$0xff] %v8606_v17 }
  0x95   :  { %839 = vmatprep.subr.mxu0 %v7845_v43  ;;  %1022 = vmatprep.subr.mxu1 %v7845_v43  ;;  %v939_v43 = vrot.slane %v911_v10, %v7813_v36  ;;  %v758_v21 = vcombine.low %v742_v37, %v756_v26  ;;  %v766_v53 = vcombine.high %v765_v19, %v765_v19  ;;  %v8480_v10 = vld [vmem:[%s14070_s1 + $0x48] sm:$0xff]  ;;  %v8505_v26 = vld [vmem:[%s14070_s1 + $0x30] sm:$0xff]  ;;  %v8519_v48 = vld [vmem:[%s14070_s1 + $0x20] sm:$0xff] }
  0x96   :  { %840 = vmatpush2.msra.mxu0 %v7855_v59  ;;  %1023 = vmatpush2.msra.mxu1 %v7855_v59  ;;  %v932_v59 = vrot.slane %v910_v11, %v7813_v36  ;;  %v773_v18 = vrot.slane %v765_v19, %v7813_v36  ;;  %14349 = vst [vmem:[#allocation19_spill] sm:$0xff] %v8473_v23  ;;  %14350 = vst [vmem:[#allocation20_spill] sm:$0xff] %v8480_v10  ;;  %v6651_v19 = vld [vmem:[%s14072_s0 + $0x23] ss:$8 sm:$0x3] }
  0x97   :  { %841 = vmatprep.subr.mxu0 %v7860_v60  ;;  %1024 = vmatprep.subr.mxu1 %v7860_v60  ;;  %v948_v60 = vrot.slane %v683_v24, %v7813_v36  ;;  %14351 = vst [vmem:[#allocation21_spill] sm:$0xff] %v8489_v12  ;;  %v8496_v24 = vld [vmem:[%s14070_s1 + $0x38] sm:$0xff]  ;;  %14353 = vst [vmem:[#allocation23_spill] sm:$0xff] %v8505_v26  ;;  %v6687_v3 = vld [vmem:[%s14072_s0 + $0x25] ss:$8 sm:$0x3] }
  0x98   :  { %842 = vmatpush2.msra.mxu0 %v7886_v35  ;;  %1025 = vmatpush2.msra.mxu1 %v7886_v35  ;;  %v941_v35 = vcombine.low %v925_v27, %v939_v43  ;;  %v940_v32 = vcombine.low %v918_v9, %v932_v59  ;;  %14352 = vst [vmem:[#allocation22_spill] sm:$0xff] %v8496_v24  ;;  %14354 = vst [vmem:[#allocation24_spill] sm:$0xff] %v8512_v25  ;;  %v8526_v27 = vld [vmem:[%s14070_s1 + $0x18] sm:$0xff]  ;;  %v6649_v9 = vld [vmem:[%s14072_s0 + $0x3] ss:$8 sm:$0x3] }
  0x99   :  { %843 = vmatprep.subr.mxu0 %v7893_v50  ;;  %1026 = vmatprep.subr.mxu1 %v7893_v50  ;;  %v949_v54 = vcombine.high %v948_v60, %v948_v60  ;;  %v8297_v50 = vpop.permute.xlu0 %6920  ;;  %v956_v51 = vrot.slane %v948_v60, %v7813_v36  ;;  %14355 = vst [vmem:[#allocation26_spill] sm:$0xff] %v8519_v48  ;;  %14356 = vst [vmem:[#allocation27_spill] sm:$0xff] %v8526_v27  ;;  %v6650_v59 = vld [vmem:[%s14072_s0 + $0x13] ss:$8 sm:$0x3] }
  0x9a   :  { %844 = vmatpush2.msra.mxu0 %v7902_v47  ;;  %1027 = vmatpush2.msra.mxu1 %v7902_v47  ;;  %14340 = vst [vmem:[#allocation10_spill] sm:$0xff] %v8297_v50  ;;  %v8299_v47 = vpop.permute.xlu1 %6932  ;;  %v6667_v60 = vld [vmem:[%s14072_s0 + $0x4] ss:$8 sm:$0x3] }
  0x9b   :  { %845 = vmatprep.subr.mxu0 %v7909_v56  ;;  %1028 = vmatprep.subr.mxu1 %v7909_v56  ;;  %14341 = vst [vmem:[#allocation11_spill] sm:$0xff] %v8299_v47  ;;  %v780_v56 = vrot.slane %v766_v53, %v7813_v36  ;;  %v6669_v53 = vld [vmem:[%s14072_s0 + $0x24] ss:$8 sm:$0x3] }
  0x9c   :  { %846 = vmatpush2.msra.mxu0 %v7919_v33  ;;  %1029 = vmatpush2.msra.mxu1 %v7919_v33  ;;  %v963_v33 = vrot.slane %v949_v54, %v7813_v36  ;;  %v8566_v54 = vld [vmem:[%s14070_s1 + $0x8] sm:$0xff]  ;;  %v1105_v1 = vadd.f32 %v6669_v53, %v6651_v19 }
  0x9d   :  { %847 = vmatprep.subr.mxu0 %v7930_v34  ;;  %1030 = vmatprep.subr.mxu1 %v7930_v34  ;;  %v8308_v34 = vld [vmem:[%s14070_s1 + $0xf8] sm:$0xff]  ;;  %v8328_v52 = vpop.permute.xlu0 %2133  ;;  %14358 = vst [vmem:[#allocation29_spill] sm:$0xff] %v8566_v54  ;;  %v6689_v50 = vld [vmem:[%s14072_s0 + $0x45] ss:$8 sm:$0x3] }
  0x9e   :  { %848 = vmatpush2.msra.mxu0 %v7942_v31  ;;  %849 = vmatprep.mubr.f32.mxu0 %v758_v21  ;;  %14342 = vst [vmem:[#allocation12_spill] sm:$0xff] %v8328_v52  ;;  %v8330_v49 = vpop.permute.xlu1 %2213  ;;  %v8547_v21 = vld [vmem:[%s14070_s1 + $0x10] sm:$0xff]  ;;  %v1103_v52 = vadd.f32 %v6667_v60, %v6649_v9  ;;  %v6659_v60 = vld [vmem:[%s14072_s0 + $0xa3] ss:$8 sm:$0x3] }
  0x9f   :  { %1031 = vmatpush2.msra.mxu1 %v7942_v31  ;;  %1032 = vmatprep.mubr.f32.mxu1 %v941_v35  ;;  %v8315_v31 = vld [vmem:[%s14070_s1 + $0xf0] sm:$0xff]  ;;  %14343 = vst [vmem:[#allocation13_spill] sm:$0xff] %v8330_v49  ;;  %14357 = vst [vmem:[#allocation28_spill] sm:$0xff] %v8547_v21  ;;  %v6661_v53 = vld [vmem:[%s14072_s0 + $0xc3] ss:$8 sm:$0x3] }
  0xa0   :  { %850 = vmatmul.mubr.f32.vlgmr.msra.gmra.mxu0 %v757_v22  ;;  %1033 = vmatmul.mubr.f32.vlgmr.msra.gmra.mxu1 %v940_v32  ;;  %v6652_v35 = vld [vmem:[%s14072_s0 + $0x33] ss:$8 sm:$0x3]  ;;  %v6653_v22 = vld [vmem:[%s14072_s0 + $0x43] ss:$8 sm:$0x3] }
  0xa1   :  { %1276 = vmatprep.subr.mxu0 %v8308_v34  ;;  %1459 = vmatprep.subr.mxu1 %v8308_v34  ;;  %v8360_v55 = vpop.permute.xlu0 %2145  ;;  %v6668_v32 = vld [vmem:[%s14072_s0 + $0x14] ss:$8 sm:$0x3] }
  0xa2   :  { %1277 = vmatpush1.msra.mxu0 %v8315_v31  ;;  %1460 = vmatpush1.msra.mxu1 %v8315_v31  ;;  %14344 = vst [vmem:[#allocation14_spill] sm:$0xff] %v8360_v55  ;;  %v8362_v45 = vpop.permute.xlu1 %2221  ;;  %v6672_v55 = vld [vmem:[%s14072_s0 + $0x54] ss:$8 sm:$0x3]  ;;  %v1104_v47 = vadd.f32 %v6668_v32, %v6650_v59 }
  0xa3   :  { %1278 = vmatprep.subr.mxu0 %v8324_v41  ;;  %1461 = vmatprep.subr.mxu1 %v8324_v41  ;;  %14345 = vst [vmem:[#allocation15_spill] sm:$0xff] %v8362_v45  ;;  %v6655_v45 = vld [vmem:[%s14072_s0 + $0x63] ss:$8 sm:$0x3] }
  0xa4   :  { %855 = vmatprep.mubr.f32.mxu0 %v780_v56  ;;  %1038 = vmatprep.mubr.f32.mxu1 %v963_v33  ;;  %v6670_v33 = vld [vmem:[%s14072_s0 + $0x34] ss:$8 sm:$0x3]  ;;  %v6660_v32 = vld [vmem:[%s14072_s0 + $0xb3] ss:$8 sm:$0x3] }
  0xa5   :  { %1279 = vmatpush1.msra.mxu0 %v8335_v39  ;;  %1462 = vmatpush1.msra.mxu1 %v8335_v39  ;;  %v8406_v8 = vpop.permute.xlu0 %6937  ;;  %v6674_v49 = vld [vmem:[%s14072_s0 + $0x74] ss:$8 sm:$0x3]  ;;  %v1106_v59 = vadd.f32 %v6670_v33, %v6652_v35  ;;  %v6690_v35 = vld [vmem:[%s14072_s0 + $0x55] ss:$8 sm:$0x3] }
  0xa6   :  { %856 = vmatmul.mubr.f32.gmra.mxu0 %v773_v18  ;;  %1039 = vmatmul.mubr.f32.gmra.mxu1 %v956_v51  ;;  %14346 = vst [vmem:[#allocation16_spill] sm:$0xff] %v8406_v8  ;;  %v6671_v18 = vld [vmem:[%s14072_s0 + $0x44] ss:$8 sm:$0x3] }
  0xa7   :  { %1280 = vmatprep.subr.mxu0 %v8342_v58  ;;  %1463 = vmatprep.subr.mxu1 %v8342_v58  ;;  %v8408_v28 = vpop.permute.xlu1 %2225  ;;  %v8581_v51 = vld [vmem:[%s14070_s1] sm:$0xff]  ;;  %v6686_v8 = vld [vmem:[%s14072_s0 + $0x15] ss:$8 sm:$0x3]  ;;  %v1107_v19 = vadd.f32 %v6671_v18, %v6653_v22 }
  0xa8   :  { %1281 = vmatpush1.msra.mxu0 %v8349_v61  ;;  %1464 = vmatpush1.msra.mxu1 %v8349_v61  ;;  %14347 = vst [vmem:[#allocation17_spill] sm:$0xff] %v8408_v28  ;;  %14359 = vst [vmem:[#allocation30_spill] sm:$0xff] %v8581_v51  ;;  %v6654_v28 = vld [vmem:[%s14072_s0 + $0x53] ss:$8 sm:$0x3] }
  0xa9   :  { %1282 = vmatprep.subr.mxu0 %v8356_v44  ;;  %1465 = vmatprep.subr.mxu1 %v8356_v44  ;;  %v8438_v4 = vpop.permute.xlu0 %2217  ;;  %v6662_v22 = vld [vmem:[%s14072_s0 + $0xd3] ss:$8 sm:$0x3]  ;;  %v6663_v33 = vld [vmem:[%s14072_s0 + $0xe3] ss:$8 sm:$0x3] }
  0xaa   :  { %1283 = vmatpush1.msra.mxu0 %v8367_v42  ;;  %1466 = vmatpush1.msra.mxu1 %v8367_v42  ;;  %14348 = vst [vmem:[#allocation18_spill] sm:$0xff] %v8438_v4  ;;  %v6656_v4 = vld [vmem:[%s14072_s0 + $0x73] ss:$8 sm:$0x3] }
  0xab   :  { %1284 = vmatprep.subr.mxu0 %v8374_v38  ;;  %1467 = vmatprep.subr.mxu1 %v8374_v38  ;;  %v6676_v18 = vld [vmem:[%s14072_s0 + $0x94] ss:$8 sm:$0x3] }
  0xac   :  { %1285 = vmatpush1.msra.mxu0 %v8381_v46  ;;  %1468 = vmatpush1.msra.mxu1 %v8381_v46 }
  0xad   :  { %1286 = vmatprep.subr.mxu0 %v8388_v62  ;;  %1469 = vmatprep.subr.mxu1 %v8388_v62 }
  0xae   :  { %1287 = vmatpush1.msra.mxu0 %v8395_v57  ;;  %1470 = vmatpush1.msra.mxu1 %v8395_v57  ;;  %v8454_v13 = vpop.permute.xlu1 %2297  ;;  %v8484_v11 = vpop.permute.xlu0 %2293 }
  0xaf   :  { %1288 = vmatprep.subr.mxu0 %v8402_v15  ;;  %1471 = vmatprep.subr.mxu1 %v8402_v15 }
  0xb0   :  { %1289 = vmatpush1.msra.mxu0 %v8413_v0  ;;  %1472 = vmatpush1.msra.mxu1 %v8413_v0 }
  0xb1   :  { %1290 = vmatprep.subr.mxu0 %v8420_v63  ;;  %1473 = vmatprep.subr.mxu1 %v8420_v63 }
  0xb2   :  { %1291 = vmatpush1.msra.mxu0 %v8427_v5  ;;  %1474 = vmatpush1.msra.mxu1 %v8427_v5 }
  0xb3   :  { %1292 = vmatprep.subr.mxu0 %v8434_v6  ;;  %1475 = vmatprep.subr.mxu1 %v8434_v6  ;;  %v8500_v37 = vpop.permute.xlu1 %2301  ;;  %v8530_v43 = vpop.permute.xlu0 %2305 }
  0xb4   :  { %1293 = vmatpush1.msra.mxu0 %v8443_v20  ;;  %1476 = vmatpush1.msra.mxu1 %v8443_v20 }
  0xb5   :  { %1294 = vmatprep.subr.mxu0 %v8450_v30  ;;  %1477 = vmatprep.subr.mxu1 %v8450_v30 }
  0xb6   :  { %1295 = vmatpush1.msra.mxu0 %v8459_v29  ;;  %1478 = vmatpush1.msra.mxu1 %v8459_v29 }
  0xb7   :  { %1296 = vmatprep.subr.mxu0 %v8466_v14  ;;  %1479 = vmatprep.subr.mxu1 %v8466_v14  ;;  %v8570_v56 = vpop.permute.xlu1 %6946 }
  0xb8   :  { %1297 = vmatpush1.msra.mxu0 %v8473_v23  ;;  %1480 = vmatpush1.msra.mxu1 %v8473_v23  ;;  %v8742_v23 = vld [vmem:[%s14070_s1 + $0x1c0] sm:$0xff] }
  0xb9   :  { %1298 = vmatprep.subr.mxu0 %v8480_v10  ;;  %1481 = vmatprep.subr.mxu1 %v8480_v10  ;;  %v8642_v9 = vpop.permute.xlu0 %2519  ;;  %v6681_v10 = vld [vmem:[%s14072_s0 + $0xe4] ss:$8 sm:$0x3]  ;;  %14366 = vst [vmem:[#allocation37_spill] sm:$0xff] %v8742_v23 }
  0xba   :  { %1299 = vmatpush1.msra.mxu0 %v8489_v12  ;;  %1482 = vmatpush1.msra.mxu1 %v8489_v12  ;;  %v6680_v12 = vld [vmem:[%s14072_s0 + $0xd4] ss:$8 sm:$0x3] }
  0xbb   :  { %1300 = vmatprep.subr.mxu0 %v8496_v24  ;;  %1483 = vmatprep.subr.mxu1 %v8496_v24  ;;  %v6665_v24 = vld [vmem:[%s14072_s0 + $0x103] ss:$8 sm:$0x3] }
  0xbc   :  { %1301 = vmatpush1.msra.mxu0 %v8505_v26  ;;  %1484 = vmatpush1.msra.mxu1 %v8505_v26  ;;  %v6664_v26 = vld [vmem:[%s14072_s0 + $0xf3] ss:$8 sm:$0x3] }
  0xbd   :  { %1302 = vmatprep.subr.mxu0 %v8512_v25  ;;  %1485 = vmatprep.subr.mxu1 %v8512_v25  ;;  %v6691_v25 = vld [vmem:[%s14072_s0 + $0x65] ss:$8 sm:$0x3] }
  0xbe   :  { %1303 = vmatpush1.msra.mxu0 %v8519_v48  ;;  %1486 = vmatpush1.msra.mxu1 %v8519_v48  ;;  %v1110_v48 = vadd.f32 %v6674_v49, %v6656_v4  ;;  %v8702_v49 = vld [vmem:[%s14070_s1 + $0x1d0] sm:$0xff]  ;;  %v8713_v4 = vadd.f32 %v6687_v3, %v1105_v1  ;;  %v8729_v1 = vadd.f32 %v6688_v7, %v1106_v59 }
  0xbf   :  { %1304 = vmatprep.subr.mxu0 %v8526_v27  ;;  %1487 = vmatprep.subr.mxu1 %v8526_v27  ;;  %v1109_v27 = vadd.f32 %v6673_v40, %v6655_v45  ;;  %v6679_v40 = vld [vmem:[%s14072_s0 + $0xc4] ss:$8 sm:$0x3]  ;;  %14365 = vst [vmem:[#allocation36_spill] sm:$0xff] %v8702_v49  ;;  %v8709_v45 = vadd.f32 %v6685_v16, %v1103_v52  ;;  %v6948_v16 = vunpack.i.l.bf16 %v8570_v56 }
  0xc0   :  { %1305 = vmatpush1.msra.mxu0 %v8547_v21  ;;  %1488 = vmatpush1.msra.mxu1 %v8547_v21  ;;  %v1108_v21 = vadd.f32 %v6672_v55, %v6654_v28  ;;  %v6692_v55 = vld [vmem:[%s14072_s0 + $0x75] ss:$8 sm:$0x3]  ;;  %v8711_v28 = vadd.f32 %v6686_v8, %v1104_v47  ;;  %v8731_v3 = vadd.f32 %v6689_v50, %v1107_v19  ;;  %v6682_v47 = vld [vmem:[%s14072_s0 + $0xf4] ss:$8 sm:$0x3] }
  0xc1   :  { %1306 = vmatprep.subr.mxu0 %v8566_v54  ;;  %1489 = vmatprep.subr.mxu1 %v8566_v54  ;;  %v8682_v54 = vpop.permute.xlu1 %2523  ;;  %v6683_v52 = vld [vmem:[%s14072_s0 + $0x104] ss:$8 sm:$0x3]  ;;  %v1115_v59 = vadd.f32 %v6679_v40, %v6661_v53  ;;  %v6694_v19 = vld [vmem:[%s14072_s0 + $0x95] ss:$8 sm:$0x3]  ;;  %v1117_v53 = vadd.f32 %v6681_v10, %v6663_v33  ;;  %v1118_v10 = vadd.f32 %v6682_v47, %v6664_v26 }
  0xc2   :  { %1307 = vmatpush1.msra.mxu0 %v8581_v51  ;;  %1490 = vmatpush1.msra.mxu1 %v8581_v51  ;;  %v8638_v51 = vld [vmem:[%s14070_s1 + $0x1e8] sm:$0xff]  ;;  %v6696_v40 = vld [vmem:[%s14072_s0 + $0xb5] ss:$8 sm:$0x3] }
  0xc3   :  { %1308 = vmatprep.subr.mxu0 %v8606_v17  ;;  %1491 = vmatprep.subr.mxu1 %v8606_v17  ;;  %v6658_v17 = vld [vmem:[%s14072_s0 + $0x93] ss:$8 sm:$0x3]  ;;  %14362 = vst [vmem:[#allocation33_spill] sm:$0xff] %v8638_v51 }
  0xc4   :  { %1309 = vmatpush2.msra.mxu0 %v8622_v2  ;;  %1492 = vmatpush2.msra.mxu1 %v8622_v2  ;;  %v8678_v2 = vld [vmem:[%s14070_s1 + $0x1d8] sm:$0xff]  ;;  %v1112_v8 = vadd.f32 %v6676_v18, %v6658_v17  ;;  %v6695_v17 = vld [vmem:[%s14072_s0 + $0xa5] ss:$8 sm:$0x3] }
  0xc5   :  { %1310 = vmatprep.subr.mxu0 %v8638_v51  ;;  %1493 = vmatprep.subr.mxu1 %v8638_v51  ;;  %v8656_v51 = vld [vmem:[%s14070_s1 + $0x1e0] sm:$0xff]  ;;  %14364 = vst [vmem:[#allocation35_spill] sm:$0xff] %v8678_v2  ;;  %v8755_v18 = vld [vmem:[%s14070_s1 + $0x1b8] sm:$0xff]  ;;  %v2528_v26 = vpop.permute.xlu1 %2527 }
  0xc6   :  { %14363 = vst [vmem:[#allocation34_spill] sm:$0xff] %v8656_v51  ;;  %1311 = vmatpush2.msra.mxu0 %v8656_v51  ;;  %1494 = vmatpush2.msra.mxu1 %v8656_v51  ;;  %v6677_v51 = vld [vmem:[%s14072_s0 + $0xa4] ss:$8 sm:$0x3]  ;;  %14367 = vst [vmem:[#allocation38_spill] sm:$0xff] %v8755_v18  ;;  %v1166_v47 = vadd.f32 %v6694_v19, %v1112_v8 }
  0xc7   :  { %1312 = vmatprep.subr.mxu0 %v8678_v2  ;;  %1495 = vmatprep.subr.mxu1 %v8678_v2  ;;  %v6678_v2 = vld [vmem:[%s14072_s0 + $0xb4] ss:$8 sm:$0x3]  ;;  %v1113_v7 = vadd.f32 %v6677_v51, %v6659_v60  ;;  %v8760_v51 = vpop.permute.xlu0 %6951  ;;  %v8762_v60 = vadd.f32 %v6690_v35, %v1108_v21  ;;  %v8777_v21 = vadd.f32 %v6691_v25, %v1109_v27  ;;  %v6699_v35 = vld [vmem:[%s14072_s0 + $0xe5] ss:$8 sm:$0x3] }
  0xc8   :  { %1313 = vmatpush2.msra.mxu0 %v8702_v49  ;;  %1496 = vmatpush2.msra.mxu1 %v8702_v49  ;;  %v8724_v49 = vld [vmem:[%s14070_s1 + $0x1c8] sm:$0xff]  ;;  %v1114_v50 = vadd.f32 %v6678_v2, %v6660_v32  ;;  %v6949_v2 = vunpack.i.h.bf16 %v8570_v56  ;;  %v1116_v32 = vadd.f32 %v6680_v12, %v6662_v22  ;;  %v1119_v12 = vadd.f32 %v6683_v52, %v6665_v24  ;;  %v6698_v56 = vld [vmem:[%s14072_s0 + $0xd5] ss:$8 sm:$0x3]  ;;  %v8805_v52 = vld [vmem:[%s14070_s1 + $0x1a0] sm:$0xff] }
  0xc9   :  { %1314 = vmatprep.subr.mxu0 %v8724_v49  ;;  %1497 = vmatprep.subr.mxu1 %v8724_v49  ;;  %v8788_v22 = vld [vmem:[%s14070_s1 + $0x1a8] sm:$0xff]  ;;  %v8794_v24 = vsel %vm2436_vm1, %v6948_v16, %v8642_v9  ;;  %v1164_v25 = vadd.f32 %v6692_v55, %v1110_v48  ;;  %v6700_v27 = vld [vmem:[%s14072_s0 + $0xf5] ss:$8 sm:$0x3]  ;;  %v1167_v9 = vadd.f32 %v6695_v17, %v1113_v7  ;;  %v6953_v7 = vunpack.i.l.bf16 %v8760_v51 }
  0xca   :  { %1315 = vmatpush2.msra.mxu0 %v8742_v23  ;;  %1498 = vmatpush2.msra.mxu1 %v8742_v23  ;;  %v6697_v23 = vld [vmem:[%s14072_s0 + $0xc5] ss:$8 sm:$0x3]  ;;  %14368 = vst [vmem:[#allocation39_spill] sm:$0xff] %v8788_v22  ;;  %v1168_v48 = vadd.f32 %v6696_v40, %v1114_v50  ;;  %v8812_v16 = vld [vmem:[%s14070_s1 + $0x198] sm:$0xff]  ;;  %v8818_v8 = vsel %vm2436_vm1, %v6949_v2, %v8682_v54  ;;  %v8827_v50 = vld [vmem:[%s14070_s1 + $0x190] sm:$0xff] }
  0xcb   :  { %1316 = vmatprep.subr.mxu0 %v8755_v18  ;;  %1499 = vmatprep.subr.mxu1 %v8755_v18  ;;  %v8773_v18 = vld [vmem:[%s14070_s1 + $0x1b0] sm:$0xff]  ;;  %v6701_v33 = vld [vmem:[%s14072_s0 + $0x105] ss:$8 sm:$0x3]  ;;  %v1169_v55 = vadd.f32 %v6697_v23, %v1115_v59  ;;  %v1170_v19 = vadd.f32 %v6698_v56, %v1116_v32  ;;  %v6954_v23 = vunpack.i.h.bf16 %v8760_v51  ;;  %v1172_v59 = vadd.f32 %v6700_v27, %v1118_v10  ;;  %v2532_v2 = vpop.permute.xlu0 %2531  ;;  %v8837_v51 = vpop.permute.xlu1 %2646 }
  0xcc   :  { %1317 = vmatpush2.msra.mxu0 %v8773_v18  ;;  %1500 = vmatpush2.msra.mxu1 %v8773_v18  ;;  %v1173_v17 = vadd.f32 %v6701_v33, %v1119_v12  ;;  %v8834_v54 = vld [vmem:[%s14070_s1 + $0x188] sm:$0xff]  ;;  %14369 = vst [vmem:[#allocation40_spill] sm:$0xff] %v8837_v51  ;;  %v1184_v32 = vcombine.low %v8709_v45, %v8711_v28  ;;  %v8852_v12 = vld [vmem:[%s14070_s1 + $0x180] sm:$0xff]  ;;  %v8884_v27 = vld [vmem:[%s14070_s1 + $0x170] sm:$0xff] }
  0xcd   :  { %1318 = vmatprep.subr.mxu0 %v8788_v22  ;;  %1501 = vmatprep.subr.mxu1 %v8788_v22  ;;  %v1171_v22 = vadd.f32 %v6699_v35, %v1117_v53  ;;  %v1185_v53 = vcombine.low %v8713_v4, %v8729_v1  ;;  %v1186_v40 = vcombine.low %v8731_v3, %v8762_v60  ;;  %v6657_v4 = vld [vmem:[%s14072_s0 + $0x83] ss:$8 sm:$0x3]  ;;  %v6675_v1 = vld [vmem:[%s14072_s0 + $0x84] ss:$8 sm:$0x3] }
  0xce   :  { %1319 = vmatpush2.msra.mxu0 %v8805_v52  ;;  %1502 = vmatpush2.msra.mxu1 %v8805_v52  ;;  %v1187_v10 = vcombine.low %v8777_v21, %v1164_v25  ;;  %v1367_v45 = vcombine.low %v1166_v47, %v1167_v9  ;;  %v1368_v28 = vcombine.low %v1168_v48, %v1169_v55  ;;  %v8865_v3 = vld [vmem:[%s14070_s1 + $0x178] sm:$0xff]  ;;  %v8892_v33 = vld [vmem:[%s14070_s1 + $0x168] sm:$0xff]  ;;  %v8950_v51 = vld [vmem:[%s14070_s1 + $0x140] sm:$0xff] }
  0xcf   :  { %1320 = vmatprep.subr.mxu0 %v8812_v16  ;;  %1503 = vmatprep.subr.mxu1 %v8812_v16  ;;  %v1369_v56 = vcombine.low %v1170_v19, %v1171_v22  ;;  %v8870_v60 = vsel %vm2436_vm1, %v6954_v23, %v2532_v2  ;;  %v8873_v21 = vsel %vm2436_vm1, %v6953_v7, %v2528_v26  ;;  %v6666_v22 = vld [vmem:[%s14072_s0 + $0x113] ss:$8 sm:$0x3]  ;;  %v6684_v25 = vld [vmem:[%s14072_s0 + $0x114] ss:$8 sm:$0x3]  ;;  %v8903_v55 = vpop.permute.xlu1 %2654 }
  0xd0   :  { %2613 = vrot.lane.b32.xlu1 %v8794_v24, %s7235_s17  ;;  %1321 = vmatpush2.msra.mxu0 %v8827_v50  ;;  %v1370_v35 = vcombine.low %v1172_v59, %v1173_v17  ;;  %v1194_v26 = vrot.slane %v1184_v32, %v7813_v36  ;;  %v1201_v47 = vrot.slane %v1185_v53, %v7813_v36  ;;  %v8909_v59 = vld [vmem:[%s14070_s1 + $0x160] sm:$0xff] }
  0xd1   :  { %1504 = vmatpush2.msra.mxu1 %v8827_v50  ;;  %1322 = vmatprep.subr.mxu0 %v8834_v54  ;;  %v1208_v9 = vrot.slane %v1186_v40, %v7813_v36  ;;  %v1215_v48 = vrot.slane %v1187_v10, %v7813_v36  ;;  %14370 = vst [vmem:[#allocation41_spill] sm:$0xff] %v8903_v55  ;;  %v6693_v53 = vld [vmem:[%s14072_s0 + $0x85] ss:$8 sm:$0x3]  ;;  %v8925_v10 = vld [vmem:[%s14070_s1 + $0x158] sm:$0xff] }
  0xd2   :  { %1505 = vmatprep.subr.mxu1 %v8834_v54  ;;  %2615 = vrot.lane.b32.xlu0 %v8818_v8, %s7235_s17  ;;  %v1377_v19 = vrot.slane %v1367_v45, %v7813_v36  ;;  %v1111_v23 = vadd.f32 %v6675_v1, %v6657_v4  ;;  %v1120_v7 = vadd.f32 %v6684_v25, %v6666_v22  ;;  %v6702_v40 = vld [vmem:[%s14072_s0 + $0x115] ss:$8 sm:$0x3] }
  0xd3   :  { %1323 = vmatpush2.msra.mxu0 %v8852_v12  ;;  %1506 = vmatpush2.msra.mxu1 %v8852_v12  ;;  %v1384_v17 = vrot.slane %v1368_v28, %v7813_v36  ;;  %v1391_v2 = vrot.slane %v1369_v56, %v7813_v36  ;;  %v1398_v32 = vrot.slane %v1370_v35, %v7813_v36  ;;  %v8932_v45 = vld [vmem:[%s14070_s1 + $0x150] sm:$0xff]  ;;  %v8939_v56 = vld [vmem:[%s14070_s1 + $0x148] sm:$0xff] }
  0xd4   :  { %1324 = vmatprep.subr.mxu0 %v8865_v3  ;;  %1507 = vmatprep.subr.mxu1 %v8865_v3  ;;  %v1217_v28 = vcombine.high %v1194_v26, %v1201_v47  ;;  %v1219_v4 = vcombine.high %v1208_v9, %v1215_v48  ;;  %v1165_v1 = vadd.f32 %v6693_v53, %v1111_v23 }
  0xd5   :  { %1325 = vmatpush2.msra.mxu0 %v8884_v27  ;;  %1508 = vmatpush2.msra.mxu1 %v8884_v27  ;;  %v1174_v35 = vadd.f32 %v6702_v40, %v1120_v7  ;;  %v1216_v22 = vcombine.low %v1194_v26, %v1201_v47  ;;  %v1400_v25 = vcombine.high %v1377_v19, %v1384_v17  ;;  %v8954_v40 = vpop.permute.xlu1 %2658  ;;  %v8967_v26 = vld [vmem:[%s14070_s1 + $0x130] sm:$0xff] }
  0xd6   :  { %1326 = vmatprep.subr.mxu0 %v8892_v33  ;;  %1509 = vmatprep.subr.mxu1 %v8892_v33  ;;  %v1402_v55 = vcombine.high %v1391_v2, %v1398_v32  ;;  %v1218_v23 = vcombine.low %v1208_v9, %v1215_v48  ;;  %v1399_v7 = vcombine.low %v1377_v19, %v1384_v17  ;;  %v8981_v19 = vld [vmem:[%s14070_s1 + $0x128] sm:$0xff] }
  0xd7   :  { %2619 = vrot.lane.b32.xlu0 %v8870_v60, %s7235_s17  ;;  %2617 = vrot.lane.b32.xlu1 %v8873_v21, %s7235_s17  ;;  %v1401_v53 = vcombine.low %v1391_v2, %v1398_v32  ;;  %14371 = vst [vmem:[#allocation42_spill] sm:$0xff] %v8954_v40  ;;  %v1247_v47 = vrot.slane %v1219_v4, %v7813_v36  ;;  %14372 = vst [vmem:[#allocation43_spill] sm:$0xff] %v8981_v19 }
  0xd8   :  { %1327 = vmatpush2.msra.mxu0 %v8909_v59  ;;  %1510 = vmatpush2.msra.mxu1 %v8909_v59  ;;  %v8973_v9 = vrot.slane %v1165_v1, %v7813_v36  ;;  %v8976_v48 = vrot.slane %v1174_v35, %v7813_v36  ;;  %v1416_v17 = vrot.slane %v1400_v25, %v7813_v36 }
  0xd9   :  { %1328 = vmatprep.subr.mxu0 %v8925_v10  ;;  %1511 = vmatprep.subr.mxu1 %v8925_v10  ;;  %v1430_v2 = vrot.slane %v1402_v55, %v7813_v36  ;;  %v1226_v32 = vrot.slane %v1216_v22, %v7813_v36  ;;  %v1409_v4 = vrot.slane %v1399_v7, %v7813_v36  ;;  %v9000_v55 = vld [vmem:[%s14070_s1 + $0x120] sm:$0xff]  ;;  %v9020_v7 = vld [vmem:[%s14070_s1 + $0x110] sm:$0xff] }
  0xda   :  { %1329 = vmatpush2.msra.mxu0 %v8932_v45  ;;  %1512 = vmatpush2.msra.mxu1 %v8932_v45  ;;  %v1423_v1 = vrot.slane %v1401_v53, %v7813_v36  ;;  %14374 = vst [vmem:[#allocation45_spill] sm:$0xff] %v9000_v55  ;;  %v1257_v22 = vcombine.high %v8973_v9, %v8973_v9  ;;  %14377 = vst [vmem:[#allocation48_spill] sm:$0xff] %v9020_v7  ;;  %v9024_v53 = vld [vmem:[#allocation2 + $0x8] sm:$0xff] }
  0xdb   :  { %1330 = vmatprep.subr.mxu0 %v8939_v56  ;;  %1513 = vmatprep.subr.mxu1 %v8939_v56  ;;  %v8995_v35 = vpop.permute.xlu0 %2650  ;;  %v1440_v25 = vcombine.high %v8976_v48, %v8976_v48 }
  0xdc   :  { %2693 = vrot.lane.b32.xlu0 %v8794_v24, %s7237_s19  ;;  %2695 = vrot.lane.b32.xlu1 %v8818_v8, %s7237_s19  ;;  %v8959_v24 = vld [vmem:[%s14070_s1 + $0x138] sm:$0xff]  ;;  %v1233_v8 = vrot.slane %v1217_v28, %v7813_v36  ;;  %v1240_v28 = vrot.slane %v1218_v23, %v7813_v36  ;;  %14373 = vst [vmem:[#allocation44_spill] sm:$0xff] %v8995_v35  ;;  %v9015_v23 = vpop.permute.xlu1 %2730  ;;  %v9035_v35 = vld [vmem:[%s14070_s1 + $0x108] sm:$0xff] }
  0xdd   :  { %1331 = vmatpush2.msra.mxu0 %v8950_v51  ;;  %1514 = vmatpush2.msra.mxu1 %v8950_v51  ;;  %14376 = vst [vmem:[#allocation47_spill] sm:$0xff] %v9015_v23  ;;  %v1432_v23 = vcombine.low %v1416_v17, %v1430_v2  ;;  %v1271_v17 = vrot.slane %v1257_v22, %v7813_v36  ;;  %v9066_v22 = vld [vmem:[#allocation2 + $0x28] sm:$0xff] }
  0xde   :  { %1332 = vmatprep.subr.mxu0 %v8959_v24  ;;  %1515 = vmatprep.subr.mxu1 %v8959_v24  ;;  %v1454_v2 = vrot.slane %v1440_v25, %v7813_v36  ;;  %v2313_v25 = vmul.f32 %v9066_v22, %v8500_v37 }
  0xdf   :  { %1333 = vmatpush2.msra.mxu0 %v8967_v26  ;;  %1516 = vmatpush2.msra.mxu1 %v8967_v26 }
  0xe0   :  { %1334 = vmatprep.subr.mxu0 %v8981_v19  ;;  %1517 = vmatprep.subr.mxu1 %v8981_v19 }
  0xe1   :  { %2697 = vrot.lane.b32.xlu0 %v8873_v21, %s7237_s19  ;;  %2699 = vrot.lane.b32.xlu1 %v8870_v60, %s7237_s19  ;;  %v9007_v60 = vld [vmem:[%s14070_s1 + $0x118] sm:$0xff]  ;;  %v1249_v21 = vcombine.low %v1233_v8, %v1247_v47  ;;  %v2309_v8 = vmul.f32 %v9024_v53, %v8484_v11  ;;  %v9028_v47 = vld [vmem:[#allocation2 + $0x20] sm:$0xff] }
  0xe2   :  { %1335 = vmatpush2.msra.mxu0 %v9000_v55  ;;  %1518 = vmatpush2.msra.mxu1 %v9000_v55  ;;  %14375 = vst [vmem:[#allocation46_spill] sm:$0xff] %v9007_v60  ;;  %v2308_v40 = vmul.f32 %v9028_v47, %v8484_v11  ;;  %v9044_v55 = vld [vmem:[%s14070_s1 + $0x100] sm:$0xff]  ;;  %v9049_v19 = vpop.permute.xlu0 %2726  ;;  %s7245_s1 = smov 96  }
  0xe3   :  { %1336 = vmatprep.subr.mxu0 %v9007_v60  ;;  %1519 = vmatprep.subr.mxu1 %v9007_v60  ;;  %v1431_v60 = vcombine.low %v1409_v4, %v1423_v1  ;;  %14378 = vst [vmem:[#allocation49_spill] sm:$0xff] %v9049_v19  ;;  %v1264_v4 = vrot.slane %v8973_v9, %v7813_v36 }
  0xe4   :  { %1337 = vmatpush2.msra.mxu0 %v9020_v7  ;;  %1520 = vmatpush2.msra.mxu1 %v9020_v7  ;;  %v1248_v7 = vcombine.low %v1226_v32, %v1240_v28  ;;  %v9052_v32 = vld [vmem:[#allocation2 + $0x18] sm:$0xff]  ;;  %v2310_v28 = vmul.f32 %v9028_v47, %v8454_v13  ;;  %v1447_v1 = vrot.slane %v8976_v48, %v7813_v36 }
  0xe5   :  { %1338 = vmatprep.subr.mxu0 %v9035_v35  ;;  %1521 = vmatprep.subr.mxu1 %v9035_v35 }
  0xe6   :  { %2374 = vrot.lane.b32.xlu0 %v2309_v8, %s7241_s16  ;;  %2372 = vrot.lane.b32.xlu1 %v2308_v40, %s7241_s16  ;;  %v2311_v40 = vmul.f32 %v9052_v32, %v8454_v13 }
  0xe7   :  { %1339 = vmatpush2.msra.mxu0 %v9044_v55  ;;  %1340 = vmatprep.mubr.f32.mxu0 %v1249_v21  ;;  %v9062_v21 = vpop.permute.xlu1 %2734  ;;  %v9074_v9 = vpop.permute.xlu0 %2738 }
  0xe8   :  { %1522 = vmatpush2.msra.mxu1 %v9044_v55  ;;  %1523 = vmatprep.mubr.f32.mxu1 %v1432_v23  ;;  %14379 = vst [vmem:[#allocation50_spill] sm:$0xff] %v9062_v21  ;;  %14380 = vst [vmem:[#allocation51_spill] sm:$0xff] %v9074_v9  ;;  %v9082_v23 = vld [vmem:[#allocation2 + $0x38] sm:$0xff] }
  0xe9   :  { %1341 = vmatmul.mubr.f32.vlgmr.msra.gmra.mxu0 %v1248_v7  ;;  %1524 = vmatmul.mubr.f32.vlgmr.msra.gmra.mxu1 %v1431_v60  ;;  %v2312_v60 = vmul.f32 %v9028_v47, %v8500_v37  ;;  %v2315_v7 = vmul.f32 %v9082_v23, %v8530_v43 }
  0xea   :  { %2378 = vrot.lane.b32.xlu0 %v2311_v40, %s7241_s16  ;;  %2376 = vrot.lane.b32.xlu1 %v2310_v28, %s7241_s16  ;;  %v14392_v28 = vld [vmem:[#allocation31_spill] sm:$0xff] }
  0xeb   :  { %1346 = vmatprep.mubr.f32.mxu0 %v1271_v17  ;;  %1529 = vmatprep.mubr.f32.mxu1 %v1454_v2  ;;  %v9078_v48 = vpop.permute.xlu1 %2774 }
  0xec   :  { %1767 = vmatprep.subr.mxu0 %v8308_v34  ;;  %1950 = vmatprep.subr.mxu1 %v8308_v34  ;;  %v2314_v34 = vmul.f32 %v9028_v47, %v8530_v43  ;;  %v2790_v8 = vmul.f32 %v9024_v53, %v9078_v48 }
  0xed   :  { %1347 = vmatmul.mubr.f32.gmra.mxu0 %v1264_v4  ;;  %1530 = vmatmul.mubr.f32.gmra.mxu1 %v1447_v1  ;;  %v9098_v17 = vpop.permute.xlu0 %2778  ;;  %v14393_v4 = vld [vmem:[#allocation32_spill] sm:$0xff]  ;;  %v14394_v1 = vld [vmem:[#allocation33_spill] sm:$0xff] }
  0xee   :  { %2382 = vrot.lane.b32.xlu0 %v2313_v25, %s7241_s16  ;;  %2380 = vrot.lane.b32.xlu1 %v2312_v60, %s7241_s16  ;;  %v14395_v60 = vld [vmem:[#allocation34_spill] sm:$0xff] }
  0xef   :  { %1768 = vmatpush1.msra.mxu0 %v8315_v31  ;;  %1951 = vmatpush1.msra.mxu1 %v8315_v31  ;;  %v2789_v31 = vmul.f32 %v9028_v47, %v9078_v48 }
  0xf0   :  { %1769 = vmatprep.subr.mxu0 %v8324_v41  ;;  %1952 = vmatprep.subr.mxu1 %v8324_v41 }
  0xf1   :  { %1770 = vmatpush1.msra.mxu0 %v8335_v39  ;;  %1953 = vmatpush1.msra.mxu1 %v8335_v39  ;;  %v2791_v39 = vmul.f32 %v9028_v47, %v9098_v17 }
  0xf2   :  { %2386 = vrot.lane.b32.xlu0 %v2315_v7, %s7241_s16  ;;  %2384 = vrot.lane.b32.xlu1 %v2314_v34, %s7241_s16  ;;  %v9104_v41 = vpop.permute.xlu1 %2782 }
  0xf3   :  { %1771 = vmatprep.subr.mxu0 %v8342_v58  ;;  %1954 = vmatprep.subr.mxu1 %v8342_v58  ;;  %v2792_v58 = vmul.f32 %v9052_v32, %v9098_v17 }
  0xf4   :  { %1772 = vmatpush1.msra.mxu0 %v8349_v61  ;;  %1955 = vmatpush1.msra.mxu1 %v8349_v61  ;;  %v2793_v61 = vmul.f32 %v9028_v47, %v9104_v41 }
  0xf5   :  { %1773 = vmatprep.subr.mxu0 %v8356_v44  ;;  %1956 = vmatprep.subr.mxu1 %v8356_v44  ;;  %v2794_v44 = vmul.f32 %v9066_v22, %v9104_v41 }
  0xf6   :  { %2853 = vrot.lane.b32.xlu0 %v2789_v31, %s7245_s1  ;;  %2855 = vrot.lane.b32.xlu1 %v2790_v8, %s7245_s1  ;;  %v9126_v2 = vpop.permute.xlu1 %2786  ;;  %v14397_v31 = vld [vmem:[#allocation36_spill] sm:$0xff]  ;;  %v14398_v8 = vld [vmem:[#allocation37_spill] sm:$0xff] }
  0xf7   :  { %1774 = vmatpush1.msra.mxu0 %v8367_v42  ;;  %1957 = vmatpush1.msra.mxu1 %v8367_v42  ;;  %v2795_v42 = vmul.f32 %v9028_v47, %v9126_v2 }
  0xf8   :  { %1775 = vmatprep.subr.mxu0 %v8374_v38  ;;  %1958 = vmatprep.subr.mxu1 %v8374_v38  ;;  %v2796_v38 = vmul.f32 %v9082_v23, %v9126_v2 }
  0xf9   :  { %1776 = vmatpush1.msra.mxu0 %v8381_v46  ;;  %1959 = vmatpush1.msra.mxu1 %v8381_v46  ;;  %v6961_v46 = vpack.i.bf16 %v9028_v47, %v9028_v47 }
  0xfa   :  { %2857 = vrot.lane.b32.xlu0 %v2791_v39, %s7245_s1  ;;  %2859 = vrot.lane.b32.xlu1 %v2792_v58, %s7245_s1  ;;  %v14399_v39 = vld [vmem:[#allocation38_spill] sm:$0xff] }
  0xfb   :  { %1777 = vmatprep.subr.mxu0 %v8388_v62  ;;  %1960 = vmatprep.subr.mxu1 %v8388_v62  ;;  %v14381_v62 = vld [vmem:[#allocation19_spill] sm:$0xff] }
  0xfc   :  { %1778 = vmatpush1.msra.mxu0 %v8395_v57  ;;  %1961 = vmatpush1.msra.mxu1 %v8395_v57  ;;  %v14382_v57 = vld [vmem:[#allocation20_spill] sm:$0xff] }
  0xfd   :  { %1779 = vmatprep.subr.mxu0 %v8402_v15  ;;  %1962 = vmatprep.subr.mxu1 %v8402_v15  ;;  %v14383_v15 = vld [vmem:[#allocation21_spill] sm:$0xff] }
  0xfe   :  { %2861 = vrot.lane.b32.xlu0 %v2793_v61, %s7245_s1  ;;  %2863 = vrot.lane.b32.xlu1 %v2794_v44, %s7245_s1  ;;  %v14400_v61 = vld [vmem:[#allocation39_spill] sm:$0xff] }
  0xff   :  { %1780 = vmatpush1.msra.mxu0 %v8413_v0  ;;  %1963 = vmatpush1.msra.mxu1 %v8413_v0  ;;  %v14384_v0 = vld [vmem:[#allocation22_spill] sm:$0xff] }
 0x100   :  { %1781 = vmatprep.subr.mxu0 %v8420_v63  ;;  %1964 = vmatprep.subr.mxu1 %v8420_v63  ;;  %v14385_v63 = vld [vmem:[#allocation23_spill] sm:$0xff] }
 0x101   :  { %1782 = vmatpush1.msra.mxu0 %v8427_v5  ;;  %1965 = vmatpush1.msra.mxu1 %v8427_v5  ;;  %v14386_v5 = vld [vmem:[#allocation24_spill] sm:$0xff] }
 0x102   :  { %2865 = vrot.lane.b32.xlu0 %v2795_v42, %s7245_s1  ;;  %2867 = vrot.lane.b32.xlu1 %v2796_v38, %s7245_s1 }
 0x103   :  { %1783 = vmatprep.subr.mxu0 %v8434_v6  ;;  %1966 = vmatprep.subr.mxu1 %v8434_v6  ;;  %v14387_v6 = vld [vmem:[#allocation26_spill] sm:$0xff] }
 0x104   :  { %1784 = vmatpush1.msra.mxu0 %v8443_v20  ;;  %1967 = vmatpush1.msra.mxu1 %v8443_v20  ;;  %v14388_v20 = vld [vmem:[#allocation27_spill] sm:$0xff] }
 0x105   :  { %1785 = vmatprep.subr.mxu0 %v8450_v30  ;;  %1968 = vmatprep.subr.mxu1 %v8450_v30  ;;  %v14389_v30 = vld [vmem:[#allocation28_spill] sm:$0xff] }
 0x106   :  { %6962 = vrot.lane.b32.xlu0 %v6961_v46, %s7245_s1  ;;  %2968 = vrot.lane.b32.xlu1 %v9024_v53, %s7245_s1 }
 0x107   :  { %1786 = vmatpush1.msra.mxu0 %v8459_v29  ;;  %1969 = vmatpush1.msra.mxu1 %v8459_v29 }
 0x108   :  { %1787 = vmatprep.subr.mxu0 %v8466_v14  ;;  %1970 = vmatprep.subr.mxu1 %v8466_v14  ;;  %v14390_v14 = vld [vmem:[#allocation29_spill] sm:$0xff] }
 0x109   :  { %1788 = vmatpush1.msra.mxu0 %v14381_v62  ;;  %1971 = vmatpush1.msra.mxu1 %v14381_v62 }
 0x10a   :  { %2972 = vrot.lane.b32.xlu0 %v9052_v32, %s7245_s1  ;;  %6967 = vrot.lane.b32.xlu1 %v6961_v46, %s7245_s1  ;;  %v14391_v32 = vld [vmem:[#allocation30_spill] sm:$0xff] }
 0x10b   :  { %1789 = vmatprep.subr.mxu0 %v14382_v57  ;;  %1972 = vmatprep.subr.mxu1 %v14382_v57 }
 0x10c   :  { %1790 = vmatpush1.msra.mxu0 %v14383_v15  ;;  %1973 = vmatpush1.msra.mxu1 %v14383_v15 }
 0x10d   :  { %1791 = vmatprep.subr.mxu0 %v14384_v0  ;;  %1974 = vmatprep.subr.mxu1 %v14384_v0 }
 0x10e   :  { %2976 = vrot.lane.b32.xlu0 %v9066_v22, %s7245_s1  ;;  %2980 = vrot.lane.b32.xlu1 %v9082_v23, %s7245_s1  ;;  %v14396_v23 = vld [vmem:[#allocation35_spill] sm:$0xff] }
 0x10f   :  { %1792 = vmatpush1.msra.mxu0 %v14385_v63  ;;  %1975 = vmatpush1.msra.mxu1 %v14385_v63 }
 0x110   :  { %1793 = vmatprep.subr.mxu0 %v14386_v5  ;;  %1976 = vmatprep.subr.mxu1 %v14386_v5 }
 0x111   :  { %1794 = vmatpush1.msra.mxu0 %v14387_v6  ;;  %1977 = vmatpush1.msra.mxu1 %v14387_v6  ;;  %v6703_v6 = vld [vmem:[%s14072_s0 + $0x5] ss:$8 sm:$0x3] }
 0x112   :  { %1795 = vmatprep.subr.mxu0 %v14388_v20  ;;  %1978 = vmatprep.subr.mxu1 %v14388_v20  ;;  %v6704_v20 = vld [vmem:[%s14072_s0 + $0x15] ss:$8 sm:$0x3] }
 0x113   :  { %1796 = vmatpush1.msra.mxu0 %v14389_v30  ;;  %1979 = vmatpush1.msra.mxu1 %v14389_v30 }
 0x114   :  { %v9188_v29 = vpop.f32.mrf.mxu0  ;;  %1797 = vmatprep.subr.mxu0 %v14390_v14  ;;  %1980 = vmatprep.subr.mxu1 %v14390_v14  ;;  %v6705_v14 = vld [vmem:[%s14072_s0 + $0x25] ss:$8 sm:$0x3] }
 0x115   :  { %371 = vst [vmem:[#allocation2 + $0x40] sm:$0xff] %v9188_v29  ;;  %v9193_v53 = vpop.f32.mrf.mxu1  ;;  %2188 = vrot.lane.b32.xlu1 %v9188_v29, %s7237_s19  ;;  %2108 = vrot.lane.b32.xlu0 %v9188_v29, %s7235_s17  ;;  %v2316_v58 = vmul.f32 %v8484_v11, %v9188_v29 }
 0x116   :  { %554 = vst [vmem:[#allocation2 + $0x60] sm:$0xff] %v9193_v53  ;;  %v361_v47 = vpop.f32.mrf.mxu0  ;;  %1798 = vmatpush1.msra.mxu0 %v14391_v32  ;;  %1981 = vmatpush1.msra.mxu1 %v14391_v32  ;;  %v2320_v44 = vmul.f32 %v8500_v37, %v9193_v53  ;;  %v6708_v32 = vld [vmem:[%s14072_s0 + $0x55] ss:$8 sm:$0x3] }
 0x117   :  { %372 = vst.msk [vmem:[#allocation2 + $0x48] sm:$0xff] %vm22_vm0, %v361_v47  ;;  %v545_v40 = vpop.f32.mrf.mxu1  ;;  %1799 = vmatprep.subr.mxu0 %v14392_v28  ;;  %1982 = vmatprep.subr.mxu1 %v14392_v28  ;;  %v6707_v47 = vld [vmem:[%s14072_s0 + $0x45] ss:$8 sm:$0x3] }
 0x118   :  { %555 = vst.msk [vmem:[#allocation2 + $0x68] sm:$0xff] %vm22_vm0, %v545_v40  ;;  %1800 = vmatpush2.msra.mxu0 %v14393_v4  ;;  %1983 = vmatpush2.msra.mxu1 %v14393_v4  ;;  %v6709_v40 = vld [vmem:[%s14072_s0 + $0x65] ss:$8 sm:$0x3] }
 0x119   :  { %2192 = vrot.lane.b32.xlu1 %v9193_v53, %s7237_s19  ;;  %2112 = vrot.lane.b32.xlu0 %v9193_v53, %s7235_s17  ;;  %v6710_v28 = vld [vmem:[%s14072_s0 + $0x75] ss:$8 sm:$0x3]  ;;  %v6721_v4 = vld [vmem:[%s14072_s0 + $0x6] ss:$8 sm:$0x3] }
 0x11a   :  { %1801 = vmatprep.subr.mxu0 %v14394_v1  ;;  %1984 = vmatprep.subr.mxu1 %v14394_v1  ;;  %v6722_v1 = vld [vmem:[%s14072_s0 + $0x16] ss:$8 sm:$0x3] }
 0x11b   :  { %v365_v22 = vpop.f32.mrf.mxu0  ;;  %v549_v25 = vpop.f32.mrf.mxu1  ;;  %1802 = vmatpush2.msra.mxu0 %v14395_v60  ;;  %1985 = vmatpush2.msra.mxu1 %v14395_v60  ;;  %v6723_v60 = vld [vmem:[%s14072_s0 + $0x26] ss:$8 sm:$0x3] }
 0x11c   :  { %373 = vst [vmem:[#allocation2 + $0x50] sm:$0x1] %v365_v22  ;;  %556 = vst [vmem:[#allocation2 + $0x70] sm:$0x1] %v549_v25  ;;  %1803 = vmatprep.subr.mxu0 %v14396_v23  ;;  %1986 = vmatprep.subr.mxu1 %v14396_v23 }
 0x11d   :  { %v367_v7 = vpop.f32.mrf.mxu0  ;;  %v551_v34 = vpop.f32.mrf.mxu1  ;;  %2533 = vrot.lane.b32.xlu1 %v9188_v29, %s7241_s16  ;;  %2982 = vrot.lane.b32.xlu0 %v9188_v29, %s7245_s1  ;;  %v6724_v23 = vld [vmem:[%s14072_s0 + $0x36] ss:$8 sm:$0x3] }
 0x11e   :  { %375 = vst.msk [vmem:[#allocation2 + $0x58] sm:$0x1] %vm374_vm2, %v367_v7  ;;  %557 = vst.msk [vmem:[#allocation2 + $0x78] sm:$0x1] %vm374_vm2, %v551_v34  ;;  %1804 = vmatpush2.msra.mxu0 %v14397_v31  ;;  %1987 = vmatpush2.msra.mxu1 %v14397_v31 }
 0x11f   :  { %1805 = vmatprep.subr.mxu0 %v8724_v49  ;;  %1988 = vmatprep.subr.mxu1 %v8724_v49  ;;  %v9240_v49 = vld [vmem:[#allocation2 + $0x48] sm:$0xff] }
 0x120   :  { %1806 = vmatpush2.msra.mxu0 %v14398_v8  ;;  %1989 = vmatpush2.msra.mxu1 %v14398_v8  ;;  %v9251_v42 = vld [vmem:[#allocation2 + $0x68] sm:$0xff]  ;;  %v6726_v8 = vld [vmem:[%s14072_s0 + $0x56] ss:$8 sm:$0x3] }
 0x121   :  { %2541 = vrot.lane.b32.xlu1 %v9193_v53, %s7241_s16  ;;  %2990 = vrot.lane.b32.xlu0 %v9193_v53, %s7245_s1  ;;  %v6725_v31 = vld [vmem:[%s14072_s0 + $0x46] ss:$8 sm:$0x3] }
 0x122   :  { %1807 = vmatprep.subr.mxu0 %v14399_v39  ;;  %1990 = vmatprep.subr.mxu1 %v14399_v39  ;;  %v1594_v39 = vadd.f32 %v6721_v4, %v6703_v6 }
 0x123   :  { %1808 = vmatpush2.msra.mxu0 %v8773_v18  ;;  %1991 = vmatpush2.msra.mxu1 %v8773_v18  ;;  %v2797_v18 = vmul.f32 %v9078_v48, %v9188_v29 }
 0x124   :  { %1809 = vmatprep.subr.mxu0 %v14400_v61  ;;  %1992 = vmatprep.subr.mxu1 %v14400_v61 }
 0x125   :  { %2388 = vrot.lane.b32.xlu1 %v2316_v58, %s7241_s16  ;;  %2535 = vrot.lane.b32.xlu0 %v9240_v49, %s7241_s16  ;;  %v2275_v57 = vld [vmem:[#allocation2 + $0x78] sm:$0xff]  ;;  %v1595_v58 = vadd.f32 %v6722_v1, %v6704_v20 }
 0x126   :  { %1810 = vmatpush2.msra.mxu0 %v8805_v52  ;;  %1993 = vmatpush2.msra.mxu1 %v8805_v52  ;;  %v2801_v52 = vmul.f32 %v9104_v41, %v9193_v53  ;;  %v6706_v53 = vld [vmem:[%s14072_s0 + $0x35] ss:$8 sm:$0x3] }
 0x127   :  { %1811 = vmatprep.subr.mxu0 %v8812_v16  ;;  %1994 = vmatprep.subr.mxu1 %v8812_v16  ;;  %v2053_v16 = vld [vmem:[#allocation2 + $0x50] sm:$0xff]  ;;  %v1597_v61 = vadd.f32 %v6724_v23, %v6706_v53 }
 0x128   :  { %1812 = vmatpush2.msra.mxu0 %v8827_v50  ;;  %1995 = vmatpush2.msra.mxu1 %v8827_v50  ;;  %v2055_v50 = vld [vmem:[#allocation2 + $0x70] sm:$0xff]  ;;  %v2799_v63 = vmul.f32 %v9098_v17, %v2053_v16 }
 0x129   :  { %2396 = vrot.lane.b32.xlu1 %v2320_v44, %s7241_s16  ;;  %2543 = vrot.lane.b32.xlu0 %v9251_v42, %s7241_s16  ;;  %v2322_v62 = vmul.f32 %v8530_v43, %v2055_v50  ;;  %v2803_v5 = vmul.f32 %v9126_v2, %v2055_v50  ;;  %v6727_v44 = vld [vmem:[%s14072_s0 + $0x66] ss:$8 sm:$0x3]  ;;  %v6746_v53 = vld [vmem:[%s14072_s0 + $0x77] ss:$8 sm:$0x3] }
 0x12a   :  { %1813 = vmatprep.subr.mxu0 %v8834_v54  ;;  %1996 = vmatprep.subr.mxu1 %v8834_v54  ;;  %v14401_v54 = vld [vmem:[#allocation43_spill] sm:$0xff] }
 0x12b   :  { %1814 = vmatpush2.msra.mxu0 %v8852_v12  ;;  %1997 = vmatpush2.msra.mxu1 %v8852_v12  ;;  %v2317_v12 = vmul.f32 %v8484_v11, %v9240_v49 }
 0x12c   :  { %1815 = vmatprep.subr.mxu0 %v8865_v3  ;;  %1998 = vmatprep.subr.mxu1 %v8865_v3  ;;  %v14402_v3 = vld [vmem:[#allocation45_spill] sm:$0xff] }
 0x12d   :  { %2984 = vrot.lane.b32.xlu1 %v9240_v49, %s7245_s1  ;;  %2869 = vrot.lane.b32.xlu0 %v2797_v18, %s7245_s1  ;;  %v1598_v18 = vadd.f32 %v6725_v31, %v6707_v47 }
 0x12e   :  { %1816 = vmatpush2.msra.mxu0 %v8884_v27  ;;  %1999 = vmatpush2.msra.mxu1 %v8884_v27  ;;  %v14403_v27 = vld [vmem:[#allocation46_spill] sm:$0xff] }
 0x12f   :  { %1817 = vmatprep.subr.mxu0 %v8892_v33  ;;  %2000 = vmatprep.subr.mxu1 %v8892_v33  ;;  %v2321_v33 = vmul.f32 %v8500_v37, %v9251_v42 }
 0x130   :  { %1818 = vmatpush2.msra.mxu0 %v8909_v59  ;;  %2001 = vmatpush2.msra.mxu1 %v8909_v59  ;;  %v2798_v59 = vmul.f32 %v9078_v48, %v9240_v49  ;;  %v1596_v49 = vadd.f32 %v6723_v60, %v6705_v14  ;;  %v6745_v14 = vld [vmem:[%s14072_s0 + $0x67] ss:$8 sm:$0x3] }
 0x131   :  { %2992 = vrot.lane.b32.xlu1 %v9251_v42, %s7245_s1  ;;  %2877 = vrot.lane.b32.xlu0 %v2801_v52, %s7245_s1  ;;  %v1599_v52 = vadd.f32 %v6726_v8, %v6708_v32  ;;  %v6711_v8 = vld [vmem:[%s14072_s0 + $0x85] ss:$8 sm:$0x3] }
 0x132   :  { %1819 = vmatprep.subr.mxu0 %v8925_v10  ;;  %2002 = vmatprep.subr.mxu1 %v8925_v10 }
 0x133   :  { %1820 = vmatpush2.msra.mxu0 %v8932_v45  ;;  %2003 = vmatpush2.msra.mxu1 %v8932_v45 }
 0x134   :  { %1821 = vmatprep.subr.mxu0 %v8939_v56  ;;  %2004 = vmatprep.subr.mxu1 %v8939_v56  ;;  %v2802_v56 = vmul.f32 %v9104_v41, %v9251_v42  ;;  %v6728_v42 = vld [vmem:[%s14072_s0 + $0x76] ss:$8 sm:$0x3] }
 0x135   :  { %2190 = vrot.lane.b32.xlu0 %v2053_v16, %s7237_s19  ;;  %2110 = vrot.lane.b32.xlu1 %v2053_v16, %s7235_s17 }
 0x136   :  { %1822 = vmatpush2.msra.mxu0 %v8950_v51  ;;  %2005 = vmatpush2.msra.mxu1 %v8950_v51  ;;  %v14404_v51 = vld [vmem:[#allocation48_spill] sm:$0xff] }
 0x137   :  { %1823 = vmatprep.subr.mxu0 %v8959_v24  ;;  %2006 = vmatprep.subr.mxu1 %v8959_v24 }
 0x138   :  { %1824 = vmatpush2.msra.mxu0 %v8967_v26  ;;  %2007 = vmatpush2.msra.mxu1 %v8967_v26 }
 0x139   :  { %2194 = vrot.lane.b32.xlu0 %v2055_v50, %s7237_s19  ;;  %2114 = vrot.lane.b32.xlu1 %v2055_v50, %s7235_s17 }
 0x13a   :  { %1825 = vmatprep.subr.mxu0 %v14401_v54  ;;  %2008 = vmatprep.subr.mxu1 %v14401_v54  ;;  %v2804_v54 = vmul.f32 %v9126_v2, %v2275_v57 }
 0x13b   :  { %1826 = vmatpush2.msra.mxu0 %v14402_v3  ;;  %2009 = vmatpush2.msra.mxu1 %v14402_v3  ;;  %v1600_v3 = vadd.f32 %v6727_v44, %v6709_v40 }
 0x13c   :  { %1827 = vmatprep.subr.mxu0 %v14403_v27  ;;  %2010 = vmatprep.subr.mxu1 %v14403_v27  ;;  %v1601_v27 = vadd.f32 %v6728_v42, %v6710_v28 }
 0x13d   :  { %2390 = vrot.lane.b32.xlu0 %v2317_v12, %s7241_s16  ;;  %2537 = vrot.lane.b32.xlu1 %v2053_v16, %s7241_s16  ;;  %v2323_v12 = vmul.f32 %v8530_v43, %v2275_v57  ;;  %v1654_v4 = vadd.f32 %v6745_v14, %v1600_v3  ;;  %v6714_v14 = vld [vmem:[%s14072_s0 + $0xb5] ss:$8 sm:$0x3] }
 0x13e   :  { %1828 = vmatpush2.msra.mxu0 %v14404_v51  ;;  %2011 = vmatpush2.msra.mxu1 %v14404_v51  ;;  %v6741_v51 = vld [vmem:[%s14072_s0 + $0x27] ss:$8 sm:$0x3]  ;;  %v1655_v1 = vadd.f32 %v6746_v53, %v1601_v27  ;;  %v6715_v53 = vld [vmem:[%s14072_s0 + $0xc5] ss:$8 sm:$0x3] }
 0x13f   :  { %1829 = vmatprep.subr.mxu0 %v9035_v35  ;;  %2012 = vmatprep.subr.mxu1 %v9035_v35  ;;  %v2318_v35 = vmul.f32 %v8454_v13, %v2053_v16  ;;  %v6747_v27 = vld [vmem:[%s14072_s0 + $0x87] ss:$8 sm:$0x3] }
 0x140   :  { %1830 = vmatpush2.msra.mxu0 %v9044_v55  ;;  %2013 = vmatpush2.msra.mxu1 %v9044_v55  ;;  %v2271_v55 = vld [vmem:[#allocation2 + $0x58] sm:$0xff] }
 0x141   :  { %2398 = vrot.lane.b32.xlu0 %v2321_v33, %s7241_s16  ;;  %2545 = vrot.lane.b32.xlu1 %v2055_v50, %s7241_s16  ;;  %v2800_v22 = vmul.f32 %v9098_v17, %v2271_v55  ;;  %v2319_v25 = vmul.f32 %v8454_v13, %v2271_v55  ;;  %v6742_v33 = vld [vmem:[%s14072_s0 + $0x37] ss:$8 sm:$0x3] }
 0x142   :  { %v9322_v45 = vpop.permute.xlu1 %2613 }
 0x144   :  { %v9320_v10 = vpop.permute.xlu0 %2615 }
 0x145   :  { %2986 = vrot.lane.b32.xlu0 %v2053_v16, %s7245_s1  ;;  %2871 = vrot.lane.b32.xlu1 %v2798_v59, %s7245_s1  ;;  %v6739_v16 = vld [vmem:[%s14072_s0 + $0x7] ss:$8 sm:$0x3] }
 0x149   :  { %v9328_v24 = vpop.permute.xlu0 %2619  ;;  %v9330_v26 = vpop.permute.xlu1 %2617  ;;  %2994 = vrot.lane.b32.xlu0 %v2055_v50, %s7245_s1  ;;  %2879 = vrot.lane.b32.xlu1 %v2802_v56, %s7245_s1  ;;  %v6740_v50 = vld [vmem:[%s14072_s0 + $0x17] ss:$8 sm:$0x3] }
 0x14a   :  { %14405 = vst [vmem:[#allocation19_spill] sm:$0xff] %v9328_v24  ;;  %14406 = vst [vmem:[#allocation20_spill] sm:$0xff] %v9330_v26 }
 0x14d   :  { %2392 = vrot.lane.b32.xlu1 %v2318_v35, %s7241_s16  ;;  %2539 = vrot.lane.b32.xlu0 %v2271_v55, %s7241_s16  ;;  %v6743_v35 = vld [vmem:[%s14072_s0 + $0x47] ss:$8 sm:$0x3] }
 0x14e   :  { %v9337_v38 = vpop.permute.xlu0 %2693  ;;  %v9339_v46 = vpop.permute.xlu1 %2695  ;;  %v1652_v47 = vadd.f32 %v6743_v35, %v1598_v18 }
 0x14f   :  { %14407 = vst [vmem:[#allocation21_spill] sm:$0xff] %v9337_v38  ;;  %14408 = vst [vmem:[#allocation22_spill] sm:$0xff] %v9339_v46 }
 0x151   :  { %2400 = vrot.lane.b32.xlu1 %v2322_v62, %s7241_s16  ;;  %2547 = vrot.lane.b32.xlu0 %v2275_v57, %s7241_s16  ;;  %v1648_v62 = vadd.f32 %v6739_v16, %v1594_v39  ;;  %v6729_v39 = vld [vmem:[%s14072_s0 + $0x86] ss:$8 sm:$0x3] }
 0x152   :  { %v1602_v16 = vadd.f32 %v6729_v39, %v6711_v8 }
 0x153   :  { %v9344_v15 = vpop.permute.xlu0 %2697  ;;  %v9346_v0 = vpop.permute.xlu1 %2699 }
 0x154   :  { %14409 = vst [vmem:[#allocation23_spill] sm:$0xff] %v9344_v15  ;;  %14410 = vst [vmem:[#allocation24_spill] sm:$0xff] %v9346_v0 }
 0x155   :  { %2988 = vrot.lane.b32.xlu1 %v2271_v55, %s7245_s1  ;;  %2873 = vrot.lane.b32.xlu0 %v2799_v63, %s7245_s1  ;;  %v6744_v55 = vld [vmem:[%s14072_s0 + $0x57] ss:$8 sm:$0x3]  ;;  %v1650_v63 = vadd.f32 %v6741_v51, %v1596_v49 }
 0x156   :  { %v1653_v32 = vadd.f32 %v6744_v55, %v1599_v52 }
 0x158   :  { %v9358_v30 = vpop.permute.xlu0 %2374  ;;  %v9360_v29 = vpop.permute.xlu1 %2372  ;;  %v1677_v31 = vcombine.low %v1652_v47, %v1653_v32  ;;  %v6730_v47 = vld [vmem:[%s14072_s0 + $0x96] ss:$8 sm:$0x3] }
 0x159   :  { %2996 = vrot.lane.b32.xlu1 %v2275_v57, %s7245_s1  ;;  %2881 = vrot.lane.b32.xlu0 %v2803_v5, %s7245_s1  ;;  %v1649_v57 = vadd.f32 %v6740_v50, %v1595_v58  ;;  %v1651_v5 = vadd.f32 %v6742_v33, %v1597_v61  ;;  %v1678_v58 = vcombine.low %v1654_v4, %v1655_v1  ;;  %v6716_v4 = vld [vmem:[%s14072_s0 + $0xd5] ss:$8 sm:$0x3]  ;;  %v6717_v1 = vld [vmem:[%s14072_s0 + $0xe5] ss:$8 sm:$0x3] }
 0x15a   :  { %v1699_v18 = vrot.slane %v1677_v31, %v7813_v36  ;;  %v6732_v31 = vld [vmem:[%s14072_s0 + $0xb6] ss:$8 sm:$0x3] }
 0x15b   :  { %v1675_v60 = vcombine.low %v1648_v62, %v1649_v57  ;;  %v1676_v23 = vcombine.low %v1650_v63, %v1651_v5  ;;  %v1706_v52 = vrot.slane %v1678_v58, %v7813_v36  ;;  %v6712_v62 = vld [vmem:[%s14072_s0 + $0x95] ss:$8 sm:$0x3]  ;;  %v6713_v5 = vld [vmem:[%s14072_s0 + $0xa5] ss:$8 sm:$0x3] }
 0x15c   :  { %v9396_v7 = vpop.permute.xlu0 %2378  ;;  %v9398_v34 = vpop.permute.xlu1 %2376  ;;  %v6719_v58 = vld [vmem:[%s14072_s0 + $0x105] ss:$8 sm:$0x3] }
 0x15d   :  { %2875 = vrot.lane.b32.xlu1 %v2800_v22, %s7245_s1  ;;  %2394 = vrot.lane.b32.xlu0 %v2319_v25, %s7241_s16  ;;  %v1685_v44 = vrot.slane %v1675_v60, %v7813_v36  ;;  %v1692_v42 = vrot.slane %v1676_v23, %v7813_v36  ;;  %v1709_v35 = vcombine.low %v1699_v18, %v1706_v52  ;;  %v6718_v60 = vld [vmem:[%s14072_s0 + $0xf5] ss:$8 sm:$0x3]  ;;  %v6731_v23 = vld [vmem:[%s14072_s0 + $0xa6] ss:$8 sm:$0x3] }
 0x15e   :  { %v1710_v55 = vcombine.high %v1699_v18, %v1706_v52  ;;  %v6735_v18 = vld [vmem:[%s14072_s0 + $0xe6] ss:$8 sm:$0x3]  ;;  %v6736_v52 = vld [vmem:[%s14072_s0 + $0xf6] ss:$8 sm:$0x3] }
 0x15f   :  { %v1708_v3 = vcombine.high %v1685_v44, %v1692_v42 }
 0x160   :  { %v9428_v59 = vpop.permute.xlu0 %2382  ;;  %v9430_v56 = vpop.permute.xlu1 %2380  ;;  %v1738_v32 = vrot.slane %v1710_v55, %v7813_v36  ;;  %v6749_v55 = vld [vmem:[%s14072_s0 + $0xa7] ss:$8 sm:$0x3] }
 0x161   :  { %v9438_v6 = vpop.f32.mrf.mxu0  ;;  %v9440_v20 = vpop.f32.mrf.mxu1  ;;  %2883 = vrot.lane.b32.xlu1 %v2804_v54, %s7245_s1  ;;  %2402 = vrot.lane.b32.xlu0 %v2323_v12, %s7241_s16  ;;  %v1707_v12 = vcombine.low %v1685_v44, %v1692_v42  ;;  %v1724_v57 = vrot.slane %v1708_v3, %v7813_v36  ;;  %v6737_v3 = vld [vmem:[%s14072_s0 + $0x106] ss:$8 sm:$0x3] }
 0x162   :  { %863 = vst [vmem:[#allocation2 + $0x80] sm:$0xff] %v9438_v6  ;;  %1045 = vst [vmem:[#allocation2 + $0xa0] sm:$0xff] %v9440_v20 }
 0x163   :  { %v853_v40 = vpop.f32.mrf.mxu0  ;;  %v1036_v28 = vpop.f32.mrf.mxu1  ;;  %v1717_v63 = vrot.slane %v1707_v12, %v7813_v36  ;;  %v1740_v44 = vcombine.low %v1724_v57, %v1738_v32 }
 0x164   :  { %v9452_v22 = vpop.permute.xlu0 %2386  ;;  %v9454_v25 = vpop.permute.xlu1 %2384  ;;  %864 = vst.msk [vmem:[#allocation2 + $0x88] sm:$0xff] %vm22_vm0, %v853_v40  ;;  %1046 = vst.msk [vmem:[#allocation2 + $0xa8] sm:$0xff] %vm22_vm0, %v1036_v28  ;;  %v1731_v40 = vrot.slane %v1709_v35, %v7813_v36  ;;  %v1656_v28 = vadd.f32 %v6747_v27, %v1602_v16  ;;  %v1603_v16 = vadd.f32 %v6730_v47, %v6712_v62  ;;  %v6748_v27 = vld [vmem:[%s14072_s0 + $0x97] ss:$8 sm:$0x3] }
 0x165   :  { %2196 = vrot.lane.b32.xlu1 %v9438_v6, %s7237_s19  ;;  %2116 = vrot.lane.b32.xlu0 %v9438_v6, %s7235_s17  ;;  %v6750_v62 = vld [vmem:[%s14072_s0 + $0xb7] ss:$8 sm:$0x3] }
 0x166   :  { %v857_v49 = vpop.f32.mrf.mxu0  ;;  %v1040_v61 = vpop.f32.mrf.mxu1  ;;  %v1739_v42 = vcombine.low %v1717_v63, %v1731_v40  ;;  %v1747_v12 = vrot.slane %v1656_v28, %v7813_v36  ;;  %1831 = vmatprep.mubr.f32.mxu0 %v1740_v44  ;;  %v1608_v40 = vadd.f32 %v6735_v18, %v6717_v1  ;;  %v1609_v28 = vadd.f32 %v6736_v52, %v6718_v60  ;;  %v6754_v1 = vld [vmem:[%s14072_s0 + $0xf7] ss:$8 sm:$0x3] }
 0x167   :  { %865 = vst [vmem:[#allocation2 + $0x90] sm:$0x1] %v857_v49  ;;  %1047 = vst [vmem:[#allocation2 + $0xb0] sm:$0x1] %v1040_v61  ;;  %v1657_v60 = vadd.f32 %v6748_v27, %v1603_v16 }
 0x168   :  { %v9472_v50 = vpop.permute.xlu0 %2853  ;;  %v9474_v54 = vpop.permute.xlu1 %2855  ;;  %v6733_v49 = vld [vmem:[%s14072_s0 + $0xc6] ss:$8 sm:$0x3]  ;;  %v6734_v61 = vld [vmem:[%s14072_s0 + $0xd6] ss:$8 sm:$0x3]  ;;  %1832 = vmatmul.mubr.f32.vlgmr.msra.gmra.mxu0 %v1739_v42  ;;  %v1748_v47 = vcombine.high %v1747_v12, %v1747_v12  ;;  %v1663_v27 = vadd.f32 %v6754_v1, %v1609_v28 }
 0x169   :  { %14411 = vst [vmem:[#allocation26_spill] sm:$0xff] %v9472_v50  ;;  %14412 = vst [vmem:[#allocation27_spill] sm:$0xff] %v9474_v54  ;;  %v859_v51 = vpop.f32.mrf.mxu0  ;;  %v1042_v33 = vpop.f32.mrf.mxu1  ;;  %2200 = vrot.lane.b32.xlu1 %v9440_v20, %s7237_s19  ;;  %2120 = vrot.lane.b32.xlu0 %v9440_v20, %s7235_s17  ;;  %v1606_v35 = vadd.f32 %v6733_v49, %v6715_v53  ;;  %v1607_v32 = vadd.f32 %v6734_v61, %v6716_v4  ;;  %v6753_v4 = vld [vmem:[%s14072_s0 + $0xe7] ss:$8 sm:$0x3] }
 0x16a   :  { %866 = vst.msk [vmem:[#allocation2 + $0x98] sm:$0x1] %vm374_vm2, %v859_v51  ;;  %1048 = vst.msk [vmem:[#allocation2 + $0xb8] sm:$0x1] %vm374_vm2, %v1042_v33  ;;  %v1604_v51 = vadd.f32 %v6731_v23, %v6713_v5  ;;  %v1605_v33 = vadd.f32 %v6732_v31, %v6714_v14  ;;  %v1610_v53 = vadd.f32 %v6737_v3, %v6719_v58 }
 0x16b   :  { %v6751_v5 = vld [vmem:[%s14072_s0 + $0xc7] ss:$8 sm:$0x3]  ;;  %v6752_v14 = vld [vmem:[%s14072_s0 + $0xd7] ss:$8 sm:$0x3]  ;;  %v2324_v31 = vmul.f32 %v8484_v11, %v9438_v6  ;;  %v1762_v58 = vrot.slane %v1748_v47, %v7813_v36  ;;  %v1662_v16 = vadd.f32 %v6753_v4, %v1608_v40 }
 0x16c   :  { %v9519_v8 = vpop.permute.xlu0 %2857  ;;  %v9521_v39 = vpop.permute.xlu1 %2859  ;;  %v6755_v23 = vld [vmem:[%s14072_s0 + $0x107] ss:$8 sm:$0x3]  ;;  %v1658_v61 = vadd.f32 %v6749_v55, %v1604_v51  ;;  %v1659_v44 = vadd.f32 %v6750_v62, %v1605_v33  ;;  %v1660_v52 = vadd.f32 %v6751_v5, %v1606_v35  ;;  %v1661_v3 = vadd.f32 %v6752_v14, %v1607_v32  ;;  %v6756_v47 = vld [vmem:[%s14072_s0 + $0x117] ss:$8 sm:$0x3] }
 0x16d   :  { %14413 = vst [vmem:[#allocation28_spill] sm:$0xff] %v9519_v8  ;;  %14414 = vst [vmem:[#allocation29_spill] sm:$0xff] %v9521_v39  ;;  %2549 = vrot.lane.b32.xlu1 %v9438_v6, %s7241_s16  ;;  %2998 = vrot.lane.b32.xlu0 %v9438_v6, %s7245_s1  ;;  %v9580_v49 = vld [vmem:[#allocation2 + $0x88] sm:$0xff]  ;;  %v1664_v51 = vadd.f32 %v6755_v23, %v1610_v53  ;;  %v1755_v62 = vrot.slane %v1747_v12, %v7813_v36 }
 0x16e   :  { %v1858_v33 = vcombine.low %v1657_v60, %v1658_v61  ;;  %1837 = vmatprep.mubr.f32.mxu0 %v1762_v58  ;;  %v1859_v35 = vcombine.low %v1659_v44, %v1660_v52  ;;  %v1860_v55 = vcombine.low %v1661_v3, %v1662_v16  ;;  %v2328_v32 = vmul.f32 %v8500_v37, %v9440_v20  ;;  %v2281_v53 = vld [vmem:[#allocation2 + $0xa8] sm:$0xff] }
 0x16f   :  { %v1861_v40 = vcombine.low %v1663_v27, %v1664_v51  ;;  %1838 = vmatmul.mubr.f32.gmra.mxu0 %v1755_v62 }
 0x170   :  { %v9555_v57 = vpop.permute.xlu0 %2861  ;;  %v9557_v63 = vpop.permute.xlu1 %2863  ;;  %v1868_v28 = vrot.slane %v1858_v33, %v7813_v36  ;;  %v1875_v1 = vrot.slane %v1859_v35, %v7813_v36  ;;  %v1882_v12 = vrot.slane %v1860_v55, %v7813_v36  ;;  %v2809_v35 = vmul.f32 %v9104_v41, %v9440_v20 }
 0x171   :  { %14415 = vst [vmem:[#allocation30_spill] sm:$0xff] %v9555_v57  ;;  %14416 = vst [vmem:[#allocation31_spill] sm:$0xff] %v9557_v63  ;;  %2557 = vrot.lane.b32.xlu1 %v9440_v20, %s7241_s16  ;;  %3006 = vrot.lane.b32.xlu0 %v9440_v20, %s7245_s1  ;;  %v6720_v57 = vld [vmem:[%s14072_s0 + $0x115] ss:$8 sm:$0x3]  ;;  %v1889_v60 = vrot.slane %v1861_v40, %v7813_v36 }
 0x172   :  { %v6738_v63 = vld [vmem:[%s14072_s0 + $0x116] ss:$8 sm:$0x3]  ;;  %v1891_v58 = vcombine.high %v1868_v28, %v1875_v1 }
 0x173   :  { %v1611_v5 = vadd.f32 %v6738_v63, %v6720_v57  ;;  %v2805_v57 = vmul.f32 %v9078_v48, %v9438_v6  ;;  %v1892_v63 = vcombine.low %v1882_v12, %v1889_v60  ;;  %v1893_v61 = vcombine.high %v1882_v12, %v1889_v60  ;;  %v2059_v12 = vld [vmem:[#allocation2 + $0xb0] sm:$0xff] }
 0x174   :  { %v9583_v42 = vpop.permute.xlu0 %2865  ;;  %v9585_v18 = vpop.permute.xlu1 %2867  ;;  %v1907_v3 = vrot.slane %v1891_v58, %v7813_v36 }
 0x175   :  { %14417 = vst [vmem:[#allocation32_spill] sm:$0xff] %v9583_v42  ;;  %14418 = vst [vmem:[#allocation33_spill] sm:$0xff] %v9585_v18  ;;  %2404 = vrot.lane.b32.xlu1 %v2324_v31, %s7241_s16  ;;  %2551 = vrot.lane.b32.xlu0 %v9580_v49, %s7241_s16  ;;  %v1665_v23 = vadd.f32 %v6756_v47, %v1611_v5  ;;  %v1890_v31 = vcombine.low %v1868_v28, %v1875_v1  ;;  %v2057_v5 = vld [vmem:[#allocation2 + $0x90] sm:$0xff] }
 0x176   :  { %v1921_v51 = vrot.slane %v1893_v61, %v7813_v36  ;;  %v1914_v6 = vrot.slane %v1892_v63, %v7813_v36 }
 0x177   :  { %v1930_v44 = vrot.slane %v1665_v23, %v7813_v36  ;;  %v1900_v16 = vrot.slane %v1890_v31, %v7813_v36 }
 0x178   :  { %v9603_v14 = vpop.permute.xlu0 %6962  ;;  %v9605_v4 = vpop.permute.xlu1 %2968  ;;  %v1923_v55 = vcombine.low %v1907_v3, %v1921_v51  ;;  %v2810_v51 = vmul.f32 %v9104_v41, %v2281_v53 }
 0x179   :  { %2412 = vrot.lane.b32.xlu1 %v2328_v32, %s7241_s16  ;;  %2559 = vrot.lane.b32.xlu0 %v2281_v53, %s7241_s16  ;;  %v1931_v33 = vcombine.high %v1930_v44, %v1930_v44  ;;  %v1922_v62 = vcombine.low %v1900_v16, %v1914_v6  ;;  %v1938_v28 = vrot.slane %v1930_v44, %v7813_v36 }
 0x17a   :  { %2014 = vmatprep.mubr.f32.mxu1 %v1923_v55  ;;  %v2806_v44 = vmul.f32 %v9078_v48, %v9580_v49  ;;  %v2279_v55 = vld [vmem:[#allocation2 + $0x98] sm:$0xff] }
 0x17b   :  { %v1945_v47 = vrot.slane %v1931_v33, %v7813_v36  ;;  %2015 = vmatmul.mubr.f32.vlgmr.msra.gmra.mxu1 %v1922_v62  ;;  %v2325_v36 = vmul.f32 %v8484_v11, %v9580_v49 }
 0x17c   :  { %v9615_v52 = vpop.permute.xlu1 %6967  ;;  %v9619_v27 = vpop.permute.xlu0 %2972 }
 0x17d   :  { %3000 = vrot.lane.b32.xlu1 %v9580_v49, %s7245_s1  ;;  %2885 = vrot.lane.b32.xlu0 %v2805_v57, %s7245_s1  ;;  %v2329_v57 = vmul.f32 %v8500_v37, %v2281_v53 }
 0x17e   :  { %2020 = vmatprep.mubr.f32.mxu1 %v1945_v47  ;;  %v2283_v47 = vld [vmem:[#allocation2 + $0xb8] sm:$0xff] }
 0x17f   :  { %2021 = vmatmul.mubr.f32.gmra.mxu1 %v1938_v28 }
 0x180   :  { %v9631_v32 = vpop.permute.xlu0 %2976  ;;  %v9633_v40 = vpop.permute.xlu1 %2980 }
 0x181   :  { %3008 = vrot.lane.b32.xlu1 %v2281_v53, %s7245_s1  ;;  %2893 = vrot.lane.b32.xlu0 %v2809_v35, %s7245_s1  ;;  %v2326_v35 = vmul.f32 %v8454_v13, %v2057_v5  ;;  %v2330_v53 = vmul.f32 %v8530_v43, %v2059_v12 }
 0x185   :  { %2118 = vrot.lane.b32.xlu1 %v2057_v5, %s7235_s17  ;;  %2198 = vrot.lane.b32.xlu0 %v2057_v5, %s7237_s19 }
 0x187   :  { %v9638_v20 = vpop.permute.xlu1 %2188  ;;  %v9640_v1 = vpop.permute.xlu0 %2108 }
 0x188   :  { %14419 = vst [vmem:[#allocation34_spill] sm:$0xff] %v9638_v20  ;;  %14420 = vst [vmem:[#allocation35_spill] sm:$0xff] %v9640_v1  ;;  %v6964_v1 = vunpack.i.l.bf16 %v9603_v14 }
 0x189   :  { %2122 = vrot.lane.b32.xlu1 %v2059_v12, %s7235_s17  ;;  %2202 = vrot.lane.b32.xlu0 %v2059_v12, %s7237_s19 }
 0x18b   :  { %v9644_v60 = vpop.permute.xlu1 %2192  ;;  %v9646_v23 = vpop.permute.xlu0 %2112 }
 0x18c   :  { %14421 = vst [vmem:[#allocation36_spill] sm:$0xff] %v9644_v60  ;;  %14422 = vst [vmem:[#allocation37_spill] sm:$0xff] %v9646_v23 }
 0x18d   :  { %2553 = vrot.lane.b32.xlu1 %v2057_v5, %s7241_s16  ;;  %2406 = vrot.lane.b32.xlu0 %v2325_v36, %s7241_s16 }
 0x18f   :  { %v9652_v31 = vpop.permute.xlu1 %2533  ;;  %v9654_v58 = vpop.permute.xlu0 %2982 }
 0x191   :  { %2561 = vrot.lane.b32.xlu1 %v2059_v12, %s7241_s16  ;;  %2414 = vrot.lane.b32.xlu0 %v2329_v57, %s7241_s16  ;;  %v2807_v57 = vmul.f32 %v9098_v17, %v2057_v5 }
 0x193   :  { %v9659_v63 = vpop.permute.xlu1 %2541  ;;  %v9661_v61 = vpop.permute.xlu0 %2990 }
 0x195   :  { %2887 = vrot.lane.b32.xlu1 %v2806_v44, %s7245_s1  ;;  %3002 = vrot.lane.b32.xlu0 %v2057_v5, %s7245_s1 }
 0x197   :  { %v9667_v3 = vpop.permute.xlu1 %2388  ;;  %v2536_v16 = vpop.permute.xlu0 %2535 }
 0x198   :  { %14423 = vst [vmem:[#allocation38_spill] sm:$0xff] %v9667_v3 }
 0x199   :  { %2895 = vrot.lane.b32.xlu1 %v2810_v51, %s7245_s1  ;;  %3010 = vrot.lane.b32.xlu0 %v2059_v12, %s7245_s1 }
 0x19b   :  { %v9672_v6 = vpop.permute.xlu1 %2396  ;;  %v2544_v33 = vpop.permute.xlu0 %2543 }
 0x19c   :  { %14424 = vst [vmem:[#allocation39_spill] sm:$0xff] %v9672_v6  ;;  %v2327_v6 = vmul.f32 %v8454_v13, %v2279_v55 }
 0x19d   :  { %2408 = vrot.lane.b32.xlu1 %v2326_v35, %s7241_s16  ;;  %2555 = vrot.lane.b32.xlu0 %v2279_v55, %s7241_s16  ;;  %v2811_v35 = vmul.f32 %v9126_v2, %v2059_v12 }
 0x19f   :  { %v9677_v49 = vpop.permute.xlu1 %2984  ;;  %v9679_v62 = vpop.permute.xlu0 %2869 }
 0x1a0   :  { %14425 = vst [vmem:[#allocation43_spill] sm:$0xff] %v9679_v62 }
 0x1a1   :  { %2416 = vrot.lane.b32.xlu1 %v2330_v53, %s7241_s16  ;;  %2563 = vrot.lane.b32.xlu0 %v2283_v47, %s7241_s16 }
 0x1a3   :  { %v9684_v28 = vpop.permute.xlu1 %2992  ;;  %v9686_v36 = vpop.permute.xlu0 %2877 }
 0x1a4   :  { %14426 = vst [vmem:[#allocation45_spill] sm:$0xff] %v9686_v36  ;;  %v2808_v36 = vmul.f32 %v9098_v17, %v2279_v55 }
 0x1a5   :  { %3004 = vrot.lane.b32.xlu1 %v2279_v55, %s7245_s1  ;;  %2889 = vrot.lane.b32.xlu0 %v2807_v57, %s7245_s1  ;;  %v2812_v55 = vmul.f32 %v9126_v2, %v2283_v47 }
 0x1a7   :  { %v9691_v44 = vpop.permute.xlu0 %2190  ;;  %v9693_v51 = vpop.permute.xlu1 %2110 }
 0x1a8   :  { %14427 = vst [vmem:[#allocation46_spill] sm:$0xff] %v9691_v44  ;;  %14428 = vst [vmem:[#allocation48_spill] sm:$0xff] %v9693_v51 }
 0x1a9   :  { %v9696_v62 = vpop.f32.mrf.mxu0  ;;  %v9698_v53 = vpop.f32.mrf.mxu1  ;;  %3012 = vrot.lane.b32.xlu1 %v2283_v47, %s7245_s1  ;;  %2897 = vrot.lane.b32.xlu0 %v2811_v35, %s7245_s1 }
 0x1aa   :  { %1354 = vst [vmem:[#allocation2 + $0xc0] sm:$0xff] %v9696_v62  ;;  %1536 = vst [vmem:[#allocation2 + $0xe0] sm:$0xff] %v9698_v53 }
 0x1ab   :  { %v1344_v5 = vpop.f32.mrf.mxu0  ;;  %v1527_v57 = vpop.f32.mrf.mxu1 }
 0x1ac   :  { %1355 = vst.msk [vmem:[#allocation2 + $0xc8] sm:$0xff] %vm22_vm0, %v1344_v5  ;;  %1537 = vst.msk [vmem:[#allocation2 + $0xe8] sm:$0xff] %vm22_vm0, %v1527_v57  ;;  %v9708_v12 = vpop.permute.xlu0 %2194  ;;  %v9710_v44 = vpop.permute.xlu1 %2114  ;;  %v2331_v5 = vmul.f32 %v8530_v43, %v2283_v47 }
 0x1ad   :  { %14429 = vst [vmem:[#allocation52_spill] sm:$0xff] %v9708_v12  ;;  %14430 = vst [vmem:[#allocation53_spill] sm:$0xff] %v9710_v44  ;;  %v1348_v3 = vpop.f32.mrf.mxu0  ;;  %v1531_v35 = vpop.f32.mrf.mxu1  ;;  %2891 = vrot.lane.b32.xlu1 %v2808_v36, %s7245_s1  ;;  %2410 = vrot.lane.b32.xlu0 %v2327_v6, %s7241_s16  ;;  %v7246_v44 = vmov 7  }
 0x1ae   :  { %1356 = vst [vmem:[#allocation2 + $0xd0] sm:$0x1] %v1348_v3  ;;  %1538 = vst [vmem:[#allocation2 + $0xf0] sm:$0x1] %v1531_v35  ;;  %6972 = vset.pattern.permute.xlu1 %v7246_v44  ;;  %6971 = vset.pattern.permute.xlu0 %v7246_v44  ;;  %v2585_v3 = vsel %vm2436_vm1, %v9652_v31, %v2536_v16 }
 0x1af   :  { %v1350_v60 = vpop.f32.mrf.mxu0  ;;  %v1533_v20 = vpop.f32.mrf.mxu1 }
 0x1b0   :  { %1357 = vst.msk [vmem:[#allocation2 + $0xd8] sm:$0x1] %vm374_vm2, %v1350_v60  ;;  %1539 = vst.msk [vmem:[#allocation2 + $0xf8] sm:$0x1] %vm374_vm2, %v1533_v20  ;;  %v9718_v57 = vpop.permute.xlu0 %2390  ;;  %v2538_v12 = vpop.permute.xlu1 %2537  ;;  %v2587_v20 = vsel %vm2436_vm1, %v9659_v63, %v2544_v33 }
 0x1b1   :  { %14431 = vst [vmem:[#allocation54_spill] sm:$0xff] %v9718_v57  ;;  %2899 = vrot.lane.b32.xlu1 %v2812_v55, %s7245_s1  ;;  %2418 = vrot.lane.b32.xlu0 %v2331_v5, %s7241_s16 }
 0x1b4   :  { %v9724_v6 = vpop.permute.xlu0 %2398  ;;  %v2546_v47 = vpop.permute.xlu1 %2545 }
 0x1b5   :  { %14432 = vst [vmem:[#allocation55_spill] sm:$0xff] %v9724_v6  ;;  %2621 = vrot.lane.b32.xlu1 %v2585_v3, %s7235_s17  ;;  %2701 = vrot.lane.b32.xlu0 %v2585_v3, %s7237_s19 }
 0x1b8   :  { %v9730_v60 = vpop.permute.xlu0 %2986  ;;  %v9732_v36 = vpop.permute.xlu1 %2871 }
 0x1b9   :  { %14433 = vst [vmem:[#allocation56_spill] sm:$0xff] %v9732_v36  ;;  %2625 = vrot.lane.b32.xlu1 %v2587_v20, %s7235_s17  ;;  %2705 = vrot.lane.b32.xlu0 %v2587_v20, %s7237_s19  ;;  %v2289_v36 = vld [vmem:[#allocation2 + $0xe8] sm:$0xff] }
 0x1ba   :  { %v2337_v42 = vmul.f32 %v8500_v37, %v2289_v36 }
 0x1bc   :  { %v9736_v44 = vpop.permute.xlu0 %2994  ;;  %v9738_v31 = vpop.permute.xlu1 %2879 }
 0x1bd   :  { %14434 = vst [vmem:[#allocation57_spill] sm:$0xff] %v9738_v31  ;;  %v2336_v31 = vmul.f32 %v8500_v37, %v9698_v53  ;;  %v2818_v37 = vmul.f32 %v9104_v41, %v2289_v36 }
 0x1c0   :  { %v9740_v16 = vpop.permute.xlu1 %2392  ;;  %v2540_v35 = vpop.permute.xlu0 %2539 }
 0x1c1   :  { %14435 = vst [vmem:[#allocation58_spill] sm:$0xff] %v9740_v16  ;;  %v2586_v55 = vsel %vm2436_vm1, %v2538_v12, %v2540_v35 }
 0x1c2   :  { %2703 = vrot.lane.b32.xlu1 %v2586_v55, %s7237_s19  ;;  %2623 = vrot.lane.b32.xlu0 %v2586_v55, %s7235_s17 }
 0x1c4   :  { %v9745_v63 = vpop.permute.xlu1 %2400  ;;  %v2548_v33 = vpop.permute.xlu0 %2547 }
 0x1c5   :  { %14436 = vst [vmem:[#allocation59_spill] sm:$0xff] %v9745_v63  ;;  %v2588_v5 = vsel %vm2436_vm1, %v2546_v47, %v2548_v33 }
 0x1c6   :  { %2707 = vrot.lane.b32.xlu1 %v2588_v5, %s7237_s19  ;;  %2627 = vrot.lane.b32.xlu0 %v2588_v5, %s7235_s17 }
 0x1c8   :  { %v9750_v3 = vpop.permute.xlu1 %2988  ;;  %v9752_v20 = vpop.permute.xlu0 %2873 }
 0x1c9   :  { %14437 = vst [vmem:[#allocation60_spill] sm:$0xff] %v9752_v20  ;;  %v2332_v20 = vmul.f32 %v8484_v11, %v9696_v62 }
 0x1ca   :  { %2204 = vrot.lane.b32.xlu1 %v9696_v62, %s7237_s19  ;;  %2124 = vrot.lane.b32.xlu0 %v9696_v62, %s7235_s17 }
 0x1cc   :  { %v9758_v12 = vpop.permute.xlu1 %2996  ;;  %v9760_v35 = vpop.permute.xlu0 %2881 }
 0x1cd   :  { %14438 = vst [vmem:[#allocation61_spill] sm:$0xff] %v9760_v35 }
 0x1ce   :  { %2208 = vrot.lane.b32.xlu1 %v9698_v53, %s7237_s19  ;;  %2128 = vrot.lane.b32.xlu0 %v9698_v53, %s7235_s17 }
 0x1d0   :  { %v9766_v47 = vpop.permute.xlu1 %2875  ;;  %v9768_v55 = vpop.permute.xlu0 %2394 }
 0x1d1   :  { %14439 = vst [vmem:[#allocation62_spill] sm:$0xff] %v9766_v47  ;;  %14440 = vst [vmem:[#allocation63_spill] sm:$0xff] %v9768_v55  ;;  %v2285_v47 = vld [vmem:[#allocation2 + $0xc8] sm:$0xff] }
 0x1d2   :  { %2565 = vrot.lane.b32.xlu1 %v9696_v62, %s7241_s16  ;;  %3014 = vrot.lane.b32.xlu0 %v9696_v62, %s7245_s1  ;;  %v2333_v57 = vmul.f32 %v8484_v11, %v2285_v47  ;;  %v2814_v11 = vmul.f32 %v9078_v48, %v2285_v47 }
 0x1d4   :  { %v9774_v33 = vpop.permute.xlu1 %2883  ;;  %v9776_v5 = vpop.permute.xlu0 %2402 }
 0x1d5   :  { %14441 = vst [vmem:[#allocation64_spill] sm:$0xff] %v9774_v33  ;;  %14442 = vst [vmem:[#allocation65_spill] sm:$0xff] %v9776_v5 }
 0x1d6   :  { %2573 = vrot.lane.b32.xlu1 %v9698_v53, %s7241_s16  ;;  %3022 = vrot.lane.b32.xlu0 %v9698_v53, %s7245_s1 }
 0x1d8   :  { %v9782_v35 = vpop.permute.xlu1 %2196  ;;  %v9784_v63 = vpop.permute.xlu0 %2116 }
 0x1d9   :  { %14443 = vst [vmem:[#allocation66_spill] sm:$0xff] %v9782_v35  ;;  %14444 = vst [vmem:[#allocation67_spill] sm:$0xff] %v9784_v63 }
 0x1da   :  { %2420 = vrot.lane.b32.xlu1 %v2332_v20, %s7241_s16  ;;  %2567 = vrot.lane.b32.xlu0 %v2285_v47, %s7241_s16  ;;  %v2813_v20 = vmul.f32 %v9078_v48, %v9696_v62  ;;  %v9818_v62 = vld [vmem:[#allocation2 + $0xd0] sm:$0xff] }
 0x1db   :  { %v2334_v48 = vmul.f32 %v8454_v13, %v9818_v62 }
 0x1dc   :  { %v9790_v33 = vpop.permute.xlu1 %2200  ;;  %v9792_v5 = vpop.permute.xlu0 %2120 }
 0x1dd   :  { %14445 = vst [vmem:[#allocation68_spill] sm:$0xff] %v9790_v33  ;;  %14446 = vst [vmem:[#allocation69_spill] sm:$0xff] %v9792_v5 }
 0x1de   :  { %2428 = vrot.lane.b32.xlu1 %v2336_v31, %s7241_s16  ;;  %2575 = vrot.lane.b32.xlu0 %v2289_v36, %s7241_s16  ;;  %v2817_v31 = vmul.f32 %v9104_v41, %v9698_v53  ;;  %v9828_v53 = vld [vmem:[#allocation2 + $0xf0] sm:$0xff] }
 0x1e0   :  { %v9798_v35 = vpop.permute.xlu1 %2549  ;;  %v9800_v16 = vpop.permute.xlu0 %2998 }
 0x1e2   :  { %3016 = vrot.lane.b32.xlu1 %v2285_v47, %s7245_s1  ;;  %2901 = vrot.lane.b32.xlu0 %v2813_v20, %s7245_s1  ;;  %v2287_v47 = vld [vmem:[#allocation2 + $0xd8] sm:$0xff] }
 0x1e3   :  { %v2816_v23 = vmul.f32 %v9098_v17, %v2287_v47  ;;  %v2335_v8 = vmul.f32 %v8454_v13, %v2287_v47 }
 0x1e4   :  { %v9806_v33 = vpop.permute.xlu1 %2557  ;;  %v9808_v5 = vpop.permute.xlu0 %3006 }
 0x1e6   :  { %3024 = vrot.lane.b32.xlu1 %v2289_v36, %s7245_s1  ;;  %2909 = vrot.lane.b32.xlu0 %v2817_v31, %s7245_s1  ;;  %v2338_v36 = vmul.f32 %v8530_v43, %v9828_v53 }
 0x1e8   :  { %v9814_v55 = vpop.permute.xlu1 %2404  ;;  %v9816_v63 = vpop.permute.xlu0 %2551 }
 0x1e9   :  { %14447 = vst [vmem:[#allocation70_spill] sm:$0xff] %v9814_v55 }
 0x1ea   :  { %2126 = vrot.lane.b32.xlu1 %v9818_v62, %s7235_s17  ;;  %2206 = vrot.lane.b32.xlu0 %v9818_v62, %s7237_s19 }
 0x1ec   :  { %v9824_v20 = vpop.permute.xlu1 %2412  ;;  %v9826_v6 = vpop.permute.xlu0 %2559 }
 0x1ed   :  { %14448 = vst [vmem:[#allocation71_spill] sm:$0xff] %v9824_v20 }
 0x1ee   :  { %2130 = vrot.lane.b32.xlu1 %v9828_v53, %s7235_s17  ;;  %2210 = vrot.lane.b32.xlu0 %v9828_v53, %s7237_s19 }
 0x1f0   :  { %v9834_v31 = vpop.permute.xlu1 %3000  ;;  %v9836_v55 = vpop.permute.xlu0 %2885 }
 0x1f1   :  { %14449 = vst [vmem:[#allocation72_spill] sm:$0xff] %v9836_v55 }
 0x1f2   :  { %2569 = vrot.lane.b32.xlu1 %v9818_v62, %s7241_s16  ;;  %2422 = vrot.lane.b32.xlu0 %v2333_v57, %s7241_s16 }
 0x1f4   :  { %v9842_v20 = vpop.permute.xlu1 %3008  ;;  %v9844_v51 = vpop.permute.xlu0 %2893 }
 0x1f5   :  { %14450 = vst [vmem:[#allocation73_spill] sm:$0xff] %v9844_v51 }
 0x1f6   :  { %2577 = vrot.lane.b32.xlu1 %v9828_v53, %s7241_s16  ;;  %2430 = vrot.lane.b32.xlu0 %v2337_v42, %s7241_s16 }
 0x1f8   :  { %v9850_v18 = vpop.permute.xlu1 %2118  ;;  %v9852_v55 = vpop.permute.xlu0 %2198 }
 0x1f9   :  { %14451 = vst [vmem:[#allocation74_spill] sm:$0xff] %v9850_v18  ;;  %14452 = vst [vmem:[#allocation75_spill] sm:$0xff] %v9852_v55 }
 0x1fa   :  { %2903 = vrot.lane.b32.xlu1 %v2814_v11, %s7245_s1  ;;  %3018 = vrot.lane.b32.xlu0 %v9818_v62, %s7245_s1 }
 0x1fc   :  { %v9858_v57 = vpop.permute.xlu1 %2122  ;;  %v9860_v51 = vpop.permute.xlu0 %2202 }
 0x1fd   :  { %14453 = vst [vmem:[#allocation76_spill] sm:$0xff] %v9858_v57  ;;  %14454 = vst [vmem:[#allocation77_spill] sm:$0xff] %v9860_v51 }
 0x1fe   :  { %2911 = vrot.lane.b32.xlu1 %v2818_v37, %s7245_s1  ;;  %3026 = vrot.lane.b32.xlu0 %v9828_v53, %s7245_s1  ;;  %v2291_v37 = vld [vmem:[#allocation2 + $0xf8] sm:$0xff] }
 0x1ff   :  { %v2820_v39 = vmul.f32 %v9126_v2, %v2291_v37 }
 0x200   :  { %v9866_v42 = vpop.permute.xlu1 %2553  ;;  %v9868_v55 = vpop.permute.xlu0 %2406 }
 0x201   :  { %14455 = vst [vmem:[#allocation78_spill] sm:$0xff] %v9868_v55 }
 0x202   :  { %2424 = vrot.lane.b32.xlu1 %v2334_v48, %s7241_s16  ;;  %2571 = vrot.lane.b32.xlu0 %v2287_v47, %s7241_s16  ;;  %v2815_v48 = vmul.f32 %v9098_v17, %v9818_v62 }
 0x204   :  { %v9874_v11 = vpop.permute.xlu1 %2561  ;;  %v9876_v41 = vpop.permute.xlu0 %2414 }
 0x205   :  { %14456 = vst [vmem:[#allocation79_spill] sm:$0xff] %v9876_v41 }
 0x206   :  { %2432 = vrot.lane.b32.xlu1 %v2338_v36, %s7241_s16  ;;  %2579 = vrot.lane.b32.xlu0 %v2291_v37, %s7241_s16  ;;  %v2819_v36 = vmul.f32 %v9126_v2, %v9828_v53 }
 0x208   :  { %v9882_v55 = vpop.permute.xlu1 %2887  ;;  %v9884_v51 = vpop.permute.xlu0 %3002 }
 0x209   :  { %14457 = vst [vmem:[#allocation80_spill] sm:$0xff] %v9882_v55 }
 0x20a   :  { %3020 = vrot.lane.b32.xlu1 %v2287_v47, %s7245_s1  ;;  %2905 = vrot.lane.b32.xlu0 %v2815_v48, %s7245_s1 }
 0x20c   :  { %v9890_v41 = vpop.permute.xlu1 %2895  ;;  %v9892_v57 = vpop.permute.xlu0 %3010 }
 0x20d   :  { %14458 = vst [vmem:[#allocation81_spill] sm:$0xff] %v9890_v41 }
 0x20e   :  { %3028 = vrot.lane.b32.xlu1 %v2291_v37, %s7245_s1  ;;  %2913 = vrot.lane.b32.xlu0 %v2819_v36, %s7245_s1  ;;  %v2339_v36 = vmul.f32 %v8530_v43, %v2291_v37  ;;  %v6970_v43 = vunpack.i.h.bf16 %v9615_v52 }
 0x210   :  { %v9898_v55 = vpop.permute.xlu1 %2408  ;;  %v9900_v18 = vpop.permute.xlu0 %2555 }
 0x211   :  { %14459 = vst [vmem:[#allocation82_spill] sm:$0xff] %v9898_v55  ;;  %v6965_v55 = vunpack.i.h.bf16 %v9603_v14  ;;  %v6969_v14 = vunpack.i.l.bf16 %v9615_v52 }
 0x212   :  { %2907 = vrot.lane.b32.xlu1 %v2816_v23, %s7245_s1  ;;  %2426 = vrot.lane.b32.xlu0 %v2335_v8, %s7241_s16  ;;  %v3030_v8 = vsel %vm2917_vm3, %v6964_v1, %v9605_v4 }
 0x213   :  { %v9924_v2 = vsel %vm2917_vm3, %v6965_v55, %v9619_v27  ;;  %v9937_v4 = vsel %vm2917_vm3, %v6969_v14, %v9631_v32  ;;  %v9941_v27 = vsel %vm2917_vm3, %v6970_v43, %v9633_v40  ;;  %v9954_v55 = vsel %vm2917_vm3, %v9654_v58, %v9677_v49 }
 0x214   :  { %v9906_v48 = vpop.permute.xlu1 %2416  ;;  %v9908_v41 = vpop.permute.xlu0 %2563  ;;  %v9959_v32 = vsel %vm2917_vm3, %v9730_v60, %v9750_v3  ;;  %v9972_v58 = vsel %vm2917_vm3, %v9661_v61, %v9684_v28  ;;  %v9977_v49 = vsel %vm2917_vm3, %v9736_v44, %v9758_v12  ;;  %v9990_v61 = vld [vmem:[%s14071_s2 + $0x8] sm:$0xff]  ;;  %v9996_v28 = vld [vmem:[%s14071_s2] sm:$0xff]  ;;  %v10002_v44 = vld [vmem:[%s14071_s2 + $0x10] sm:$0xff]  ;;  %v2589_v14 = vsel %vm2436_vm1, %v9798_v35, %v9816_v63 }
 0x215   :  { %14460 = vst [vmem:[#allocation83_spill] sm:$0xff] %v9906_v48  ;;  %v10008_v12 = vld [vmem:[%s14071_s2 + $0x18] sm:$0xff]  ;;  %v2591_v63 = vsel %vm2436_vm1, %v9806_v33, %v9826_v6 }
 0x216   :  { %2915 = vrot.lane.b32.xlu1 %v2820_v39, %s7245_s1  ;;  %2434 = vrot.lane.b32.xlu0 %v2339_v36, %s7241_s16  ;;  %v10566_v48 = vld [vmem:[#allocation2 + $0xf8] sm:$0xff] }
 0x218   :  { %v9916_v13 = vpop.permute.xlu1 %3004  ;;  %v9918_v17 = vpop.permute.xlu0 %2889 }
 0x219   :  { %14461 = vst [vmem:[#allocation84_spill] sm:$0xff] %v9918_v17 }
 0x21a   :  { %3064 = vrot.lane.b32.xlu1 %v9924_v2, %s7235_s17  ;;  %3062 = vrot.lane.b32.xlu0 %v3030_v8, %s7235_s17 }
 0x21c   :  { %v9931_v39 = vpop.permute.xlu1 %3012  ;;  %v9933_v23 = vpop.permute.xlu0 %2897 }
 0x21d   :  { %14462 = vst [vmem:[#allocation85_spill] sm:$0xff] %v9933_v23 }
 0x21e   :  { %3068 = vrot.lane.b32.xlu1 %v9941_v27, %s7235_s17  ;;  %3066 = vrot.lane.b32.xlu0 %v9937_v4, %s7235_s17 }
 0x220   :  { %v9947_v52 = vpop.permute.xlu1 %2891  ;;  %v9949_v1 = vpop.permute.xlu0 %2410 }
 0x221   :  { %14463 = vst [vmem:[#allocation86_spill] sm:$0xff] %v9947_v52  ;;  %14464 = vst [vmem:[#allocation87_spill] sm:$0xff] %v9949_v1 }
 0x222   :  { %3072 = vrot.lane.b32.xlu1 %v9959_v32, %s7235_s17  ;;  %3070 = vrot.lane.b32.xlu0 %v9954_v55, %s7235_s17 }
 0x224   :  { %v9965_v40 = vpop.permute.xlu1 %2899  ;;  %v9967_v47 = vpop.permute.xlu0 %2418 }
 0x225   :  { %14465 = vst [vmem:[#allocation88_spill] sm:$0xff] %v9965_v40  ;;  %14466 = vst [vmem:[#allocation89_spill] sm:$0xff] %v9967_v47  ;;  %v7247_v40 = vmov 8   ;;  %v10568_v47 = vld [vmem:[#allocation2 + $0xf0] sm:$0xff] }
 0x226   :  { %3076 = vrot.lane.b32.xlu1 %v9977_v49, %s7235_s17  ;;  %3074 = vrot.lane.b32.xlu0 %v9972_v58, %s7235_s17 }
 0x228   :  { %v9983_v60 = vpop.permute.xlu1 %2621  ;;  %v9985_v3 = vpop.permute.xlu0 %2701 }
 0x229   :  { %14467 = vst [vmem:[#allocation90_spill] sm:$0xff] %v9983_v60  ;;  %14468 = vst [vmem:[#allocation91_spill] sm:$0xff] %v9985_v3  ;;  %v10015_v43 = vpop.f32.mrf.mxu0 }
 0x22a   :  { %3099 = vperm.xlu1 %6972, %v9990_v61   ;;  %3095 = vperm.xlu0 %6971, %v9996_v28   ;;  %1845 = vst [vmem:[#allocation2 + $0x100] sm:$0xff] %v10015_v43 }
 0x22b   :  { %v1835_v23 = vpop.f32.mrf.mxu0 }
 0x22c   :  { %v10011_v37 = vpop.permute.xlu1 %2625  ;;  %v10013_v36 = vpop.permute.xlu0 %2705  ;;  %1846 = vst.msk [vmem:[#allocation2 + $0x108] sm:$0xff] %vm22_vm0, %v1835_v23  ;;  %v3038_v23 = vsel %vm2917_vm3, %v9800_v16, %v9834_v31  ;;  %v2590_v16 = vsel %vm2436_vm1, %v9866_v42, %v9900_v18  ;;  %v3039_v42 = vsel %vm2917_vm3, %v9884_v51, %v9916_v13 }
 0x22d   :  { %14469 = vst [vmem:[#allocation92_spill] sm:$0xff] %v10011_v37  ;;  %14470 = vst [vmem:[#allocation93_spill] sm:$0xff] %v10013_v36 }
 0x22e   :  { %3103 = vperm.xlu1 %6972, %v10002_v44   ;;  %3107 = vperm.xlu0 %6971, %v10008_v12  }
 0x232   :  { %3142 = vrot.lane.b32.xlu1 %v3030_v8, %s7237_s19  ;;  %2709 = vrot.lane.b32.xlu0 %v2589_v14, %s7237_s19 }
 0x233   :  { %6973 = vset.pattern.permute.xlu1 %v7247_v40  ;;  %6974 = vset.pattern.permute.xlu0 %v7247_v40  ;;  %v1839_v40 = vpop.f32.mrf.mxu0  ;;  %v10576_v36 = vld [vmem:[#allocation2 + $0x108] sm:$0xff] }
 0x234   :  { %v10024_v17 = vpop.permute.xlu1 %2703  ;;  %v10026_v52 = vpop.permute.xlu0 %2623  ;;  %1847 = vst [vmem:[#allocation2 + $0x110] sm:$0x1] %v1839_v40 }
 0x235   :  { %14471 = vst [vmem:[#allocation94_spill] sm:$0xff] %v10024_v17  ;;  %14472 = vst [vmem:[#allocation95_spill] sm:$0xff] %v10026_v52  ;;  %v1841_v17 = vpop.f32.mrf.mxu0 }
 0x236   :  { %2629 = vrot.lane.b32.xlu1 %v2589_v14, %s7235_s17  ;;  %2713 = vrot.lane.b32.xlu0 %v2591_v63, %s7237_s19  ;;  %1848 = vst.msk [vmem:[#allocation2 + $0x118] sm:$0x1] %vm374_vm2, %v1841_v17  ;;  %v3040_v14 = vsel %vm2917_vm3, %v9808_v5, %v9842_v20  ;;  %v2592_v17 = vsel %vm2436_vm1, %v9874_v11, %v9908_v41 }
 0x238   :  { %v10033_v35 = vpop.permute.xlu1 %2707  ;;  %v10035_v8 = vpop.permute.xlu0 %2627 }
 0x239   :  { %14473 = vst [vmem:[#allocation96_spill] sm:$0xff] %v10033_v35  ;;  %14474 = vst [vmem:[#allocation97_spill] sm:$0xff] %v10035_v8 }
 0x23a   :  { %3078 = vrot.lane.b32.xlu0 %v3038_v23, %s7235_s17  ;;  %2633 = vrot.lane.b32.xlu1 %v2591_v63, %s7235_s17 }
 0x23b   :  { %v10064_v5 = vpop.f32.mrf.mxu1 }
 0x23c   :  { %v10042_v6 = vpop.permute.xlu1 %2204  ;;  %v10044_v33 = vpop.permute.xlu0 %2124  ;;  %2027 = vst [vmem:[#allocation2 + $0x120] sm:$0xff] %v10064_v5 }
 0x23d   :  { %14475 = vst [vmem:[#allocation98_spill] sm:$0xff] %v10042_v6  ;;  %14476 = vst [vmem:[#allocation99_spill] sm:$0xff] %v10044_v33  ;;  %v2018_v40 = vpop.f32.mrf.mxu1  ;;  %v10558_v33 = vld [vmem:[#allocation2 + $0xe8] sm:$0xff]  ;;  %v10584_v1 = vld [vmem:[#allocation2 + $0x118] sm:$0xff] }
 0x23e   :  { %3082 = vrot.lane.b32.xlu0 %v3040_v14, %s7235_s17  ;;  %2711 = vrot.lane.b32.xlu1 %v2590_v16, %s7237_s19  ;;  %2028 = vst.msk [vmem:[#allocation2 + $0x128] sm:$0xff] %vm22_vm0, %v2018_v40 }
 0x23f   :  { %v2022_v11 = vpop.f32.mrf.mxu1 }
 0x240   :  { %v10055_v31 = vpop.permute.xlu1 %2208  ;;  %v10057_v63 = vpop.permute.xlu0 %2128  ;;  %2029 = vst [vmem:[#allocation2 + $0x130] sm:$0x1] %v2022_v11 }
 0x241   :  { %14477 = vst [vmem:[#allocation100_spill] sm:$0xff] %v10055_v31  ;;  %14478 = vst [vmem:[#allocation101_spill] sm:$0xff] %v10057_v63  ;;  %v3041_v31 = vsel %vm2917_vm3, %v9892_v57, %v9931_v39  ;;  %v2024_v6 = vpop.f32.mrf.mxu1  ;;  %v10550_v63 = vld [vmem:[#allocation2 + $0xd0] sm:$0xff] }
 0x242   :  { %2631 = vrot.lane.b32.xlu0 %v2590_v16, %s7235_s17  ;;  %2715 = vrot.lane.b32.xlu1 %v2592_v17, %s7237_s19  ;;  %2030 = vst.msk [vmem:[#allocation2 + $0x138] sm:$0x1] %vm374_vm2, %v2024_v6 }
 0x244   :  { %v2566_v20 = vpop.permute.xlu1 %2565  ;;  %v3015_v18 = vpop.permute.xlu0 %3014 }
 0x246   :  { %3080 = vrot.lane.b32.xlu1 %v3039_v42, %s7235_s17  ;;  %2635 = vrot.lane.b32.xlu0 %v2592_v17, %s7235_s17 }
 0x248   :  { %v2574_v41 = vpop.permute.xlu1 %2573  ;;  %v3023_v16 = vpop.permute.xlu0 %3022 }
 0x24a   :  { %3084 = vrot.lane.b32.xlu1 %v3041_v31, %s7235_s17  ;;  %3144 = vrot.lane.b32.xlu0 %v9924_v2, %s7237_s19 }
 0x24c   :  { %v10080_v51 = vpop.permute.xlu1 %2420  ;;  %v2568_v13 = vpop.permute.xlu0 %2567 }
 0x24d   :  { %14479 = vst [vmem:[#allocation102_spill] sm:$0xff] %v10080_v51 }
 0x24e   :  { %3146 = vrot.lane.b32.xlu1 %v9937_v4, %s7237_s19  ;;  %3148 = vrot.lane.b32.xlu0 %v9941_v27, %s7237_s19 }
 0x250   :  { %v10086_v17 = vpop.permute.xlu1 %2428  ;;  %v2576_v57 = vpop.permute.xlu0 %2575 }
 0x251   :  { %14480 = vst [vmem:[#allocation103_spill] sm:$0xff] %v10086_v17  ;;  %v2595_v11 = vsel %vm2436_vm1, %v2574_v41, %v2576_v57 }
 0x252   :  { %3150 = vrot.lane.b32.xlu1 %v9954_v55, %s7237_s19  ;;  %3152 = vrot.lane.b32.xlu0 %v9959_v32, %s7237_s19 }
 0x254   :  { %v3017_v2 = vpop.permute.xlu1 %3016  ;;  %v10092_v39 = vpop.permute.xlu0 %2901 }
 0x255   :  { %14481 = vst [vmem:[#allocation104_spill] sm:$0xff] %v10092_v39 }
 0x256   :  { %3154 = vrot.lane.b32.xlu1 %v9972_v58, %s7237_s19  ;;  %3156 = vrot.lane.b32.xlu0 %v9977_v49, %s7237_s19 }
 0x258   :  { %v3025_v4 = vpop.permute.xlu1 %3024  ;;  %v10098_v27 = vpop.permute.xlu0 %2909 }
 0x259   :  { %14482 = vst [vmem:[#allocation105_spill] sm:$0xff] %v10098_v27 }
 0x25a   :  { %3158 = vrot.lane.b32.xlu1 %v3038_v23, %s7237_s19  ;;  %3160 = vrot.lane.b32.xlu0 %v3039_v42, %s7237_s19  ;;  %v2593_v42 = vsel %vm2436_vm1, %v2566_v20, %v2568_v13  ;;  %v3042_v20 = vsel %vm2917_vm3, %v3015_v18, %v3017_v2 }
 0x25c   :  { %v10102_v55 = vpop.permute.xlu1 %2126  ;;  %v10104_v6 = vpop.permute.xlu0 %2206 }
 0x25d   :  { %14483 = vst [vmem:[#allocation106_spill] sm:$0xff] %v10102_v55  ;;  %14484 = vst [vmem:[#allocation107_spill] sm:$0xff] %v10104_v6 }
 0x25e   :  { %3162 = vrot.lane.b32.xlu1 %v3040_v14, %s7237_s19  ;;  %3164 = vrot.lane.b32.xlu0 %v3041_v31, %s7237_s19  ;;  %v7248_v14 = vmov 9  }
 0x260   :  { %v10108_v32 = vpop.permute.xlu1 %2130  ;;  %v10110_v58 = vpop.permute.xlu0 %2210 }
 0x261   :  { %14485 = vst [vmem:[#allocation108_spill] sm:$0xff] %v10108_v32  ;;  %14486 = vst [vmem:[#allocation109_spill] sm:$0xff] %v10110_v58 }
 0x262   :  { %3175 = vperm.xlu1 %6973, %v9996_v28   ;;  %3179 = vperm.xlu0 %6974, %v9990_v61  }
 0x264   :  { %v2570_v49 = vpop.permute.xlu1 %2569  ;;  %v10114_v23 = vpop.permute.xlu0 %2422 }
 0x265   :  { %14487 = vst [vmem:[#allocation110_spill] sm:$0xff] %v10114_v23 }
 0x266   :  { %3183 = vperm.xlu1 %6973, %v10002_v44   ;;  %2717 = vrot.lane.b32.xlu0 %v2593_v42, %s7237_s19 }
 0x267   :  { %6975 = vset.pattern.permute.xlu0 %v7248_v14 }
 0x268   :  { %v2578_v31 = vpop.permute.xlu1 %2577  ;;  %v10119_v40 = vpop.permute.xlu0 %2430 }
 0x269   :  { %14488 = vst [vmem:[#allocation111_spill] sm:$0xff] %v10119_v40  ;;  %v3044_v40 = vsel %vm2917_vm3, %v3023_v16, %v3025_v4 }
 0x26a   :  { %3187 = vperm.xlu1 %6973, %v10008_v12   ;;  %2721 = vrot.lane.b32.xlu0 %v2595_v11, %s7237_s19 }
 0x26c   :  { %v10124_v27 = vpop.permute.xlu1 %2903  ;;  %v3019_v39 = vpop.permute.xlu0 %3018 }
 0x26d   :  { %14489 = vst [vmem:[#allocation112_spill] sm:$0xff] %v10124_v27 }
 0x26e   :  { %2637 = vrot.lane.b32.xlu1 %v2593_v42, %s7235_s17  ;;  %3086 = vrot.lane.b32.xlu0 %v3042_v20, %s7235_s17 }
 0x26f   :  { %6976 = vset.pattern.permute.xlu1 %v7248_v14 }
 0x270   :  { %v10129_v13 = vpop.permute.xlu1 %2911  ;;  %v3027_v17 = vpop.permute.xlu0 %3026 }
 0x271   :  { %14490 = vst [vmem:[#allocation113_spill] sm:$0xff] %v10129_v13 }
 0x272   :  { %3090 = vrot.lane.b32.xlu0 %v3044_v40, %s7235_s17  ;;  %2641 = vrot.lane.b32.xlu1 %v2595_v11, %s7235_s17 }
 0x274   :  { %v10134_v41 = vpop.permute.xlu1 %2424  ;;  %v2572_v57 = vpop.permute.xlu0 %2571 }
 0x275   :  { %14491 = vst [vmem:[#allocation114_spill] sm:$0xff] %v10134_v41  ;;  %v2594_v27 = vsel %vm2436_vm1, %v2570_v49, %v2572_v57  ;;  %v10238_v41 = vld [vmem:[#allocation2 + $0xe0] sm:$0xff] }
 0x276   :  { %3166 = vrot.lane.b32.xlu1 %v3042_v20, %s7237_s19  ;;  %2639 = vrot.lane.b32.xlu0 %v2594_v27, %s7235_s17 }
 0x278   :  { %v10139_v18 = vpop.permute.xlu1 %2432  ;;  %v2580_v2 = vpop.permute.xlu0 %2579 }
 0x279   :  { %14492 = vst [vmem:[#allocation115_spill] sm:$0xff] %v10139_v18  ;;  %v2596_v42 = vsel %vm2436_vm1, %v2578_v31, %v2580_v2  ;;  %v10226_v18 = vld [vmem:[#allocation2 + $0xc0] sm:$0xff] }
 0x27a   :  { %3170 = vrot.lane.b32.xlu1 %v3044_v40, %s7237_s19  ;;  %2643 = vrot.lane.b32.xlu0 %v2596_v42, %s7235_s17 }
 0x27c   :  { %v3021_v16 = vpop.permute.xlu1 %3020  ;;  %v10144_v4 = vpop.permute.xlu0 %2905 }
 0x27d   :  { %14493 = vst [vmem:[#allocation116_spill] sm:$0xff] %v10144_v4  ;;  %v3043_v14 = vsel %vm2917_vm3, %v3019_v39, %v3021_v16  ;;  %v10175_v16 = vld [vmem:[#allocation2 + $0x70] sm:$0xff] }
 0x27e   :  { %2719 = vrot.lane.b32.xlu1 %v2594_v27, %s7237_s19  ;;  %3168 = vrot.lane.b32.xlu0 %v3043_v14, %s7237_s19 }
 0x280   :  { %v3029_v49 = vpop.permute.xlu1 %3028  ;;  %v10149_v11 = vpop.permute.xlu0 %2913 }
 0x281   :  { %14494 = vst [vmem:[#allocation117_spill] sm:$0xff] %v10149_v11  ;;  %v3045_v20 = vsel %vm2917_vm3, %v3027_v17, %v3029_v49  ;;  %v10166_v17 = vld [vmem:[#allocation2 + $0x50] sm:$0xff] }
 0x282   :  { %2723 = vrot.lane.b32.xlu1 %v2596_v42, %s7237_s19  ;;  %3172 = vrot.lane.b32.xlu0 %v3045_v20, %s7237_s19  ;;  %v7249_v42 = vmov 10   ;;  %v10186_v11 = vld [vmem:[#allocation2 + $0x90] sm:$0xff] }
 0x284   :  { %v10154_v31 = vpop.permute.xlu1 %2907  ;;  %v10156_v40 = vpop.permute.xlu0 %2426 }
 0x285   :  { %14495 = vst [vmem:[#allocation118_spill] sm:$0xff] %v10154_v31  ;;  %14496 = vst [vmem:[#allocation119_spill] sm:$0xff] %v10156_v40  ;;  %v10214_v31 = vld [vmem:[#allocation2 + $0xa0] sm:$0xff]  ;;  %v7250_v40 = vmov 11  }
 0x286   :  { %3088 = vrot.lane.b32.xlu1 %v3043_v14, %s7235_s17  ;;  %3239 = vperm.xlu0 %6975, %v9996_v28  }
 0x288   :  { %v10160_v39 = vpop.permute.xlu1 %2915  ;;  %v10162_v27 = vpop.permute.xlu0 %2434 }
 0x289   :  { %14497 = vst [vmem:[#allocation120_spill] sm:$0xff] %v10160_v39  ;;  %14498 = vst [vmem:[#allocation121_spill] sm:$0xff] %v10162_v27  ;;  %v10204_v39 = vld [vmem:[#allocation2 + $0x80] sm:$0xff] }
 0x28a   :  { %3092 = vrot.lane.b32.xlu1 %v3045_v20, %s7235_s17  ;;  %3251 = vperm.xlu0 %6975, %v10008_v12   ;;  %v10184_v20 = vld [vmem:[#allocation2 + $0x40] sm:$0xff] }
 0x28c   :  { %v10171_v57 = vpop.permute.xlu1 %3064  ;;  %v10173_v2 = vpop.permute.xlu0 %3062 }
 0x28d   :  { %14499 = vst [vmem:[#allocation122_spill] sm:$0xff] %v10171_v57  ;;  %14500 = vst [vmem:[#allocation123_spill] sm:$0xff] %v10173_v2  ;;  %v10192_v2 = vld [vmem:[#allocation2 + $0x60] sm:$0xff]  ;;  %v10194_v57 = vld [vmem:[#allocation2 + $0xb0] sm:$0xff] }
 0x28e   :  { %3243 = vperm.xlu1 %6976, %v9990_v61   ;;  %3272 = vrot.lane.b32.xlu0 %v10166_v17, %s7235_s17 }
 0x28f   :  { %6978 = vset.pattern.permute.xlu0 %v7249_v42 }
 0x290   :  { %v10180_v14 = vpop.permute.xlu1 %3068  ;;  %v10182_v49 = vpop.permute.xlu0 %3066 }
 0x291   :  { %14501 = vst [vmem:[#allocation124_spill] sm:$0xff] %v10180_v14  ;;  %14502 = vst [vmem:[#allocation125_spill] sm:$0xff] %v10182_v49 }
 0x292   :  { %3247 = vperm.xlu1 %6976, %v10002_v44   ;;  %3276 = vrot.lane.b32.xlu0 %v10175_v16, %s7235_s17 }
 0x294   :  { %v10200_v14 = vpop.permute.xlu1 %3072  ;;  %v10202_v49 = vpop.permute.xlu0 %3070 }
 0x295   :  { %14503 = vst [vmem:[#allocation126_spill] sm:$0xff] %v10200_v14  ;;  %14504 = vst [vmem:[#allocation127_spill] sm:$0xff] %v10202_v49  ;;  %v10220_v49 = vld [vmem:[#allocation2 + $0x110] sm:$0xff] }
 0x296   :  { %3270 = vrot.lane.b32.xlu1 %v10184_v20, %s7235_s17  ;;  %3280 = vrot.lane.b32.xlu0 %v10186_v11, %s7235_s17 }
 0x297   :  { %6977 = vset.pattern.permute.xlu1 %v7249_v42 }
 0x298   :  { %v10210_v42 = vpop.permute.xlu1 %3076  ;;  %v10212_v4 = vpop.permute.xlu0 %3074 }
 0x299   :  { %14505 = vst [vmem:[#allocation128_spill] sm:$0xff] %v10210_v42  ;;  %14506 = vst [vmem:[#allocation129_spill] sm:$0xff] %v10212_v4  ;;  %v10232_v42 = vld [vmem:[#allocation2 + $0x130] sm:$0xff] }
 0x29a   :  { %3274 = vrot.lane.b32.xlu1 %v10192_v2, %s7235_s17  ;;  %3284 = vrot.lane.b32.xlu0 %v10194_v57, %s7235_s17 }
 0x29e   :  { %3278 = vrot.lane.b32.xlu1 %v10204_v39, %s7235_s17  ;;  %3288 = vrot.lane.b32.xlu0 %v9818_v62, %s7235_s17 }
 0x2a2   :  { %3282 = vrot.lane.b32.xlu1 %v10214_v31, %s7235_s17  ;;  %3292 = vrot.lane.b32.xlu0 %v9828_v53, %s7235_s17 }
 0x2a5   :  { %v10222_v14 = vpop.permute.xlu1 %3099  ;;  %v10224_v13 = vpop.permute.xlu0 %3095 }
 0x2a6   :  { %14507 = vst [vmem:[#allocation130_spill] sm:$0xff] %v10222_v14  ;;  %14508 = vst [vmem:[#allocation131_spill] sm:$0xff] %v10224_v13  ;;  %3286 = vrot.lane.b32.xlu1 %v10226_v18, %s7235_s17  ;;  %3296 = vrot.lane.b32.xlu0 %v10220_v49, %s7235_s17 }
 0x2a9   :  { %v10234_v4 = vpop.permute.xlu1 %3103  ;;  %v10236_v27 = vpop.permute.xlu0 %3107 }
 0x2aa   :  { %14509 = vst [vmem:[#allocation132_spill] sm:$0xff] %v10234_v4  ;;  %14510 = vst [vmem:[#allocation133_spill] sm:$0xff] %v10236_v27  ;;  %3290 = vrot.lane.b32.xlu1 %v10238_v41, %s7235_s17  ;;  %3300 = vrot.lane.b32.xlu0 %v10232_v42, %s7235_s17 }
 0x2ad   :  { %v10244_v13 = vpop.permute.xlu1 %3142  ;;  %v10246_v14 = vpop.permute.xlu0 %2709 }
 0x2ae   :  { %14511 = vst [vmem:[#allocation134_spill] sm:$0xff] %v10244_v13  ;;  %14512 = vst [vmem:[#allocation135_spill] sm:$0xff] %v10246_v14  ;;  %3294 = vrot.lane.b32.xlu1 %v10015_v43, %s7235_s17  ;;  %3307 = vperm.xlu0 %6978, %v9990_v61  }
 0x2b1   :  { %v10251_v4 = vpop.permute.xlu1 %2629  ;;  %v10253_v27 = vpop.permute.xlu0 %2713 }
 0x2b2   :  { %14513 = vst [vmem:[#allocation136_spill] sm:$0xff] %v10251_v4  ;;  %14514 = vst [vmem:[#allocation137_spill] sm:$0xff] %v10253_v27  ;;  %3298 = vrot.lane.b32.xlu1 %v10064_v5, %s7235_s17  ;;  %3350 = vrot.lane.b32.xlu0 %v10184_v20, %s7237_s19 }
 0x2b3   :  { %6979 = vset.pattern.permute.xlu0 %v7250_v40 }
 0x2b5   :  { %v10259_v13 = vpop.permute.xlu1 %2633  ;;  %v10261_v14 = vpop.permute.xlu0 %3078 }
 0x2b6   :  { %14515 = vst [vmem:[#allocation138_spill] sm:$0xff] %v10259_v13  ;;  %14516 = vst [vmem:[#allocation139_spill] sm:$0xff] %v10261_v14  ;;  %3303 = vperm.xlu1 %6977, %v9996_v28   ;;  %3354 = vrot.lane.b32.xlu0 %v10192_v2, %s7237_s19 }
 0x2b9   :  { %v10266_v58 = vpop.permute.xlu1 %2711  ;;  %v10268_v27 = vpop.permute.xlu0 %3082 }
 0x2ba   :  { %14517 = vst [vmem:[#allocation140_spill] sm:$0xff] %v10266_v58  ;;  %14518 = vst [vmem:[#allocation141_spill] sm:$0xff] %v10268_v27  ;;  %3311 = vperm.xlu1 %6977, %v10002_v44   ;;  %3358 = vrot.lane.b32.xlu0 %v10204_v39, %s7237_s19 }
 0x2bd   :  { %v10273_v4 = vpop.permute.xlu1 %2715  ;;  %v10275_v51 = vpop.permute.xlu0 %2631 }
 0x2be   :  { %14519 = vst [vmem:[#allocation142_spill] sm:$0xff] %v10273_v4  ;;  %14520 = vst [vmem:[#allocation143_spill] sm:$0xff] %v10275_v51  ;;  %3315 = vperm.xlu1 %6977, %v10008_v12   ;;  %3362 = vrot.lane.b32.xlu0 %v10214_v31, %s7237_s19  ;;  %v10508_v51 = vld [vmem:[#allocation2 + $0x88] sm:$0xff] }
 0x2c1   :  { %v10280_v14 = vpop.permute.xlu1 %3080  ;;  %v10282_v13 = vpop.permute.xlu0 %2635 }
 0x2c2   :  { %14521 = vst [vmem:[#allocation144_spill] sm:$0xff] %v10280_v14  ;;  %14522 = vst [vmem:[#allocation145_spill] sm:$0xff] %v10282_v13  ;;  %3352 = vrot.lane.b32.xlu1 %v10166_v17, %s7237_s19  ;;  %3366 = vrot.lane.b32.xlu0 %v10226_v18, %s7237_s19 }
 0x2c3   :  { %6980 = vset.pattern.permute.xlu1 %v7250_v40 }
 0x2c5   :  { %v10288_v27 = vpop.permute.xlu1 %3084  ;;  %v10290_v4 = vpop.permute.xlu0 %3144 }
 0x2c6   :  { %14523 = vst [vmem:[#allocation146_spill] sm:$0xff] %v10288_v27  ;;  %14524 = vst [vmem:[#allocation147_spill] sm:$0xff] %v10290_v4  ;;  %3356 = vrot.lane.b32.xlu1 %v10175_v16, %s7237_s19  ;;  %3370 = vrot.lane.b32.xlu0 %v10238_v41, %s7237_s19 }
 0x2c9   :  { %v10296_v14 = vpop.permute.xlu1 %3146  ;;  %v10298_v58 = vpop.permute.xlu0 %3148 }
 0x2ca   :  { %14525 = vst [vmem:[#allocation148_spill] sm:$0xff] %v10296_v14  ;;  %14526 = vst [vmem:[#allocation149_spill] sm:$0xff] %v10298_v58  ;;  %3360 = vrot.lane.b32.xlu1 %v10186_v11, %s7237_s19  ;;  %3374 = vrot.lane.b32.xlu0 %v10015_v43, %s7237_s19 }
 0x2cd   :  { %v10304_v40 = vpop.permute.xlu1 %3150  ;;  %v10306_v27 = vpop.permute.xlu0 %3152 }
 0x2ce   :  { %14527 = vst [vmem:[#allocation150_spill] sm:$0xff] %v10304_v40  ;;  %14528 = vst [vmem:[#allocation151_spill] sm:$0xff] %v10306_v27  ;;  %3364 = vrot.lane.b32.xlu1 %v10194_v57, %s7237_s19  ;;  %3378 = vrot.lane.b32.xlu0 %v10064_v5, %s7237_s19 }
 0x2d1   :  { %v10312_v4 = vpop.permute.xlu1 %3154  ;;  %v10314_v14 = vpop.permute.xlu0 %3156 }
 0x2d2   :  { %14529 = vst [vmem:[#allocation152_spill] sm:$0xff] %v10312_v4  ;;  %14530 = vst [vmem:[#allocation153_spill] sm:$0xff] %v10314_v14  ;;  %3368 = vrot.lane.b32.xlu1 %v9818_v62, %s7237_s19  ;;  %3383 = vperm.xlu0 %6979, %v9996_v28   ;;  %v7251_v14 = vmov 12  }
 0x2d5   :  { %v10319_v58 = vpop.permute.xlu1 %3158  ;;  %v10321_v40 = vpop.permute.xlu0 %3160 }
 0x2d6   :  { %14531 = vst [vmem:[#allocation154_spill] sm:$0xff] %v10319_v58  ;;  %14532 = vst [vmem:[#allocation155_spill] sm:$0xff] %v10321_v40  ;;  %3372 = vrot.lane.b32.xlu1 %v9828_v53, %s7237_s19  ;;  %3395 = vperm.xlu0 %6979, %v10008_v12  }
 0x2d9   :  { %v10326_v27 = vpop.permute.xlu1 %3162  ;;  %v10328_v13 = vpop.permute.xlu0 %3164 }
 0x2da   :  { %14533 = vst [vmem:[#allocation156_spill] sm:$0xff] %v10326_v27  ;;  %14534 = vst [vmem:[#allocation157_spill] sm:$0xff] %v10328_v13  ;;  %3376 = vrot.lane.b32.xlu1 %v10220_v49, %s7237_s19  ;;  %6982 = vset.pattern.permute.xlu0 %v7251_v14 }
 0x2db   :  { %3467 = vperm.xlu0 %6982, %v9990_v61  }
 0x2dd   :  { %v10333_v62 = vpop.permute.xlu1 %3175  ;;  %v10335_v4 = vpop.permute.xlu0 %3179 }
 0x2de   :  { %14535 = vst [vmem:[#allocation158_spill] sm:$0xff] %v10333_v62  ;;  %14536 = vst [vmem:[#allocation159_spill] sm:$0xff] %v10335_v4  ;;  %3380 = vrot.lane.b32.xlu1 %v10232_v42, %s7237_s19 }
 0x2e1   :  { %v10339_v53 = vpop.permute.xlu1 %3183  ;;  %v10341_v40 = vpop.permute.xlu0 %2717 }
 0x2e2   :  { %14537 = vst [vmem:[#allocation160_spill] sm:$0xff] %v10339_v53  ;;  %14538 = vst [vmem:[#allocation161_spill] sm:$0xff] %v10341_v40  ;;  %3387 = vperm.xlu1 %6980, %v9990_v61  }
 0x2e5   :  { %v10344_v13 = vpop.permute.xlu1 %3187  ;;  %v10346_v27 = vpop.permute.xlu0 %2721 }
 0x2e6   :  { %14539 = vst [vmem:[#allocation162_spill] sm:$0xff] %v10344_v13  ;;  %14540 = vst [vmem:[#allocation163_spill] sm:$0xff] %v10346_v27  ;;  %3391 = vperm.xlu1 %6980, %v10002_v44  }
 0x2e9   :  { %v10349_v58 = vpop.permute.xlu1 %2637  ;;  %v10351_v62 = vpop.permute.xlu0 %3086 }
 0x2ea   :  { %14541 = vst [vmem:[#allocation164_spill] sm:$0xff] %v10349_v58  ;;  %14542 = vst [vmem:[#allocation165_spill] sm:$0xff] %v10351_v62  ;;  %6981 = vset.pattern.permute.xlu1 %v7251_v14 }
 0x2eb   :  { %3463 = vperm.xlu1 %6981, %v9996_v28  }
 0x2ed   :  { %v10354_v4 = vpop.permute.xlu1 %2641  ;;  %v10356_v53 = vpop.permute.xlu0 %3090 }
 0x2ee   :  { %14543 = vst [vmem:[#allocation166_spill] sm:$0xff] %v10354_v4  ;;  %14544 = vst [vmem:[#allocation167_spill] sm:$0xff] %v10356_v53  ;;  %v10500_v4 = vld [vmem:[#allocation2 + $0x78] sm:$0xff] }
 0x2ef   :  { %3471 = vperm.xlu1 %6981, %v10002_v44  }
 0x2f1   :  { %v10359_v61 = vpop.permute.xlu1 %3166  ;;  %v10361_v13 = vpop.permute.xlu0 %2639 }
 0x2f2   :  { %14545 = vst [vmem:[#allocation168_spill] sm:$0xff] %v10359_v61  ;;  %14546 = vst [vmem:[#allocation169_spill] sm:$0xff] %v10361_v13 }
 0x2f3   :  { %3475 = vperm.xlu1 %6981, %v10008_v12  }
 0x2f5   :  { %v10364_v40 = vpop.permute.xlu1 %3170  ;;  %v10366_v27 = vpop.permute.xlu0 %2643 }
 0x2f6   :  { %14547 = vst [vmem:[#allocation170_spill] sm:$0xff] %v10364_v40  ;;  %14548 = vst [vmem:[#allocation171_spill] sm:$0xff] %v10366_v27 }
 0x2f9   :  { %v10368_v62 = vpop.permute.xlu1 %2719  ;;  %v10370_v14 = vpop.permute.xlu0 %3168 }
 0x2fa   :  { %14549 = vst [vmem:[#allocation172_spill] sm:$0xff] %v10368_v62  ;;  %14550 = vst [vmem:[#allocation173_spill] sm:$0xff] %v10370_v14 }
 0x2fd   :  { %v10372_v28 = vpop.permute.xlu1 %2723  ;;  %v10374_v58 = vpop.permute.xlu0 %3172 }
 0x2fe   :  { %14551 = vst [vmem:[#allocation174_spill] sm:$0xff] %v10372_v28  ;;  %14552 = vst [vmem:[#allocation175_spill] sm:$0xff] %v10374_v58 }
 0x301   :  { %v10376_v53 = vpop.permute.xlu1 %3088  ;;  %v10378_v44 = vpop.permute.xlu0 %3239 }
 0x302   :  { %14553 = vst [vmem:[#allocation176_spill] sm:$0xff] %v10376_v53  ;;  %14554 = vst [vmem:[#allocation177_spill] sm:$0xff] %v10378_v44 }
 0x305   :  { %v10380_v61 = vpop.permute.xlu1 %3092  ;;  %v10382_v13 = vpop.permute.xlu0 %3251 }
 0x306   :  { %14555 = vst [vmem:[#allocation178_spill] sm:$0xff] %v10380_v61  ;;  %14556 = vst [vmem:[#allocation179_spill] sm:$0xff] %v10382_v13 }
 0x309   :  { %v10384_v12 = vpop.permute.xlu1 %3243  ;;  %v10386_v40 = vpop.permute.xlu0 %3272 }
 0x30a   :  { %14557 = vst [vmem:[#allocation180_spill] sm:$0xff] %v10384_v12  ;;  %14558 = vst [vmem:[#allocation181_spill] sm:$0xff] %v10386_v40 }
 0x30d   :  { %v10388_v27 = vpop.permute.xlu1 %3247  ;;  %v10390_v62 = vpop.permute.xlu0 %3276 }
 0x30e   :  { %14559 = vst [vmem:[#allocation182_spill] sm:$0xff] %v10388_v27  ;;  %14560 = vst [vmem:[#allocation183_spill] sm:$0xff] %v10390_v62 }
 0x311   :  { %v10392_v14 = vpop.permute.xlu1 %3270  ;;  %v10394_v28 = vpop.permute.xlu0 %3280 }
 0x312   :  { %14561 = vst [vmem:[#allocation184_spill] sm:$0xff] %v10392_v14  ;;  %14562 = vst [vmem:[#allocation185_spill] sm:$0xff] %v10394_v28 }
 0x315   :  { %v10396_v58 = vpop.permute.xlu1 %3274  ;;  %v10398_v53 = vpop.permute.xlu0 %3284 }
 0x316   :  { %14563 = vst [vmem:[#allocation186_spill] sm:$0xff] %v10396_v58  ;;  %14564 = vst [vmem:[#allocation187_spill] sm:$0xff] %v10398_v53 }
 0x319   :  { %v10400_v44 = vpop.permute.xlu1 %3278  ;;  %v10402_v61 = vpop.permute.xlu0 %3288 }
 0x31a   :  { %14565 = vst [vmem:[#allocation188_spill] sm:$0xff] %v10400_v44  ;;  %14566 = vst [vmem:[#allocation189_spill] sm:$0xff] %v10402_v61 }
 0x31d   :  { %v10404_v13 = vpop.permute.xlu1 %3282  ;;  %v10406_v12 = vpop.permute.xlu0 %3292 }
 0x31e   :  { %14567 = vst [vmem:[#allocation190_spill] sm:$0xff] %v10404_v13  ;;  %14568 = vst [vmem:[#allocation191_spill] sm:$0xff] %v10406_v12 }
 0x321   :  { %v10408_v40 = vpop.permute.xlu1 %3286  ;;  %v10410_v27 = vpop.permute.xlu0 %3296 }
 0x322   :  { %14569 = vst [vmem:[#allocation192_spill] sm:$0xff] %v10408_v40  ;;  %14570 = vst [vmem:[#allocation193_spill] sm:$0xff] %v10410_v27 }
 0x325   :  { %v10412_v62 = vpop.permute.xlu1 %3290  ;;  %v10414_v14 = vpop.permute.xlu0 %3300 }
 0x326   :  { %14571 = vst [vmem:[#allocation194_spill] sm:$0xff] %v10412_v62  ;;  %14572 = vst [vmem:[#allocation195_spill] sm:$0xff] %v10414_v14 }
 0x329   :  { %v10416_v28 = vpop.permute.xlu1 %3294  ;;  %v10418_v58 = vpop.permute.xlu0 %3307 }
 0x32a   :  { %14573 = vst [vmem:[#allocation196_spill] sm:$0xff] %v10416_v28  ;;  %14574 = vst [vmem:[#allocation197_spill] sm:$0xff] %v10418_v58 }
 0x32d   :  { %v10420_v53 = vpop.permute.xlu1 %3298  ;;  %v10422_v44 = vpop.permute.xlu0 %3350 }
 0x32e   :  { %14575 = vst [vmem:[#allocation198_spill] sm:$0xff] %v10420_v53  ;;  %14576 = vst [vmem:[#allocation199_spill] sm:$0xff] %v10422_v44 }
 0x331   :  { %v10424_v61 = vpop.permute.xlu1 %3303  ;;  %v10426_v13 = vpop.permute.xlu0 %3354 }
 0x332   :  { %14577 = vst [vmem:[#allocation200_spill] sm:$0xff] %v10424_v61  ;;  %14578 = vst [vmem:[#allocation201_spill] sm:$0xff] %v10426_v13 }
 0x335   :  { %v10428_v12 = vpop.permute.xlu1 %3311  ;;  %v10430_v40 = vpop.permute.xlu0 %3358 }
 0x336   :  { %14579 = vst [vmem:[#allocation202_spill] sm:$0xff] %v10428_v12  ;;  %14580 = vst [vmem:[#allocation203_spill] sm:$0xff] %v10430_v40 }
 0x339   :  { %v10432_v27 = vpop.permute.xlu1 %3315  ;;  %v10436_v14 = vpop.permute.xlu0 %3362 }
 0x33a   :  { %14581 = vst [vmem:[#allocation204_spill] sm:$0xff] %v10432_v27  ;;  %14583 = vst [vmem:[#allocation206_spill] sm:$0xff] %v10436_v14 }
 0x33d   :  { %v10434_v62 = vpop.permute.xlu1 %3352  ;;  %v10440_v58 = vpop.permute.xlu0 %3366 }
 0x33e   :  { %14582 = vst [vmem:[#allocation205_spill] sm:$0xff] %v10434_v62  ;;  %14585 = vst [vmem:[#allocation208_spill] sm:$0xff] %v10440_v58 }
 0x341   :  { %v10438_v28 = vpop.permute.xlu1 %3356  ;;  %v10446_v61 = vpop.permute.xlu0 %3370 }
 0x342   :  { %14584 = vst [vmem:[#allocation207_spill] sm:$0xff] %v10438_v28  ;;  %14588 = vst [vmem:[#allocation211_spill] sm:$0xff] %v10446_v61 }
 0x345   :  { %v10442_v53 = vpop.permute.xlu1 %3360  ;;  %v10450_v12 = vpop.permute.xlu0 %3374 }
 0x346   :  { %14586 = vst [vmem:[#allocation209_spill] sm:$0xff] %v10442_v53  ;;  %14590 = vst [vmem:[#allocation213_spill] sm:$0xff] %v10450_v12  ;;  %v10490_v12 = vld [vmem:[#allocation2 + $0x68] sm:$0xff] }
 0x349   :  { %v10444_v44 = vpop.permute.xlu1 %3364  ;;  %v10456_v62 = vpop.permute.xlu0 %3378 }
 0x34a   :  { %14587 = vst [vmem:[#allocation210_spill] sm:$0xff] %v10444_v44  ;;  %14593 = vst [vmem:[#allocation216_spill] sm:$0xff] %v10456_v62 }
 0x34d   :  { %v10448_v13 = vpop.permute.xlu1 %3368  ;;  %v10460_v28 = vpop.permute.xlu0 %3383 }
 0x34e   :  { %14589 = vst [vmem:[#allocation212_spill] sm:$0xff] %v10448_v13  ;;  %14595 = vst [vmem:[#allocation218_spill] sm:$0xff] %v10460_v28  ;;  %v10470_v13 = vld [vmem:[#allocation2 + $0x48] sm:$0xff] }
 0x351   :  { %v10452_v40 = vpop.permute.xlu1 %3372  ;;  %v10466_v44 = vpop.permute.xlu0 %3395 }
 0x352   :  { %14591 = vst [vmem:[#allocation214_spill] sm:$0xff] %v10452_v40  ;;  %14598 = vst [vmem:[#allocation221_spill] sm:$0xff] %v10466_v44 }
 0x355   :  { %v10454_v27 = vpop.permute.xlu1 %3376 }
 0x356   :  { %14592 = vst [vmem:[#allocation215_spill] sm:$0xff] %v10454_v27  ;;  %v10476_v27 = vpop.permute.xlu0 %3467 }
 0x357   :  { %v3480_v44 = vmul.f32 %v10476_v27, %v10166_v17  ;;  %v3505_v3 = vmul.f32 %v10476_v27, %v10584_v1 }
 0x359   :  { %v10458_v14 = vpop.permute.xlu1 %3380 }
 0x35a   :  { %14594 = vst [vmem:[#allocation217_spill] sm:$0xff] %v10458_v14 }
 0x35d   :  { %v10462_v58 = vpop.permute.xlu1 %3387 }
 0x35e   :  { %14596 = vst [vmem:[#allocation219_spill] sm:$0xff] %v10462_v58 }
 0x361   :  { %v10464_v53 = vpop.permute.xlu1 %3391 }
 0x362   :  { %14597 = vst [vmem:[#allocation220_spill] sm:$0xff] %v10464_v53  ;;  %v10482_v53 = vld [vmem:[#allocation2 + $0x58] sm:$0xff] }
 0x363   :  { %v3481_v14 = vmul.f32 %v10476_v27, %v10482_v53 }
 0x366   :  { %v10468_v61 = vpop.permute.xlu1 %3463 }
 0x367   :  { %v3479_v40 = vmul.f32 %v10468_v61, %v10470_v13  ;;  %v3478_v62 = vmul.f32 %v10468_v61, %v10184_v20  ;;  %v3487_v23 = vmul.f32 %v10468_v61, %v10508_v51 }
 0x369   :  { %3544 = vrot.lane.b32.xlu1 %v3479_v40, %s7241_s16  ;;  %3542 = vrot.lane.b32.xlu0 %v3478_v62, %s7241_s16 }
 0x36a   :  { %v10480_v58 = vpop.permute.xlu1 %3471 }
 0x36b   :  { %v3483_v40 = vmul.f32 %v10480_v58, %v10490_v12  ;;  %v3482_v62 = vmul.f32 %v10480_v58, %v10192_v2 }
 0x36d   :  { %3548 = vrot.lane.b32.xlu1 %v3481_v14, %s7241_s16  ;;  %3546 = vrot.lane.b32.xlu0 %v3480_v44, %s7241_s16 }
 0x36e   :  { %v10496_v28 = vpop.permute.xlu1 %3475 }
 0x36f   :  { %v3485_v14 = vmul.f32 %v10496_v28, %v10500_v4  ;;  %v3484_v44 = vmul.f32 %v10496_v28, %v10175_v16 }
 0x371   :  { %3552 = vrot.lane.b32.xlu1 %v3483_v40, %s7241_s16  ;;  %3550 = vrot.lane.b32.xlu0 %v3482_v62, %s7241_s16  ;;  %v3486_v40 = vmul.f32 %v10468_v61, %v10204_v39  ;;  %v10516_v62 = vld [vmem:[#allocation2 + $0x98] sm:$0xff] }
 0x372   :  { %v3489_v6 = vmul.f32 %v10476_v27, %v10516_v62 }
 0x375   :  { %3556 = vrot.lane.b32.xlu1 %v3485_v14, %s7241_s16  ;;  %3554 = vrot.lane.b32.xlu0 %v3484_v44, %s7241_s16  ;;  %v3488_v14 = vmul.f32 %v10476_v27, %v10186_v11  ;;  %v10524_v44 = vld [vmem:[#allocation2 + $0xa8] sm:$0xff] }
 0x376   :  { %v3491_v35 = vmul.f32 %v10480_v58, %v10524_v44 }
 0x379   :  { %3560 = vrot.lane.b32.xlu1 %v3487_v23, %s7241_s16  ;;  %3558 = vrot.lane.b32.xlu0 %v3486_v40, %s7241_s16  ;;  %v3490_v23 = vmul.f32 %v10480_v58, %v10214_v31  ;;  %v10532_v40 = vld [vmem:[#allocation2 + $0xb8] sm:$0xff] }
 0x37a   :  { %v3493_v32 = vmul.f32 %v10496_v28, %v10532_v40 }
 0x37d   :  { %3564 = vrot.lane.b32.xlu1 %v3489_v6, %s7241_s16  ;;  %3562 = vrot.lane.b32.xlu0 %v3488_v14, %s7241_s16  ;;  %v3492_v6 = vmul.f32 %v10496_v28, %v10194_v57  ;;  %v10540_v14 = vld [vmem:[#allocation2 + $0xc8] sm:$0xff] }
 0x37e   :  { %v3495_v55 = vmul.f32 %v10468_v61, %v10540_v14 }
 0x381   :  { %3568 = vrot.lane.b32.xlu1 %v3491_v35, %s7241_s16  ;;  %3566 = vrot.lane.b32.xlu0 %v3490_v23, %s7241_s16  ;;  %v3494_v35 = vmul.f32 %v10468_v61, %v10226_v18  ;;  %v10548_v23 = vld [vmem:[#allocation2 + $0xd8] sm:$0xff] }
 0x385   :  { %3572 = vrot.lane.b32.xlu1 %v3493_v32, %s7241_s16  ;;  %3570 = vrot.lane.b32.xlu0 %v3492_v6, %s7241_s16  ;;  %v3497_v32 = vmul.f32 %v10476_v27, %v10548_v23  ;;  %v3496_v6 = vmul.f32 %v10476_v27, %v10550_v63 }
 0x389   :  { %3576 = vrot.lane.b32.xlu1 %v3495_v55, %s7241_s16  ;;  %3574 = vrot.lane.b32.xlu0 %v3494_v35, %s7241_s16  ;;  %v3499_v55 = vmul.f32 %v10480_v58, %v10558_v33  ;;  %v3498_v35 = vmul.f32 %v10480_v58, %v10238_v41 }
 0x38d   :  { %3580 = vrot.lane.b32.xlu1 %v3497_v32, %s7241_s16  ;;  %3578 = vrot.lane.b32.xlu0 %v3496_v6, %s7241_s16  ;;  %v3501_v32 = vmul.f32 %v10496_v28, %v10566_v48  ;;  %v3500_v6 = vmul.f32 %v10496_v28, %v10568_v47 }
 0x391   :  { %3584 = vrot.lane.b32.xlu1 %v3499_v55, %s7241_s16  ;;  %3582 = vrot.lane.b32.xlu0 %v3498_v35, %s7241_s16  ;;  %v3503_v55 = vmul.f32 %v10468_v61, %v10576_v36  ;;  %v3502_v35 = vmul.f32 %v10468_v61, %v10015_v43 }
 0x395   :  { %3588 = vrot.lane.b32.xlu1 %v3501_v32, %s7241_s16  ;;  %3586 = vrot.lane.b32.xlu0 %v3500_v6, %s7241_s16  ;;  %v3504_v32 = vmul.f32 %v10476_v27, %v10220_v49  ;;  %v10592_v6 = vld [vmem:[#allocation2 + $0x128] sm:$0xff] }
 0x396   :  { %v3507_v61 = vmul.f32 %v10480_v58, %v10592_v6 }
 0x399   :  { %3592 = vrot.lane.b32.xlu1 %v3503_v55, %s7241_s16  ;;  %3590 = vrot.lane.b32.xlu0 %v3502_v35, %s7241_s16  ;;  %v3506_v55 = vmul.f32 %v10480_v58, %v10064_v5  ;;  %v10600_v35 = vld [vmem:[#allocation2 + $0x138] sm:$0xff]  ;;  %v7252_v58 = vmov 13  }
 0x39a   :  { %v3509_v27 = vmul.f32 %v10496_v28, %v10600_v35  ;;  %6983 = vset.pattern.permute.xlu0 %v7252_v58  ;;  %6984 = vset.pattern.permute.xlu1 %v7252_v58 }
 0x39d   :  { %3596 = vrot.lane.b32.xlu1 %v3505_v3, %s7241_s16  ;;  %3594 = vrot.lane.b32.xlu0 %v3504_v32, %s7241_s16  ;;  %v3508_v3 = vmul.f32 %v10496_v28, %v10232_v42 }
 0x3a1   :  { %3600 = vrot.lane.b32.xlu1 %v3507_v61, %s7241_s16  ;;  %3598 = vrot.lane.b32.xlu0 %v3506_v55, %s7241_s16 }
 0x3a5   :  { %3604 = vrot.lane.b32.xlu1 %v3509_v27, %s7241_s16  ;;  %3602 = vrot.lane.b32.xlu0 %v3508_v3, %s7241_s16 }
 0x3a9   :  { %3688 = vrot.lane.b32.xlu1 %v10470_v13, %s7241_s16  ;;  %3686 = vrot.lane.b32.xlu0 %v10184_v20, %s7241_s16 }
 0x3ad   :  { %3692 = vrot.lane.b32.xlu1 %v10482_v53, %s7241_s16  ;;  %3690 = vrot.lane.b32.xlu0 %v10166_v17, %s7241_s16 }
 0x3b1   :  { %3696 = vrot.lane.b32.xlu1 %v10490_v12, %s7241_s16  ;;  %3694 = vrot.lane.b32.xlu0 %v10192_v2, %s7241_s16 }
 0x3b5   :  { %3700 = vrot.lane.b32.xlu1 %v10500_v4, %s7241_s16  ;;  %3698 = vrot.lane.b32.xlu0 %v10175_v16, %s7241_s16 }
 0x3b9   :  { %3704 = vrot.lane.b32.xlu1 %v10508_v51, %s7241_s16  ;;  %3702 = vrot.lane.b32.xlu0 %v10204_v39, %s7241_s16 }
 0x3bd   :  { %3708 = vrot.lane.b32.xlu1 %v10516_v62, %s7241_s16  ;;  %3706 = vrot.lane.b32.xlu0 %v10186_v11, %s7241_s16 }
 0x3c1   :  { %3712 = vrot.lane.b32.xlu1 %v10524_v44, %s7241_s16  ;;  %3710 = vrot.lane.b32.xlu0 %v10214_v31, %s7241_s16 }
 0x3c5   :  { %3716 = vrot.lane.b32.xlu1 %v10532_v40, %s7241_s16  ;;  %3714 = vrot.lane.b32.xlu0 %v10194_v57, %s7241_s16 }
 0x3c9   :  { %3720 = vrot.lane.b32.xlu1 %v10540_v14, %s7241_s16  ;;  %3718 = vrot.lane.b32.xlu0 %v10226_v18, %s7241_s16 }
 0x3cd   :  { %3724 = vrot.lane.b32.xlu1 %v10548_v23, %s7241_s16  ;;  %3722 = vrot.lane.b32.xlu0 %v10550_v63, %s7241_s16 }
 0x3d1   :  { %3728 = vrot.lane.b32.xlu1 %v10558_v33, %s7241_s16  ;;  %3726 = vrot.lane.b32.xlu0 %v10238_v41, %s7241_s16 }
 0x3d5   :  { %3732 = vrot.lane.b32.xlu1 %v10566_v48, %s7241_s16  ;;  %3730 = vrot.lane.b32.xlu0 %v10568_v47, %s7241_s16 }
 0x3d9   :  { %3736 = vrot.lane.b32.xlu1 %v10576_v36, %s7241_s16  ;;  %3734 = vrot.lane.b32.xlu0 %v10015_v43, %s7241_s16 }
 0x3db   :  { %v10660_v28 = vpop.permute.xlu1 %3544  ;;  %v10662_v32 = vpop.permute.xlu0 %3542 }
 0x3dc   :  { %14599 = vst [vmem:[#allocation222_spill] sm:$0xff] %v10660_v28  ;;  %14600 = vst [vmem:[#allocation223_spill] sm:$0xff] %v10662_v32 }
 0x3dd   :  { %3740 = vrot.lane.b32.xlu1 %v10584_v1, %s7241_s16  ;;  %3738 = vrot.lane.b32.xlu0 %v10220_v49, %s7241_s16 }
 0x3df   :  { %v10668_v61 = vpop.permute.xlu1 %3548  ;;  %v10670_v55 = vpop.permute.xlu0 %3546 }
 0x3e0   :  { %14601 = vst [vmem:[#allocation224_spill] sm:$0xff] %v10668_v61  ;;  %14602 = vst [vmem:[#allocation225_spill] sm:$0xff] %v10670_v55 }
 0x3e1   :  { %3744 = vrot.lane.b32.xlu1 %v10592_v6, %s7241_s16  ;;  %3742 = vrot.lane.b32.xlu0 %v10064_v5, %s7241_s16 }
 0x3e3   :  { %v10676_v43 = vpop.permute.xlu1 %3552  ;;  %v10678_v27 = vpop.permute.xlu0 %3550 }
 0x3e4   :  { %14603 = vst [vmem:[#allocation226_spill] sm:$0xff] %v10676_v43  ;;  %14604 = vst [vmem:[#allocation227_spill] sm:$0xff] %v10678_v27 }
 0x3e5   :  { %3748 = vrot.lane.b32.xlu1 %v10600_v35, %s7241_s16  ;;  %3746 = vrot.lane.b32.xlu0 %v10232_v42, %s7241_s16 }
 0x3e7   :  { %v10684_v3 = vpop.permute.xlu1 %3556  ;;  %v10686_v58 = vpop.permute.xlu0 %3554 }
 0x3e8   :  { %14605 = vst [vmem:[#allocation228_spill] sm:$0xff] %v10684_v3  ;;  %14606 = vst [vmem:[#allocation229_spill] sm:$0xff] %v10686_v58 }
 0x3eb   :  { %v10688_v55 = vpop.permute.xlu1 %3560  ;;  %v10690_v61 = vpop.permute.xlu0 %3558 }
 0x3ec   :  { %14607 = vst [vmem:[#allocation230_spill] sm:$0xff] %v10688_v55  ;;  %14608 = vst [vmem:[#allocation231_spill] sm:$0xff] %v10690_v61 }
 0x3ef   :  { %v10692_v32 = vpop.permute.xlu1 %3564  ;;  %v10694_v5 = vpop.permute.xlu0 %3562 }
 0x3f0   :  { %14609 = vst [vmem:[#allocation232_spill] sm:$0xff] %v10692_v32  ;;  %14610 = vst [vmem:[#allocation233_spill] sm:$0xff] %v10694_v5 }
 0x3f3   :  { %v10696_v43 = vpop.permute.xlu1 %3568  ;;  %v10698_v27 = vpop.permute.xlu0 %3566 }
 0x3f4   :  { %14611 = vst [vmem:[#allocation234_spill] sm:$0xff] %v10696_v43  ;;  %14612 = vst [vmem:[#allocation235_spill] sm:$0xff] %v10698_v27 }
 0x3f7   :  { %v10700_v28 = vpop.permute.xlu1 %3572  ;;  %v10702_v8 = vpop.permute.xlu0 %3570 }
 0x3f8   :  { %14613 = vst [vmem:[#allocation236_spill] sm:$0xff] %v10700_v28  ;;  %14614 = vst [vmem:[#allocation237_spill] sm:$0xff] %v10702_v8 }
 0x3fb   :  { %v10704_v52 = vpop.permute.xlu1 %3576  ;;  %v10706_v3 = vpop.permute.xlu0 %3574 }
 0x3fc   :  { %14615 = vst [vmem:[#allocation238_spill] sm:$0xff] %v10704_v52  ;;  %14616 = vst [vmem:[#allocation239_spill] sm:$0xff] %v10706_v3 }
 0x3ff   :  { %v10708_v58 = vpop.permute.xlu1 %3580  ;;  %v10710_v55 = vpop.permute.xlu0 %3578 }
 0x400   :  { %14617 = vst [vmem:[#allocation240_spill] sm:$0xff] %v10708_v58  ;;  %14618 = vst [vmem:[#allocation241_spill] sm:$0xff] %v10710_v55 }
 0x403   :  { %v10712_v61 = vpop.permute.xlu1 %3584  ;;  %v10714_v32 = vpop.permute.xlu0 %3582 }
 0x404   :  { %14619 = vst [vmem:[#allocation242_spill] sm:$0xff] %v10712_v61  ;;  %14620 = vst [vmem:[#allocation243_spill] sm:$0xff] %v10714_v32 }
 0x407   :  { %v10716_v5 = vpop.permute.xlu1 %3588  ;;  %v10718_v43 = vpop.permute.xlu0 %3586 }
 0x408   :  { %14621 = vst [vmem:[#allocation244_spill] sm:$0xff] %v10716_v5  ;;  %14622 = vst [vmem:[#allocation245_spill] sm:$0xff] %v10718_v43 }
 0x40b   :  { %v10720_v27 = vpop.permute.xlu1 %3592  ;;  %v10722_v28 = vpop.permute.xlu0 %3590 }
 0x40c   :  { %14623 = vst [vmem:[#allocation246_spill] sm:$0xff] %v10720_v27  ;;  %14624 = vst [vmem:[#allocation247_spill] sm:$0xff] %v10722_v28 }
 0x40f   :  { %v10724_v8 = vpop.permute.xlu1 %3596  ;;  %v10726_v52 = vpop.permute.xlu0 %3594 }
 0x410   :  { %14625 = vst [vmem:[#allocation248_spill] sm:$0xff] %v10724_v8  ;;  %14626 = vst [vmem:[#allocation249_spill] sm:$0xff] %v10726_v52 }
 0x413   :  { %v10728_v3 = vpop.permute.xlu1 %3600  ;;  %v10730_v58 = vpop.permute.xlu0 %3598 }
 0x414   :  { %14627 = vst [vmem:[#allocation250_spill] sm:$0xff] %v10728_v3  ;;  %14628 = vst [vmem:[#allocation251_spill] sm:$0xff] %v10730_v58 }
 0x417   :  { %v10732_v55 = vpop.permute.xlu1 %3604  ;;  %v10734_v61 = vpop.permute.xlu0 %3602 }
 0x418   :  { %14629 = vst [vmem:[#allocation252_spill] sm:$0xff] %v10732_v55  ;;  %14630 = vst [vmem:[#allocation253_spill] sm:$0xff] %v10734_v61 }
 0x41b   :  { %v3689_v32 = vpop.permute.xlu1 %3688  ;;  %v3687_v5 = vpop.permute.xlu0 %3686 }
 0x41c   :  { %v10737_v43 = vsel %vm2436_vm1, %v3687_v5, %v3689_v32 }
 0x41d   :  { %3782 = vrot.lane.b32.xlu0 %v10737_v43, %s7235_s17 }
 0x41f   :  { %v3693_v28 = vpop.permute.xlu1 %3692  ;;  %v3691_v8 = vpop.permute.xlu0 %3690 }
 0x420   :  { %v10742_v52 = vsel %vm2436_vm1, %v3691_v8, %v3693_v28 }
 0x421   :  { %3784 = vrot.lane.b32.xlu1 %v10742_v52, %s7235_s17 }
 0x423   :  { %v3697_v58 = vpop.permute.xlu1 %3696  ;;  %v3695_v55 = vpop.permute.xlu0 %3694 }
 0x424   :  { %v10747_v61 = vsel %vm2436_vm1, %v3695_v55, %v3697_v58 }
 0x425   :  { %3786 = vrot.lane.b32.xlu0 %v10747_v61, %s7235_s17 }
 0x427   :  { %v3701_v32 = vpop.permute.xlu1 %3700  ;;  %v3699_v5 = vpop.permute.xlu0 %3698 }
 0x428   :  { %v3753_v3 = vsel %vm2436_vm1, %v3699_v5, %v3701_v32 }
 0x429   :  { %3788 = vrot.lane.b32.xlu1 %v3753_v3, %s7235_s17 }
 0x42b   :  { %v3705_v27 = vpop.permute.xlu1 %3704  ;;  %v3703_v8 = vpop.permute.xlu0 %3702 }
 0x42c   :  { %v3754_v28 = vsel %vm2436_vm1, %v3703_v8, %v3705_v27 }
 0x42d   :  { %3790 = vrot.lane.b32.xlu0 %v3754_v28, %s7235_s17 }
 0x42f   :  { %v3709_v37 = vpop.permute.xlu1 %3708  ;;  %v3707_v60 = vpop.permute.xlu0 %3706 }
 0x430   :  { %v3755_v55 = vsel %vm2436_vm1, %v3707_v60, %v3709_v37 }
 0x431   :  { %3792 = vrot.lane.b32.xlu1 %v3755_v55, %s7235_s17 }
 0x433   :  { %v3713_v58 = vpop.permute.xlu1 %3712  ;;  %v3711_v50 = vpop.permute.xlu0 %3710 }
 0x434   :  { %v3756_v54 = vsel %vm2436_vm1, %v3711_v50, %v3713_v58 }
 0x435   :  { %3794 = vrot.lane.b32.xlu0 %v3756_v54, %s7235_s17 }
 0x437   :  { %v3717_v32 = vpop.permute.xlu1 %3716  ;;  %v3715_v5 = vpop.permute.xlu0 %3714 }
 0x438   :  { %v3757_v9 = vsel %vm2436_vm1, %v3715_v5, %v3717_v32 }
 0x439   :  { %3796 = vrot.lane.b32.xlu1 %v3757_v9, %s7235_s17 }
 0x43b   :  { %v3721_v27 = vpop.permute.xlu1 %3720  ;;  %v3719_v8 = vpop.permute.xlu0 %3718 }
 0x43c   :  { %v3758_v0 = vsel %vm2436_vm1, %v3719_v8, %v3721_v27 }
 0x43d   :  { %3798 = vrot.lane.b32.xlu0 %v3758_v0, %s7235_s17 }
 0x43f   :  { %v3725_v60 = vpop.permute.xlu1 %3724  ;;  %v3723_v37 = vpop.permute.xlu0 %3722 }
 0x440   :  { %v3759_v21 = vsel %vm2436_vm1, %v3723_v37, %v3725_v60 }
 0x441   :  { %3800 = vrot.lane.b32.xlu1 %v3759_v21, %s7235_s17 }
 0x443   :  { %v3729_v50 = vpop.permute.xlu1 %3728  ;;  %v3727_v58 = vpop.permute.xlu0 %3726 }
 0x444   :  { %v3760_v15 = vsel %vm2436_vm1, %v3727_v58, %v3729_v50 }
 0x445   :  { %3802 = vrot.lane.b32.xlu0 %v3760_v15, %s7235_s17 }
 0x447   :  { %v3733_v32 = vpop.permute.xlu1 %3732  ;;  %v3731_v5 = vpop.permute.xlu0 %3730 }
 0x448   :  { %v3761_v46 = vsel %vm2436_vm1, %v3731_v5, %v3733_v32 }
 0x449   :  { %3804 = vrot.lane.b32.xlu1 %v3761_v46, %s7235_s17 }
 0x44b   :  { %v3737_v27 = vpop.permute.xlu1 %3736  ;;  %v3735_v8 = vpop.permute.xlu0 %3734 }
 0x44c   :  { %v3762_v19 = vsel %vm2436_vm1, %v3735_v8, %v3737_v27  ;;  %v10779_v27 = vld [vmem:[%s14071_s2] sm:$0xff]  ;;  %v10786_v8 = vld [vmem:[%s14071_s2 + $0x18] sm:$0xff] }
 0x44d   :  { %3806 = vrot.lane.b32.xlu0 %v3762_v19, %s7235_s17 }
 0x44f   :  { %v3741_v60 = vpop.permute.xlu1 %3740  ;;  %v3739_v37 = vpop.permute.xlu0 %3738 }
 0x450   :  { %v3763_v38 = vsel %vm2436_vm1, %v3739_v37, %v3741_v60  ;;  %v10792_v60 = vld [vmem:[%s14071_s2 + $0x8] sm:$0xff]  ;;  %v10800_v37 = vld [vmem:[%s14071_s2 + $0x10] sm:$0xff] }
 0x451   :  { %3808 = vrot.lane.b32.xlu1 %v3763_v38, %s7235_s17 }
 0x453   :  { %v3745_v50 = vpop.permute.xlu1 %3744  ;;  %v3743_v58 = vpop.permute.xlu0 %3742 }
 0x454   :  { %v3764_v24 = vsel %vm2436_vm1, %v3743_v58, %v3745_v50  ;;  %v7253_v50 = vmov 14  }
 0x455   :  { %3810 = vrot.lane.b32.xlu0 %v3764_v24, %s7235_s17 }
 0x457   :  { %v3749_v32 = vpop.permute.xlu1 %3748  ;;  %v3747_v5 = vpop.permute.xlu0 %3746 }
 0x458   :  { %v3765_v26 = vsel %vm2436_vm1, %v3747_v5, %v3749_v32 }
 0x459   :  { %3815 = vperm.xlu0 %6983, %v10779_v27   ;;  %3812 = vrot.lane.b32.xlu1 %v3765_v26, %s7235_s17 }
 0x45d   :  { %3827 = vperm.xlu0 %6983, %v10786_v8   ;;  %3819 = vperm.xlu1 %6984, %v10792_v60  }
 0x461   :  { %3864 = vrot.lane.b32.xlu0 %v10742_v52, %s7237_s19  ;;  %3823 = vperm.xlu1 %6984, %v10800_v37  }
 0x462   :  { %6986 = vset.pattern.permute.xlu0 %v7253_v50 }
 0x465   :  { %3868 = vrot.lane.b32.xlu0 %v3753_v3, %s7237_s19  ;;  %3862 = vrot.lane.b32.xlu1 %v10737_v43, %s7237_s19 }
 0x466   :  { %6985 = vset.pattern.permute.xlu1 %v7253_v50 }
 0x469   :  { %3872 = vrot.lane.b32.xlu0 %v3755_v55, %s7237_s19  ;;  %3866 = vrot.lane.b32.xlu1 %v10747_v61, %s7237_s19 }
 0x46d   :  { %3876 = vrot.lane.b32.xlu0 %v3757_v9, %s7237_s19  ;;  %3870 = vrot.lane.b32.xlu1 %v3754_v28, %s7237_s19  ;;  %v7254_v9 = vmov 15  }
 0x471   :  { %3880 = vrot.lane.b32.xlu0 %v3759_v21, %s7237_s19  ;;  %3874 = vrot.lane.b32.xlu1 %v3756_v54, %s7237_s19 }
 0x475   :  { %3884 = vrot.lane.b32.xlu0 %v3761_v46, %s7237_s19  ;;  %3878 = vrot.lane.b32.xlu1 %v3758_v0, %s7237_s19 }
 0x479   :  { %3888 = vrot.lane.b32.xlu0 %v3763_v38, %s7237_s19  ;;  %3882 = vrot.lane.b32.xlu1 %v3760_v15, %s7237_s19 }
 0x47d   :  { %3892 = vrot.lane.b32.xlu0 %v3765_v26, %s7237_s19  ;;  %3886 = vrot.lane.b32.xlu1 %v3762_v19, %s7237_s19 }
 0x481   :  { %3899 = vperm.xlu0 %6986, %v10792_v60   ;;  %3890 = vrot.lane.b32.xlu1 %v3764_v24, %s7237_s19 }
 0x485   :  { %6987 = vset.pattern.permute.xlu0 %v7254_v9  ;;  %3895 = vperm.xlu1 %6985, %v10779_v27  }
 0x486   :  { %3943 = vperm.xlu0 %6987, %v10779_v27  }
 0x489   :  { %3903 = vperm.xlu1 %6985, %v10800_v37  }
 0x48a   :  { %3955 = vperm.xlu0 %6987, %v10786_v8  }
 0x48d   :  { %3907 = vperm.xlu1 %6985, %v10786_v8  }
 0x48f   :  { %v10828_v19 = vpop.permute.xlu0 %3782 }
 0x490   :  { %14631 = vst [vmem:[#allocation254_spill] sm:$0xff] %v10828_v19  ;;  %v14837_v19 = vld [vmem:[#allocation11_spill] sm:$0xff] }
 0x491   :  { %6988 = vset.pattern.permute.xlu1 %v7254_v9 }
 0x492   :  { %3947 = vperm.xlu1 %6988, %v10792_v60  }
 0x493   :  { %v10830_v21 = vpop.permute.xlu1 %3784 }
 0x494   :  { %14632 = vst [vmem:[#allocation255_spill] sm:$0xff] %v10830_v21 }
 0x496   :  { %3951 = vperm.xlu1 %6988, %v10800_v37  }
 0x497   :  { %v10832_v24 = vpop.permute.xlu0 %3786 }
 0x498   :  { %14633 = vst [vmem:[#allocation256_spill] sm:$0xff] %v10832_v24 }
 0x49b   :  { %v10834_v26 = vpop.permute.xlu1 %3788 }
 0x49c   :  { %14634 = vst [vmem:[#allocation257_spill] sm:$0xff] %v10834_v26 }
 0x49f   :  { %v10836_v38 = vpop.permute.xlu0 %3790 }
 0x4a0   :  { %14635 = vst [vmem:[#allocation258_spill] sm:$0xff] %v10836_v38  ;;  %v14836_v38 = vld [vmem:[#allocation6_spill] sm:$0xff] }
 0x4a3   :  { %v10838_v46 = vpop.permute.xlu1 %3792 }
 0x4a4   :  { %14636 = vst [vmem:[#allocation259_spill] sm:$0xff] %v10838_v46 }
 0x4a7   :  { %v10840_v15 = vpop.permute.xlu0 %3794 }
 0x4a8   :  { %14637 = vst [vmem:[#allocation260_spill] sm:$0xff] %v10840_v15 }
 0x4ab   :  { %v10842_v0 = vpop.permute.xlu1 %3796 }
 0x4ac   :  { %14638 = vst [vmem:[#allocation261_spill] sm:$0xff] %v10842_v0 }
 0x4af   :  { %v10844_v54 = vpop.permute.xlu0 %3798 }
 0x4b0   :  { %14639 = vst [vmem:[#allocation262_spill] sm:$0xff] %v10844_v54 }
 0x4b3   :  { %v10846_v52 = vpop.permute.xlu1 %3800 }
 0x4b4   :  { %14640 = vst [vmem:[#allocation263_spill] sm:$0xff] %v10846_v52 }
 0x4b7   :  { %v10848_v61 = vpop.permute.xlu0 %3802 }
 0x4b8   :  { %14641 = vst [vmem:[#allocation264_spill] sm:$0xff] %v10848_v61 }
 0x4bb   :  { %v10850_v43 = vpop.permute.xlu1 %3804 }
 0x4bc   :  { %14642 = vst [vmem:[#allocation265_spill] sm:$0xff] %v10850_v43 }
 0x4bf   :  { %v10852_v3 = vpop.permute.xlu0 %3806 }
 0x4c0   :  { %14643 = vst [vmem:[#allocation266_spill] sm:$0xff] %v10852_v3 }
 0x4c3   :  { %v10854_v28 = vpop.permute.xlu1 %3808 }
 0x4c4   :  { %14644 = vst [vmem:[#allocation267_spill] sm:$0xff] %v10854_v28 }
 0x4c7   :  { %v10856_v55 = vpop.permute.xlu0 %3810 }
 0x4c8   :  { %14645 = vst [vmem:[#allocation268_spill] sm:$0xff] %v10856_v55 }
 0x4cb   :  { %v10858_v58 = vpop.permute.xlu1 %3812 }
 0x4cc   :  { %14646 = vst [vmem:[#allocation269_spill] sm:$0xff] %v10858_v58 }
 0x4d4   :  { %v10860_v32 = vpop.permute.xlu0 %3815 }
 0x4d5   :  { %14647 = vst [vmem:[#allocation270_spill] sm:$0xff] %v10860_v32 }
 0x4d8   :  { %v10862_v5 = vpop.permute.xlu1 %3819  ;;  %v10864_v50 = vpop.permute.xlu0 %3827 }
 0x4d9   :  { %14648 = vst [vmem:[#allocation271_spill] sm:$0xff] %v10862_v5  ;;  %14649 = vst [vmem:[#allocation272_spill] sm:$0xff] %v10864_v50 }
 0x4dc   :  { %v10866_v9 = vpop.permute.xlu1 %3823  ;;  %v10868_v15 = vpop.permute.xlu0 %3864 }
 0x4dd   :  { %14650 = vst [vmem:[#allocation273_spill] sm:$0xff] %v10866_v9  ;;  %14651 = vst [vmem:[#allocation274_spill] sm:$0xff] %v10868_v15 }
 0x4e0   :  { %v10870_v61 = vpop.permute.xlu1 %3862  ;;  %v10872_v24 = vpop.permute.xlu0 %3868 }
 0x4e1   :  { %14652 = vst [vmem:[#allocation275_spill] sm:$0xff] %v10870_v61  ;;  %14653 = vst [vmem:[#allocation276_spill] sm:$0xff] %v10872_v24 }
 0x4e4   :  { %v10874_v43 = vpop.permute.xlu1 %3866  ;;  %v10876_v0 = vpop.permute.xlu0 %3872 }
 0x4e5   :  { %14654 = vst [vmem:[#allocation277_spill] sm:$0xff] %v10874_v43  ;;  %14655 = vst [vmem:[#allocation278_spill] sm:$0xff] %v10876_v0 }
 0x4e8   :  { %v10878_v55 = vpop.permute.xlu1 %3870  ;;  %v10880_v58 = vpop.permute.xlu0 %3876 }
 0x4e9   :  { %14656 = vst [vmem:[#allocation279_spill] sm:$0xff] %v10878_v55  ;;  %14657 = vst [vmem:[#allocation280_spill] sm:$0xff] %v10880_v58 }
 0x4ec   :  { %v10882_v26 = vpop.permute.xlu1 %3874  ;;  %v10884_v28 = vpop.permute.xlu0 %3880 }
 0x4ed   :  { %14658 = vst [vmem:[#allocation281_spill] sm:$0xff] %v10882_v26  ;;  %14659 = vst [vmem:[#allocation282_spill] sm:$0xff] %v10884_v28 }
 0x4f0   :  { %v10886_v50 = vpop.permute.xlu1 %3878  ;;  %v10888_v9 = vpop.permute.xlu0 %3884 }
 0x4f1   :  { %14660 = vst [vmem:[#allocation283_spill] sm:$0xff] %v10886_v50  ;;  %14661 = vst [vmem:[#allocation284_spill] sm:$0xff] %v10888_v9 }
 0x4f4   :  { %v10890_v15 = vpop.permute.xlu1 %3882  ;;  %v10892_v61 = vpop.permute.xlu0 %3888 }
 0x4f5   :  { %14662 = vst [vmem:[#allocation285_spill] sm:$0xff] %v10890_v15  ;;  %14663 = vst [vmem:[#allocation286_spill] sm:$0xff] %v10892_v61 }
 0x4f8   :  { %v10894_v24 = vpop.permute.xlu1 %3886  ;;  %v10896_v43 = vpop.permute.xlu0 %3892 }
 0x4f9   :  { %14664 = vst [vmem:[#allocation287_spill] sm:$0xff] %v10894_v24  ;;  %14665 = vst [vmem:[#allocation288_spill] sm:$0xff] %v10896_v43 }
 0x4fc   :  { %v10898_v0 = vpop.permute.xlu1 %3890  ;;  %v10900_v55 = vpop.permute.xlu0 %3899 }
 0x4fd   :  { %14666 = vst [vmem:[#allocation289_spill] sm:$0xff] %v10898_v0  ;;  %14667 = vst [vmem:[#allocation290_spill] sm:$0xff] %v10900_v55  ;;  %v7265_v55 = vmov 25  }
 0x500   :  { %v10902_v58 = vpop.permute.xlu1 %3895 }
 0x501   :  { %14668 = vst [vmem:[#allocation291_spill] sm:$0xff] %v10902_v58  ;;  %v3944_v26 = vpop.permute.xlu0 %3943 }
 0x502   :  { %v3959_v28 = vmul.f32 %v3944_v26, %v10470_v13  ;;  %v3958_v50 = vmul.f32 %v3944_v26, %v10184_v20 }
 0x504   :  { %v10906_v9 = vpop.permute.xlu1 %3903  ;;  %4024 = vrot.lane.b32.xlu0 %v3959_v28, %s7245_s1  ;;  %4022 = vrot.lane.b32.xlu1 %v3958_v50, %s7245_s1 }
 0x505   :  { %14669 = vst [vmem:[#allocation292_spill] sm:$0xff] %v10906_v9  ;;  %v3956_v61 = vpop.permute.xlu0 %3955 }
 0x506   :  { %v3965_v28 = vmul.f32 %v3956_v61, %v10500_v4  ;;  %v3964_v50 = vmul.f32 %v3956_v61, %v10175_v16 }
 0x508   :  { %v10910_v15 = vpop.permute.xlu1 %3907 }
 0x509   :  { %14670 = vst [vmem:[#allocation293_spill] sm:$0xff] %v10910_v15 }
 0x50d   :  { %v3948_v43 = vpop.permute.xlu1 %3947 }
 0x50e   :  { %v3961_v0 = vmul.f32 %v3948_v43, %v10482_v53  ;;  %v3960_v24 = vmul.f32 %v3948_v43, %v10166_v17  ;;  %v3967_v17 = vmul.f32 %v3944_v26, %v10508_v51 }
 0x510   :  { %4028 = vrot.lane.b32.xlu0 %v3961_v0, %s7245_s1  ;;  %4026 = vrot.lane.b32.xlu1 %v3960_v24, %s7245_s1  ;;  %v3966_v24 = vmul.f32 %v3944_v26, %v10204_v39  ;;  %v3968_v0 = vmul.f32 %v3948_v43, %v10186_v11  ;;  %v3973_v39 = vmul.f32 %v3956_v61, %v10532_v40 }
 0x511   :  { %v3952_v58 = vpop.permute.xlu1 %3951  ;;  %v3975_v11 = vmul.f32 %v3944_v26, %v10540_v14 }
 0x512   :  { %v3963_v20 = vmul.f32 %v3952_v58, %v10490_v12  ;;  %v3962_v9 = vmul.f32 %v3952_v58, %v10192_v2  ;;  %v3969_v2 = vmul.f32 %v3948_v43, %v10516_v62  ;;  %v3971_v16 = vmul.f32 %v3952_v58, %v10524_v44 }
 0x514   :  { %4032 = vrot.lane.b32.xlu0 %v3963_v20, %s7245_s1  ;;  %4030 = vrot.lane.b32.xlu1 %v3962_v9, %s7245_s1  ;;  %v3970_v9 = vmul.f32 %v3952_v58, %v10214_v31  ;;  %v3972_v20 = vmul.f32 %v3956_v61, %v10194_v57  ;;  %v3979_v57 = vmul.f32 %v3952_v58, %v10558_v33 }
 0x518   :  { %4036 = vrot.lane.b32.xlu0 %v3965_v28, %s7245_s1  ;;  %4034 = vrot.lane.b32.xlu1 %v3964_v50, %s7245_s1  ;;  %v3974_v28 = vmul.f32 %v3944_v26, %v10226_v18  ;;  %v3977_v50 = vmul.f32 %v3948_v43, %v10548_v23 }
 0x51c   :  { %4040 = vrot.lane.b32.xlu0 %v3967_v17, %s7245_s1  ;;  %4038 = vrot.lane.b32.xlu1 %v3966_v24, %s7245_s1  ;;  %v3976_v17 = vmul.f32 %v3948_v43, %v10550_v63  ;;  %v3978_v24 = vmul.f32 %v3952_v58, %v10238_v41 }
 0x520   :  { %4044 = vrot.lane.b32.xlu0 %v3969_v2, %s7245_s1  ;;  %4042 = vrot.lane.b32.xlu1 %v3968_v0, %s7245_s1  ;;  %v3981_v2 = vmul.f32 %v3956_v61, %v10566_v48  ;;  %v3980_v0 = vmul.f32 %v3956_v61, %v10568_v47 }
 0x524   :  { %4048 = vrot.lane.b32.xlu0 %v3971_v16, %s7245_s1  ;;  %4046 = vrot.lane.b32.xlu1 %v3970_v9, %s7245_s1  ;;  %v3983_v16 = vmul.f32 %v3944_v26, %v10576_v36  ;;  %v7160_v9 = vld [vmem:[#allocation2 + $0x100] sm:$0xff] }
 0x528   :  { %4052 = vrot.lane.b32.xlu0 %v3973_v39, %s7245_s1  ;;  %4050 = vrot.lane.b32.xlu1 %v3972_v20, %s7245_s1  ;;  %v3982_v39 = vmul.f32 %v7160_v9, %v3944_v26  ;;  %v3985_v20 = vmul.f32 %v3948_v43, %v10584_v1  ;;  %v3989_v26 = vmul.f32 %v3956_v61, %v10600_v35 }
 0x52c   :  { %4056 = vrot.lane.b32.xlu0 %v3975_v11, %s7245_s1  ;;  %4054 = vrot.lane.b32.xlu1 %v3974_v28, %s7245_s1  ;;  %v3984_v11 = vmul.f32 %v3948_v43, %v10220_v49  ;;  %v3987_v28 = vmul.f32 %v3952_v58, %v10592_v6  ;;  %v7162_v49 = vld [vmem:[#allocation2 + $0x40] sm:$0xff]  ;;  %v7163_v43 = vld [vmem:[#allocation2 + $0x50] sm:$0xff] }
 0x530   :  { %4060 = vrot.lane.b32.xlu0 %v3977_v50, %s7245_s1  ;;  %4058 = vrot.lane.b32.xlu1 %v3976_v17, %s7245_s1  ;;  %v7161_v50 = vld [vmem:[#allocation2 + $0x120] sm:$0xff] }
 0x531   :  { %v3986_v17 = vmul.f32 %v7161_v50, %v3952_v58 }
 0x534   :  { %4064 = vrot.lane.b32.xlu0 %v3979_v57, %s7245_s1  ;;  %4062 = vrot.lane.b32.xlu1 %v3978_v24, %s7245_s1  ;;  %v3988_v57 = vmul.f32 %v3956_v61, %v10232_v42  ;;  %v7164_v42 = vld [vmem:[#allocation2 + $0x60] sm:$0xff]  ;;  %v7165_v61 = vld [vmem:[#allocation2 + $0x70] sm:$0xff] }
 0x538   :  { %4068 = vrot.lane.b32.xlu0 %v3981_v2, %s7245_s1  ;;  %4066 = vrot.lane.b32.xlu1 %v3980_v0, %s7245_s1 }
 0x53c   :  { %4072 = vrot.lane.b32.xlu0 %v3983_v16, %s7245_s1  ;;  %4070 = vrot.lane.b32.xlu1 %v3982_v39, %s7245_s1 }
 0x540   :  { %4076 = vrot.lane.b32.xlu0 %v3985_v20, %s7245_s1  ;;  %4074 = vrot.lane.b32.xlu1 %v3984_v11, %s7245_s1 }
 0x544   :  { %4080 = vrot.lane.b32.xlu0 %v3987_v28, %s7245_s1  ;;  %4078 = vrot.lane.b32.xlu1 %v3986_v17, %s7245_s1 }
 0x548   :  { %4084 = vrot.lane.b32.xlu0 %v3989_v26, %s7245_s1  ;;  %4082 = vrot.lane.b32.xlu1 %v3988_v57, %s7245_s1 }
 0x54c   :  { %4136 = vrot.lane.b32.xlu0 %v10470_v13, %s7245_s1  ;;  %4134 = vrot.lane.b32.xlu1 %v7162_v49, %s7245_s1  ;;  %v7166_v13 = vld [vmem:[#allocation2 + $0x80] sm:$0xff] }
 0x550   :  { %4140 = vrot.lane.b32.xlu0 %v10482_v53, %s7245_s1  ;;  %4138 = vrot.lane.b32.xlu1 %v7163_v43, %s7245_s1  ;;  %v7167_v53 = vld [vmem:[#allocation2 + $0x90] sm:$0xff] }
 0x554   :  { %4144 = vrot.lane.b32.xlu0 %v10490_v12, %s7245_s1  ;;  %4142 = vrot.lane.b32.xlu1 %v7164_v42, %s7245_s1 }
 0x558   :  { %4148 = vrot.lane.b32.xlu0 %v10500_v4, %s7245_s1  ;;  %4146 = vrot.lane.b32.xlu1 %v7165_v61, %s7245_s1  ;;  %v7168_v4 = vld [vmem:[#allocation2 + $0xb0] sm:$0xff] }
 0x55c   :  { %4152 = vrot.lane.b32.xlu0 %v10508_v51, %s7245_s1  ;;  %4150 = vrot.lane.b32.xlu1 %v7166_v13, %s7245_s1  ;;  %v7255_v51 = vmov 16  }
 0x55d   :  { %6989 = vset.pattern.permute.xlu1 %v7255_v51  ;;  %6990 = vset.pattern.permute.xlu0 %v7255_v51 }
 0x560   :  { %4156 = vrot.lane.b32.xlu0 %v10516_v62, %s7245_s1  ;;  %4154 = vrot.lane.b32.xlu1 %v7167_v53, %s7245_s1 }
 0x564   :  { %4160 = vrot.lane.b32.xlu0 %v10524_v44, %s7245_s1  ;;  %4158 = vrot.lane.b32.xlu1 %v10214_v31, %s7245_s1 }
 0x568   :  { %4164 = vrot.lane.b32.xlu0 %v10532_v40, %s7245_s1  ;;  %4162 = vrot.lane.b32.xlu1 %v7168_v4, %s7245_s1 }
 0x56c   :  { %4168 = vrot.lane.b32.xlu0 %v10540_v14, %s7245_s1  ;;  %4166 = vrot.lane.b32.xlu1 %v10226_v18, %s7245_s1 }
 0x570   :  { %4172 = vrot.lane.b32.xlu0 %v10548_v23, %s7245_s1  ;;  %4170 = vrot.lane.b32.xlu1 %v10550_v63, %s7245_s1 }
 0x574   :  { %4176 = vrot.lane.b32.xlu0 %v10558_v33, %s7245_s1  ;;  %4174 = vrot.lane.b32.xlu1 %v10238_v41, %s7245_s1  ;;  %v7169_v41 = vld [vmem:[#allocation2 + $0x110] sm:$0xff] }
 0x576   :  { %v11014_v63 = vpop.permute.xlu1 %4022  ;;  %v11016_v33 = vpop.permute.xlu0 %4024 }
 0x577   :  { %14671 = vst [vmem:[#allocation294_spill] sm:$0xff] %v11014_v63  ;;  %14672 = vst [vmem:[#allocation295_spill] sm:$0xff] %v11016_v33 }
 0x578   :  { %4180 = vrot.lane.b32.xlu0 %v10566_v48, %s7245_s1  ;;  %4178 = vrot.lane.b32.xlu1 %v10568_v47, %s7245_s1 }
 0x57c   :  { %4184 = vrot.lane.b32.xlu0 %v10576_v36, %s7245_s1  ;;  %4182 = vrot.lane.b32.xlu1 %v7160_v9, %s7245_s1 }
 0x580   :  { %4188 = vrot.lane.b32.xlu0 %v10584_v1, %s7245_s1  ;;  %4186 = vrot.lane.b32.xlu1 %v7169_v41, %s7245_s1  ;;  %v7170_v1 = vld [vmem:[#allocation2 + $0x130] sm:$0xff] }
 0x582   :  { %v11021_v48 = vpop.permute.xlu1 %4026  ;;  %v11023_v47 = vpop.permute.xlu0 %4028 }
 0x583   :  { %14673 = vst [vmem:[#allocation296_spill] sm:$0xff] %v11021_v48  ;;  %14674 = vst [vmem:[#allocation297_spill] sm:$0xff] %v11023_v47 }
 0x584   :  { %4192 = vrot.lane.b32.xlu0 %v10592_v6, %s7245_s1  ;;  %4190 = vrot.lane.b32.xlu1 %v7161_v50, %s7245_s1 }
 0x586   :  { %v11028_v36 = vpop.permute.xlu1 %4030  ;;  %v11030_v18 = vpop.permute.xlu0 %4032 }
 0x587   :  { %14675 = vst [vmem:[#allocation298_spill] sm:$0xff] %v11028_v36  ;;  %14676 = vst [vmem:[#allocation299_spill] sm:$0xff] %v11030_v18  ;;  %v11531_v36 = vld [vmem:[#allocation2 + $0x168] sm:$0xff] }
 0x588   :  { %4196 = vrot.lane.b32.xlu0 %v10600_v35, %s7245_s1  ;;  %4194 = vrot.lane.b32.xlu1 %v7170_v1, %s7245_s1 }
 0x58a   :  { %v11035_v31 = vpop.permute.xlu1 %4034  ;;  %v11037_v12 = vpop.permute.xlu0 %4036 }
 0x58b   :  { %14677 = vst [vmem:[#allocation300_spill] sm:$0xff] %v11035_v31  ;;  %14678 = vst [vmem:[#allocation301_spill] sm:$0xff] %v11037_v12 }
 0x58e   :  { %v11039_v62 = vpop.permute.xlu1 %4038  ;;  %v11041_v44 = vpop.permute.xlu0 %4040 }
 0x58f   :  { %14679 = vst [vmem:[#allocation302_spill] sm:$0xff] %v11039_v62  ;;  %14680 = vst [vmem:[#allocation303_spill] sm:$0xff] %v11041_v44 }
 0x592   :  { %v11043_v40 = vpop.permute.xlu1 %4042  ;;  %v11045_v14 = vpop.permute.xlu0 %4044 }
 0x593   :  { %14681 = vst [vmem:[#allocation304_spill] sm:$0xff] %v11043_v40  ;;  %14682 = vst [vmem:[#allocation305_spill] sm:$0xff] %v11045_v14 }
 0x596   :  { %v11047_v23 = vpop.permute.xlu1 %4046  ;;  %v11049_v6 = vpop.permute.xlu0 %4048 }
 0x597   :  { %14683 = vst [vmem:[#allocation306_spill] sm:$0xff] %v11047_v23  ;;  %14684 = vst [vmem:[#allocation307_spill] sm:$0xff] %v11049_v6 }
 0x59a   :  { %v11051_v35 = vpop.permute.xlu1 %4050  ;;  %v11053_v58 = vpop.permute.xlu0 %4052 }
 0x59b   :  { %14685 = vst [vmem:[#allocation308_spill] sm:$0xff] %v11051_v35  ;;  %14686 = vst [vmem:[#allocation309_spill] sm:$0xff] %v11053_v58 }
 0x59e   :  { %v11055_v24 = vpop.permute.xlu1 %4054  ;;  %v11057_v2 = vpop.permute.xlu0 %4056 }
 0x59f   :  { %14687 = vst [vmem:[#allocation310_spill] sm:$0xff] %v11055_v24  ;;  %14688 = vst [vmem:[#allocation311_spill] sm:$0xff] %v11057_v2 }
 0x5a2   :  { %v11059_v0 = vpop.permute.xlu1 %4058  ;;  %v11061_v16 = vpop.permute.xlu0 %4060 }
 0x5a3   :  { %14689 = vst [vmem:[#allocation312_spill] sm:$0xff] %v11059_v0  ;;  %14690 = vst [vmem:[#allocation313_spill] sm:$0xff] %v11061_v16 }
 0x5a6   :  { %v11063_v9 = vpop.permute.xlu1 %4062  ;;  %v11065_v39 = vpop.permute.xlu0 %4064 }
 0x5a7   :  { %14691 = vst [vmem:[#allocation314_spill] sm:$0xff] %v11063_v9  ;;  %14692 = vst [vmem:[#allocation315_spill] sm:$0xff] %v11065_v39 }
 0x5aa   :  { %v11067_v20 = vpop.permute.xlu1 %4066  ;;  %v11069_v11 = vpop.permute.xlu0 %4068 }
 0x5ab   :  { %14693 = vst [vmem:[#allocation316_spill] sm:$0xff] %v11067_v20  ;;  %14694 = vst [vmem:[#allocation317_spill] sm:$0xff] %v11069_v11 }
 0x5ae   :  { %v11071_v28 = vpop.permute.xlu1 %4070  ;;  %v11073_v50 = vpop.permute.xlu0 %4072 }
 0x5af   :  { %14695 = vst [vmem:[#allocation318_spill] sm:$0xff] %v11071_v28  ;;  %14696 = vst [vmem:[#allocation319_spill] sm:$0xff] %v11073_v50 }
 0x5b2   :  { %v11075_v17 = vpop.permute.xlu1 %4074  ;;  %v11077_v26 = vpop.permute.xlu0 %4076 }
 0x5b3   :  { %14697 = vst [vmem:[#allocation320_spill] sm:$0xff] %v11075_v17  ;;  %14698 = vst [vmem:[#allocation321_spill] sm:$0xff] %v11077_v26 }
 0x5b6   :  { %v11079_v57 = vpop.permute.xlu1 %4078  ;;  %v11081_v49 = vpop.permute.xlu0 %4080 }
 0x5b7   :  { %14699 = vst [vmem:[#allocation322_spill] sm:$0xff] %v11079_v57  ;;  %14700 = vst [vmem:[#allocation323_spill] sm:$0xff] %v11081_v49 }
 0x5ba   :  { %v11083_v43 = vpop.permute.xlu1 %4082  ;;  %v11085_v42 = vpop.permute.xlu0 %4084 }
 0x5bb   :  { %14701 = vst [vmem:[#allocation324_spill] sm:$0xff] %v11083_v43  ;;  %14702 = vst [vmem:[#allocation325_spill] sm:$0xff] %v11085_v42 }
 0x5be   :  { %v4135_v61 = vpop.permute.xlu1 %4134  ;;  %v4137_v13 = vpop.permute.xlu0 %4136 }
 0x5bf   :  { %v11088_v53 = vsel %vm2917_vm3, %v4135_v61, %v4137_v13 }
 0x5c0   :  { %4230 = vrot.lane.b32.xlu1 %v11088_v53, %s7235_s17 }
 0x5c2   :  { %v4139_v4 = vpop.permute.xlu1 %4138  ;;  %v4141_v51 = vpop.permute.xlu0 %4140 }
 0x5c3   :  { %v11093_v41 = vsel %vm2917_vm3, %v4139_v4, %v4141_v51 }
 0x5c4   :  { %4232 = vrot.lane.b32.xlu0 %v11093_v41, %s7235_s17 }
 0x5c6   :  { %v4143_v1 = vpop.permute.xlu1 %4142  ;;  %v4145_v43 = vpop.permute.xlu0 %4144 }
 0x5c7   :  { %v4200_v42 = vsel %vm2917_vm3, %v4143_v1, %v4145_v43 }
 0x5c8   :  { %4234 = vrot.lane.b32.xlu1 %v4200_v42, %s7235_s17 }
 0x5ca   :  { %v4147_v57 = vpop.permute.xlu1 %4146  ;;  %v4149_v61 = vpop.permute.xlu0 %4148 }
 0x5cb   :  { %v4201_v13 = vsel %vm2917_vm3, %v4147_v57, %v4149_v61 }
 0x5cc   :  { %4236 = vrot.lane.b32.xlu0 %v4201_v13, %s7235_s17 }
 0x5ce   :  { %v4151_v49 = vpop.permute.xlu1 %4150  ;;  %v4153_v17 = vpop.permute.xlu0 %4152 }
 0x5cf   :  { %v4202_v4 = vsel %vm2917_vm3, %v4151_v49, %v4153_v17 }
 0x5d0   :  { %4238 = vrot.lane.b32.xlu1 %v4202_v4, %s7235_s17 }
 0x5d2   :  { %v4155_v51 = vpop.permute.xlu1 %4154  ;;  %v4157_v26 = vpop.permute.xlu0 %4156 }
 0x5d3   :  { %v4203_v28 = vsel %vm2917_vm3, %v4155_v51, %v4157_v26 }
 0x5d4   :  { %4240 = vrot.lane.b32.xlu0 %v4203_v28, %s7235_s17 }
 0x5d6   :  { %v4159_v43 = vpop.permute.xlu1 %4158  ;;  %v4161_v1 = vpop.permute.xlu0 %4160 }
 0x5d7   :  { %v4204_v50 = vsel %vm2917_vm3, %v4159_v43, %v4161_v1 }
 0x5d8   :  { %4242 = vrot.lane.b32.xlu1 %v4204_v50, %s7235_s17 }
 0x5da   :  { %v4163_v57 = vpop.permute.xlu1 %4162  ;;  %v4165_v61 = vpop.permute.xlu0 %4164 }
 0x5db   :  { %v4205_v20 = vsel %vm2917_vm3, %v4163_v57, %v4165_v61 }
 0x5dc   :  { %4244 = vrot.lane.b32.xlu0 %v4205_v20, %s7235_s17 }
 0x5de   :  { %v4167_v17 = vpop.permute.xlu1 %4166  ;;  %v4169_v49 = vpop.permute.xlu0 %4168 }
 0x5df   :  { %v4206_v11 = vsel %vm2917_vm3, %v4167_v17, %v4169_v49 }
 0x5e0   :  { %4246 = vrot.lane.b32.xlu1 %v4206_v11, %s7235_s17 }
 0x5e2   :  { %v4171_v26 = vpop.permute.xlu1 %4170  ;;  %v4173_v51 = vpop.permute.xlu0 %4172 }
 0x5e3   :  { %v4207_v9 = vsel %vm2917_vm3, %v4171_v26, %v4173_v51 }
 0x5e4   :  { %4248 = vrot.lane.b32.xlu0 %v4207_v9, %s7235_s17 }
 0x5e6   :  { %v4175_v43 = vpop.permute.xlu1 %4174  ;;  %v4177_v1 = vpop.permute.xlu0 %4176 }
 0x5e7   :  { %v4208_v39 = vsel %vm2917_vm3, %v4175_v43, %v4177_v1 }
 0x5e8   :  { %4250 = vrot.lane.b32.xlu1 %v4208_v39, %s7235_s17 }
 0x5ea   :  { %v4179_v57 = vpop.permute.xlu1 %4178  ;;  %v4181_v61 = vpop.permute.xlu0 %4180 }
 0x5eb   :  { %v4209_v0 = vsel %vm2917_vm3, %v4179_v57, %v4181_v61 }
 0x5ec   :  { %4252 = vrot.lane.b32.xlu0 %v4209_v0, %s7235_s17 }
 0x5ee   :  { %v4183_v17 = vpop.permute.xlu1 %4182  ;;  %v4185_v49 = vpop.permute.xlu0 %4184 }
 0x5ef   :  { %v4210_v16 = vsel %vm2917_vm3, %v4183_v17, %v4185_v49  ;;  %v7256_v17 = vmov 17   ;;  %v7259_v49 = vmov 20  }
 0x5f0   :  { %4254 = vrot.lane.b32.xlu1 %v4210_v16, %s7235_s17 }
 0x5f2   :  { %v4187_v26 = vpop.permute.xlu1 %4186  ;;  %v4189_v51 = vpop.permute.xlu0 %4188 }
 0x5f3   :  { %v4211_v24 = vsel %vm2917_vm3, %v4187_v26, %v4189_v51 }
 0x5f4   :  { %4256 = vrot.lane.b32.xlu0 %v4211_v24, %s7235_s17 }
 0x5f6   :  { %v4191_v43 = vpop.permute.xlu1 %4190  ;;  %v4193_v1 = vpop.permute.xlu0 %4192 }
 0x5f7   :  { %v4212_v2 = vsel %vm2917_vm3, %v4191_v43, %v4193_v1 }
 0x5f8   :  { %4258 = vrot.lane.b32.xlu1 %v4212_v2, %s7235_s17 }
 0x5fa   :  { %v4195_v57 = vpop.permute.xlu1 %4194  ;;  %v4197_v61 = vpop.permute.xlu0 %4196 }
 0x5fb   :  { %v4213_v35 = vsel %vm2917_vm3, %v4195_v57, %v4197_v61 }
 0x5fc   :  { %4263 = vperm.xlu1 %6989, %v10779_v27   ;;  %4260 = vrot.lane.b32.xlu0 %v4213_v35, %s7235_s17 }
 0x600   :  { %4271 = vperm.xlu1 %6989, %v10800_v37   ;;  %4267 = vperm.xlu0 %6990, %v10792_v60  }
 0x604   :  { %4275 = vperm.xlu1 %6989, %v10786_v8   ;;  %4310 = vrot.lane.b32.xlu0 %v11088_v53, %s7237_s19 }
 0x605   :  { %6991 = vset.pattern.permute.xlu0 %v7256_v17 }
 0x608   :  { %4312 = vrot.lane.b32.xlu1 %v11093_v41, %s7237_s19  ;;  %4314 = vrot.lane.b32.xlu0 %v4200_v42, %s7237_s19  ;;  %v11191_v42 = vld [vmem:[#allocation2 + $0x20] sm:$0xff]  ;;  %v11197_v41 = vld [vmem:[#allocation2 + $0xf0] sm:$0xff] }
 0x609   :  { %6992 = vset.pattern.permute.xlu1 %v7256_v17  ;;  %v11195_v53 = vpack.i.bf16 %v11191_v42, %v11191_v42  ;;  %v2084_v32 = vmul.f32 %v11191_v42, %v14836_v38 }
 0x60c   :  { %4316 = vrot.lane.b32.xlu1 %v4201_v13, %s7237_s19  ;;  %4318 = vrot.lane.b32.xlu0 %v4202_v4, %s7237_s19  ;;  %v11203_v13 = vld [vmem:[#allocation2 + $0x110] sm:$0xff] }
 0x60d   :  { %v11208_v4 = vld [vmem:[#allocation2 + $0x130] sm:$0xff] }
 0x610   :  { %4320 = vrot.lane.b32.xlu1 %v4203_v28, %s7237_s19  ;;  %4322 = vrot.lane.b32.xlu0 %v4204_v50, %s7237_s19  ;;  %v11183_v28 = vld [vmem:[#allocation2 + $0xd0] sm:$0xff]  ;;  %v11185_v50 = vld [vmem:[#allocation2 + $0x120] sm:$0xff] }
 0x614   :  { %4324 = vrot.lane.b32.xlu1 %v4205_v20, %s7237_s19  ;;  %4326 = vrot.lane.b32.xlu0 %v4206_v11, %s7237_s19  ;;  %v11175_v20 = vld [vmem:[#allocation2 + $0xb0] sm:$0xff]  ;;  %v11177_v11 = vld [vmem:[#allocation2 + $0x100] sm:$0xff] }
 0x618   :  { %4328 = vrot.lane.b32.xlu1 %v4207_v9, %s7237_s19  ;;  %4330 = vrot.lane.b32.xlu0 %v4208_v39, %s7237_s19  ;;  %v7257_v9 = vmov 18   ;;  %v11169_v39 = vld [vmem:[#allocation2 + $0xe0] sm:$0xff] }
 0x61c   :  { %4332 = vrot.lane.b32.xlu1 %v4209_v0, %s7237_s19  ;;  %4334 = vrot.lane.b32.xlu0 %v4210_v16, %s7237_s19  ;;  %v11152_v0 = vld [vmem:[#allocation2 + $0x80] sm:$0xff]  ;;  %v11167_v16 = vld [vmem:[#allocation2 + $0x90] sm:$0xff] }
 0x620   :  { %4336 = vrot.lane.b32.xlu1 %v4211_v24, %s7237_s19  ;;  %4338 = vrot.lane.b32.xlu0 %v4212_v2, %s7237_s19  ;;  %v11157_v24 = vld [vmem:[#allocation2 + $0xa0] sm:$0xff] }
 0x621   :  { %v11162_v2 = vld [vmem:[#allocation2 + $0xc0] sm:$0xff] }
 0x624   :  { %4340 = vrot.lane.b32.xlu1 %v4213_v35, %s7237_s19  ;;  %4343 = vperm.xlu0 %6991, %v10779_v27   ;;  %v7258_v35 = vmov 19  }
 0x628   :  { %4347 = vperm.xlu1 %6992, %v10792_v60   ;;  %4355 = vperm.xlu0 %6991, %v10786_v8  }
 0x62c   :  { %4351 = vperm.xlu1 %6992, %v10800_v37   ;;  %6994 = vset.pattern.permute.xlu0 %v7257_v9 }
 0x62d   :  { %4411 = vperm.xlu0 %6994, %v10792_v60  }
 0x630   :  { %6993 = vset.pattern.permute.xlu1 %v7257_v9 }
 0x631   :  { %4407 = vperm.xlu1 %6993, %v10779_v27   ;;  %4438 = vrot.lane.b32.xlu0 %v11152_v0, %s7235_s17 }
 0x632   :  { %7005 = vset.pattern.permute.xlu0 %v7258_v35  ;;  %v11217_v26 = vpop.permute.xlu1 %4230 }
 0x633   :  { %14703 = vst [vmem:[#allocation326_spill] sm:$0xff] %v11217_v26 }
 0x635   :  { %4415 = vperm.xlu1 %6993, %v10800_v37   ;;  %4442 = vrot.lane.b32.xlu0 %v11157_v24, %s7235_s17 }
 0x636   :  { %v11222_v51 = vpop.permute.xlu0 %4232 }
 0x637   :  { %14704 = vst [vmem:[#allocation327_spill] sm:$0xff] %v11222_v51 }
 0x639   :  { %4419 = vperm.xlu1 %6993, %v10786_v8   ;;  %4446 = vrot.lane.b32.xlu0 %v11162_v2, %s7235_s17 }
 0x63a   :  { %v11224_v43 = vpop.permute.xlu1 %4234 }
 0x63b   :  { %14705 = vst [vmem:[#allocation328_spill] sm:$0xff] %v11224_v43 }
 0x63d   :  { %4440 = vrot.lane.b32.xlu1 %v11167_v16, %s7235_s17  ;;  %4450 = vrot.lane.b32.xlu0 %v11169_v39, %s7235_s17 }
 0x63e   :  { %7006 = vset.pattern.permute.xlu1 %v7258_v35  ;;  %v11229_v1 = vpop.permute.xlu0 %4236 }
 0x63f   :  { %14706 = vst [vmem:[#allocation329_spill] sm:$0xff] %v11229_v1 }
 0x641   :  { %4444 = vrot.lane.b32.xlu1 %v11175_v20, %s7235_s17  ;;  %4454 = vrot.lane.b32.xlu0 %v11177_v11, %s7235_s17 }
 0x642   :  { %v11231_v57 = vpop.permute.xlu1 %4238 }
 0x643   :  { %14707 = vst [vmem:[#allocation330_spill] sm:$0xff] %v11231_v57 }
 0x645   :  { %4448 = vrot.lane.b32.xlu1 %v11183_v28, %s7235_s17  ;;  %4458 = vrot.lane.b32.xlu0 %v11185_v50, %s7235_s17 }
 0x646   :  { %v11237_v61 = vpop.permute.xlu0 %4240 }
 0x647   :  { %14708 = vst [vmem:[#allocation331_spill] sm:$0xff] %v11237_v61 }
 0x649   :  { %4452 = vrot.lane.b32.xlu1 %v11197_v41, %s7235_s17  ;;  %6996 = vrot.lane.b32.xlu0 %v11195_v53, %s7235_s17 }
 0x64a   :  { %v11239_v17 = vpop.permute.xlu1 %4242 }
 0x64b   :  { %14709 = vst [vmem:[#allocation332_spill] sm:$0xff] %v11239_v17 }
 0x64d   :  { %4456 = vrot.lane.b32.xlu1 %v11203_v13, %s7235_s17  ;;  %4471 = vperm.xlu0 %7005, %v10779_v27  }
 0x64e   :  { %v11245_v9 = vpop.permute.xlu0 %4244 }
 0x64f   :  { %14710 = vst [vmem:[#allocation333_spill] sm:$0xff] %v11245_v9 }
 0x651   :  { %4460 = vrot.lane.b32.xlu1 %v11208_v4, %s7235_s17  ;;  %4483 = vperm.xlu0 %7005, %v10786_v8  }
 0x652   :  { %v11247_v35 = vpop.permute.xlu1 %4246 }
 0x653   :  { %14711 = vst [vmem:[#allocation334_spill] sm:$0xff] %v11247_v35 }
 0x655   :  { %7001 = vrot.lane.b32.xlu1 %v11195_v53, %s7235_s17  ;;  %4520 = vrot.lane.b32.xlu0 %v11167_v16, %s7237_s19 }
 0x656   :  { %7018 = vset.pattern.permute.xlu0 %v7259_v49 }
 0x659   :  { %4475 = vperm.xlu1 %7006, %v10792_v60   ;;  %4524 = vrot.lane.b32.xlu0 %v11175_v20, %s7237_s19 }
 0x65a   :  { %v11255_v1 = vpop.permute.xlu1 %4250 }
 0x65b   :  { %14713 = vst [vmem:[#allocation336_spill] sm:$0xff] %v11255_v1  ;;  %v7260_v1 = vmov 21  }
 0x65d   :  { %4479 = vperm.xlu1 %7006, %v10800_v37   ;;  %4528 = vrot.lane.b32.xlu0 %v11183_v28, %s7237_s19 }
 0x661   :  { %4518 = vrot.lane.b32.xlu1 %v11152_v0, %s7237_s19  ;;  %4532 = vrot.lane.b32.xlu0 %v11197_v41, %s7237_s19 }
 0x662   :  { %7017 = vset.pattern.permute.xlu1 %v7259_v49  ;;  %v11253_v49 = vpop.permute.xlu0 %4248  ;;  %v11263_v9 = vpop.permute.xlu1 %4254 }
 0x663   :  { %14712 = vst [vmem:[#allocation335_spill] sm:$0xff] %v11253_v49  ;;  %14715 = vst [vmem:[#allocation338_spill] sm:$0xff] %v11263_v9 }
 0x665   :  { %4522 = vrot.lane.b32.xlu1 %v11157_v24, %s7237_s19  ;;  %4536 = vrot.lane.b32.xlu0 %v11203_v13, %s7237_s19 }
 0x666   :  { %v11261_v61 = vpop.permute.xlu0 %4252 }
 0x667   :  { %14714 = vst [vmem:[#allocation337_spill] sm:$0xff] %v11261_v61 }
 0x669   :  { %4526 = vrot.lane.b32.xlu1 %v11162_v2, %s7237_s19  ;;  %4540 = vrot.lane.b32.xlu0 %v11208_v4, %s7237_s19 }
 0x66a   :  { %v11268_v51 = vpop.permute.xlu0 %4256  ;;  %v11270_v49 = vpop.permute.xlu1 %4258 }
 0x66b   :  { %14716 = vst [vmem:[#allocation339_spill] sm:$0xff] %v11268_v51  ;;  %14717 = vst [vmem:[#allocation340_spill] sm:$0xff] %v11270_v49 }
 0x66d   :  { %4530 = vrot.lane.b32.xlu1 %v11169_v39, %s7237_s19  ;;  %7013 = vrot.lane.b32.xlu0 %v11195_v53, %s7237_s19 }
 0x66e   :  { %v11275_v17 = vpop.permute.xlu0 %4260 }
 0x66f   :  { %14718 = vst [vmem:[#allocation341_spill] sm:$0xff] %v11275_v17 }
 0x671   :  { %4534 = vrot.lane.b32.xlu1 %v11177_v11, %s7237_s19  ;;  %4555 = vperm.xlu0 %7018, %v10792_v60  }
 0x675   :  { %4538 = vrot.lane.b32.xlu1 %v11185_v50, %s7237_s19  ;;  %7019 = vset.pattern.permute.xlu0 %v7260_v1 }
 0x676   :  { %4631 = vperm.xlu0 %7019, %v10779_v27  }
 0x677   :  { %v11277_v61 = vpop.permute.xlu1 %4263 }
 0x678   :  { %14719 = vst [vmem:[#allocation342_spill] sm:$0xff] %v11277_v61 }
 0x679   :  { %7008 = vrot.lane.b32.xlu1 %v11195_v53, %s7237_s19 }
 0x67a   :  { %4643 = vperm.xlu0 %7019, %v10786_v8  }
 0x67b   :  { %v11282_v43 = vpop.permute.xlu1 %4271  ;;  %v11284_v51 = vpop.permute.xlu0 %4267 }
 0x67c   :  { %14720 = vst [vmem:[#allocation343_spill] sm:$0xff] %v11282_v43  ;;  %14721 = vst [vmem:[#allocation344_spill] sm:$0xff] %v11284_v51  ;;  %v11445_v51 = vld [vmem:[#allocation2 + $0xb8] sm:$0xff]  ;;  %v11453_v43 = vld [vmem:[#allocation2 + $0xc8] sm:$0xff] }
 0x67d   :  { %4551 = vperm.xlu1 %7017, %v10779_v27  }
 0x67f   :  { %v11287_v49 = vpop.permute.xlu1 %4275  ;;  %v11289_v9 = vpop.permute.xlu0 %4310 }
 0x680   :  { %14722 = vst [vmem:[#allocation345_spill] sm:$0xff] %v11287_v49  ;;  %14723 = vst [vmem:[#allocation346_spill] sm:$0xff] %v11289_v9 }
 0x681   :  { %4559 = vperm.xlu1 %7017, %v10800_v37  }
 0x683   :  { %v11292_v17 = vpop.permute.xlu1 %4312  ;;  %v11294_v35 = vpop.permute.xlu0 %4314 }
 0x684   :  { %14724 = vst [vmem:[#allocation347_spill] sm:$0xff] %v11292_v17  ;;  %14725 = vst [vmem:[#allocation348_spill] sm:$0xff] %v11294_v35 }
 0x685   :  { %4563 = vperm.xlu1 %7017, %v10786_v8  }
 0x687   :  { %v11297_v57 = vpop.permute.xlu1 %4316  ;;  %v11299_v61 = vpop.permute.xlu0 %4318 }
 0x688   :  { %14726 = vst [vmem:[#allocation349_spill] sm:$0xff] %v11297_v57  ;;  %14727 = vst [vmem:[#allocation350_spill] sm:$0xff] %v11299_v61 }
 0x689   :  { %7020 = vset.pattern.permute.xlu1 %v7260_v1 }
 0x68a   :  { %4635 = vperm.xlu1 %7020, %v10792_v60  }
 0x68b   :  { %v11302_v27 = vpop.permute.xlu1 %4320  ;;  %v11304_v49 = vpop.permute.xlu0 %4322 }
 0x68c   :  { %14728 = vst [vmem:[#allocation351_spill] sm:$0xff] %v11302_v27  ;;  %14729 = vst [vmem:[#allocation352_spill] sm:$0xff] %v11304_v49 }
 0x68e   :  { %4639 = vperm.xlu1 %7020, %v10800_v37  }
 0x68f   :  { %v11307_v9 = vpop.permute.xlu1 %4324  ;;  %v11309_v17 = vpop.permute.xlu0 %4326 }
 0x690   :  { %14730 = vst [vmem:[#allocation353_spill] sm:$0xff] %v11307_v9  ;;  %14731 = vst [vmem:[#allocation354_spill] sm:$0xff] %v11309_v17 }
 0x693   :  { %v11311_v35 = vpop.permute.xlu1 %4328  ;;  %v11313_v8 = vpop.permute.xlu0 %4330 }
 0x694   :  { %14732 = vst [vmem:[#allocation355_spill] sm:$0xff] %v11311_v35  ;;  %14733 = vst [vmem:[#allocation356_spill] sm:$0xff] %v11313_v8 }
 0x697   :  { %v11315_v57 = vpop.permute.xlu1 %4332  ;;  %v11317_v61 = vpop.permute.xlu0 %4334 }
 0x698   :  { %14734 = vst [vmem:[#allocation357_spill] sm:$0xff] %v11315_v57  ;;  %14735 = vst [vmem:[#allocation358_spill] sm:$0xff] %v11317_v61 }
 0x69b   :  { %v11319_v1 = vpop.permute.xlu1 %4336  ;;  %v11321_v60 = vpop.permute.xlu0 %4338 }
 0x69c   :  { %14736 = vst [vmem:[#allocation359_spill] sm:$0xff] %v11319_v1  ;;  %14737 = vst [vmem:[#allocation360_spill] sm:$0xff] %v11321_v60 }
 0x69f   :  { %v11323_v27 = vpop.permute.xlu1 %4340  ;;  %v11325_v49 = vpop.permute.xlu0 %4343 }
 0x6a0   :  { %14738 = vst [vmem:[#allocation361_spill] sm:$0xff] %v11323_v27  ;;  %14739 = vst [vmem:[#allocation362_spill] sm:$0xff] %v11325_v49 }
 0x6a3   :  { %v11327_v37 = vpop.permute.xlu1 %4347  ;;  %v11329_v9 = vpop.permute.xlu0 %4355 }
 0x6a4   :  { %14740 = vst [vmem:[#allocation363_spill] sm:$0xff] %v11327_v37  ;;  %14741 = vst [vmem:[#allocation364_spill] sm:$0xff] %v11329_v9 }
 0x6a7   :  { %v11331_v17 = vpop.permute.xlu1 %4351 }
 0x6a8   :  { %14742 = vst [vmem:[#allocation365_spill] sm:$0xff] %v11331_v17  ;;  %v11333_v35 = vpop.permute.xlu0 %4411 }
 0x6a9   :  { %14743 = vst [vmem:[#allocation366_spill] sm:$0xff] %v11333_v35 }
 0x6ac   :  { %v11335_v8 = vpop.permute.xlu1 %4407  ;;  %v11337_v57 = vpop.permute.xlu0 %4438 }
 0x6ad   :  { %14744 = vst [vmem:[#allocation367_spill] sm:$0xff] %v11335_v8  ;;  %14745 = vst [vmem:[#allocation368_spill] sm:$0xff] %v11337_v57 }
 0x6b0   :  { %v11339_v61 = vpop.permute.xlu1 %4415  ;;  %v11341_v1 = vpop.permute.xlu0 %4442 }
 0x6b1   :  { %14746 = vst [vmem:[#allocation369_spill] sm:$0xff] %v11339_v61  ;;  %14747 = vst [vmem:[#allocation370_spill] sm:$0xff] %v11341_v1 }
 0x6b4   :  { %v11343_v60 = vpop.permute.xlu1 %4419  ;;  %v11345_v27 = vpop.permute.xlu0 %4446 }
 0x6b5   :  { %14748 = vst [vmem:[#allocation371_spill] sm:$0xff] %v11343_v60  ;;  %14749 = vst [vmem:[#allocation372_spill] sm:$0xff] %v11345_v27 }
 0x6b8   :  { %v11347_v49 = vpop.permute.xlu1 %4440  ;;  %v11349_v37 = vpop.permute.xlu0 %4450 }
 0x6b9   :  { %14750 = vst [vmem:[#allocation373_spill] sm:$0xff] %v11347_v49  ;;  %14751 = vst [vmem:[#allocation374_spill] sm:$0xff] %v11349_v37  ;;  %v7261_v37 = vmov 24  }
 0x6ba   :  { %7021 = vset.pattern.permute.xlu1 %v7261_v37  ;;  %7022 = vset.pattern.permute.xlu0 %v7261_v37 }
 0x6bc   :  { %v11351_v9 = vpop.permute.xlu1 %4444  ;;  %v11353_v17 = vpop.permute.xlu0 %4454 }
 0x6bd   :  { %14752 = vst [vmem:[#allocation375_spill] sm:$0xff] %v11351_v9  ;;  %14753 = vst [vmem:[#allocation376_spill] sm:$0xff] %v11353_v17 }
 0x6c0   :  { %v11355_v35 = vpop.permute.xlu1 %4448  ;;  %v11357_v8 = vpop.permute.xlu0 %4458 }
 0x6c1   :  { %14754 = vst [vmem:[#allocation377_spill] sm:$0xff] %v11355_v35  ;;  %14755 = vst [vmem:[#allocation378_spill] sm:$0xff] %v11357_v8 }
 0x6c4   :  { %v11359_v57 = vpop.permute.xlu1 %4452  ;;  %v11361_v61 = vpop.permute.xlu0 %6996 }
 0x6c5   :  { %14756 = vst [vmem:[#allocation379_spill] sm:$0xff] %v11359_v57  ;;  %14757 = vst [vmem:[#allocation380_spill] sm:$0xff] %v11361_v61 }
 0x6c8   :  { %v11363_v1 = vpop.permute.xlu1 %4456  ;;  %v11365_v60 = vpop.permute.xlu0 %4471 }
 0x6c9   :  { %14758 = vst [vmem:[#allocation381_spill] sm:$0xff] %v11363_v1  ;;  %14759 = vst [vmem:[#allocation382_spill] sm:$0xff] %v11365_v60 }
 0x6cc   :  { %v11367_v27 = vpop.permute.xlu1 %4460  ;;  %v11369_v49 = vpop.permute.xlu0 %4483 }
 0x6cd   :  { %14760 = vst [vmem:[#allocation383_spill] sm:$0xff] %v11367_v27  ;;  %14761 = vst [vmem:[#allocation384_spill] sm:$0xff] %v11369_v49 }
 0x6d0   :  { %v11371_v9 = vpop.permute.xlu1 %7001  ;;  %v11373_v35 = vpop.permute.xlu0 %4520 }
 0x6d1   :  { %14762 = vst [vmem:[#allocation385_spill] sm:$0xff] %v11371_v9  ;;  %14763 = vst [vmem:[#allocation386_spill] sm:$0xff] %v11373_v35 }
 0x6d4   :  { %v11375_v8 = vpop.permute.xlu1 %4475  ;;  %v11377_v57 = vpop.permute.xlu0 %4524 }
 0x6d5   :  { %14764 = vst [vmem:[#allocation387_spill] sm:$0xff] %v11375_v8  ;;  %14765 = vst [vmem:[#allocation388_spill] sm:$0xff] %v11377_v57 }
 0x6d8   :  { %v11379_v17 = vpop.permute.xlu1 %4479  ;;  %v11381_v1 = vpop.permute.xlu0 %4528 }
 0x6d9   :  { %14766 = vst [vmem:[#allocation389_spill] sm:$0xff] %v11379_v17  ;;  %14767 = vst [vmem:[#allocation390_spill] sm:$0xff] %v11381_v1 }
 0x6dc   :  { %v11383_v60 = vpop.permute.xlu1 %4518  ;;  %v11385_v27 = vpop.permute.xlu0 %4532 }
 0x6dd   :  { %14768 = vst [vmem:[#allocation391_spill] sm:$0xff] %v11383_v60  ;;  %14769 = vst [vmem:[#allocation392_spill] sm:$0xff] %v11385_v27  ;;  %v11407_v27 = vld [vmem:[#allocation2 + $0x88] sm:$0xff] }
 0x6e0   :  { %v11387_v49 = vpop.permute.xlu1 %4522  ;;  %v11389_v61 = vpop.permute.xlu0 %4536 }
 0x6e1   :  { %14770 = vst [vmem:[#allocation393_spill] sm:$0xff] %v11387_v49  ;;  %14771 = vst [vmem:[#allocation394_spill] sm:$0xff] %v11389_v61 }
 0x6e4   :  { %v11391_v37 = vpop.permute.xlu1 %4526  ;;  %v11393_v9 = vpop.permute.xlu0 %4540 }
 0x6e5   :  { %14772 = vst [vmem:[#allocation395_spill] sm:$0xff] %v11391_v37  ;;  %14773 = vst [vmem:[#allocation396_spill] sm:$0xff] %v11393_v9 }
 0x6e8   :  { %v11395_v35 = vpop.permute.xlu1 %4530  ;;  %v11397_v8 = vpop.permute.xlu0 %7013 }
 0x6e9   :  { %14774 = vst [vmem:[#allocation397_spill] sm:$0xff] %v11395_v35  ;;  %14775 = vst [vmem:[#allocation398_spill] sm:$0xff] %v11397_v8 }
 0x6ec   :  { %v11399_v57 = vpop.permute.xlu1 %4534  ;;  %v11401_v17 = vpop.permute.xlu0 %4555 }
 0x6ed   :  { %14776 = vst [vmem:[#allocation399_spill] sm:$0xff] %v11399_v57  ;;  %14777 = vst [vmem:[#allocation400_spill] sm:$0xff] %v11401_v17  ;;  %v11425_v17 = vld [vmem:[#allocation2 + $0x98] sm:$0xff] }
 0x6f0   :  { %v11403_v1 = vpop.permute.xlu1 %4538 }
 0x6f1   :  { %14778 = vst [vmem:[#allocation401_spill] sm:$0xff] %v11403_v1  ;;  %v11405_v60 = vpop.permute.xlu0 %4631 }
 0x6f2   :  { %v4647_v49 = vmul.f32 %v11405_v60, %v11407_v27  ;;  %v4646_v9 = vmul.f32 %v11405_v60, %v11152_v0  ;;  %v4655_v26 = vmul.f32 %v11405_v60, %v11453_v43 }
 0x6f4   :  { %v11413_v61 = vpop.permute.xlu1 %7008  ;;  %4712 = vrot.lane.b32.xlu0 %v4647_v49, %s7241_s16  ;;  %4710 = vrot.lane.b32.xlu1 %v4646_v9, %s7241_s16  ;;  %v11435_v49 = vld [vmem:[#allocation2 + $0xa8] sm:$0xff] }
 0x6f5   :  { %14779 = vst [vmem:[#allocation402_spill] sm:$0xff] %v11413_v61 }
 0x6f8   :  { %v11417_v57 = vpop.permute.xlu1 %4551 }
 0x6f9   :  { %14780 = vst [vmem:[#allocation403_spill] sm:$0xff] %v11417_v57  ;;  %v11441_v57 = vpop.permute.xlu0 %4643 }
 0x6fc   :  { %v11419_v35 = vpop.permute.xlu1 %4559 }
 0x6fd   :  { %14781 = vst [vmem:[#allocation404_spill] sm:$0xff] %v11419_v35 }
 0x700   :  { %v11421_v1 = vpop.permute.xlu1 %4563 }
 0x701   :  { %14782 = vst [vmem:[#allocation405_spill] sm:$0xff] %v11421_v1 }
 0x705   :  { %v11423_v37 = vpop.permute.xlu1 %4635 }
 0x706   :  { %v4649_v8 = vmul.f32 %v11423_v37, %v11425_v17  ;;  %v4648_v61 = vmul.f32 %v11423_v37, %v11167_v16 }
 0x708   :  { %4716 = vrot.lane.b32.xlu0 %v4649_v8, %s7241_s16  ;;  %4714 = vrot.lane.b32.xlu1 %v4648_v61, %s7241_s16  ;;  %v4653_v61 = vmul.f32 %v11441_v57, %v11445_v51  ;;  %v4652_v8 = vmul.f32 %v11441_v57, %v11175_v20 }
 0x709   :  { %v11433_v9 = vpop.permute.xlu1 %4639 }
 0x70a   :  { %v4651_v1 = vmul.f32 %v11433_v9, %v11435_v49  ;;  %v4650_v35 = vmul.f32 %v11433_v9, %v11157_v24 }
 0x70c   :  { %4720 = vrot.lane.b32.xlu0 %v4651_v1, %s7241_s16  ;;  %4718 = vrot.lane.b32.xlu1 %v4650_v35, %s7241_s16  ;;  %v4654_v35 = vmul.f32 %v11405_v60, %v11162_v2  ;;  %v11461_v1 = vld [vmem:[#allocation2 + $0xd8] sm:$0xff] }
 0x70d   :  { %v4657_v58 = vmul.f32 %v11423_v37, %v11461_v1 }
 0x710   :  { %4724 = vrot.lane.b32.xlu0 %v4653_v61, %s7241_s16  ;;  %4722 = vrot.lane.b32.xlu1 %v4652_v8, %s7241_s16  ;;  %v4656_v61 = vmul.f32 %v11423_v37, %v11183_v28  ;;  %v11469_v8 = vld [vmem:[#allocation2 + $0xe8] sm:$0xff] }
 0x711   :  { %v4659_v23 = vmul.f32 %v11433_v9, %v11469_v8 }
 0x714   :  { %4728 = vrot.lane.b32.xlu0 %v4655_v26, %s7241_s16  ;;  %4726 = vrot.lane.b32.xlu1 %v4654_v35, %s7241_s16  ;;  %v4658_v26 = vmul.f32 %v11433_v9, %v11169_v39  ;;  %v11477_v35 = vld [vmem:[#allocation2 + $0xf8] sm:$0xff] }
 0x715   :  { %v4661_v6 = vmul.f32 %v11441_v57, %v11477_v35 }
 0x718   :  { %4732 = vrot.lane.b32.xlu0 %v4657_v58, %s7241_s16  ;;  %4730 = vrot.lane.b32.xlu1 %v4656_v61, %s7241_s16  ;;  %v4660_v58 = vmul.f32 %v11441_v57, %v11197_v41  ;;  %v11485_v61 = vld [vmem:[#allocation2 + $0x108] sm:$0xff] }
 0x719   :  { %v4663_v40 = vmul.f32 %v11405_v60, %v11485_v61 }
 0x71c   :  { %4736 = vrot.lane.b32.xlu0 %v4659_v23, %s7241_s16  ;;  %4734 = vrot.lane.b32.xlu1 %v4658_v26, %s7241_s16  ;;  %v4662_v23 = vmul.f32 %v11405_v60, %v11177_v11  ;;  %v11493_v26 = vld [vmem:[#allocation2 + $0x118] sm:$0xff] }
 0x71d   :  { %v4665_v14 = vmul.f32 %v11423_v37, %v11493_v26 }
 0x720   :  { %4740 = vrot.lane.b32.xlu0 %v4661_v6, %s7241_s16  ;;  %4738 = vrot.lane.b32.xlu1 %v4660_v58, %s7241_s16  ;;  %v4664_v6 = vmul.f32 %v11423_v37, %v11203_v13  ;;  %v11501_v58 = vld [vmem:[#allocation2 + $0x128] sm:$0xff] }
 0x721   :  { %v4667_v62 = vmul.f32 %v11433_v9, %v11501_v58 }
 0x724   :  { %4744 = vrot.lane.b32.xlu0 %v4663_v40, %s7241_s16  ;;  %4742 = vrot.lane.b32.xlu1 %v4662_v23, %s7241_s16  ;;  %v4666_v40 = vmul.f32 %v11433_v9, %v11185_v50  ;;  %v11509_v23 = vld [vmem:[#allocation2 + $0x138] sm:$0xff] }
 0x725   :  { %v4669_v44 = vmul.f32 %v11441_v57, %v11509_v23 }
 0x728   :  { %4748 = vrot.lane.b32.xlu0 %v4665_v14, %s7241_s16  ;;  %4746 = vrot.lane.b32.xlu1 %v4664_v6, %s7241_s16  ;;  %v4668_v14 = vmul.f32 %v11441_v57, %v11208_v4  ;;  %v11515_v6 = vld [vmem:[#allocation2 + $0x148] sm:$0xff] }
 0x729   :  { %v4671_v31 = vmul.f32 %v11405_v60, %v11515_v6 }
 0x72c   :  { %4752 = vrot.lane.b32.xlu0 %v4667_v62, %s7241_s16  ;;  %4750 = vrot.lane.b32.xlu1 %v4666_v40, %s7241_s16  ;;  %v4670_v62 = vmul.f32 %v11191_v42, %v11405_v60  ;;  %v11523_v40 = vld [vmem:[#allocation2 + $0x158] sm:$0xff]  ;;  %v4675_v60 = vmul.f32 %v11433_v9, %v11531_v36 }
 0x72d   :  { %v4673_v12 = vmul.f32 %v11423_v37, %v11523_v40 }
 0x730   :  { %4756 = vrot.lane.b32.xlu0 %v4669_v44, %s7241_s16  ;;  %4754 = vrot.lane.b32.xlu1 %v4668_v14, %s7241_s16  ;;  %v4672_v44 = vmul.f32 %v11191_v42, %v11423_v37  ;;  %v11539_v14 = vld [vmem:[#allocation2 + $0x178] sm:$0xff] }
 0x731   :  { %v4677_v37 = vmul.f32 %v11441_v57, %v11539_v14 }
 0x734   :  { %4760 = vrot.lane.b32.xlu0 %v4671_v31, %s7241_s16  ;;  %4758 = vrot.lane.b32.xlu1 %v4670_v62, %s7241_s16  ;;  %v4674_v31 = vmul.f32 %v11191_v42, %v11433_v9  ;;  %v11576_v9 = vld [vmem:[%s14071_s2 + $0x10] sm:$0xff]  ;;  %v11588_v62 = vld [vmem:[%s14071_s2 + $0x8] sm:$0xff] }
 0x735   :  { %14783 = vst [vmem:[#allocation406_spill] sm:$0xff] %v11588_v62 }
 0x738   :  { %4764 = vrot.lane.b32.xlu0 %v4673_v12, %s7241_s16  ;;  %4762 = vrot.lane.b32.xlu1 %v4672_v44, %s7241_s16  ;;  %v4676_v12 = vmul.f32 %v11191_v42, %v11441_v57  ;;  %v11566_v57 = vld [vmem:[%s14071_s2 + $0x18] sm:$0xff]  ;;  %v7262_v44 = vmov 22  }
 0x73c   :  { %4768 = vrot.lane.b32.xlu0 %v4675_v60, %s7241_s16  ;;  %4766 = vrot.lane.b32.xlu1 %v4674_v31, %s7241_s16  ;;  %v11614_v60 = vld [vmem:[%s14071_s2] sm:$0xff] }
 0x740   :  { %4772 = vrot.lane.b32.xlu0 %v4677_v37, %s7241_s16  ;;  %4770 = vrot.lane.b32.xlu1 %v4676_v12, %s7241_s16 }
 0x744   :  { %4856 = vrot.lane.b32.xlu0 %v11407_v27, %s7241_s16  ;;  %4854 = vrot.lane.b32.xlu1 %v11152_v0, %s7241_s16 }
 0x748   :  { %4860 = vrot.lane.b32.xlu0 %v11425_v17, %s7241_s16  ;;  %4858 = vrot.lane.b32.xlu1 %v11167_v16, %s7241_s16 }
 0x74c   :  { %4864 = vrot.lane.b32.xlu0 %v11435_v49, %s7241_s16  ;;  %4862 = vrot.lane.b32.xlu1 %v11157_v24, %s7241_s16 }
 0x750   :  { %4866 = vrot.lane.b32.xlu0 %v11175_v20, %s7241_s16  ;;  %5123 = vperm.xlu1 %7021, %v11566_v57  }
 0x754   :  { %4882 = vrot.lane.b32.xlu0 %v11197_v41, %s7241_s16  ;;  %4868 = vrot.lane.b32.xlu1 %v11445_v51, %s7241_s16 }
 0x758   :  { %5119 = vperm.xlu0 %7022, %v11576_v9   ;;  %4884 = vrot.lane.b32.xlu1 %v11477_v35, %s7241_s16 }
 0x75c   :  { %4898 = vrot.lane.b32.xlu0 %v11208_v4, %s7241_s16  ;;  %4878 = vrot.lane.b32.xlu1 %v11169_v39, %s7241_s16 }
 0x760   :  { %5115 = vperm.xlu0 %7022, %v11588_v62   ;;  %4880 = vrot.lane.b32.xlu1 %v11469_v8, %s7241_s16 }
 0x764   :  { %4876 = vrot.lane.b32.xlu0 %v11461_v1, %s7241_s16  ;;  %4900 = vrot.lane.b32.xlu1 %v11509_v23, %s7241_s16 }
 0x765   :  { %7043 = vset.pattern.permute.xlu0 %v7262_v44 }
 0x766   :  { %v11617_v31 = vpop.permute.xlu1 %4710  ;;  %v11619_v37 = vpop.permute.xlu0 %4712 }
 0x767   :  { %14784 = vst [vmem:[#allocation407_spill] sm:$0xff] %v11617_v31  ;;  %14785 = vst [vmem:[#allocation408_spill] sm:$0xff] %v11619_v37 }
 0x768   :  { %4896 = vrot.lane.b32.xlu0 %v11501_v58, %s7241_s16  ;;  %4874 = vrot.lane.b32.xlu1 %v11183_v28, %s7241_s16 }
 0x76c   :  { %4916 = vrot.lane.b32.xlu0 %v11539_v14, %s7241_s16  ;;  %4894 = vrot.lane.b32.xlu1 %v11185_v50, %s7241_s16 }
 0x770   :  { %4870 = vrot.lane.b32.xlu0 %v11162_v2, %s7241_s16  ;;  %7024 = vrot.lane.b32.xlu1 %v11195_v53, %s7241_s16 }
 0x774   :  { %4890 = vrot.lane.b32.xlu0 %v11203_v13, %s7241_s16  ;;  %5111 = vperm.xlu1 %7021, %v11614_v60  }
 0x778   :  { %4912 = vrot.lane.b32.xlu0 %v11531_v36, %s7241_s16  ;;  %4872 = vrot.lane.b32.xlu1 %v11453_v43, %s7241_s16 }
 0x779   :  { %7044 = vset.pattern.permute.xlu1 %v7262_v44 }
 0x77a   :  { %v11625_v12 = vpop.permute.xlu1 %4714  ;;  %v11627_v18 = vpop.permute.xlu0 %4716 }
 0x77b   :  { %14786 = vst [vmem:[#allocation409_spill] sm:$0xff] %v11625_v12  ;;  %14787 = vst [vmem:[#allocation410_spill] sm:$0xff] %v11627_v18 }
 0x77c   :  { %5316 = vrot.lane.b32.xlu0 %v11445_v51, %s7245_s1  ;;  %4892 = vrot.lane.b32.xlu1 %v11493_v26, %s7241_s16 }
 0x77e   :  { %v11633_v31 = vpop.permute.xlu1 %4718  ;;  %v11635_v37 = vpop.permute.xlu0 %4720 }
 0x77f   :  { %14788 = vst [vmem:[#allocation411_spill] sm:$0xff] %v11633_v31  ;;  %14789 = vst [vmem:[#allocation412_spill] sm:$0xff] %v11635_v37 }
 0x780   :  { %5332 = vrot.lane.b32.xlu0 %v11477_v35, %s7245_s1  ;;  %5314 = vrot.lane.b32.xlu1 %v11175_v20, %s7245_s1 }
 0x782   :  { %v11641_v44 = vpop.permute.xlu1 %4722  ;;  %v11643_v12 = vpop.permute.xlu0 %4724 }
 0x783   :  { %14790 = vst [vmem:[#allocation413_spill] sm:$0xff] %v11641_v44  ;;  %14791 = vst [vmem:[#allocation414_spill] sm:$0xff] %v11643_v12 }
 0x784   :  { %4888 = vrot.lane.b32.xlu0 %v11485_v61, %s7241_s16  ;;  %5330 = vrot.lane.b32.xlu1 %v11197_v41, %s7245_s1 }
 0x786   :  { %v11649_v18 = vpop.permute.xlu1 %4726  ;;  %v11651_v31 = vpop.permute.xlu0 %4728 }
 0x787   :  { %14792 = vst [vmem:[#allocation415_spill] sm:$0xff] %v11649_v18  ;;  %14793 = vst [vmem:[#allocation416_spill] sm:$0xff] %v11651_v31 }
 0x788   :  { %4908 = vrot.lane.b32.xlu0 %v11523_v40, %s7241_s16  ;;  %4886 = vrot.lane.b32.xlu1 %v11177_v11, %s7241_s16 }
 0x78a   :  { %v11657_v37 = vpop.permute.xlu1 %4730  ;;  %v11659_v44 = vpop.permute.xlu0 %4732 }
 0x78b   :  { %14794 = vst [vmem:[#allocation417_spill] sm:$0xff] %v11657_v37  ;;  %14795 = vst [vmem:[#allocation418_spill] sm:$0xff] %v11659_v44 }
 0x78c   :  { %5312 = vrot.lane.b32.xlu0 %v11435_v49, %s7245_s1  ;;  %7029 = vrot.lane.b32.xlu1 %v11195_v53, %s7241_s16 }
 0x78e   :  { %v11665_v12 = vpop.permute.xlu1 %4734  ;;  %v11667_v18 = vpop.permute.xlu0 %4736 }
 0x78f   :  { %14796 = vst [vmem:[#allocation419_spill] sm:$0xff] %v11665_v12  ;;  %14797 = vst [vmem:[#allocation420_spill] sm:$0xff] %v11667_v18 }
 0x790   :  { %5328 = vrot.lane.b32.xlu0 %v11469_v8, %s7245_s1  ;;  %5310 = vrot.lane.b32.xlu1 %v11157_v24, %s7245_s1 }
 0x792   :  { %v11673_v31 = vpop.permute.xlu1 %4738  ;;  %v11675_v37 = vpop.permute.xlu0 %4740 }
 0x793   :  { %14798 = vst [vmem:[#allocation421_spill] sm:$0xff] %v11673_v31  ;;  %14799 = vst [vmem:[#allocation422_spill] sm:$0xff] %v11675_v37 }
 0x794   :  { %5348 = vrot.lane.b32.xlu0 %v11509_v23, %s7245_s1  ;;  %5326 = vrot.lane.b32.xlu1 %v11169_v39, %s7245_s1 }
 0x796   :  { %v11681_v44 = vpop.permute.xlu1 %4742  ;;  %v11683_v12 = vpop.permute.xlu0 %4744 }
 0x797   :  { %14800 = vst [vmem:[#allocation423_spill] sm:$0xff] %v11681_v44  ;;  %14801 = vst [vmem:[#allocation424_spill] sm:$0xff] %v11683_v12 }
 0x798   :  { %5306 = vrot.lane.b32.xlu0 %v11167_v16, %s7245_s1  ;;  %5346 = vrot.lane.b32.xlu1 %v11208_v4, %s7245_s1 }
 0x79a   :  { %v11689_v18 = vpop.permute.xlu1 %4746  ;;  %v11691_v31 = vpop.permute.xlu0 %4748 }
 0x79b   :  { %14802 = vst [vmem:[#allocation425_spill] sm:$0xff] %v11689_v18  ;;  %14803 = vst [vmem:[#allocation426_spill] sm:$0xff] %v11691_v31 }
 0x79c   :  { %5322 = vrot.lane.b32.xlu0 %v11183_v28, %s7245_s1  ;;  %4904 = vrot.lane.b32.xlu1 %v11515_v6, %s7241_s16 }
 0x79e   :  { %v11697_v37 = vpop.permute.xlu1 %4750  ;;  %v11699_v44 = vpop.permute.xlu0 %4752 }
 0x79f   :  { %14804 = vst [vmem:[#allocation427_spill] sm:$0xff] %v11697_v37  ;;  %14805 = vst [vmem:[#allocation428_spill] sm:$0xff] %v11699_v44 }
 0x7a0   :  { %5342 = vrot.lane.b32.xlu0 %v11185_v50, %s7245_s1  ;;  %5308 = vrot.lane.b32.xlu1 %v11425_v17, %s7245_s1 }
 0x7a2   :  { %v11705_v12 = vpop.permute.xlu1 %4754  ;;  %v11707_v18 = vpop.permute.xlu0 %4756 }
 0x7a3   :  { %14806 = vst [vmem:[#allocation429_spill] sm:$0xff] %v11705_v12  ;;  %14807 = vst [vmem:[#allocation430_spill] sm:$0xff] %v11707_v18 }
 0x7a4   :  { %7034 = vrot.lane.b32.xlu0 %v11195_v53, %s7245_s1  ;;  %5324 = vrot.lane.b32.xlu1 %v11461_v1, %s7245_s1 }
 0x7a6   :  { %v11713_v28 = vpop.permute.xlu1 %4758  ;;  %v11715_v37 = vpop.permute.xlu0 %4760 }
 0x7a7   :  { %14808 = vst [vmem:[#allocation431_spill] sm:$0xff] %v11713_v28  ;;  %14809 = vst [vmem:[#allocation432_spill] sm:$0xff] %v11715_v37  ;;  %v14246_v37 = vmov 26  }
 0x7a8   :  { %5302 = vrot.lane.b32.xlu0 %v11152_v0, %s7245_s1  ;;  %5344 = vrot.lane.b32.xlu1 %v11501_v58, %s7245_s1 }
 0x7aa   :  { %v11721_v50 = vpop.permute.xlu1 %4762  ;;  %v11723_v12 = vpop.permute.xlu0 %4764 }
 0x7ab   :  { %14810 = vst [vmem:[#allocation433_spill] sm:$0xff] %v11721_v50  ;;  %14811 = vst [vmem:[#allocation434_spill] sm:$0xff] %v11723_v12 }
 0x7ac   :  { %5318 = vrot.lane.b32.xlu0 %v11162_v2, %s7245_s1  ;;  %5364 = vrot.lane.b32.xlu1 %v11539_v14, %s7245_s1 }
 0x7ae   :  { %v11729_v18 = vpop.permute.xlu0 %4768  ;;  %v11731_v28 = vpop.permute.xlu1 %4766 }
 0x7af   :  { %14812 = vst [vmem:[#allocation435_spill] sm:$0xff] %v11729_v18  ;;  %14813 = vst [vmem:[#allocation436_spill] sm:$0xff] %v11731_v28 }
 0x7b0   :  { %5338 = vrot.lane.b32.xlu0 %v11203_v13, %s7245_s1  ;;  %5304 = vrot.lane.b32.xlu1 %v11407_v27, %s7245_s1 }
 0x7b2   :  { %v11737_v0 = vpop.permute.xlu0 %4772  ;;  %v11743_v2 = vpop.permute.xlu1 %4770 }
 0x7b3   :  { %14814 = vst [vmem:[#allocation437_spill] sm:$0xff] %v11737_v0  ;;  %14815 = vst [vmem:[#allocation438_spill] sm:$0xff] %v11743_v2 }
 0x7b4   :  { %5360 = vrot.lane.b32.xlu0 %v11531_v36, %s7245_s1  ;;  %5320 = vrot.lane.b32.xlu1 %v11453_v43, %s7245_s1 }
 0x7b6   :  { %v11745_v50 = vpop.permute.xlu0 %4856  ;;  %v11751_v13 = vpop.permute.xlu1 %4854 }
 0x7b8   :  { %5336 = vrot.lane.b32.xlu0 %v11485_v61, %s7245_s1  ;;  %5340 = vrot.lane.b32.xlu1 %v11493_v26, %s7245_s1 }
 0x7ba   :  { %v4861_v36 = vpop.permute.xlu0 %4860  ;;  %v4859_v43 = vpop.permute.xlu1 %4858 }
 0x7bc   :  { %5356 = vrot.lane.b32.xlu0 %v11523_v40, %s7245_s1  ;;  %5334 = vrot.lane.b32.xlu1 %v11177_v11, %s7245_s1  ;;  %v7263_v11 = vmov 23  }
 0x7be   :  { %v4865_v27 = vpop.permute.xlu0 %4864  ;;  %v4863_v61 = vpop.permute.xlu1 %4862 }
 0x7bf   :  { %v4920_v44 = vsel %vm2436_vm1, %v4863_v61, %v4865_v27  ;;  %v4919_v61 = vsel %vm2436_vm1, %v4859_v43, %v4861_v36 }
 0x7c0   :  { %4995 = vperm.xlu0 %7043, %v11566_v57   ;;  %7039 = vrot.lane.b32.xlu1 %v11195_v53, %s7245_s1 }
 0x7c2   :  { %v4867_v26 = vpop.permute.xlu0 %4866 }
 0x7c4   :  { %4987 = vperm.xlu0 %7043, %v11588_v62   ;;  %5352 = vrot.lane.b32.xlu1 %v11515_v6, %s7245_s1 }
 0x7c6   :  { %v4883_v2 = vpop.permute.xlu0 %4882 }
 0x7c8   :  { %4991 = vperm.xlu1 %7044, %v11576_v9  }
 0x7cb   :  { %v11764_v40 = vpop.permute.xlu1 %5123 }
 0x7cc   :  { %7045 = vset.pattern.permute.xlu1 %v7263_v11  ;;  %v5141_v46 = vmul.f32 %v11764_v40, %v11477_v35 }
 0x7cd   :  { %5075 = vperm.xlu1 %7045, %v11566_v57  }
 0x7cf   :  { %v4869_v0 = vpop.permute.xlu1 %4868 }
 0x7d0   :  { %v4921_v53 = vsel %vm2436_vm1, %v4867_v26, %v4869_v0 }
 0x7d1   :  { %5071 = vperm.xlu1 %7045, %v11576_v9   ;;  %4956 = vrot.lane.b32.xlu0 %v4921_v53, %s7235_s17 }
 0x7d3   :  { %v4885_v28 = vpop.permute.xlu1 %4884  ;;  %v11770_v6 = vpop.permute.xlu0 %5119 }
 0x7d4   :  { %v4925_v18 = vsel %vm2436_vm1, %v4883_v2, %v4885_v28 }
 0x7d5   :  { %4983 = vperm.xlu0 %7043, %v11614_v60   ;;  %4964 = vrot.lane.b32.xlu1 %v4925_v18, %s7235_s17 }
 0x7d7   :  { %v4879_v11 = vpop.permute.xlu1 %4878  ;;  %v4899_v12 = vpop.permute.xlu0 %4898 }
 0x7d9   :  { %5067 = vperm.xlu1 %7045, %v11588_v62   ;;  %7048 = vset.pattern.permute.xlu0 %v14246_v37 }
 0x7db   :  { %v4881_v0 = vpop.permute.xlu1 %4880  ;;  %v11777_v26 = vpop.permute.xlu0 %5115 }
 0x7dc   :  { %v4924_v2 = vsel %vm2436_vm1, %v4879_v11, %v4881_v0  ;;  %v14816_v0 = vmov 26  }
 0x7dd   :  { %4954 = vrot.lane.b32.xlu1 %v4920_v44, %s7235_s17 }
 0x7df   :  { %v4901_v31 = vpop.permute.xlu1 %4900  ;;  %v4877_v28 = vpop.permute.xlu0 %4876 }
 0x7e0   :  { %v4929_v48 = vsel %vm2436_vm1, %v4899_v12, %v4901_v31 }
 0x7e1   :  { %4962 = vrot.lane.b32.xlu1 %v4924_v2, %s7235_s17  ;;  %4972 = vrot.lane.b32.xlu0 %v4929_v48, %s7235_s17 }
 0x7e3   :  { %v4875_v47 = vpop.permute.xlu1 %4874  ;;  %v4897_v63 = vpop.permute.xlu0 %4896 }
 0x7e4   :  { %v4923_v33 = vsel %vm2436_vm1, %v4875_v47, %v4877_v28  ;;  %v5133_v47 = vmul.f32 %v11764_v40, %v11445_v51  ;;  %v5140_v51 = vmul.f32 %v11764_v40, %v11197_v41  ;;  %v4918_v41 = vsel %vm2436_vm1, %v11751_v13, %v11745_v50 }
 0x7e5   :  { %5036 = vrot.lane.b32.xlu1 %v4921_v53, %s7237_s19  ;;  %5044 = vrot.lane.b32.xlu0 %v4925_v18, %s7237_s19 }
 0x7e7   :  { %v4895_v37 = vpop.permute.xlu1 %4894  ;;  %v4917_v27 = vpop.permute.xlu0 %4916 }
 0x7e8   :  { %v4928_v12 = vsel %vm2436_vm1, %v4895_v37, %v4897_v63 }
 0x7e9   :  { %5063 = vperm.xlu1 %7045, %v11614_v60   ;;  %4952 = vrot.lane.b32.xlu0 %v4919_v61, %s7235_s17 }
 0x7eb   :  { %v7025_v11 = vpop.permute.xlu1 %7024  ;;  %v4871_v31 = vpop.permute.xlu0 %4870 }
 0x7ec   :  { %v7026_v36 = vunpack.i.l.bf16 %v7025_v11  ;;  %v7027_v50 = vunpack.i.h.bf16 %v7025_v11 }
 0x7ed   :  { %7046 = vset.pattern.permute.xlu1 %v14816_v0  ;;  %4970 = vrot.lane.b32.xlu0 %v4928_v12, %s7235_s17 }
 0x7ee   :  { %5523 = vperm.xlu1 %7046, %v11566_v57   ;;  %v4933_v63 = vsel %vm2436_vm1, %v7026_v36, %v4917_v27 }
 0x7ef   :  { %v11794_v53 = vpop.permute.xlu1 %5111  ;;  %v4891_v18 = vpop.permute.xlu0 %4890 }
 0x7f1   :  { %5034 = vrot.lane.b32.xlu0 %v4920_v44, %s7237_s19 }
 0x7f2   :  { %4960 = vrot.lane.b32.xlu1 %v4923_v33, %s7235_s17 }
 0x7f3   :  { %v4873_v43 = vpop.permute.xlu1 %4872  ;;  %v4913_v15 = vpop.permute.xlu0 %4912  ;;  %7047 = vset.pattern.permute.xlu1 %v7265_v55 }
 0x7f4   :  { %v4932_v21 = vsel %vm2436_vm1, %v7027_v50, %v4913_v15  ;;  %v5139_v50 = vmul.f32 %v11770_v6, %v11469_v8 }
 0x7f5   :  { %5052 = vrot.lane.b32.xlu0 %v4929_v48, %s7237_s19  ;;  %v5132_v48 = vmul.f32 %v11764_v40, %v11175_v20 }
 0x7f6   :  { %4980 = vrot.lane.b32.xlu1 %v4933_v63, %s7235_s17 }
 0x7f7   :  { %v4893_v37 = vpop.permute.xlu1 %4892  ;;  %v5317_v52 = vpop.permute.xlu0 %5316 }
 0x7f9   :  { %5204 = vrot.lane.b32.xlu0 %v5133_v47, %s7245_s1 }
 0x7fa   :  { %5042 = vrot.lane.b32.xlu1 %v4924_v2, %s7237_s19 }
 0x7fb   :  { %v5315_v44 = vpop.permute.xlu1 %5314  ;;  %v5333_v28 = vpop.permute.xlu0 %5332 }
 0x7fc   :  { %v11855_v11 = vsel %vm2917_vm3, %v5315_v44, %v5317_v52  ;;  %v5131_v44 = vmul.f32 %v11770_v6, %v11435_v49 }
 0x7fd   :  { %5220 = vrot.lane.b32.xlu0 %v5141_v46, %s7245_s1 }
 0x7fe   :  { %5202 = vrot.lane.b32.xlu1 %v5132_v48, %s7245_s1 }
 0x7ff   :  { %v5331_v27 = vpop.permute.xlu1 %5330  ;;  %v4889_v36 = vpop.permute.xlu0 %4888 }
 0x801   :  { %5519 = vperm.xlu0 %7048, %v11576_v9  }
 0x802   :  { %5218 = vrot.lane.b32.xlu1 %v5140_v51, %s7245_s1  ;;  %v4927_v51 = vsel %vm2436_vm1, %v4891_v18, %v4893_v37 }
 0x803   :  { %v4887_v2 = vpop.permute.xlu1 %4886  ;;  %v11816_v47 = vpop.permute.xlu0 %4908 }
 0x804   :  { %v11902_v8 = vsel %vm2436_vm1, %v4887_v2, %v4889_v36 }
 0x805   :  { %7049 = vset.pattern.permute.xlu0 %v7265_v55  ;;  %v11835_v55 = vsel %vm2436_vm1, %v4871_v31, %v4873_v43 }
 0x806   :  { %5443 = vperm.xlu0 %7049, %v11566_v57   ;;  %5435 = vperm.xlu1 %7047, %v11588_v62  }
 0x807   :  { %v11820_v46 = vpop.permute.xlu1 %7029  ;;  %v11822_v20 = vpop.permute.xlu0 %5312 }
 0x80a   :  { %5439 = vperm.xlu0 %7049, %v11576_v9   ;;  %4950 = vrot.lane.b32.xlu1 %v4918_v41, %s7235_s17 }
 0x80b   :  { %v11829_v35 = vpop.permute.xlu1 %5310  ;;  %v11831_v48 = vpop.permute.xlu0 %5328  ;;  %7050 = vset.pattern.permute.xlu1 %v14816_v0 }
 0x80e   :  { %4958 = vrot.lane.b32.xlu1 %v11835_v55, %s7235_s17  ;;  %4968 = vrot.lane.b32.xlu0 %v4927_v51, %s7235_s17 }
 0x80f   :  { %v11841_v13 = vpop.permute.xlu1 %5326  ;;  %v5349_v5 = vpop.permute.xlu0 %5348 }
 0x812   :  { %5032 = vrot.lane.b32.xlu0 %v4919_v61, %s7237_s19  ;;  %4978 = vrot.lane.b32.xlu1 %v4932_v21, %s7235_s17 }
 0x813   :  { %v5347_v3 = vpop.permute.xlu1 %5346  ;;  %v11846_v31 = vpop.permute.xlu0 %5306 }
 0x816   :  { %5050 = vrot.lane.b32.xlu0 %v4928_v12, %s7237_s19  ;;  %5040 = vrot.lane.b32.xlu1 %v4923_v33, %s7237_s19  ;;  %v5130_v12 = vmul.f32 %v11770_v6, %v11157_v24  ;;  %v5373_v33 = vsel %vm2917_vm3, %v5331_v27, %v5333_v28  ;;  %v5148_v27 = vmul.f32 %v11764_v40, %v11208_v4 }
 0x817   :  { %v11850_v18 = vpop.permute.xlu1 %4904  ;;  %v11852_v43 = vpop.permute.xlu0 %5322 }
 0x81a   :  { %5060 = vrot.lane.b32.xlu1 %v4933_v63, %s7237_s19  ;;  %5404 = vrot.lane.b32.xlu0 %v11855_v11, %s7235_s17  ;;  %v5138_v63 = vmul.f32 %v11770_v6, %v11169_v39 }
 0x81b   :  { %v11860_v15 = vpop.permute.xlu1 %5308  ;;  %v11862_v61 = vpop.permute.xlu0 %5342 }
 0x81c   :  { %14817 = vst [vmem:[#allocation439_spill] sm:$0xff] %v11862_v61 }
 0x81e   :  { %5198 = vrot.lane.b32.xlu0 %v5130_v12, %s7245_s1  ;;  %5412 = vrot.lane.b32.xlu1 %v5373_v33, %s7235_s17  ;;  %v5149_v12 = vmul.f32 %v11764_v40, %v11509_v23  ;;  %v7266_v23 = vmov 27  }
 0x81f   :  { %v11869_v52 = vpop.permute.xlu1 %5324  ;;  %v11871_v37 = vpop.permute.xlu0 %7034 }
 0x822   :  { %5214 = vrot.lane.b32.xlu0 %v5138_v63, %s7245_s1  ;;  %5200 = vrot.lane.b32.xlu1 %v5131_v44, %s7245_s1 }
 0x823   :  { %v11879_v24 = vpop.permute.xlu1 %5344  ;;  %v11881_v28 = vpop.permute.xlu0 %5302 }
 0x824   :  { %14818 = vst [vmem:[#allocation440_spill] sm:$0xff] %v11881_v28  ;;  %v14847_v28 = vld [vmem:[#allocation4_spill] sm:$0xff] }
 0x826   :  { %5234 = vrot.lane.b32.xlu0 %v5148_v27, %s7245_s1  ;;  %5216 = vrot.lane.b32.xlu1 %v5139_v50, %s7245_s1  ;;  %v7031_v50 = vunpack.i.l.bf16 %v11820_v46 }
 0x827   :  { %v11889_v39 = vpop.permute.xlu1 %5364  ;;  %v11891_v49 = vpop.permute.xlu0 %5318 }
 0x828   :  { %14819 = vst [vmem:[#allocation441_spill] sm:$0xff] %v11891_v49  ;;  %v11921_v2 = vsel %vm2436_vm1, %v7031_v50, %v11816_v47  ;;  %v11942_v47 = vsel %vm2917_vm3, %v5347_v3, %v5349_v5  ;;  %v11955_v50 = vsel %vm2917_vm3, %v11841_v13, %v11831_v48  ;;  %v6934_v48 = vunpack.i.l.bf16 %v14837_v19  ;;  %v14838_v13 = vld [vmem:[#allocation12_spill] sm:$0xff] }
 0x829   :  { %14830 = vst [vmem:[#allocation452_spill] sm:$0xff] %v11942_v47 }
 0x82a   :  { %5431 = vperm.xlu0 %7049, %v11614_v60   ;;  %5236 = vrot.lane.b32.xlu1 %v5149_v12, %s7245_s1 }
 0x82b   :  { %v11897_v63 = vpop.permute.xlu1 %5304  ;;  %v11899_v4 = vpop.permute.xlu0 %5338 }
 0x82c   :  { %14820 = vst [vmem:[#allocation442_spill] sm:$0xff] %v11897_v63  ;;  %14821 = vst [vmem:[#allocation443_spill] sm:$0xff] %v11899_v4  ;;  %v14846_v4 = vld [vmem:[#allocation13_spill] sm:$0xff]  ;;  %v14848_v63 = vld [vmem:[#allocation14_spill] sm:$0xff] }
 0x82e   :  { %5515 = vperm.xlu1 %7050, %v11588_v62   ;;  %4966 = vrot.lane.b32.xlu0 %v11902_v8, %s7235_s17  ;;  %v14849_v62 = vld [vmem:[#allocation18_spill] sm:$0xff] }
 0x82f   :  { %v11907_v44 = vpop.permute.xlu1 %5320  ;;  %v11909_v27 = vpop.permute.xlu0 %5360  ;;  %7053 = vset.pattern.permute.xlu0 %v7266_v23 }
 0x830   :  { %14822 = vst [vmem:[#allocation444_spill] sm:$0xff] %v11907_v44  ;;  %14823 = vst [vmem:[#allocation445_spill] sm:$0xff] %v11909_v27  ;;  %v14845_v44 = vld [vmem:[#allocation9_spill] sm:$0xff] }
 0x832   :  { %7051 = vset.pattern.permute.xlu1 %v7266_v23  ;;  %5030 = vrot.lane.b32.xlu0 %v4918_v41, %s7237_s19  ;;  %v11931_v41 = vsel %vm2917_vm3, %v11829_v35, %v11822_v20  ;;  %v14833_v35 = vld [vmem:[#allocation10_spill] sm:$0xff] }
 0x833   :  { %v11913_v12 = vpop.permute.xlu1 %5340  ;;  %5587 = vperm.xlu1 %7051, %v11566_v57   ;;  %v11916_v36 = vpop.permute.xlu0 %5336  ;;  %14827 = vst [vmem:[#allocation449_spill] sm:$0xff] %v11931_v41  ;;  %v6922_v23 = vunpack.i.l.bf16 %v14833_v35  ;;  %v6923_v3 = vunpack.i.h.bf16 %v14833_v35 }
 0x834   :  { %14824 = vst [vmem:[#allocation446_spill] sm:$0xff] %v11913_v12  ;;  %14825 = vst [vmem:[#allocation447_spill] sm:$0xff] %v11916_v36  ;;  %v14841_v36 = vld [vmem:[#allocation7_spill] sm:$0xff]  ;;  %v2228_v12 = vmul.f32 %v6934_v48, %v14846_v4 }
 0x836   :  { %5048 = vrot.lane.b32.xlu0 %v4927_v51, %s7237_s19 }
 0x837   :  { %v11923_v54 = vpop.permute.xlu1 %5334  ;;  %4976 = vrot.lane.b32.xlu1 %v11921_v2, %s7235_s17  ;;  %v11933_v57 = vpop.permute.xlu0 %5356 }
 0x838   :  { %14826 = vst [vmem:[#allocation448_spill] sm:$0xff] %v11923_v54  ;;  %7052 = vset.pattern.permute.xlu1 %v14816_v0  ;;  %14828 = vst [vmem:[#allocation450_spill] sm:$0xff] %v11933_v57  ;;  %v6935_v57 = vunpack.i.h.bf16 %v14837_v19 }
 0x83a   :  { %5402 = vrot.lane.b32.xlu0 %v11931_v41, %s7235_s17 }
 0x83b   :  { %v11937_v51 = vpop.permute.xlu1 %7039  ;;  %5038 = vrot.lane.b32.xlu1 %v11835_v55, %s7237_s19  ;;  %v11949_v20 = vpop.permute.xlu0 %4995  ;;  %v14835_v55 = vld [vmem:[#allocation5_spill] sm:$0xff] }
 0x83c   :  { %14829 = vst [vmem:[#allocation451_spill] sm:$0xff] %v11937_v51  ;;  %14832 = vst [vmem:[#allocation454_spill] sm:$0xff] %v11949_v20  ;;  %v6928_v20 = vunpack.i.l.bf16 %v14835_v55  ;;  %v6929_v35 = vunpack.i.h.bf16 %v14835_v55  ;;  %v14842_v51 = vld [vmem:[#allocation16_spill] sm:$0xff]  ;;  %v5128_v55 = vmul.f32 %v11777_v26, %v11167_v16  ;;  %v14850_v16 = vld [vmem:[#allocation15_spill] sm:$0xff] }
 0x83d   :  { %v6939_v27 = vunpack.i.l.bf16 %v14842_v51 }
 0x83e   :  { %5420 = vrot.lane.b32.xlu0 %v11942_v47, %s7235_s17  ;;  %v2150_v19 = vmul.f32 %v6928_v20, %v14845_v44 }
 0x83f   :  { %v11946_v0 = vpop.permute.xlu1 %5352  ;;  %5058 = vrot.lane.b32.xlu1 %v4932_v21, %s7237_s19  ;;  %v5129_v21 = vmul.f32 %v11777_v26, %v11425_v17  ;;  %v2149_v17 = vmul.f32 %v6923_v3, %v14841_v36  ;;  %v2230_v41 = vmul.f32 %v6939_v27, %v14850_v16  ;;  %v2438_v27 = vsel %vm2436_vm1, %v9398_v34, %v9396_v7 }
 0x840   :  { %14831 = vst [vmem:[#allocation453_spill] sm:$0xff] %v11946_v0  ;;  %v2148_v0 = vmul.f32 %v6922_v23, %v14838_v13  ;;  %v5137_v23 = vmul.f32 %v11777_v26, %v11461_v1  ;;  %v2151_v1 = vmul.f32 %v6929_v35, %v14848_v63  ;;  %v7176_v35 = vld [vmem:[#allocation2 + $0xd0] sm:$0xff]  ;;  %v2440_v7 = vsel %vm2436_vm1, %v9454_v25, %v9452_v22  ;;  %v14859_v22 = vld [vmem:[#allocation44_spill] sm:$0xff] }
 0x841   :  { %v2662_v25 = vmul.f32 %v14859_v22, %v9320_v10 }
 0x842   :  { %5492 = vrot.lane.b32.xlu0 %v5373_v33, %s7237_s19  ;;  %v11970_v33 = vpop.permute.xlu0 %4987 }
 0x843   :  { %v11959_v5 = vpop.permute.xlu1 %4991  ;;  %5410 = vrot.lane.b32.xlu1 %v11955_v50, %s7235_s17  ;;  %14839 = vst [vmem:[#allocation5_spill] sm:$0xff] %v11970_v33  ;;  %v14844_v33 = vld [vmem:[#allocation3_spill] sm:$0xff] }
 0x844   :  { %14834 = vst [vmem:[#allocation10_spill] sm:$0xff] %v11959_v5  ;;  %v14840_v5 = vld [vmem:[#allocation8_spill] sm:$0xff]  ;;  %v2086_v3 = vmul.f32 %v11191_v42, %v14844_v33 }
 0x845   :  { %v2085_v54 = vmul.f32 %v11191_v42, %v14840_v5 }
 0x846   :  { %5196 = vrot.lane.b32.xlu0 %v5129_v21, %s7245_s1  ;;  %v6940_v21 = vunpack.i.h.bf16 %v14842_v51  ;;  %v2229_v51 = vmul.f32 %v6935_v57, %v14849_v62  ;;  %v11999_v61 = vpop.permute.xlu0 %4956 }
 0x847   :  { %5484 = vrot.lane.b32.xlu1 %v11855_v11, %s7237_s19  ;;  %v2164_v11 = vadd.f32 %v2148_v0, %v2084_v32  ;;  %v2165_v47 = vadd.f32 %v2149_v17, %v2085_v54  ;;  %14851 = vst [vmem:[#allocation11_spill] sm:$0xff] %v11999_v61  ;;  %v5147_v32 = vmul.f32 %v11770_v6, %v11501_v58  ;;  %v14853_v0 = vld [vmem:[#allocation17_spill] sm:$0xff] }
 0x848   :  { %v11981_v49 = vpop.permute.xlu1 %5075  ;;  %v2231_v48 = vmul.f32 %v6940_v21, %v14853_v0  ;;  %v5136_v54 = vmul.f32 %v7176_v35, %v11777_v26  ;;  %v2166_v17 = vadd.f32 %v2150_v19, %v2086_v3 }
 0x849   :  { %14843 = vst [vmem:[#allocation6_spill] sm:$0xff] %v11981_v49  ;;  %v2087_v49 = vmul.f32 %v11191_v42, %v14847_v28  ;;  %v2437_v42 = vsel %vm2436_vm1, %v9360_v29, %v9358_v30  ;;  %v2244_v57 = vadd.f32 %v2228_v12, %v2164_v11  ;;  %v2245_v58 = vadd.f32 %v2229_v51, %v2165_v47  ;;  %v7177_v51 = vld [vmem:[#allocation2 + $0x120] sm:$0xff] }
 0x84a   :  { %5212 = vrot.lane.b32.xlu0 %v5137_v23, %s7245_s1  ;;  %v14854_v23 = vlaneseq  ;;  %v2439_v30 = vsel %vm2436_vm1, %v9430_v56, %v9428_v59  ;;  %v2246_v12 = vadd.f32 %v2230_v41, %v2166_v17  ;;  %v5157_v47 = vmul.f32 %v11764_v40, %v11539_v14  ;;  %v14858_v56 = vld [vmem:[#allocation40_spill] sm:$0xff]  ;;  %v14864_v17 = vld [vmem:[#allocation19_spill] sm:$0xff] }
 0x84b   :  { %5194 = vrot.lane.b32.xlu1 %v5128_v55, %s7245_s1  ;;  %v2167_v29 = vadd.f32 %v2151_v1, %v2087_v49  ;;  %v2469_v21 = vadd.f32 %v2437_v42, %v2244_v57  ;;  %v2470_v19 = vadd.f32 %v2438_v27, %v2245_v58  ;;  %v5146_v59 = vmul.f32 %v7177_v51, %v11770_v6  ;;  %v14860_v14 = vld [vmem:[#allocation20_spill] sm:$0xff]  ;;  %v14861_v42 = vld [vmem:[#allocation41_spill] sm:$0xff] }
 0x84c   :  { %v12001_v20 = vpop.permute.xlu1 %5071  ;;  %v12015_v55 = vand.u32 127, %v14854_v23  ;;  %v2661_v49 = vmul.f32 %v14858_v56, %v9322_v45  ;;  %v2471_v41 = vadd.f32 %v2439_v30, %v2246_v12  ;;  %v7178_v45 = vld [vmem:[#allocation2 + $0x40] sm:$0xff]  ;;  %v14865_v23 = vld [vmem:[#allocation42_spill] sm:$0xff]  ;;  %v7181_v51 = vld [vmem:[#allocation2 + $0x50] sm:$0xff] }
 0x84d   :  { %14852 = vst [vmem:[#allocation12_spill] sm:$0xff] %v12001_v20  ;;  %v2247_v11 = vadd.f32 %v2231_v48, %v2167_v29  ;;  %v2663_v48 = vmul.f32 %v14861_v42, %v14860_v14  ;;  %v2088_v27 = vmul.f32 %v7178_v45, %v14836_v38  ;;  %v2664_v58 = vmul.f32 %v14865_v23, %v14864_v17  ;;  %v12047_v30 = vld [vmem:[#allocation2 + $0x20] sm:$0xff]  ;;  %v14869_v14 = vld [vmem:[#allocation22_spill] sm:$0xff] }
 0x84e   :  { %5232 = vrot.lane.b32.xlu0 %v5147_v32, %s7245_s1  ;;  %14855 = vst [vmem:[#allocation8_spill] sm:$0xff] %v12015_v55  ;;  %v2677_v35 = vadd.f32 %v2661_v49, %v2469_v21  ;;  %v2678_v10 = vadd.f32 %v2662_v25, %v2470_v19  ;;  %14866 = vst [vmem:[#allocation13_spill] sm:$0xff] %v12047_v30  ;;  %v5156_v29 = vmul.f32 %v12047_v30, %v11764_v40  ;;  %v7180_v12 = vld [vmem:[#allocation2 + $0x60] sm:$0xff]  ;;  %v14867_v21 = vld [vmem:[#allocation21_spill] sm:$0xff] }
 0x84f   :  { %5210 = vrot.lane.b32.xlu1 %v5136_v54, %s7245_s1  ;;  %v2472_v1 = vadd.f32 %v2440_v7, %v2247_v11  ;;  %v2090_v7 = vmul.f32 %v7180_v12, %v14844_v33  ;;  %v2679_v49 = vadd.f32 %v2663_v48, %v2471_v41  ;;  %v14870_v45 = vld [vmem:[#allocation47_spill] sm:$0xff]  ;;  %v14872_v17 = vld [vmem:[#allocation50_spill] sm:$0xff]  ;;  %v14873_v12 = vld [vmem:[#allocation24_spill] sm:$0xff] }
 0x850   :  { %v12024_v34 = vpop.permute.xlu1 %4964  ;;  %v12026_v3 = vpop.permute.xlu0 %4983  ;;  %v2742_v19 = vmul.f32 %v14870_v45, %v14869_v14  ;;  %v14871_v25 = vld [vmem:[#allocation23_spill] sm:$0xff]  ;;  %v14876_v41 = vld [vmem:[#allocation26_spill] sm:$0xff]  ;;  %v14886_v30 = vld [vmem:[#allocation32_spill] sm:$0xff] }
 0x851   :  { %14856 = vst [vmem:[#allocation7_spill] sm:$0xff] %v12024_v34  ;;  %14857 = vst [vmem:[#allocation16_spill] sm:$0xff] %v12026_v3  ;;  %v2743_v32 = vmul.f32 %v14872_v17, %v14871_v25  ;;  %v2680_v3 = vadd.f32 %v2664_v58, %v2472_v1  ;;  %v14877_v48 = vld [vmem:[#allocation35_spill] sm:$0xff]  ;;  %v14881_v1 = vld [vmem:[#allocation28_spill] sm:$0xff] }
 0x852   :  { %5252 = vrot.lane.b32.xlu0 %v5157_v47, %s7245_s1  ;;  %v14868_v47 = vld [vmem:[#allocation49_spill] sm:$0xff]  ;;  %v2152_v14 = vmul.f32 %v14838_v13, %v14877_v48  ;;  %v2758_v34 = vadd.f32 %v2742_v19, %v2678_v10  ;;  %v14883_v55 = vld [vmem:[#allocation30_spill] sm:$0xff] }
 0x853   :  { %5230 = vrot.lane.b32.xlu1 %v5146_v59, %s7245_s1  ;;  %v2741_v11 = vmul.f32 %v14868_v47, %v14867_v21  ;;  %v2089_v59 = vmul.f32 %v7181_v51, %v14840_v5  ;;  %v14874_v21 = vld [vmem:[#allocation51_spill] sm:$0xff]  ;;  %v14888_v10 = vld [vmem:[#allocation53_spill] sm:$0xff] }
 0x854   :  { %v12040_v54 = vpop.permute.xlu1 %5067  ;;  %v12042_v57 = vpop.permute.xlu0 %4972  ;;  %v2744_v20 = vmul.f32 %v14874_v21, %v14873_v12  ;;  %v14875_v51 = vld [vmem:[#allocation27_spill] sm:$0xff]  ;;  %v2155_v19 = vmul.f32 %v14848_v63, %v14888_v10  ;;  %v7186_v10 = vld [vmem:[#allocation2 + $0xb0] sm:$0xff] }
 0x855   :  { %14862 = vst [vmem:[#allocation3_spill] sm:$0xff] %v12040_v54  ;;  %14863 = vst [vmem:[#allocation9_spill] sm:$0xff] %v12042_v57  ;;  %v7182_v54 = vld [vmem:[#allocation2 + $0x70] sm:$0xff]  ;;  %v2757_v57 = vadd.f32 %v2741_v11, %v2677_v35 }
 0x856   :  { %5583 = vperm.xlu0 %7053, %v11576_v9   ;;  %v2091_v40 = vmul.f32 %v7182_v54, %v14847_v28  ;;  %v2918_v9 = vsel %vm2917_vm3, %v14876_v41, %v14875_v51  ;;  %v14880_v54 = vld [vmem:[#allocation29_spill] sm:$0xff]  ;;  %v2759_v51 = vadd.f32 %v2743_v32, %v2679_v49  ;;  %v7184_v32 = vld [vmem:[#allocation2 + $0xa0] sm:$0xff] }
 0x857   :  { %5250 = vrot.lane.b32.xlu1 %v5156_v29, %s7245_s1  ;;  %v2919_v58 = vsel %vm2917_vm3, %v14881_v1, %v14880_v54  ;;  %v14882_v29 = vld [vmem:[#allocation31_spill] sm:$0xff]  ;;  %v14884_v11 = vld [vmem:[#allocation37_spill] sm:$0xff]  ;;  %v12090_v54 = vadd.f32 %v2918_v9, %v2757_v57  ;;  %v12094_v49 = vmul.f32 %v7184_v32, %v14844_v33  ;;  %v12111_v9 = vsel %vm2917_vm3, %v11852_v43, %v11869_v52  ;;  %v14895_v43 = vld [vmem:[#allocation38_spill] sm:$0xff] }
 0x858   :  { %v12069_v61 = vpop.permute.xlu1 %4954  ;;  %v12071_v25 = vpop.permute.xlu0 %5044  ;;  %v2920_v35 = vsel %vm2917_vm3, %v14883_v55, %v14882_v29  ;;  %v2154_v12 = vmul.f32 %v14845_v44, %v14884_v11  ;;  %v14885_v41 = vld [vmem:[#allocation33_spill] sm:$0xff]  ;;  %v2760_v55 = vadd.f32 %v2744_v20, %v2680_v3  ;;  %v7183_v1 = vld [vmem:[#allocation2 + $0x80] sm:$0xff]  ;;  %v2168_v11 = vadd.f32 %v2152_v14, %v2088_v27  ;;  %14891 = vst [vmem:[#allocation17_spill] sm:$0xff] %v12111_v9 }
 0x859   :  { %14878 = vst [vmem:[#allocation4_spill] sm:$0xff] %v12069_v61  ;;  %14879 = vst [vmem:[#allocation14_spill] sm:$0xff] %v12071_v25  ;;  %v2921_v48 = vsel %vm2917_vm3, %v14886_v30, %v14885_v41  ;;  %v14887_v61 = vld [vmem:[#allocation48_spill] sm:$0xff]  ;;  %v2092_v29 = vmul.f32 %v7183_v1, %v14836_v38  ;;  %v12097_v30 = vadd.f32 %v2919_v58, %v2758_v34  ;;  %v7032_v41 = vunpack.i.h.bf16 %v11820_v46  ;;  %v14892_v34 = vld [vmem:[#allocation34_spill] sm:$0xff] }
 0x85a   :  { %v2153_v25 = vmul.f32 %v14841_v36, %v14887_v61  ;;  %5056 = vrot.lane.b32.xlu0 %v11921_v2, %s7237_s19  ;;  %v12099_v61 = vadd.f32 %v2920_v35, %v2759_v51  ;;  %v12106_v20 = vadd.f32 %v2921_v48, %v2760_v55  ;;  %v2170_v3 = vadd.f32 %v2154_v12, %v2090_v7  ;;  %v14893_v7 = vld [vmem:[#allocation36_spill] sm:$0xff]  ;;  %v14894_v12 = vld [vmem:[#allocation54_spill] sm:$0xff]  ;;  %v7185_v51 = vld [vmem:[#allocation2 + $0x90] sm:$0xff] }
 0x85b   :  { %5511 = vperm.xlu1 %7052, %v11614_v60   ;;  %v7036_v60 = vunpack.i.l.bf16 %v11871_v37  ;;  %v2232_v58 = vmul.f32 %v14846_v4, %v14892_v34  ;;  %v2171_v14 = vadd.f32 %v2155_v19, %v2091_v40  ;;  %v12118_v46 = vsel %vm2436_vm1, %v7032_v41, %v11850_v18  ;;  %v14896_v18 = vld [vmem:[#allocation46_spill] sm:$0xff]  ;;  %v14898_v1 = vld [vmem:[#allocation55_spill] sm:$0xff] }
 0x85c   :  { %v12102_v2 = vpop.permute.xlu1 %4962  ;;  %v12104_v57 = vpop.permute.xlu0 %4952  ;;  %v2169_v27 = vadd.f32 %v2153_v25, %v2089_v59  ;;  %v2234_v35 = vmul.f32 %v14850_v16, %v14893_v7  ;;  %v2441_v52 = vsel %vm2436_vm1, %v14895_v43, %v14894_v12  ;;  %v2093_v48 = vmul.f32 %v7185_v51, %v14840_v5  ;;  %v14897_v25 = vld [vmem:[#allocation52_spill] sm:$0xff]  ;;  %v14899_v32 = vld [vmem:[#allocation39_spill] sm:$0xff] }
 0x85d   :  { %14889 = vst [vmem:[#allocation18_spill] sm:$0xff] %v12102_v2  ;;  %14890 = vst [vmem:[#allocation15_spill] sm:$0xff] %v12104_v57  ;;  %v2095_v59 = vmul.f32 %v7186_v10, %v14847_v28  ;;  %v2233_v40 = vmul.f32 %v14849_v62, %v14896_v18  ;;  %v2235_v19 = vmul.f32 %v14853_v0, %v14897_v25  ;;  %v14902_v43 = vld [vmem:[#allocation67_spill] sm:$0xff] }
 0x85e   :  { %5408 = vrot.lane.b32.xlu0 %v12111_v9, %s7235_s17  ;;  %v2248_v55 = vadd.f32 %v2232_v58, %v2168_v11  ;;  %v2443_v41 = vsel %vm2436_vm1, %v14899_v32, %v14898_v1  ;;  %v2250_v12 = vadd.f32 %v2234_v35, %v2170_v3  ;;  %v2156_v51 = vmul.f32 %v14838_v13, %v14902_v43  ;;  %v7187_v10 = vld [vmem:[#allocation2 + $0xc0] sm:$0xff]  ;;  %v14905_v43 = vld [vmem:[#allocation58_spill] sm:$0xff] }
 0x85f   :  { %4974 = vrot.lane.b32.xlu1 %v12118_v46, %s7235_s17  ;;  %v12145_v57 = vmul.f32 %v7187_v10, %v14836_v38  ;;  %v12149_v18 = vsel %vm2917_vm3, %v7036_v60, %v11889_v39  ;;  %v2249_v58 = vadd.f32 %v2233_v40, %v2169_v27  ;;  %v2251_v25 = vadd.f32 %v2235_v19, %v2171_v14  ;;  %v7188_v1 = vld [vmem:[#allocation2 + $0xe0] sm:$0xff]  ;;  %v14906_v10 = vld [vmem:[#allocation69_spill] sm:$0xff]  ;;  %v14907_v39 = vld [vmem:[#allocation74_spill] sm:$0xff] }
 0x860   :  { %v12138_v34 = vpop.permute.xlu1 %5036  ;;  %v12140_v7 = vpop.permute.xlu0 %4970  ;;  %14903 = vst [vmem:[#allocation20_spill] sm:$0xff] %v12149_v18  ;;  %v2473_v11 = vadd.f32 %v2441_v52, %v2248_v55  ;;  %v12152_v32 = vmul.f32 %v7188_v1, %v14844_v33  ;;  %v2475_v3 = vadd.f32 %v2443_v41, %v2250_v12  ;;  %v14904_v35 = vld [vmem:[#allocation63_spill] sm:$0xff]  ;;  %v2157_v60 = vmul.f32 %v14841_v36, %v14907_v39  ;;  %v14908_v27 = vld [vmem:[#allocation56_spill] sm:$0xff]  ;;  %v12172_v19 = vld [vmem:[#allocation2 + $0xd0] sm:$0xff] }
 0x861   :  { %14900 = vst [vmem:[#allocation40_spill] sm:$0xff] %v12138_v34  ;;  %14901 = vst [vmem:[#allocation44_spill] sm:$0xff] %v12140_v7  ;;  %v2442_v38 = vsel %vm2436_vm1, %v14905_v43, %v14904_v35  ;;  %v2158_v34 = vmul.f32 %v14845_v44, %v14906_v10  ;;  %v14909_v33 = vld [vmem:[#allocation43_spill] sm:$0xff]  ;;  %v14910_v52 = vld [vmem:[#allocation76_spill] sm:$0xff]  ;;  %v12176_v55 = vmul.f32 %v12172_v19, %v14840_v5 }
 0x862   :  { %5428 = vrot.lane.b32.xlu0 %v12149_v18, %s7235_s17  ;;  %v12168_v14 = vsel %vm2917_vm3, %v14909_v33, %v14908_v27  ;;  %v2159_v40 = vmul.f32 %v14848_v63, %v14910_v52  ;;  %14911 = vst [vmem:[#allocation41_spill] sm:$0xff] %v12172_v19  ;;  %v12178_v41 = vld [vmem:[#allocation2 + $0xf0] sm:$0xff]  ;;  %v14916_v10 = vld [vmem:[#allocation62_spill] sm:$0xff]  ;;  %v14917_v39 = vld [vmem:[#allocation60_spill] sm:$0xff]  ;;  %v2172_v2 = vadd.f32 %v2156_v51, %v2092_v29 }
 0x863   :  { %5046 = vrot.lane.b32.xlu1 %v11902_v8, %s7237_s19  ;;  %14912 = vst [vmem:[#allocation19_spill] sm:$0xff] %v12178_v41  ;;  %v12182_v12 = vmul.f32 %v12178_v41, %v14847_v28  ;;  %v14914_v1 = vld [vmem:[#allocation57_spill] sm:$0xff]  ;;  %v12194_v27 = vsel %vm2917_vm3, %v14917_v39, %v14916_v10  ;;  %v14919_v33 = vld [vmem:[#allocation59_spill] sm:$0xff]  ;;  %v2474_v7 = vadd.f32 %v2442_v38, %v2249_v58  ;;  %v14920_v28 = vld [vmem:[#allocation64_spill] sm:$0xff] }
 0x864   :  { %v12184_v8 = vpop.permute.xlu1 %5063  ;;  %v14915_v35 = vld [vmem:[#allocation45_spill] sm:$0xff]  ;;  %v14922_v18 = vld [vmem:[#allocation90_spill] sm:$0xff]  ;;  %v12211_v10 = vpop.permute.xlu0 %5034  ;;  %v2174_v58 = vadd.f32 %v2158_v34, %v12094_v49  ;;  %v2173_v38 = vadd.f32 %v2157_v60, %v2093_v48 }
 0x865   :  { %14913 = vst [vmem:[#allocation42_spill] sm:$0xff] %v12184_v8  ;;  %v12189_v43 = vsel %vm2917_vm3, %v14915_v35, %v14914_v1  ;;  %v14918_v5 = vld [vmem:[#allocation65_spill] sm:$0xff]  ;;  %v2665_v1 = vmul.f32 %v14858_v56, %v14922_v18  ;;  %v12209_v35 = vsel %vm2917_vm3, %v11846_v31, %v11860_v15  ;;  %14923 = vst [vmem:[#allocation21_spill] sm:$0xff] %v12211_v10  ;;  %v14924_v29 = vld [vmem:[#allocation66_spill] sm:$0xff] }
 0x866   :  { %v2444_v52 = vsel %vm2436_vm1, %v14919_v33, %v14918_v5  ;;  %v14921_v19 = vld [vmem:[#allocation61_spill] sm:$0xff]  ;;  %5490 = vrot.lane.b32.xlu0 %v11955_v50, %s7237_s19  ;;  %v2236_v51 = vmul.f32 %v14846_v4, %v14924_v29  ;;  %v14926_v31 = vld [vmem:[#allocation68_spill] sm:$0xff]  ;;  %v2175_v5 = vadd.f32 %v2159_v40, %v2095_v59  ;;  %v7191_v33 = vld [vmem:[#allocation2 + $0x80] sm:$0xff] }
 0x867   :  { %v12202_v8 = vsel %vm2917_vm3, %v14921_v19, %v14920_v28  ;;  %v14925_v19 = vld [vmem:[#allocation92_spill] sm:$0xff]  ;;  %5400 = vrot.lane.b32.xlu1 %v12209_v35, %s7235_s17  ;;  %v2476_v18 = vadd.f32 %v2444_v52, %v2251_v25  ;;  %v2238_v15 = vmul.f32 %v14850_v16, %v14926_v31  ;;  %v5126_v50 = vmul.f32 %v7191_v33, %v11794_v53  ;;  %v14927_v28 = vld [vmem:[#allocation75_spill] sm:$0xff]  ;;  %v14928_v10 = vld [vmem:[#allocation77_spill] sm:$0xff] }
 0x868   :  { %v2667_v39 = vmul.f32 %v14861_v42, %v14925_v19  ;;  %v2237_v29 = vmul.f32 %v14849_v62, %v14927_v28  ;;  %v2239_v49 = vmul.f32 %v14853_v0, %v14928_v10  ;;  %v2252_v48 = vadd.f32 %v2236_v51, %v2172_v2  ;;  %v14929_v34 = vld [vmem:[#allocation78_spill] sm:$0xff]  ;;  %v14932_v25 = vld [vmem:[#allocation79_spill] sm:$0xff] }
 0x869   :  { %v14930_v60 = vld [vmem:[#allocation70_spill] sm:$0xff]  ;;  %v12232_v41 = vpop.permute.xlu1 %5523  ;;  %v14933_v52 = vld [vmem:[#allocation71_spill] sm:$0xff]  ;;  %v2681_v40 = vadd.f32 %v2665_v1, %v2473_v11  ;;  %v2254_v10 = vadd.f32 %v2238_v15, %v2174_v58  ;;  %v14941_v58 = vld [vmem:[#allocation72_spill] sm:$0xff] }
 0x86a   :  { %v2445_v19 = vsel %vm2436_vm1, %v14930_v60, %v14929_v34  ;;  %14931 = vst [vmem:[#allocation49_spill] sm:$0xff] %v12232_v41  ;;  %v2447_v59 = vsel %vm2436_vm1, %v14933_v52, %v14932_v25  ;;  %v14934_v31 = vld [vmem:[#allocation95_spill] sm:$0xff]  ;;  %5190 = vrot.lane.b32.xlu0 %v5126_v50, %s7245_s1  ;;  %v2253_v2 = vadd.f32 %v2237_v29, %v2173_v38  ;;  %v14937_v34 = vld [vmem:[#allocation97_spill] sm:$0xff]  ;;  %v14943_v29 = vld [vmem:[#allocation82_spill] sm:$0xff] }
 0x86b   :  { %v2666_v33 = vmul.f32 %v14859_v22, %v14934_v31  ;;  %v14935_v28 = vld [vmem:[#allocation439_spill] sm:$0xff]  ;;  %v2683_v51 = vadd.f32 %v2667_v39, %v2475_v3  ;;  %v2668_v60 = vmul.f32 %v14865_v23, %v14937_v34  ;;  %v2255_v11 = vadd.f32 %v2239_v49, %v2175_v5  ;;  %v12253_v31 = vpop.permute.xlu0 %5052  ;;  %v14940_v3 = vld [vmem:[#allocation80_spill] sm:$0xff]  ;;  %v14944_v49 = vld [vmem:[#allocation93_spill] sm:$0xff] }
 0x86c   :  { %v12242_v9 = vsel %vm2917_vm3, %v14935_v28, %v11879_v24  ;;  %v12249_v1 = vadd.f32 %v2445_v19, %v2252_v48  ;;  %v14938_v25 = vld [vmem:[#allocation91_spill] sm:$0xff]  ;;  %14939 = vst [vmem:[#allocation47_spill] sm:$0xff] %v12253_v31  ;;  %v12256_v38 = vadd.f32 %v2447_v59, %v2254_v10  ;;  %v12261_v39 = vsel %vm2917_vm3, %v14941_v58, %v14940_v3  ;;  %v14946_v28 = vld [vmem:[#allocation89_spill] sm:$0xff] }
 0x86d   :  { %14936 = vst [vmem:[#allocation22_spill] sm:$0xff] %v12242_v9  ;;  %5418 = vrot.lane.b32.xlu1 %v12242_v9, %s7235_s17  ;;  %v2745_v52 = vmul.f32 %v14868_v47, %v14938_v25  ;;  %v7192_v24 = vld [vmem:[#allocation2 + $0xc0] sm:$0xff]  ;;  %v2747_v48 = vmul.f32 %v14872_v17, %v14944_v49  ;;  %v12268_v19 = vpop.permute.xlu1 %4960  ;;  %v2682_v10 = vadd.f32 %v2666_v33, %v2474_v7  ;;  %v14949_v31 = vld [vmem:[#allocation101_spill] sm:$0xff]  ;;  %v14955_v33 = vld [vmem:[#allocation108_spill] sm:$0xff] }
 0x86e   :  { %v5134_v50 = vmul.f32 %v7192_v24, %v11794_v53  ;;  %v14942_v15 = vld [vmem:[#allocation87_spill] sm:$0xff]  ;;  %14945 = vst [vmem:[#allocation23_spill] sm:$0xff] %v12268_v19  ;;  %v2684_v58 = vadd.f32 %v2668_v60, %v2476_v18  ;;  %v14951_v19 = vld [vmem:[#allocation449_spill] sm:$0xff]  ;;  %v2163_v18 = vmul.f32 %v14848_v63, %v14955_v33  ;;  %v14956_v60 = vld [vmem:[#allocation86_spill] sm:$0xff] }
 0x86f   :  { %v2446_v5 = vsel %vm2436_vm1, %v14943_v29, %v14942_v15  ;;  %v14947_v34 = vld [vmem:[#allocation83_spill] sm:$0xff]  ;;  %v2761_v59 = vadd.f32 %v2745_v52, %v2681_v40  ;;  %v2763_v3 = vadd.f32 %v2747_v48, %v2683_v51  ;;  %v2162_v15 = vmul.f32 %v14845_v44, %v14949_v31  ;;  %v14950_v29 = vld [vmem:[#allocation106_spill] sm:$0xff]  ;;  %v14952_v9 = vld [vmem:[#allocation81_spill] sm:$0xff]  ;;  %v12310_v33 = vpop.permute.xlu0 %5204 }
 0x870   :  { %v2448_v25 = vsel %vm2436_vm1, %v14947_v34, %v14946_v28  ;;  %v14948_v24 = vld [vmem:[#allocation99_spill] sm:$0xff]  ;;  %5206 = vrot.lane.b32.xlu0 %v5134_v50, %s7245_s1  ;;  %v2161_v49 = vmul.f32 %v14841_v36, %v14950_v29  ;;  %v14953_v28 = vld [vmem:[#allocation73_spill] sm:$0xff]  ;;  %v14954_v40 = vld [vmem:[#allocation94_spill] sm:$0xff]  ;;  %v2478_v31 = vadd.f32 %v2446_v5, %v2253_v2  ;;  %14962 = vst [vmem:[#allocation24_spill] sm:$0xff] %v12310_v33 }
 0x871   :  { %v2160_v41 = vmul.f32 %v14838_v13, %v14948_v24  ;;  %5482 = vrot.lane.b32.xlu1 %v14951_v19, %s7237_s19  ;;  %v12285_v7 = vsel %vm2917_vm3, %v14953_v28, %v14952_v9  ;;  %v2746_v13 = vmul.f32 %v14870_v45, %v14954_v40  ;;  %v7193_v51 = vld [vmem:[#allocation2 + $0x110] sm:$0xff]  ;;  %v14957_v52 = vld [vmem:[#allocation84_spill] sm:$0xff]  ;;  %v12304_v24 = vpop.permute.xlu1 %4980  ;;  %v2480_v63 = vadd.f32 %v2448_v25, %v2255_v11 }
 0x872   :  { %v5144_v44 = vmul.f32 %v7193_v51, %v11777_v26  ;;  %v12295_v36 = vsel %vm2917_vm3, %v14957_v52, %v14956_v60  ;;  %v14958_v50 = vld [vmem:[#allocation88_spill] sm:$0xff]  ;;  %v14959_v48 = vld [vmem:[#allocation85_spill] sm:$0xff]  ;;  %14961 = vst [vmem:[#allocation50_spill] sm:$0xff] %v12304_v24  ;;  %v12307_v29 = vadd.f32 %v12168_v14, %v2761_v59  ;;  %v12314_v2 = vadd.f32 %v12189_v43, %v2763_v3  ;;  %v14964_v14 = vld [vmem:[#allocation98_spill] sm:$0xff] }
 0x873   :  { %v12300_v9 = vsel %vm2917_vm3, %v14959_v48, %v14958_v50  ;;  %v14960_v19 = vld [vmem:[#allocation96_spill] sm:$0xff]  ;;  %v2762_v28 = vadd.f32 %v2746_v13, %v2682_v10  ;;  %v2176_v40 = vadd.f32 %v2160_v41, %v12145_v57  ;;  %v2178_v51 = vadd.f32 %v2162_v15, %v12152_v32  ;;  %v14966_v10 = vld [vmem:[#allocation13_spill] sm:$0xff]  ;;  %v14967_v3 = vld [vmem:[#allocation107_spill] sm:$0xff] }
 0x874   :  { %v2748_v34 = vmul.f32 %v14874_v21, %v14960_v19  ;;  %5226 = vrot.lane.b32.xlu0 %v5144_v44, %s7245_s1  ;;  %v2177_v60 = vadd.f32 %v2161_v49, %v12176_v55  ;;  %v14963_v11 = vld [vmem:[#allocation452_spill] sm:$0xff]  ;;  %v2240_v25 = vmul.f32 %v14846_v4, %v14964_v14  ;;  %v2179_v41 = vadd.f32 %v2163_v18, %v12182_v12  ;;  %v14968_v32 = vld [vmem:[#allocation110_spill] sm:$0xff]  ;;  %v14972_v18 = vld [vmem:[#allocation109_spill] sm:$0xff] }
 0x875   :  { %5500 = vrot.lane.b32.xlu1 %v14963_v11, %s7237_s19  ;;  %v14965_v59 = vld [vmem:[#allocation100_spill] sm:$0xff]  ;;  %v5154_v43 = vmul.f32 %v14966_v10, %v11770_v6  ;;  %v14969_v15 = vld [vmem:[#allocation102_spill] sm:$0xff]  ;;  %v12334_v44 = vpop.permute.xlu1 %5042  ;;  %v12338_v12 = vadd.f32 %v12194_v27, %v2762_v28  ;;  %v2243_v52 = vmul.f32 %v14853_v0, %v14972_v18  ;;  %v14974_v14 = vld [vmem:[#allocation111_spill] sm:$0xff] }
 0x876   :  { %v2764_v5 = vadd.f32 %v2748_v34, %v2684_v58  ;;  %v2242_v57 = vmul.f32 %v14850_v16, %v14965_v59  ;;  %v2241_v58 = vmul.f32 %v14849_v62, %v14967_v3  ;;  %v2449_v55 = vsel %vm2436_vm1, %v14969_v15, %v14968_v32  ;;  %v14970_v49 = vld [vmem:[#allocation136_spill] sm:$0xff]  ;;  %14971 = vst [vmem:[#allocation51_spill] sm:$0xff] %v12334_v44  ;;  %v14973_v62 = vld [vmem:[#allocation138_spill] sm:$0xff]  ;;  %v14975_v59 = vld [vmem:[#allocation103_spill] sm:$0xff] }
 0x877   :  { %v2669_v13 = vmul.f32 %v14858_v56, %v14970_v49  ;;  %v7194_v4 = vld [vmem:[#allocation2 + $0x88] sm:$0xff]  ;;  %v2256_v50 = vadd.f32 %v2240_v25, %v2176_v40  ;;  %v2671_v48 = vmul.f32 %v14861_v42, %v14973_v62  ;;  %v2451_v3 = vsel %vm2436_vm1, %v14975_v59, %v14974_v14  ;;  %v14976_v0 = vld [vmem:[#allocation119_spill] sm:$0xff]  ;;  %v14977_v40 = vld [vmem:[#allocation114_spill] sm:$0xff] }
 0x878   :  { %v5127_v16 = vmul.f32 %v7194_v4, %v11794_v53  ;;  %5246 = vrot.lane.b32.xlu0 %v5154_v43, %s7245_s1  ;;  %v12346_v19 = vadd.f32 %v12202_v8, %v2764_v5  ;;  %v2257_v34 = vadd.f32 %v2241_v58, %v2177_v60  ;;  %v2258_v11 = vadd.f32 %v2242_v57, %v2178_v51  ;;  %v14978_v32 = vld [vmem:[#allocation143_spill] sm:$0xff]  ;;  %v12359_v8 = vpop.permute.xlu0 %5220  ;;  %v14980_v5 = vld [vmem:[#allocation121_spill] sm:$0xff]  ;;  %v14985_v18 = vld [vmem:[#allocation104_spill] sm:$0xff] }
 0x879   :  { %v2259_v27 = vadd.f32 %v2243_v52, %v2179_v41  ;;  %v12352_v28 = vadd.f32 %v2449_v55, %v2256_v50  ;;  %v2450_v25 = vsel %vm2436_vm1, %v14977_v40, %v14976_v0  ;;  %v2670_v43 = vmul.f32 %v14859_v22, %v14978_v32  ;;  %14979 = vst [vmem:[#allocation27_spill] sm:$0xff] %v12359_v8  ;;  %v14981_v51 = vld [vmem:[#allocation115_spill] sm:$0xff]  ;;  %v14982_v58 = vld [vmem:[#allocation145_spill] sm:$0xff]  ;;  %v12367_v15 = vpop.permute.xlu1 %5202  ;;  %v7195_v55 = vld [vmem:[#allocation2 + $0xc8] sm:$0xff] }
 0x87a   :  { %5192 = vrot.lane.b32.xlu1 %v5127_v16, %s7245_s1  ;;  %v2452_v60 = vsel %vm2436_vm1, %v14981_v51, %v14980_v5  ;;  %v2685_v57 = vadd.f32 %v2669_v13, %v12249_v1  ;;  %v2672_v41 = vmul.f32 %v14865_v23, %v14982_v58  ;;  %14983 = vst [vmem:[#allocation26_spill] sm:$0xff] %v12367_v15  ;;  %v14984_v16 = vld [vmem:[#allocation112_spill] sm:$0xff]  ;;  %v14986_v50 = vld [vmem:[#allocation113_spill] sm:$0xff]  ;;  %v14988_v13 = vld [vmem:[#allocation406_spill] sm:$0xff] }
 0x87b   :  { %v5135_v49 = vmul.f32 %v7195_v55, %v11794_v53  ;;  %v2483_v4 = vadd.f32 %v2451_v3, %v2258_v11  ;;  %v12373_v52 = vsel %vm2917_vm3, %v14985_v18, %v14984_v16  ;;  %v14987_v62 = vld [vmem:[#allocation105_spill] sm:$0xff]  ;;  %v2687_v1 = vadd.f32 %v2671_v48, %v12256_v38  ;;  %v14989_v59 = vld [vmem:[#allocation118_spill] sm:$0xff]  ;;  %v14990_v0 = vld [vmem:[#allocation116_spill] sm:$0xff] }
 0x87c   :  { %v12378_v14 = vsel %vm2917_vm3, %v14987_v62, %v14986_v50  ;;  %5579 = vperm.xlu0 %7053, %v14988_v13   ;;  %v12385_v40 = vsel %vm2917_vm3, %v14990_v0, %v14989_v59  ;;  %v12387_v11 = vadd.f32 %v2450_v25, %v2257_v34  ;;  %v14992_v3 = vld [vmem:[#allocation120_spill] sm:$0xff]  ;;  %v14993_v32 = vld [vmem:[#allocation117_spill] sm:$0xff]  ;;  %v14995_v51 = vld [vmem:[#allocation135_spill] sm:$0xff]  ;;  %v12397_v38 = vadd.f32 %v2452_v60, %v2259_v27  ;;  %v12403_v25 = vpop.permute.xlu0 %5519 }
 0x87d   :  { %14991 = vst [vmem:[#allocation35_spill] sm:$0xff] %v12385_v40  ;;  %v12392_v5 = vsel %vm2917_vm3, %v14993_v32, %v14992_v3  ;;  %v2749_v58 = vmul.f32 %v14868_v47, %v14995_v51  ;;  %v14996_v48 = vld [vmem:[#allocation122_spill] sm:$0xff]  ;;  %v14998_v18 = vld [vmem:[#allocation137_spill] sm:$0xff]  ;;  %v2686_v34 = vadd.f32 %v2670_v43, %v2478_v31  ;;  %14999 = vst [vmem:[#allocation28_spill] sm:$0xff] %v12403_v25  ;;  %v12410_v32 = vpop.permute.xlu1 %5218 }
 0x87e   :  { %14994 = vst [vmem:[#allocation29_spill] sm:$0xff] %v12392_v5  ;;  %5208 = vrot.lane.b32.xlu1 %v5135_v49, %s7245_s1  ;;  %v14997_v55 = vld [vmem:[#allocation130_spill] sm:$0xff]  ;;  %v2751_v50 = vmul.f32 %v14872_v17, %v14998_v18  ;;  %v2688_v13 = vadd.f32 %v2672_v41, %v2480_v63  ;;  %v15001_v0 = vld [vmem:[#allocation440_spill] sm:$0xff]  ;;  %15003 = vst [vmem:[#allocation30_spill] sm:$0xff] %v12410_v32 }
 0x87f   :  { %v3111_v16 = vmul.f32 %v14997_v55, %v14996_v48  ;;  %v2765_v62 = vadd.f32 %v2749_v58, %v2685_v57  ;;  %v15000_v59 = vld [vmem:[#allocation442_spill] sm:$0xff]  ;;  %v15005_v48 = vld [vmem:[#allocation123_spill] sm:$0xff]  ;;  %v15007_v25 = vld [vmem:[#allocation140_spill] sm:$0xff] }
 0x880   :  { %v12408_v3 = vsel %vm2917_vm3, %v15001_v0, %v15000_v59  ;;  %v7196_v27 = vld [vmem:[#allocation2 + $0x118] sm:$0xff]  ;;  %v15006_v18 = vld [vmem:[#allocation131_spill] sm:$0xff]  ;;  %v2767_v43 = vadd.f32 %v2751_v50, %v2687_v1  ;;  %v2750_v63 = vmul.f32 %v14870_v45, %v15007_v25  ;;  %v15009_v58 = vld [vmem:[#allocation125_spill] sm:$0xff] }
 0x881   :  { %15002 = vst [vmem:[#allocation31_spill] sm:$0xff] %v12408_v3  ;;  %v5145_v60 = vmul.f32 %v7196_v27, %v11777_v26  ;;  %v15004_v49 = vld [vmem:[#allocation126_spill] sm:$0xff]  ;;  %v3110_v31 = vmul.f32 %v15006_v18, %v15005_v48  ;;  %5398 = vrot.lane.b32.xlu0 %v12408_v3, %s7235_s17  ;;  %v15008_v57 = vld [vmem:[#allocation127_spill] sm:$0xff]  ;;  %v15010_v59 = vld [vmem:[#allocation132_spill] sm:$0xff] }
 0x882   :  { %v3115_v51 = vmul.f32 %v14997_v55, %v15004_v49  ;;  %v3114_v41 = vmul.f32 %v15006_v18, %v15008_v57  ;;  %v3112_v0 = vmul.f32 %v15010_v59, %v15009_v58  ;;  %v15011_v27 = vld [vmem:[#allocation129_spill] sm:$0xff]  ;;  %v15012_v49 = vld [vmem:[#allocation142_spill] sm:$0xff]  ;;  %v15013_v1 = vld [vmem:[#allocation124_spill] sm:$0xff]  ;;  %v2766_v8 = vadd.f32 %v2750_v63, %v2686_v34 }
 0x883   :  { %v3116_v44 = vmul.f32 %v15010_v59, %v15011_v27  ;;  %v2752_v24 = vmul.f32 %v14874_v21, %v15012_v49  ;;  %5228 = vrot.lane.b32.xlu1 %v5145_v60, %s7245_s1  ;;  %v15014_v50 = vld [vmem:[#allocation133_spill] sm:$0xff]  ;;  %v15015_v48 = vld [vmem:[#allocation128_spill] sm:$0xff]  ;;  %v15016_v15 = vld [vmem:[#allocation166_spill] sm:$0xff]  ;;  %v2958_v58 = vadd.f32 %v12261_v39, %v2765_v62  ;;  %v12442_v49 = vpop.permute.xlu1 %5435  ;;  %v12444_v60 = vpop.permute.xlu0 %5443  ;;  %v3127_v34 = vadd.f32 %v3111_v16, %v12097_v30 }
 0x884   :  { %v3113_v25 = vmul.f32 %v15014_v50, %v15013_v1  ;;  %v3117_v32 = vmul.f32 %v15014_v50, %v15015_v48  ;;  %v2675_v57 = vmul.f32 %v14861_v42, %v15016_v15  ;;  %v15017_v3 = vld [vmem:[#allocation446_spill] sm:$0xff]  ;;  %v15018_v27 = vld [vmem:[#allocation443_spill] sm:$0xff]  ;;  %15019 = vst [vmem:[#allocation37_spill] sm:$0xff] %v12442_v49  ;;  %15020 = vst [vmem:[#allocation33_spill] sm:$0xff] %v12444_v60 }
 0x885   :  { %v2768_v33 = vadd.f32 %v2752_v24, %v2688_v13  ;;  %v12440_v40 = vsel %vm2917_vm3, %v15018_v27, %v15017_v3  ;;  %v7197_v1 = vld [vmem:[#allocation2 + $0x168] sm:$0xff]  ;;  %v12449_v63 = vadd.f32 %v3115_v51, %v12338_v12  ;;  %v3126_v42 = vadd.f32 %v3110_v31, %v12090_v54  ;;  %v15021_v62 = vld [vmem:[#allocation139_spill] sm:$0xff]  ;;  %v15034_v27 = vld [vmem:[#allocation154_spill] sm:$0xff] }
 0x886   :  { %v5155_v5 = vmul.f32 %v7197_v1, %v11770_v6  ;;  %v2960_v39 = vadd.f32 %v12285_v7, %v2767_v43  ;;  %5416 = vrot.lane.b32.xlu0 %v12440_v40, %s7235_s17  ;;  %v3130_v24 = vadd.f32 %v3114_v41, %v12307_v29  ;;  %v12457_v15 = vadd.f32 %v3112_v0, %v12099_v61  ;;  %v15022_v13 = vld [vmem:[#allocation164_spill] sm:$0xff]  ;;  %v15023_v7 = vld [vmem:[#allocation141_spill] sm:$0xff]  ;;  %v15104_v49 = vld [vmem:[#allocation190_spill] sm:$0xff] }
 0x887   :  { %v3118_v6 = vmul.f32 %v15006_v18, %v15021_v62  ;;  %v2673_v30 = vmul.f32 %v14858_v56, %v15022_v13  ;;  %v12465_v54 = vadd.f32 %v3116_v44, %v12314_v2  ;;  %v3120_v12 = vmul.f32 %v15010_v59, %v15023_v7  ;;  %v12477_v31 = vpop.permute.xlu1 %4950  ;;  %v15026_v44 = vld [vmem:[#allocation144_spill] sm:$0xff]  ;;  %v15037_v7 = vld [vmem:[#allocation155_spill] sm:$0xff] }
 0x888   :  { %5248 = vrot.lane.b32.xlu1 %v5155_v5, %s7245_s1  ;;  %v2959_v16 = vadd.f32 %v12295_v36, %v2766_v8  ;;  %v2691_v29 = vadd.f32 %v2675_v57, %v2483_v4  ;;  %v12471_v61 = vadd.f32 %v3113_v25, %v12106_v20  ;;  %v12474_v3 = vadd.f32 %v3117_v32, %v12346_v19  ;;  %v12479_v5 = vpop.permute.xlu0 %5439  ;;  %v15027_v36 = vld [vmem:[#allocation147_spill] sm:$0xff]  ;;  %v15030_v19 = vld [vmem:[#allocation146_spill] sm:$0xff] }
 0x889   :  { %v3134_v51 = vadd.f32 %v3118_v6, %v2958_v58  ;;  %v2961_v56 = vadd.f32 %v12300_v9, %v2768_v33  ;;  %15024 = vst [vmem:[#allocation32_spill] sm:$0xff] %v12477_v31  ;;  %15025 = vst [vmem:[#allocation48_spill] sm:$0xff] %v12479_v5  ;;  %v12481_v2 = vadd.f32 %v3120_v12, %v2960_v39  ;;  %v15028_v8 = vld [vmem:[#allocation159_spill] sm:$0xff]  ;;  %v15031_v33 = vld [vmem:[#allocation134_spill] sm:$0xff] }
 0x88a   :  { %v3119_v43 = vmul.f32 %v14997_v55, %v15026_v44  ;;  %v3191_v4 = vmul.f32 %v15028_v8, %v15027_v36  ;;  %v15029_v20 = vld [vmem:[#allocation163_spill] sm:$0xff]  ;;  %5480 = vrot.lane.b32.xlu0 %v12209_v35, %s7237_s19  ;;  %v3121_v9 = vmul.f32 %v15014_v50, %v15030_v19  ;;  %v15032_v32 = vld [vmem:[#allocation158_spill] sm:$0xff]  ;;  %v2689_v57 = vadd.f32 %v2673_v30, %v12352_v28  ;;  %v15038_v44 = vld [vmem:[#allocation161_spill] sm:$0xff] }
 0x88b   :  { %v2755_v41 = vmul.f32 %v14872_v17, %v15029_v20  ;;  %v3190_v0 = vmul.f32 %v15032_v32, %v15031_v33  ;;  %v15033_v25 = vld [vmem:[#allocation150_spill] sm:$0xff]  ;;  %v3198_v17 = vmul.f32 %v15032_v32, %v15034_v27  ;;  %v15035_v35 = vld [vmem:[#allocation171_spill] sm:$0xff]  ;;  %v3199_v12 = vmul.f32 %v15028_v8, %v15037_v7  ;;  %v12510_v30 = vpop.permute.xlu1 %4958  ;;  %v15046_v19 = vld [vmem:[#allocation169_spill] sm:$0xff] }
 0x88c   :  { %v3194_v48 = vmul.f32 %v15032_v32, %v15033_v25  ;;  %5054 = vrot.lane.b32.xlu1 %v12118_v46, %s7237_s19  ;;  %v3135_v58 = vadd.f32 %v3119_v43, %v2959_v16  ;;  %v2676_v39 = vmul.f32 %v14865_v23, %v15035_v35  ;;  %v3137_v62 = vadd.f32 %v3121_v9, %v2961_v56  ;;  %v15036_v6 = vld [vmem:[#allocation151_spill] sm:$0xff]  ;;  %v12512_v46 = vpop.permute.xlu0 %4968  ;;  %v15041_v16 = vld [vmem:[#allocation174_spill] sm:$0xff]  ;;  %v15042_v23 = vld [vmem:[#allocation444_spill] sm:$0xff] }
 0x88d   :  { %v2771_v1 = vadd.f32 %v2755_v41, %v2691_v29  ;;  %v3195_v13 = vmul.f32 %v15028_v8, %v15036_v6  ;;  %v2753_v28 = vmul.f32 %v14868_v47, %v15038_v44  ;;  %15039 = vst [vmem:[#allocation53_spill] sm:$0xff] %v12510_v30  ;;  %15040 = vst [vmem:[#allocation34_spill] sm:$0xff] %v12512_v46  ;;  %v7037_v43 = vunpack.i.h.bf16 %v11871_v37  ;;  %v15043_v56 = vld [vmem:[#allocation441_spill] sm:$0xff]  ;;  %v15044_v20 = vld [vmem:[#allocation22_spill] sm:$0xff] }
 0x88e   :  { %v2756_v29 = vmul.f32 %v14874_v21, %v15041_v16  ;;  %v12520_v36 = vsel %vm2917_vm3, %v15043_v56, %v15042_v23  ;;  %5498 = vrot.lane.b32.xlu0 %v15044_v20, %s7237_s19  ;;  %v12524_v41 = vadd.f32 %v3191_v4, %v3127_v34  ;;  %v2674_v9 = vmul.f32 %v14859_v22, %v15046_v19  ;;  %v12536_v27 = vld [vmem:[#allocation2 + $0x100] sm:$0xff]  ;;  %v15050_v22 = vld [vmem:[#allocation160_spill] sm:$0xff]  ;;  %v15057_v7 = vld [vmem:[#allocation162_spill] sm:$0xff] }
 0x88f   :  { %v2769_v47 = vadd.f32 %v2753_v28, %v2689_v57  ;;  %v12530_v21 = vadd.f32 %v3194_v48, %v3130_v24  ;;  %v12532_v37 = vadd.f32 %v3190_v0, %v3126_v42  ;;  %v2964_v33 = vadd.f32 %v12378_v14, %v2771_v1  ;;  %v15049_v57 = vld [vmem:[#allocation148_spill] sm:$0xff]  ;;  %v15059_v16 = vld [vmem:[#allocation445_spill] sm:$0xff]  ;;  %v15102_v46 = vld [vmem:[#allocation186_spill] sm:$0xff] }
 0x890   :  { %15045 = vst [vmem:[#allocation36_spill] sm:$0xff] %v12524_v41  ;;  %5406 = vrot.lane.b32.xlu1 %v12520_v36, %s7235_s17  ;;  %v2692_v25 = vadd.f32 %v2676_v39, %v12397_v38  ;;  %v5142_v34 = vmul.f32 %v12536_v27, %v11794_v53  ;;  %v12540_v4 = vadd.f32 %v3198_v17, %v3134_v51  ;;  %v15051_v6 = vld [vmem:[#allocation152_spill] sm:$0xff]  ;;  %v12550_v38 = vpop.permute.xlu1 %4978  ;;  %v12552_v1 = vpop.permute.xlu0 %5032  ;;  %v15056_v39 = vld [vmem:[#allocation149_spill] sm:$0xff]  ;;  %v15058_v17 = vld [vmem:[#allocation167_spill] sm:$0xff] }
 0x891   :  { %15047 = vst [vmem:[#allocation54_spill] sm:$0xff] %v12532_v37  ;;  %v3192_v35 = vmul.f32 %v15050_v22, %v15049_v57  ;;  %v3196_v24 = vmul.f32 %v15050_v22, %v15051_v6  ;;  %v15052_v48 = vld [vmem:[#allocation156_spill] sm:$0xff]  ;;  %15054 = vst [vmem:[#allocation46_spill] sm:$0xff] %v12550_v38  ;;  %v3193_v51 = vmul.f32 %v15057_v7, %v15056_v39  ;;  %v15060_v56 = vld [vmem:[#allocation153_spill] sm:$0xff] }
 0x892   :  { %15048 = vst [vmem:[#allocation38_spill] sm:$0xff] %v12540_v4  ;;  %v3200_v42 = vmul.f32 %v15050_v22, %v15052_v48  ;;  %v15053_v0 = vld [vmem:[#allocation172_spill] sm:$0xff]  ;;  %15055 = vst [vmem:[#allocation52_spill] sm:$0xff] %v12552_v1  ;;  %v3124_v44 = vmul.f32 %v15010_v59, %v15058_v17  ;;  %v2772_v28 = vadd.f32 %v2756_v29, %v2692_v25  ;;  %5222 = vrot.lane.b32.xlu0 %v5142_v34, %s7245_s1  ;;  %v15061_v20 = vld [vmem:[#allocation157_spill] sm:$0xff] }
 0x893   :  { %v2754_v14 = vmul.f32 %v14870_v45, %v15053_v0  ;;  %v12560_v23 = vsel %vm2917_vm3, %v7037_v43, %v15059_v16  ;;  %v3197_v45 = vmul.f32 %v15057_v7, %v15060_v56  ;;  %v3201_v19 = vmul.f32 %v15057_v7, %v15061_v20  ;;  %v15062_v29 = vld [vmem:[#allocation170_spill] sm:$0xff]  ;;  %v15078_v16 = vld [vmem:[#allocation451_spill] sm:$0xff]  ;;  %v15097_v37 = vld [vmem:[#allocation184_spill] sm:$0xff] }
 0x894   :  { %v2962_v57 = vadd.f32 %v12373_v52, %v2769_v47  ;;  %v2690_v6 = vadd.f32 %v2674_v9, %v12387_v11  ;;  %5426 = vrot.lane.b32.xlu1 %v12560_v23, %s7235_s17  ;;  %v3140_v59 = vadd.f32 %v3124_v44, %v2964_v33  ;;  %v3204_v43 = vmul.f32 %v15050_v22, %v15062_v29  ;;  %v15063_v25 = vld [vmem:[#allocation178_spill] sm:$0xff]  ;;  %v12580_v52 = vpop.permute.xlu1 %5040  ;;  %v12582_v11 = vpop.permute.xlu0 %5050  ;;  %v15067_v33 = vld [vmem:[#allocation165_spill] sm:$0xff]  ;;  %v7213_v4 = vld [vmem:[#allocation2 + $0xe0] sm:$0xff] }
 0x895   :  { %v3125_v34 = vmul.f32 %v15014_v50, %v15063_v25  ;;  %v5152_v48 = vmul.f32 %v14966_v10, %v11777_v26  ;;  %v12578_v0 = vadd.f32 %v3192_v35, %v12457_v15  ;;  %15064 = vst [vmem:[#allocation55_spill] sm:$0xff] %v12580_v52  ;;  %15065 = vst [vmem:[#allocation39_spill] sm:$0xff] %v12582_v11  ;;  %v15068_v50 = vld [vmem:[#allocation29_spill] sm:$0xff]  ;;  %v7041_v56 = vunpack.i.l.bf16 %v15078_v16  ;;  %v7203_v25 = vld [vmem:[%s14071_s2] sm:$0xff] }
 0x896   :  { %v2770_v39 = vadd.f32 %v2754_v14, %v2690_v6  ;;  %v12585_v47 = vadd.f32 %v3195_v13, %v12449_v63  ;;  %v12587_v9 = vadd.f32 %v3199_v12, %v3135_v58  ;;  %v3122_v22 = vmul.f32 %v15006_v18, %v15067_v33  ;;  %v15069_v13 = vld [vmem:[#allocation176_spill] sm:$0xff]  ;;  %v15070_v12 = vld [vmem:[#allocation17_spill] sm:$0xff]  ;;  %v7200_v6 = vld [vmem:[#allocation2 + $0x80] sm:$0xff] }
 0x897   :  { %v2965_v17 = vadd.f32 %v15068_v50, %v2772_v28  ;;  %5242 = vrot.lane.b32.xlu0 %v5152_v48, %s7245_s1  ;;  %v12594_v15 = vadd.f32 %v3196_v24, %v12465_v54  ;;  %v12597_v35 = vadd.f32 %v3200_v42, %v12481_v2  ;;  %v12600_v14 = vadd.f32 %v3193_v51, %v12471_v61  ;;  %v15072_v54 = vld [vmem:[#allocation168_spill] sm:$0xff]  ;;  %v15074_v42 = vld [vmem:[#allocation173_spill] sm:$0xff]  ;;  %v15103_v30 = vld [vmem:[#allocation202_spill] sm:$0xff] }
 0x898   :  { %15066 = vst [vmem:[#allocation67_spill] sm:$0xff] %v12587_v9  ;;  %v12603_v63 = vadd.f32 %v3197_v45, %v12474_v3  ;;  %v12605_v58 = vadd.f32 %v3201_v19, %v3137_v62  ;;  %v3123_v18 = vmul.f32 %v14997_v55, %v15069_v13  ;;  %5488 = vrot.lane.b32.xlu1 %v15070_v12, %s7237_s19  ;;  %v15076_v62 = vld [vmem:[#allocation175_spill] sm:$0xff]  ;;  %v12627_v45 = vpop.permute.xlu1 %5060  ;;  %v12629_v20 = vpop.permute.xlu0 %5404  ;;  %v15081_v19 = vld [vmem:[#allocation177_spill] sm:$0xff]  ;;  %v15085_v12 = vld [vmem:[#allocation20_spill] sm:$0xff] }
 0x899   :  { %v12611_v44 = vadd.f32 %v3122_v22, %v2962_v57  ;;  %v12615_v2 = vmul.f32 %v15032_v32, %v15072_v54  ;;  %v12617_v24 = vadd.f32 %v3204_v43, %v3140_v59  ;;  %v3141_v61 = vadd.f32 %v3125_v34, %v2965_v17  ;;  %v15077_v55 = vld [vmem:[#allocation35_spill] sm:$0xff]  ;;  %15079 = vst [vmem:[#allocation74_spill] sm:$0xff] %v12627_v45  ;;  %v7204_v48 = vld [vmem:[#allocation2 + $0x70] sm:$0xff]  ;;  %v15100_v1 = vld [vmem:[#allocation192_spill] sm:$0xff] }
 0x89a   :  { %v12621_v3 = vmul.f32 %v15028_v8, %v15074_v42  ;;  %v3205_v51 = vmul.f32 %v15057_v7, %v15076_v62  ;;  %v2963_v28 = vadd.f32 %v15077_v55, %v2770_v39  ;;  %15080 = vst [vmem:[#allocation56_spill] sm:$0xff] %v12629_v20  ;;  %v7199_v32 = vld [vmem:[#allocation2 + $0x40] sm:$0xff]  ;;  %v12633_v59 = vmul.f32 %v7200_v6, %v15081_v19  ;;  %v7205_v22 = vld [vmem:[#allocation2 + $0xb0] sm:$0xff]  ;;  %v15106_v45 = vld [vmem:[#allocation198_spill] sm:$0xff] }
 0x89b   :  { %15071 = vst [vmem:[#allocation63_spill] sm:$0xff] %v12611_v44  ;;  %15073 = vst [vmem:[#allocation58_spill] sm:$0xff] %v12615_v2  ;;  %v3254_v57 = vmul.f32 %v7199_v32, %v15081_v19  ;;  %v7201_v8 = vld [vmem:[#allocation2 + $0xc0] sm:$0xff]  ;;  %5575 = vperm.xlu0 %7053, %v7203_v25   ;;  %v7206_v42 = vld [vmem:[#allocation2 + $0x50] sm:$0xff] }
 0x89c   :  { %15075 = vst [vmem:[#allocation69_spill] sm:$0xff] %v12621_v3  ;;  %v12636_v29 = vmul.f32 %v7201_v8, %v15081_v19  ;;  %v7202_v7 = vld [vmem:[#allocation2 + $0x100] sm:$0xff]  ;;  %v12644_v34 = vadd.f32 %v3123_v18, %v2963_v28  ;;  %5508 = vrot.lane.b32.xlu1 %v15085_v12, %s7237_s19  ;;  %v12658_v54 = vadd.f32 %v3205_v51, %v3141_v61  ;;  %v15086_v18 = vld [vmem:[#allocation180_spill] sm:$0xff]  ;;  %v7207_v55 = vld [vmem:[#allocation2 + $0x90] sm:$0xff] }
 0x89d   :  { %v12639_v43 = vmul.f32 %v7202_v7, %v15081_v19  ;;  %v15083_v39 = vld [vmem:[#allocation179_spill] sm:$0xff]  ;;  %v3255_v62 = vmul.f32 %v7206_v42, %v15086_v18  ;;  %v3259_v28 = vmul.f32 %v7207_v55, %v15086_v18  ;;  %v7208_v32 = vld [vmem:[#allocation2 + $0x130] sm:$0xff]  ;;  %v15090_v61 = vld [vmem:[#allocation450_spill] sm:$0xff] }
 0x89e   :  { %15082 = vst [vmem:[#allocation43_spill] sm:$0xff] %v12644_v34  ;;  %v12647_v33 = vmul.f32 %v7204_v48, %v15083_v39  ;;  %v12650_v50 = vmul.f32 %v7205_v22, %v15083_v39  ;;  %v15084_v17 = vld [vmem:[#allocation19_spill] sm:$0xff]  ;;  %v3269_v19 = vmul.f32 %v7208_v32, %v15083_v39  ;;  %v15087_v6 = vld [vmem:[#allocation41_spill] sm:$0xff]  ;;  %v12666_v48 = vpop.permute.xlu1 %5412  ;;  %v12668_v22 = vpop.permute.xlu0 %5198  ;;  %v12672_v51 = vsel %vm2917_vm3, %v7041_v56, %v15090_v61  ;;  %v15091_v55 = vld [vmem:[#allocation182_spill] sm:$0xff] }
 0x89f   :  { %v12654_v13 = vmul.f32 %v15084_v17, %v15083_v39  ;;  %v3263_v8 = vmul.f32 %v15087_v6, %v15086_v18  ;;  %v7209_v7 = vld [vmem:[#allocation2 + $0x110] sm:$0xff]  ;;  %15088 = vst [vmem:[#allocation76_spill] sm:$0xff] %v12666_v48  ;;  %15089 = vst [vmem:[#allocation57_spill] sm:$0xff] %v12668_v22  ;;  %v7210_v17 = vld [vmem:[#allocation2 + $0x108] sm:$0xff]  ;;  %5424 = vrot.lane.b32.xlu0 %v12672_v51, %s7235_s17 }
 0x8a0   :  { %v3267_v25 = vmul.f32 %v7209_v7, %v15086_v18  ;;  %v5143_v12 = vmul.f32 %v7210_v17, %v11794_v53  ;;  %v7211_v42 = vld [vmem:[#allocation2 + $0x60] sm:$0xff]  ;;  %v3264_v18 = vmul.f32 %v7213_v4, %v15091_v55  ;;  %v15092_v7 = vld [vmem:[#allocation181_spill] sm:$0xff]  ;;  %v15099_v4 = vld [vmem:[#allocation188_spill] sm:$0xff] }
 0x8a1   :  { %v3256_v39 = vmul.f32 %v7211_v42, %v15091_v55  ;;  %v7212_v32 = vld [vmem:[#allocation2 + $0xa0] sm:$0xff]  ;;  %v15093_v3 = vld [vmem:[#allocation197_spill] sm:$0xff]  ;;  %v15101_v22 = vld [vmem:[#allocation196_spill] sm:$0xff] }
 0x8a2   :  { %v3260_v6 = vmul.f32 %v7212_v32, %v15091_v55  ;;  %v3319_v34 = vmul.f32 %v15093_v3, %v15092_v7  ;;  %v15094_v56 = vld [vmem:[#allocation185_spill] sm:$0xff]  ;;  %v15098_v32 = vld [vmem:[#allocation200_spill] sm:$0xff]  ;;  %5224 = vrot.lane.b32.xlu1 %v5143_v12, %s7245_s1  ;;  %v3332_v12 = vmul.f32 %v15103_v30, %v15106_v45  ;;  %v12705_v52 = vpop.permute.xlu1 %5200 }
 0x8a3   :  { %v3323_v61 = vmul.f32 %v15093_v3, %v15094_v56  ;;  %v15095_v2 = vld [vmem:[#allocation189_spill] sm:$0xff]  ;;  %v3318_v41 = vmul.f32 %v15098_v32, %v15097_v37  ;;  %v3322_v7 = vmul.f32 %v15098_v32, %v15099_v4  ;;  %v3326_v38 = vmul.f32 %v15098_v32, %v15100_v1  ;;  %15107 = vst [vmem:[#allocation45_spill] sm:$0xff] %v12705_v52  ;;  %v12707_v4 = vpop.permute.xlu0 %5214  ;;  %v7214_v1 = vld [vmem:[#allocation2 + $0x158] sm:$0xff]  ;;  %v15110_v48 = vld [vmem:[#allocation204_spill] sm:$0xff] }
 0x8a4   :  { %v3327_v17 = vmul.f32 %v15093_v3, %v15095_v2  ;;  %v15096_v44 = vld [vmem:[#allocation193_spill] sm:$0xff]  ;;  %v3330_v56 = vmul.f32 %v15098_v32, %v15101_v22  ;;  %v3320_v2 = vmul.f32 %v15103_v30, %v15102_v46  ;;  %15108 = vst [vmem:[#allocation62_spill] sm:$0xff] %v12707_v4  ;;  %v5153_v31 = vmul.f32 %v7214_v1, %v11777_v26  ;;  %v7215_v22 = vld [vmem:[#allocation2 + $0x120] sm:$0xff] }
 0x8a5   :  { %v3331_v42 = vmul.f32 %v15093_v3, %v15096_v44  ;;  %v3324_v44 = vmul.f32 %v15103_v30, %v15104_v49  ;;  %v15105_v3 = vld [vmem:[#allocation194_spill] sm:$0xff]  ;;  %v3268_v32 = vmul.f32 %v7215_v22, %v15091_v55  ;;  %v15109_v46 = vld [vmem:[#allocation183_spill] sm:$0xff]  ;;  %5486 = vrot.lane.b32.xlu0 %v12520_v36, %s7237_s19  ;;  %v3339_v45 = vadd.f32 %v3323_v61, %v3259_v28 }
 0x8a6   :  { %v3328_v37 = vmul.f32 %v15103_v30, %v15105_v3  ;;  %v3321_v5 = vmul.f32 %v15110_v48, %v15109_v46  ;;  %v15111_v49 = vld [vmem:[#allocation195_spill] sm:$0xff]  ;;  %v3335_v3 = vadd.f32 %v3319_v34, %v3255_v62  ;;  %v3334_v30 = vadd.f32 %v3318_v41, %v3254_v57  ;;  %5244 = vrot.lane.b32.xlu1 %v5153_v31, %s7245_s1  ;;  %v12727_v41 = vpop.permute.xlu1 %5216 }
 0x8a7   :  { %v3333_v60 = vmul.f32 %v15110_v48, %v15111_v49  ;;  %v3343_v52 = vadd.f32 %v3327_v17, %v3263_v8  ;;  %v3347_v4 = vadd.f32 %v3331_v42, %v3267_v25  ;;  %v3336_v26 = vadd.f32 %v3320_v2, %v3256_v39  ;;  %v15112_v46 = vld [vmem:[#allocation187_spill] sm:$0xff]  ;;  %15113 = vst [vmem:[#allocation60_spill] sm:$0xff] %v12727_v41  ;;  %v12729_v57 = vpop.permute.xlu0 %5234  ;;  %v15119_v39 = vld [vmem:[#allocation218_spill] sm:$0xff]  ;;  %v15121_v17 = vld [vmem:[#allocation208_spill] sm:$0xff] }
 0x8a8   :  { %v3338_v1 = vadd.f32 %v3322_v7, %v12633_v59  ;;  %v3342_v55 = vadd.f32 %v3326_v38, %v12636_v29  ;;  %v3346_v22 = vadd.f32 %v3330_v56, %v12639_v43  ;;  %v3325_v49 = vmul.f32 %v15110_v48, %v15112_v46  ;;  %15114 = vst [vmem:[#allocation65_spill] sm:$0xff] %v12729_v57  ;;  %v15115_v31 = vld [vmem:[#allocation191_spill] sm:$0xff]  ;;  %v15117_v43 = vld [vmem:[#allocation448_spill] sm:$0xff]  ;;  %v15125_v7 = vld [vmem:[#allocation210_spill] sm:$0xff] }
 0x8a9   :  { %v3340_v34 = vadd.f32 %v3324_v44, %v3260_v6  ;;  %v12723_v62 = vadd.f32 %v3328_v37, %v3264_v18  ;;  %v12725_v36 = vadd.f32 %v3332_v12, %v3268_v32  ;;  %v3329_v28 = vmul.f32 %v15110_v48, %v15115_v31  ;;  %v15116_v29 = vld [vmem:[#allocation447_spill] sm:$0xff]  ;;  %5506 = vrot.lane.b32.xlu0 %v12560_v23, %s7237_s19  ;;  %v15122_v48 = vld [vmem:[#allocation213_spill] sm:$0xff]  ;;  %v15126_v56 = vld [vmem:[#allocation214_spill] sm:$0xff] }
 0x8aa   :  { %v3349_v59 = vadd.f32 %v3333_v60, %v3269_v19  ;;  %v3337_v38 = vadd.f32 %v3321_v5, %v12647_v33  ;;  %v5374_v8 = vsel %vm2917_vm3, %v15117_v43, %v15116_v29  ;;  %v15118_v25 = vld [vmem:[#allocation199_spill] sm:$0xff]  ;;  %v3406_v42 = vmul.f32 %v15119_v39, %v15121_v17  ;;  %v15124_v33 = vld [vmem:[#allocation221_spill] sm:$0xff]  ;;  %v7216_v44 = vld [vmem:[#allocation2 + $0x148] sm:$0xff]  ;;  %v12763_v17 = vpop.permute.xlu1 %5236 }
 0x8ab   :  { %v3398_v6 = vmul.f32 %v15119_v39, %v15118_v25  ;;  %v15120_v18 = vld [vmem:[#allocation203_spill] sm:$0xff]  ;;  %v3410_v60 = vmul.f32 %v15119_v39, %v15122_v48  ;;  %5414 = vrot.lane.b32.xlu1 %v5374_v8, %s7235_s17  ;;  %v3405_v23 = vmul.f32 %v15124_v33, %v15125_v7  ;;  %v3409_v2 = vmul.f32 %v15124_v33, %v15126_v56  ;;  %v15127_v12 = vld [vmem:[#allocation217_spill] sm:$0xff]  ;;  %v12765_v48 = vpop.permute.xlu0 %5431  ;;  %v15135_v7 = vld [vmem:[#allocation220_spill] sm:$0xff] }
 0x8ac   :  { %v3402_v61 = vmul.f32 %v15119_v39, %v15120_v18  ;;  %v15123_v5 = vld [vmem:[#allocation207_spill] sm:$0xff]  ;;  %v5151_v37 = vmul.f32 %v7216_v44, %v11794_v53  ;;  %v3413_v32 = vmul.f32 %v15124_v33, %v15127_v12  ;;  %v15128_v46 = vld [vmem:[#allocation205_spill] sm:$0xff]  ;;  %v15131_v39 = vld [vmem:[#allocation212_spill] sm:$0xff]  ;;  %15132 = vst [vmem:[#allocation59_spill] sm:$0xff] %v12763_v17  ;;  %v3341_v44 = vadd.f32 %v3325_v49, %v12650_v50 }
 0x8ad   :  { %v3401_v19 = vmul.f32 %v15124_v33, %v15123_v5  ;;  %v15129_v31 = vld [vmem:[#allocation219_spill] sm:$0xff]  ;;  %v15130_v43 = vld [vmem:[#allocation209_spill] sm:$0xff]  ;;  %15133 = vst [vmem:[#allocation64_spill] sm:$0xff] %v12765_v48  ;;  %v3345_v33 = vadd.f32 %v3329_v28, %v12654_v13  ;;  %v15137_v57 = vld [vmem:[#allocation206_spill] sm:$0xff]  ;;  %v3422_v17 = vadd.f32 %v3406_v42, %v3342_v55  ;;  %v3426_v50 = vadd.f32 %v3410_v60, %v3346_v22 }
 0x8ae   :  { %v3399_v29 = vmul.f32 %v15129_v31, %v15128_v46  ;;  %v3403_v25 = vmul.f32 %v15129_v31, %v15130_v43  ;;  %v3407_v18 = vmul.f32 %v15129_v31, %v15131_v39  ;;  %v15134_v5 = vld [vmem:[#allocation201_spill] sm:$0xff]  ;;  %v15136_v12 = vld [vmem:[#allocation215_spill] sm:$0xff]  ;;  %5240 = vrot.lane.b32.xlu0 %v5151_v37, %s7245_s1  ;;  %v3414_v43 = vadd.f32 %v3398_v6, %v3334_v30  ;;  %v15142_v6 = vld [vmem:[#allocation216_spill] sm:$0xff] }
 0x8af   :  { %v3400_v56 = vmul.f32 %v15135_v7, %v15134_v5  ;;  %v3411_v46 = vmul.f32 %v15129_v31, %v15136_v12  ;;  %v3418_v41 = vadd.f32 %v3402_v61, %v3338_v1  ;;  %v3404_v39 = vmul.f32 %v15135_v7, %v15137_v57  ;;  %v15138_v48 = vld [vmem:[#allocation31_spill] sm:$0xff]  ;;  %v12778_v31 = vpop.permute.xlu1 %5515  ;;  %v12780_v37 = vpop.permute.xlu0 %4966  ;;  %v15159_v12 = vld [vmem:[#allocation453_spill] sm:$0xff] }
 0x8b0   :  { %5478 = vrot.lane.b32.xlu1 %v15138_v48, %s7237_s19  ;;  %v3417_v20 = vadd.f32 %v3401_v19, %v3337_v38  ;;  %v3421_v5 = vadd.f32 %v3405_v23, %v3341_v44  ;;  %v3425_v11 = vadd.f32 %v3409_v2, %v3345_v33  ;;  %v3429_v49 = vadd.f32 %v3413_v32, %v3349_v59  ;;  %v15141_v1 = vld [vmem:[#allocation211_spill] sm:$0xff]  ;;  %v15143_v38 = vld [vmem:[#allocation222_spill] sm:$0xff]  ;;  %v15149_v23 = vld [vmem:[#allocation228_spill] sm:$0xff] }
 0x8b1   :  { %v3415_v13 = vadd.f32 %v3399_v29, %v3335_v3  ;;  %v3419_v28 = vadd.f32 %v3403_v25, %v3339_v45  ;;  %v3423_v9 = vadd.f32 %v3407_v18, %v3343_v52  ;;  %15139 = vst [vmem:[#allocation61_spill] sm:$0xff] %v12778_v31  ;;  %15140 = vst [vmem:[#allocation90_spill] sm:$0xff] %v12780_v37  ;;  %v15144_v22 = vld [vmem:[#allocation223_spill] sm:$0xff]  ;;  %v15145_v45 = vld [vmem:[#allocation224_spill] sm:$0xff] }
 0x8b2   :  { %v3416_v30 = vadd.f32 %v3400_v56, %v3336_v26  ;;  %v3408_v57 = vmul.f32 %v15135_v7, %v15141_v1  ;;  %v3427_v55 = vadd.f32 %v3411_v46, %v3347_v4  ;;  %v3412_v61 = vmul.f32 %v15135_v7, %v15142_v6  ;;  %5494 = vrot.lane.b32.xlu0 %v5374_v8, %s7237_s19  ;;  %v15146_v52 = vld [vmem:[#allocation225_spill] sm:$0xff]  ;;  %v15147_v4 = vld [vmem:[#allocation226_spill] sm:$0xff]  ;;  %v15148_v60 = vld [vmem:[#allocation227_spill] sm:$0xff] }
 0x8b3   :  { %v3606_v3 = vsel %vm2436_vm1, %v15144_v22, %v15143_v38  ;;  %v3607_v59 = vsel %vm2436_vm1, %v15146_v52, %v15145_v45  ;;  %v3420_v42 = vadd.f32 %v3404_v39, %v3340_v34  ;;  %v7042_v26 = vunpack.i.h.bf16 %v15078_v16  ;;  %v15150_v8 = vld [vmem:[#allocation229_spill] sm:$0xff]  ;;  %v15151_v32 = vld [vmem:[#allocation230_spill] sm:$0xff]  ;;  %v15152_v29 = vld [vmem:[#allocation231_spill] sm:$0xff]  ;;  %v12816_v39 = vpop.permute.xlu0 %5030  ;;  %v12822_v52 = vpop.permute.xlu1 %5587 }
 0x8b4   :  { %5496 = vrot.lane.b32.xlu1 %v12440_v40, %s7237_s19  ;;  %v3608_v19 = vsel %vm2436_vm1, %v15148_v60, %v15147_v4  ;;  %v3609_v2 = vsel %vm2436_vm1, %v15150_v8, %v15149_v23  ;;  %v3610_v25 = vsel %vm2436_vm1, %v15152_v29, %v15151_v32  ;;  %v15153_v18 = vld [vmem:[#allocation232_spill] sm:$0xff]  ;;  %v15154_v48 = vld [vmem:[#allocation233_spill] sm:$0xff]  ;;  %v15155_v16 = vld [vmem:[#allocation234_spill] sm:$0xff]  ;;  %15160 = vst [vmem:[#allocation66_spill] sm:$0xff] %v12816_v39 }
 0x8b5   :  { %v3611_v34 = vsel %vm2436_vm1, %v15154_v48, %v15153_v18  ;;  %v15156_v7 = vld [vmem:[#allocation235_spill] sm:$0xff]  ;;  %v15157_v56 = vld [vmem:[#allocation236_spill] sm:$0xff]  ;;  %v15158_v44 = vld [vmem:[#allocation237_spill] sm:$0xff]  ;;  %v5378_v46 = vsel %vm2917_vm3, %v7042_v26, %v15159_v12  ;;  %v5150_v1 = vmul.f32 %v14966_v10, %v11794_v53  ;;  %v3638_v6 = vadd.f32 %v3606_v3, %v3414_v43 }
 0x8b6   :  { %v3612_v40 = vsel %vm2436_vm1, %v15156_v7, %v15155_v16  ;;  %v3613_v33 = vsel %vm2436_vm1, %v15158_v44, %v15157_v56  ;;  %v3639_v38 = vadd.f32 %v3607_v59, %v3415_v13  ;;  %v3424_v22 = vadd.f32 %v3408_v57, %v12723_v62  ;;  %5502 = vrot.lane.b32.xlu0 %v5378_v46, %s7237_s19  ;;  %v15161_v29 = vld [vmem:[#allocation238_spill] sm:$0xff]  ;;  %v15162_v53 = vld [vmem:[#allocation239_spill] sm:$0xff]  ;;  %v15163_v43 = vld [vmem:[#allocation240_spill] sm:$0xff] }
 0x8b7   :  { %v3428_v45 = vadd.f32 %v3412_v61, %v12725_v36  ;;  %v3640_v4 = vadd.f32 %v3608_v19, %v3416_v30  ;;  %v3641_v60 = vadd.f32 %v3609_v2, %v3417_v20  ;;  %v3642_v23 = vadd.f32 %v3610_v25, %v3418_v41  ;;  %v15164_v62 = vld [vmem:[#allocation241_spill] sm:$0xff]  ;;  %v15165_v13 = vld [vmem:[#allocation242_spill] sm:$0xff]  ;;  %v15166_v57 = vld [vmem:[#allocation243_spill] sm:$0xff]  ;;  %v12844_v2 = vpop.permute.xlu0 %5048 }
 0x8b8   :  { %v3643_v8 = vadd.f32 %v3611_v34, %v3419_v28  ;;  %5238 = vrot.lane.b32.xlu1 %v5150_v1, %s7245_s1  ;;  %v3644_v26 = vadd.f32 %v3612_v40, %v3420_v42  ;;  %v3645_v32 = vadd.f32 %v3613_v33, %v3421_v5  ;;  %v3614_v10 = vsel %vm2436_vm1, %v15162_v53, %v15161_v29  ;;  %v15167_v30 = vld [vmem:[#allocation244_spill] sm:$0xff]  ;;  %v15168_v20 = vld [vmem:[#allocation245_spill] sm:$0xff]  ;;  %v15169_v28 = vld [vmem:[#allocation246_spill] sm:$0xff]  ;;  %v12856_v1 = vpop.permute.xlu1 %4976 }
 0x8b9   :  { %v3615_v36 = vsel %vm2436_vm1, %v15164_v62, %v15163_v43  ;;  %v3616_v61 = vsel %vm2436_vm1, %v15166_v57, %v15165_v13  ;;  %v3617_v41 = vsel %vm2436_vm1, %v15168_v20, %v15167_v30  ;;  %v15170_v3 = vld [vmem:[#allocation247_spill] sm:$0xff]  ;;  %v15171_v59 = vld [vmem:[#allocation248_spill] sm:$0xff]  ;;  %v15172_v42 = vld [vmem:[#allocation249_spill] sm:$0xff]  ;;  %15173 = vst [vmem:[#allocation92_spill] sm:$0xff] %v12844_v2  ;;  %v3646_v29 = vadd.f32 %v3614_v10, %v3422_v17 }
 0x8ba   :  { %v3618_v5 = vsel %vm2436_vm1, %v15170_v3, %v15169_v28  ;;  %v3619_v19 = vsel %vm2436_vm1, %v15172_v42, %v15171_v59  ;;  %v15174_v25 = vld [vmem:[#allocation250_spill] sm:$0xff]  ;;  %v15175_v18 = vld [vmem:[#allocation251_spill] sm:$0xff]  ;;  %v15176_v34 = vld [vmem:[#allocation252_spill] sm:$0xff]  ;;  %15181 = vst [vmem:[#allocation68_spill] sm:$0xff] %v12856_v1  ;;  %v3647_v53 = vadd.f32 %v3615_v36, %v3423_v9  ;;  %v3648_v30 = vadd.f32 %v3616_v61, %v3424_v22 }
 0x8bb   :  { %v3620_v48 = vsel %vm2436_vm1, %v15175_v18, %v15174_v25  ;;  %v15177_v16 = vld [vmem:[#allocation253_spill] sm:$0xff]  ;;  %v15178_v40 = vld [vmem:[#allocation254_spill] sm:$0xff]  ;;  %v3649_v20 = vadd.f32 %v3617_v41, %v3425_v11  ;;  %v3650_v28 = vadd.f32 %v3618_v5, %v3426_v50  ;;  %v3651_v3 = vadd.f32 %v3619_v19, %v3427_v55  ;;  %v15184_v25 = vld [vmem:[#allocation255_spill] sm:$0xff]  ;;  %v12867_v17 = vpop.permute.xlu0 %5402 }
 0x8bc   :  { %v3621_v7 = vsel %vm2436_vm1, %v15177_v16, %v15176_v34  ;;  %v15179_v56 = vld [vmem:[#allocation270_spill] sm:$0xff]  ;;  %5422 = vrot.lane.b32.xlu1 %v5378_v46, %s7235_s17  ;;  %v3652_v59 = vadd.f32 %v3620_v48, %v3428_v45  ;;  %v15185_v18 = vld [vmem:[#allocation271_spill] sm:$0xff]  ;;  %v12873_v50 = vpop.permute.xlu1 %5038  ;;  %v15190_v55 = vld [vmem:[#allocation257_spill] sm:$0xff] }
 0x8bd   :  { %v3830_v44 = vmul.f32 %v15179_v56, %v15178_v40  ;;  %v15180_v33 = vld [vmem:[#allocation258_spill] sm:$0xff]  ;;  %v3653_v42 = vadd.f32 %v3621_v7, %v3429_v49  ;;  %v3831_v34 = vmul.f32 %v15185_v18, %v15184_v25  ;;  %v15186_v16 = vld [vmem:[#allocation259_spill] sm:$0xff]  ;;  %15189 = vst [vmem:[#allocation75_spill] sm:$0xff] %v12873_v50  ;;  %v15191_v49 = vld [vmem:[#allocation272_spill] sm:$0xff] }
 0x8be   :  { %v3834_v12 = vmul.f32 %v15179_v56, %v15180_v33  ;;  %v15182_v43 = vld [vmem:[#allocation262_spill] sm:$0xff]  ;;  %v3835_v9 = vmul.f32 %v15185_v18, %v15186_v16  ;;  %v15187_v10 = vld [vmem:[#allocation263_spill] sm:$0xff]  ;;  %v3833_v45 = vmul.f32 %v15191_v49, %v15190_v55  ;;  %v15192_v61 = vld [vmem:[#allocation261_spill] sm:$0xff] }
 0x8bf   :  { %v3838_v62 = vmul.f32 %v15179_v56, %v15182_v43  ;;  %v15183_v13 = vld [vmem:[#allocation266_spill] sm:$0xff]  ;;  %v3839_v36 = vmul.f32 %v15185_v18, %v15187_v10  ;;  %v15188_v40 = vld [vmem:[#allocation267_spill] sm:$0xff]  ;;  %v3846_v22 = vadd.f32 %v3830_v44, %v3638_v6  ;;  %v3837_v41 = vmul.f32 %v15191_v49, %v15192_v61  ;;  %v15193_v48 = vld [vmem:[#allocation265_spill] sm:$0xff] }
 0x8c0   :  { %v3842_v57 = vmul.f32 %v15179_v56, %v15183_v13  ;;  %v3843_v46 = vmul.f32 %v15185_v18, %v15188_v40  ;;  %v3850_v11 = vadd.f32 %v3834_v12, %v3642_v23  ;;  %5504 = vrot.lane.b32.xlu1 %v12672_v51, %s7237_s19  ;;  %v3841_v7 = vmul.f32 %v15191_v49, %v15193_v48  ;;  %v15194_v56 = vld [vmem:[#allocation269_spill] sm:$0xff]  ;;  %v15195_v23 = vld [vmem:[#allocation256_spill] sm:$0xff]  ;;  %v15200_v18 = vld [vmem:[#allocation274_spill] sm:$0xff]  ;;  %v12899_v48 = vpop.permute.xlu1 %5058 }
 0x8c1   :  { %v3854_v5 = vadd.f32 %v3838_v62, %v3646_v29  ;;  %v3845_v6 = vmul.f32 %v15191_v49, %v15194_v56  ;;  %v15196_v44 = vld [vmem:[#allocation273_spill] sm:$0xff]  ;;  %v15197_v12 = vld [vmem:[#allocation260_spill] sm:$0xff]  ;;  %v3851_v51 = vadd.f32 %v3835_v9, %v3643_v8  ;;  %v15201_v16 = vld [vmem:[#allocation290_spill] sm:$0xff]  ;;  %v3855_v49 = vadd.f32 %v3839_v36, %v3647_v53  ;;  %15203 = vst [vmem:[#allocation77_spill] sm:$0xff] %v12899_v48 }
 0x8c2   :  { %v3858_v19 = vadd.f32 %v3842_v57, %v3650_v28  ;;  %v3832_v33 = vmul.f32 %v15196_v44, %v15195_v23  ;;  %v3836_v43 = vmul.f32 %v15196_v44, %v15197_v12  ;;  %v15198_v13 = vld [vmem:[#allocation264_spill] sm:$0xff]  ;;  %v3847_v57 = vadd.f32 %v3831_v34, %v3639_v38  ;;  %v12893_v28 = vpop.permute.xlu0 %5420  ;;  %v15202_v40 = vld [vmem:[#allocation278_spill] sm:$0xff]  ;;  %v15210_v53 = vld [vmem:[#allocation275_spill] sm:$0xff] }
 0x8c3   :  { %v3840_v25 = vmul.f32 %v15196_v44, %v15198_v13  ;;  %v15199_v29 = vld [vmem:[#allocation268_spill] sm:$0xff]  ;;  %v3911_v10 = vmul.f32 %v15201_v16, %v15200_v18  ;;  %v3915_v55 = vmul.f32 %v15201_v16, %v15202_v40  ;;  %v3859_v61 = vadd.f32 %v3843_v46, %v3651_v3  ;;  %v15204_v12 = vld [vmem:[#allocation282_spill] sm:$0xff]  ;;  %v15211_v3 = vld [vmem:[#allocation291_spill] sm:$0xff] }
 0x8c4   :  { %v3844_v62 = vmul.f32 %v15196_v44, %v15199_v29  ;;  %v3849_v56 = vadd.f32 %v3833_v45, %v3641_v60  ;;  %v3853_v23 = vadd.f32 %v3837_v41, %v3645_v32  ;;  %v3919_v13 = vmul.f32 %v15201_v16, %v15204_v12  ;;  %v15205_v44 = vld [vmem:[#allocation286_spill] sm:$0xff]  ;;  %v15206_v18 = vld [vmem:[#allocation8_spill] sm:$0xff]  ;;  %v15212_v32 = vld [vmem:[#allocation279_spill] sm:$0xff] }
 0x8c5   :  { %v3923_v38 = vmul.f32 %v15201_v16, %v15205_v44  ;;  %v3848_v8 = vadd.f32 %v3832_v33, %v3640_v4  ;;  %v3852_v34 = vadd.f32 %v3836_v43, %v3644_v26  ;;  %v3857_v9 = vadd.f32 %v3841_v7, %v3649_v20  ;;  %v15213_v20 = vld [vmem:[#allocation283_spill] sm:$0xff]  ;;  %v15215_v33 = vld [vmem:[#allocation277_spill] sm:$0xff]  ;;  %v15216_v43 = vld [vmem:[#allocation292_spill] sm:$0xff] }
 0x8c6   :  { %v3861_v29 = vadd.f32 %v3845_v6, %v3653_v42  ;;  %v15207_v1 = vand.u32 15, %v15206_v18  ;;  %v3910_v60 = vmul.f32 %v15211_v3, %v15210_v53  ;;  %v3914_v36 = vmul.f32 %v15211_v3, %v15212_v32  ;;  %v12915_v41 = vpop.permute.xlu0 %5492  ;;  %v15214_v7 = vld [vmem:[#allocation287_spill] sm:$0xff]  ;;  %v12921_v6 = vpop.permute.xlu1 %5410  ;;  %v15217_v12 = vld [vmem:[#allocation281_spill] sm:$0xff]  ;;  %v15229_v2 = vld [vmem:[#allocation296_spill] sm:$0xff] }
 0x8c7   :  { %v3856_v46 = vadd.f32 %v3840_v25, %v3648_v30  ;;  %v3860_v45 = vadd.f32 %v3844_v62, %v3652_v59  ;;  %v3927_v4 = vadd.f32 %v3911_v10, %v3847_v57  ;;  %v3931_v26 = vadd.f32 %v3915_v55, %v3851_v51  ;;  %v15218_v25 = vld [vmem:[#allocation276_spill] sm:$0xff]  ;;  %v15219_v62 = vld [vmem:[#allocation293_spill] sm:$0xff] }
 0x8c8   :  { %vm12907_vm4 = vcmp.lt.s32.totalorder %v15207_v1, 8  ;;  %v3918_v42 = vmul.f32 %v15211_v3, %v15213_v20  ;;  %v3922_v1 = vmul.f32 %v15211_v3, %v15214_v7  ;;  %v3912_v16 = vmul.f32 %v15216_v43, %v15215_v33  ;;  %v15220_v51 = vld [vmem:[#allocation280_spill] sm:$0xff]  ;;  %v15221_v55 = vld [vmem:[#allocation285_spill] sm:$0xff] }
 0x8c9   :  { %v3916_v44 = vmul.f32 %v15216_v43, %v15217_v12  ;;  %v3935_v30 = vadd.f32 %v3919_v13, %v3855_v49  ;;  %v3939_v59 = vadd.f32 %v3923_v38, %v3859_v61  ;;  %v3913_v57 = vmul.f32 %v15219_v62, %v15218_v25  ;;  %v15222_v53 = vld [vmem:[#allocation289_spill] sm:$0xff]  ;;  %v15223_v7 = vld [vmem:[#allocation284_spill] sm:$0xff]  ;;  %v15226_v13 = vld [vmem:[#allocation295_spill] sm:$0xff] }
 0x8ca   :  { %v3917_v10 = vmul.f32 %v15219_v62, %v15220_v51  ;;  %v3920_v18 = vmul.f32 %v15216_v43, %v15221_v55  ;;  %v3924_v3 = vmul.f32 %v15216_v43, %v15222_v53  ;;  %v3926_v32 = vadd.f32 %v3910_v60, %v3846_v22  ;;  %v15224_v12 = vld [vmem:[#allocation288_spill] sm:$0xff]  ;;  %v12939_v61 = vpop.permute.xlu0 %5196  ;;  %v15227_v38 = vld [vmem:[#allocation294_spill] sm:$0xff]  ;;  %v15228_v51 = vld [vmem:[#allocation297_spill] sm:$0xff]  ;;  %v12947_v22 = vpop.permute.xlu1 %5484 }
 0x8cb   :  { %v3930_v20 = vadd.f32 %v3914_v36, %v3850_v11  ;;  %v3921_v33 = vmul.f32 %v15219_v62, %v15223_v7  ;;  %v3925_v49 = vmul.f32 %v15219_v62, %v15224_v12  ;;  %15225 = vst [vmem:[#allocation78_spill] sm:$0xff] %v12939_v61  ;;  %v4086_v25 = vsel %vm2917_vm3, %v15227_v38, %v15226_v13  ;;  %v15230_v60 = vld [vmem:[#allocation299_spill] sm:$0xff]  ;;  %v15231_v36 = vld [vmem:[#allocation298_spill] sm:$0xff]  ;;  %v15232_v62 = vld [vmem:[#allocation301_spill] sm:$0xff] }
 0x8cc   :  { %v4087_v55 = vsel %vm2917_vm3, %v15229_v2, %v15228_v51  ;;  %v3934_v39 = vadd.f32 %v3918_v42, %v3854_v5  ;;  %v3938_v43 = vadd.f32 %v3922_v1, %v3858_v19  ;;  %v3928_v11 = vadd.f32 %v3912_v16, %v3848_v8  ;;  %v15233_v7 = vld [vmem:[#allocation300_spill] sm:$0xff]  ;;  %v15234_v16 = vld [vmem:[#allocation303_spill] sm:$0xff]  ;;  %v15235_v51 = vld [vmem:[#allocation302_spill] sm:$0xff] }
 0x8cd   :  { %v4088_v53 = vsel %vm2917_vm3, %v15231_v36, %v15230_v60  ;;  %v4089_v12 = vsel %vm2917_vm3, %v15233_v7, %v15232_v62  ;;  %v3932_v61 = vadd.f32 %v3916_v44, %v3852_v34  ;;  %v3929_v37 = vadd.f32 %v3913_v57, %v3849_v56  ;;  %v15236_v36 = vld [vmem:[#allocation305_spill] sm:$0xff]  ;;  %v15237_v34 = vld [vmem:[#allocation304_spill] sm:$0xff]  ;;  %v15244_v57 = vld [vmem:[#allocation310_spill] sm:$0xff] }
 0x8ce   :  { %v3933_v13 = vadd.f32 %v3917_v10, %v3853_v23  ;;  %v3936_v38 = vadd.f32 %v3920_v18, %v3856_v46  ;;  %v3940_v48 = vadd.f32 %v3924_v3, %v3860_v45  ;;  %v4118_v50 = vadd.f32 %v4086_v25, %v3926_v32  ;;  %v12957_v42 = vpop.permute.xlu0 %5212  ;;  %v12967_v23 = vpop.permute.xlu1 %5194  ;;  %v15239_v46 = vld [vmem:[#allocation307_spill] sm:$0xff]  ;;  %v15240_v45 = vld [vmem:[#allocation306_spill] sm:$0xff]  ;;  %v15246_v32 = vld [vmem:[#allocation313_spill] sm:$0xff] }
 0x8cf   :  { %v12955_v2 = vadd.f32 %v4087_v55, %v3927_v4  ;;  %v3937_v5 = vadd.f32 %v3921_v33, %v3857_v9  ;;  %v3941_v19 = vadd.f32 %v3925_v49, %v3861_v29  ;;  %v4120_v8 = vadd.f32 %v4088_v53, %v3928_v11  ;;  %15238 = vst [vmem:[#allocation70_spill] sm:$0xff] %v12967_v23  ;;  %v15241_v29 = vld [vmem:[#allocation309_spill] sm:$0xff]  ;;  %v15242_v4 = vld [vmem:[#allocation308_spill] sm:$0xff]  ;;  %v12978_v18 = vld [vmem:[#allocation2 + $0x20] sm:$0xff] }
 0x8d0   :  { %v12959_v1 = vadd.f32 %v4089_v12, %v3929_v37  ;;  %v4090_v60 = vsel %vm2917_vm3, %v15235_v51, %v15234_v16  ;;  %v4091_v56 = vsel %vm2917_vm3, %v15237_v34, %v15236_v36  ;;  %v4092_v9 = vsel %vm2917_vm3, %v15240_v45, %v15239_v46  ;;  %v15243_v37 = vld [vmem:[#allocation311_spill] sm:$0xff]  ;;  %v15247_v33 = vld [vmem:[#allocation312_spill] sm:$0xff]  ;;  %v15249_v55 = vld [vmem:[#allocation314_spill] sm:$0xff] }
 0x8d1   :  { %v4093_v44 = vsel %vm2917_vm3, %v15242_v4, %v15241_v29  ;;  %v4094_v10 = vsel %vm2917_vm3, %v15244_v57, %v15243_v37  ;;  %v12983_v3 = vsel %vm12907_vm4, 1.0, %v12978_v18  ;;  %v4095_v49 = vsel %vm2917_vm3, %v15247_v33, %v15246_v32  ;;  %v15248_v25 = vld [vmem:[#allocation315_spill] sm:$0xff]  ;;  %v15250_v53 = vld [vmem:[#allocation317_spill] sm:$0xff]  ;;  %v15251_v62 = vld [vmem:[#allocation316_spill] sm:$0xff] }
 0x8d2   :  { %15245 = vst [vmem:[#allocation79_spill] sm:$0xff] %v12983_v3  ;;  %v4096_v11 = vsel %vm2917_vm3, %v15249_v55, %v15248_v25  ;;  %v4097_v7 = vsel %vm2917_vm3, %v15251_v62, %v15250_v53  ;;  %v14279_v12 = vmov 28   ;;  %v4122_v40 = vadd.f32 %v4090_v60, %v3930_v20  ;;  %v15252_v51 = vld [vmem:[#allocation319_spill] sm:$0xff]  ;;  %v15253_v36 = vld [vmem:[#allocation318_spill] sm:$0xff]  ;;  %v15254_v46 = vld [vmem:[#allocation321_spill] sm:$0xff]  ;;  %v13002_v4 = vpop.permute.xlu0 %5232  ;;  %v13007_v53 = vpop.permute.xlu1 %5210 }
 0x8d3   :  { %7054 = vset.pattern.permute.xlu0 %v14279_v12  ;;  %7055 = vset.pattern.permute.xlu1 %v14279_v12  ;;  %v4123_v16 = vadd.f32 %v4091_v56, %v3931_v26  ;;  %v4098_v34 = vsel %vm2917_vm3, %v15253_v36, %v15252_v51  ;;  %v15255_v45 = vld [vmem:[#allocation320_spill] sm:$0xff]  ;;  %v4124_v37 = vadd.f32 %v4092_v9, %v3932_v61  ;;  %v15256_v33 = vld [vmem:[#allocation323_spill] sm:$0xff]  ;;  %v15257_v25 = vld [vmem:[#allocation322_spill] sm:$0xff] }
 0x8d4   :  { %v4099_v29 = vsel %vm2917_vm3, %v15255_v45, %v15254_v46  ;;  %v4125_v57 = vadd.f32 %v4093_v44, %v3933_v13  ;;  %v4126_v32 = vadd.f32 %v4094_v10, %v3934_v39  ;;  %v4100_v55 = vsel %vm2917_vm3, %v15257_v25, %v15256_v33  ;;  %v15258_v56 = vld [vmem:[#allocation326_spill] sm:$0xff]  ;;  %v15261_v46 = vld [vmem:[#allocation325_spill] sm:$0xff]  ;;  %v15262_v45 = vld [vmem:[#allocation324_spill] sm:$0xff] }
 0x8d5   :  { %v4127_v26 = vadd.f32 %v4095_v49, %v3935_v30  ;;  %v4128_v20 = vadd.f32 %v4096_v11, %v3936_v38  ;;  %v4129_v60 = vadd.f32 %v4097_v7, %v3937_v5  ;;  %v15259_v62 = vld [vmem:[#allocation342_spill] sm:$0xff]  ;;  %v4130_v36 = vadd.f32 %v4098_v34, %v3938_v43  ;;  %v15266_v5 = vld [vmem:[#allocation328_spill] sm:$0xff]  ;;  %v15267_v49 = vld [vmem:[#allocation343_spill] sm:$0xff] }
 0x8d6   :  { %v4278_v51 = vmul.f32 %v15259_v62, %v15258_v56  ;;  %v13011_v12 = vadd.f32 %v4099_v29, %v3939_v59  ;;  %v4101_v61 = vsel %vm2917_vm3, %v15262_v45, %v15261_v46  ;;  %v15263_v39 = vld [vmem:[#allocation330_spill] sm:$0xff]  ;;  %v4132_v9 = vadd.f32 %v4100_v55, %v3940_v48  ;;  %v13024_v43 = vpop.permute.xlu0 %5252  ;;  %v15269_v59 = vld [vmem:[#allocation332_spill] sm:$0xff]  ;;  %v15272_v25 = vld [vmem:[#allocation327_spill] sm:$0xff]  ;;  %v13034_v46 = vpop.permute.xlu1 %5230 }
 0x8d7   :  { %v4282_v13 = vmul.f32 %v15259_v62, %v15263_v39  ;;  %v15264_v44 = vld [vmem:[#allocation334_spill] sm:$0xff]  ;;  %v4280_v11 = vmul.f32 %v15267_v49, %v15266_v5  ;;  %15268 = vst [vmem:[#allocation95_spill] sm:$0xff] %v13024_v43  ;;  %v4284_v7 = vmul.f32 %v15267_v49, %v15269_v59  ;;  %v15270_v34 = vld [vmem:[#allocation336_spill] sm:$0xff]  ;;  %v15274_v39 = vld [vmem:[#allocation331_spill] sm:$0xff] }
 0x8d8   :  { %15260 = vst [vmem:[#allocation71_spill] sm:$0xff] %v13011_v12  ;;  %v4286_v10 = vmul.f32 %v15259_v62, %v15264_v44  ;;  %v15265_v30 = vld [vmem:[#allocation338_spill] sm:$0xff]  ;;  %v4288_v29 = vmul.f32 %v15267_v49, %v15270_v34  ;;  %v15271_v33 = vld [vmem:[#allocation340_spill] sm:$0xff]  ;;  %v4294_v45 = vadd.f32 %v4278_v51, %v4118_v50  ;;  %v15276_v12 = vld [vmem:[#allocation329_spill] sm:$0xff] }
 0x8d9   :  { %v4290_v38 = vmul.f32 %v15259_v62, %v15265_v30  ;;  %v4292_v48 = vmul.f32 %v15267_v49, %v15271_v33  ;;  %v15273_v55 = vld [vmem:[#allocation344_spill] sm:$0xff]  ;;  %v4133_v62 = vadd.f32 %v4101_v61, %v3941_v19  ;;  %v15275_v30 = vld [vmem:[#allocation335_spill] sm:$0xff]  ;;  %v4298_v59 = vadd.f32 %v4282_v13, %v4122_v40  ;;  %v15277_v23 = vld [vmem:[#allocation345_spill] sm:$0xff] }
 0x8da   :  { %v4279_v56 = vmul.f32 %v15273_v55, %v15272_v25  ;;  %v4283_v44 = vmul.f32 %v15273_v55, %v15274_v39  ;;  %v4287_v5 = vmul.f32 %v15273_v55, %v15275_v30  ;;  %v4281_v34 = vmul.f32 %v15277_v23, %v15276_v12  ;;  %v15278_v3 = vld [vmem:[#allocation333_spill] sm:$0xff]  ;;  %v15282_v51 = vld [vmem:[#allocation339_spill] sm:$0xff]  ;;  %v13054_v39 = vpop.permute.xlu0 %5583 }
 0x8db   :  { %v4285_v49 = vmul.f32 %v15277_v23, %v15278_v3  ;;  %v15279_v33 = vld [vmem:[#allocation337_spill] sm:$0xff]  ;;  %v13046_v31 = vadd.f32 %v4286_v10, %v4126_v32  ;;  %v13048_v19 = vadd.f32 %v4290_v38, %v4130_v36  ;;  %v4296_v50 = vadd.f32 %v4280_v11, %v4120_v8  ;;  %v13057_v3 = vpop.permute.xlu1 %5250  ;;  %v15286_v10 = vld [vmem:[#allocation350_spill] sm:$0xff] }
 0x8dc   :  { %v4289_v25 = vmul.f32 %v15277_v23, %v15279_v33  ;;  %v13052_v61 = vmul.f32 %v15273_v55, %v15282_v51  ;;  %v4300_v40 = vadd.f32 %v4284_v7, %v4124_v37  ;;  %v4304_v13 = vadd.f32 %v4288_v29, %v4128_v20  ;;  %15284 = vst [vmem:[#allocation80_spill] sm:$0xff] %v13057_v3  ;;  %v15285_v32 = vld [vmem:[#allocation341_spill] sm:$0xff]  ;;  %v15287_v8 = vld [vmem:[#allocation362_spill] sm:$0xff]  ;;  %v15289_v20 = vld [vmem:[#allocation351_spill] sm:$0xff] }
 0x8dd   :  { %15280 = vst [vmem:[#allocation439_spill] sm:$0xff] %v13046_v31  ;;  %15281 = vst [vmem:[#allocation97_spill] sm:$0xff] %v13048_v19  ;;  %v4308_v12 = vadd.f32 %v4292_v48, %v4132_v9  ;;  %v4295_v30 = vadd.f32 %v4279_v56, %v12955_v2  ;;  %v4299_v43 = vadd.f32 %v4283_v44, %v4123_v16  ;;  %v15288_v19 = vld [vmem:[#allocation346_spill] sm:$0xff]  ;;  %v15290_v9 = vld [vmem:[#allocation363_spill] sm:$0xff] }
 0x8de   :  { %15283 = vst [vmem:[#allocation91_spill] sm:$0xff] %v13052_v61  ;;  %v4303_v33 = vadd.f32 %v4287_v5, %v4127_v26  ;;  %v4293_v36 = vmul.f32 %v15277_v23, %v15285_v32  ;;  %v4362_v38 = vmul.f32 %v15287_v8, %v15286_v10  ;;  %v4297_v11 = vadd.f32 %v4281_v34, %v12959_v1  ;;  %v15291_v7 = vld [vmem:[#allocation349_spill] sm:$0xff]  ;;  %v15292_v29 = vld [vmem:[#allocation364_spill] sm:$0xff]  ;;  %v13074_v44 = vpop.permute.xlu0 %5056  ;;  %v15296_v1 = vld [vmem:[#allocation347_spill] sm:$0xff] }
 0x8df   :  { %v4301_v55 = vadd.f32 %v4285_v49, %v4125_v57  ;;  %v4305_v51 = vadd.f32 %v4289_v25, %v4129_v60  ;;  %v4358_v37 = vmul.f32 %v15287_v8, %v15288_v19  ;;  %v4363_v2 = vmul.f32 %v15290_v9, %v15289_v20  ;;  %v15293_v26 = vld [vmem:[#allocation353_spill] sm:$0xff]  ;;  %15295 = vst [vmem:[#allocation72_spill] sm:$0xff] %v13074_v44  ;;  %v15298_v34 = vld [vmem:[#allocation348_spill] sm:$0xff]  ;;  %v13084_v10 = vpop.permute.xlu1 %5511  ;;  %v15305_v61 = vld [vmem:[#allocation358_spill] sm:$0xff] }
 0x8e0   :  { %v4361_v16 = vmul.f32 %v15292_v29, %v15291_v7  ;;  %v4365_v48 = vmul.f32 %v15292_v29, %v15293_v26  ;;  %v15294_v23 = vld [vmem:[#allocation357_spill] sm:$0xff]  ;;  %v4359_v57 = vmul.f32 %v15290_v9, %v15296_v1  ;;  %v15300_v19 = vld [vmem:[#allocation352_spill] sm:$0xff]  ;;  %15301 = vst [vmem:[#allocation87_spill] sm:$0xff] %v13084_v10  ;;  %v4309_v20 = vadd.f32 %v4293_v36, %v4133_v62  ;;  %v15302_v7 = vld [vmem:[#allocation354_spill] sm:$0xff] }
 0x8e1   :  { %v4369_v56 = vmul.f32 %v15292_v29, %v15294_v23  ;;  %v15297_v60 = vld [vmem:[#allocation361_spill] sm:$0xff]  ;;  %v13088_v26 = vmul.f32 %v15287_v8, %v15302_v7  ;;  %v15304_v23 = vld [vmem:[#allocation356_spill] sm:$0xff]  ;;  %v4378_v1 = vadd.f32 %v4362_v38, %v4298_v59  ;;  %v13100_v10 = vadd.f32 %v4358_v37, %v4294_v45 }
 0x8e2   :  { %v4373_v5 = vmul.f32 %v15292_v29, %v15297_v60  ;;  %v15299_v49 = vld [vmem:[#allocation365_spill] sm:$0xff]  ;;  %v13094_v29 = vmul.f32 %v15287_v8, %v15305_v61  ;;  %v15307_v60 = vld [vmem:[#allocation355_spill] sm:$0xff]  ;;  %v15308_v44 = vld [vmem:[#allocation360_spill] sm:$0xff]  ;;  %v4377_v62 = vadd.f32 %v4361_v16, %v4297_v11  ;;  %v4381_v36 = vadd.f32 %v4365_v48, %v4301_v55 }
 0x8e3   :  { %v4360_v25 = vmul.f32 %v15299_v49, %v15298_v34  ;;  %v4364_v32 = vmul.f32 %v15299_v49, %v15300_v19  ;;  %15303 = vst [vmem:[#allocation82_spill] sm:$0xff] %v13088_v26  ;;  %v4368_v31 = vmul.f32 %v15299_v49, %v15304_v23  ;;  %v4367_v34 = vmul.f32 %v15290_v9, %v15307_v60  ;;  %v13102_v26 = vpop.permute.xlu0 %5408  ;;  %v13104_v59 = vpop.permute.xlu1 %4974  ;;  %v15312_v60 = vld [vmem:[#allocation366_spill] sm:$0xff]  ;;  %v7221_v16 = vld [vmem:[#allocation2 + $0x80] sm:$0xff] }
 0x8e4   :  { %15306 = vst [vmem:[#allocation93_spill] sm:$0xff] %v13094_v29  ;;  %v4372_v19 = vmul.f32 %v15299_v49, %v15308_v44  ;;  %15309 = vst [vmem:[#allocation89_spill] sm:$0xff] %v13100_v10  ;;  %v4385_v7 = vadd.f32 %v4369_v56, %v4305_v51  ;;  %v4379_v3 = vadd.f32 %v4363_v2, %v4299_v43  ;;  %v7218_v29 = vld [vmem:[#allocation2 + $0x90] sm:$0xff]  ;;  %v15319_v48 = vld [vmem:[#allocation367_spill] sm:$0xff] }
 0x8e5   :  { %v4376_v23 = vadd.f32 %v4360_v25, %v4296_v50  ;;  %15310 = vst [vmem:[#allocation83_spill] sm:$0xff] %v13104_v59  ;;  %v4380_v38 = vadd.f32 %v4364_v32, %v4300_v40  ;;  %v13106_v61 = vadd.f32 %v4359_v57, %v4295_v30  ;;  %v4389_v8 = vadd.f32 %v4373_v5, %v4309_v20  ;;  %v7219_v44 = vld [vmem:[#allocation2 + $0xd0] sm:$0xff]  ;;  %v15325_v25 = vld [vmem:[#allocation368_spill] sm:$0xff]  ;;  %v15328_v20 = vld [vmem:[#allocation67_spill] sm:$0xff] }
 0x8e6   :  { %v13109_v9 = vmul.f32 %v7218_v29, %v15312_v60  ;;  %v13112_v45 = vmul.f32 %v7219_v44, %v15312_v60  ;;  %v4384_v11 = vadd.f32 %v4368_v31, %v4304_v13  ;;  %v13115_v55 = vadd.f32 %v4378_v1, %v12530_v21  ;;  %v7220_v43 = vld [vmem:[#allocation2 + $0x110] sm:$0xff]  ;;  %v7223_v29 = vld [vmem:[#allocation2 + $0xa0] sm:$0xff] }
 0x8e7   :  { %15311 = vst [vmem:[#allocation99_spill] sm:$0xff] %v13106_v61  ;;  %v13118_v50 = vmul.f32 %v7220_v43, %v15312_v60  ;;  %v13122_v40 = vmul.f32 %v12978_v18, %v15312_v60  ;;  %v4388_v30 = vadd.f32 %v4372_v19, %v4308_v12  ;;  %v4383_v51 = vadd.f32 %v4367_v34, %v4303_v33  ;;  %v13130_v31 = vpop.permute.xlu0 %5428  ;;  %v13139_v57 = vpop.permute.xlu1 %5046  ;;  %v7222_v33 = vld [vmem:[#allocation2 + $0xc0] sm:$0xff]  ;;  %v15330_v34 = vld [vmem:[#allocation369_spill] sm:$0xff] }
 0x8e8   :  { %15313 = vst [vmem:[#allocation101_spill] sm:$0xff] %v13115_v55  ;;  %v13125_v37 = vadd.f32 %v4381_v36, %v12603_v63  ;;  %v13128_v2 = vadd.f32 %v4377_v62, %v12600_v14  ;;  %15316 = vst [vmem:[#allocation81_spill] sm:$0xff] %v13130_v31  ;;  %v13133_v21 = vadd.f32 %v4385_v7, %v12605_v58  ;;  %v7224_v19 = vld [vmem:[#allocation2 + $0xe0] sm:$0xff]  ;;  %v15331_v7 = vld [vmem:[#allocation385_spill] sm:$0xff] }
 0x8e9   :  { %v13136_v13 = vadd.f32 %v4379_v3, %v12585_v47  ;;  %v4422_v56 = vmul.f32 %v7221_v16, %v15319_v48  ;;  %15320 = vst [vmem:[#allocation108_spill] sm:$0xff] %v13139_v57  ;;  %v13142_v12 = vadd.f32 %v4380_v38, %v12594_v15  ;;  %v13145_v63 = vadd.f32 %v4376_v23, %v12578_v0  ;;  %v15324_v15 = vld [vmem:[#allocation380_spill] sm:$0xff]  ;;  %v15326_v0 = vld [vmem:[#allocation382_spill] sm:$0xff]  ;;  %v7225_v36 = vld [vmem:[#allocation2 + $0x120] sm:$0xff] }
 0x8ea   :  { %15314 = vst [vmem:[#allocation106_spill] sm:$0xff] %v13125_v37  ;;  %15315 = vst [vmem:[#allocation449_spill] sm:$0xff] %v13128_v2  ;;  %v13148_v14 = vadd.f32 %v4389_v8, %v12658_v54  ;;  %v4426_v58 = vmul.f32 %v7222_v33, %v15319_v48  ;;  %v4430_v47 = vmul.f32 %v12536_v27, %v15319_v48  ;;  %v6998_v49 = vunpack.i.l.bf16 %v15324_v15  ;;  %v7226_v8 = vld [vmem:[#allocation2 + $0xb0] sm:$0xff]  ;;  %v15333_v60 = vld [vmem:[#allocation371_spill] sm:$0xff] }
 0x8eb   :  { %15317 = vst [vmem:[#allocation73_spill] sm:$0xff] %v13133_v21  ;;  %15318 = vst [vmem:[#allocation94_spill] sm:$0xff] %v13136_v13  ;;  %v4434_v3 = vmul.f32 %v12978_v18, %v15319_v48  ;;  %v13156_v5 = vadd.f32 %v4384_v11, %v12597_v35  ;;  %v4486_v32 = vmul.f32 %v15326_v0, %v15325_v25  ;;  %v7004_v23 = vunpack.i.h.bf16 %v15331_v7  ;;  %v13171_v38 = vpop.permute.xlu0 %5490  ;;  %v7227_v11 = vld [vmem:[#allocation2 + $0xf0] sm:$0xff]  ;;  %v13178_v16 = vpop.permute.xlu1 %5400  ;;  %v15335_v25 = vld [vmem:[#allocation372_spill] sm:$0xff] }
 0x8ec   :  { %15321 = vst [vmem:[#allocation86_spill] sm:$0xff] %v13142_v12  ;;  %15322 = vst [vmem:[#allocation84_spill] sm:$0xff] %v13145_v63  ;;  %v13162_v54 = vadd.f32 %v4388_v30, %v12617_v24  ;;  %v13165_v1 = vadd.f32 %v4383_v51, %v15328_v20  ;;  %v4424_v27 = vmul.f32 %v7223_v29, %v15330_v34  ;;  %v7228_v30 = vld [vmem:[#allocation2 + $0x130] sm:$0xff]  ;;  %v6999_v33 = vunpack.i.h.bf16 %v15324_v15  ;;  %v15336_v29 = vld [vmem:[#allocation376_spill] sm:$0xff] }
 0x8ed   :  { %15323 = vst [vmem:[#allocation88_spill] sm:$0xff] %v13148_v14  ;;  %v4428_v62 = vmul.f32 %v7224_v19, %v15330_v34  ;;  %v4432_v35 = vmul.f32 %v7225_v36, %v15330_v34  ;;  %15332 = vst [vmem:[#allocation452_spill] sm:$0xff] %v13171_v38  ;;  %v4436_v24 = vmul.f32 %v12978_v18, %v15330_v34  ;;  %v15337_v36 = vld [vmem:[#allocation375_spill] sm:$0xff]  ;;  %v7003_v15 = vunpack.i.l.bf16 %v15331_v7  ;;  %v15348_v7 = vld [vmem:[#allocation374_spill] sm:$0xff] }
 0x8ee   :  { %15327 = vst [vmem:[#allocation85_spill] sm:$0xff] %v13162_v54  ;;  %15329 = vst [vmem:[#allocation96_spill] sm:$0xff] %v13165_v1  ;;  %v4425_v44 = vmul.f32 %v7226_v8, %v15333_v60  ;;  %v4429_v43 = vmul.f32 %v7227_v11, %v15333_v60  ;;  %v4433_v51 = vmul.f32 %v7228_v30, %v15333_v60  ;;  %v15338_v8 = vld [vmem:[#allocation384_spill] sm:$0xff]  ;;  %v15339_v10 = vld [vmem:[#allocation379_spill] sm:$0xff] }
 0x8ef   :  { %15334 = vst [vmem:[#allocation98_spill] sm:$0xff] %v13178_v16  ;;  %v4437_v48 = vmul.f32 %v12978_v18, %v15333_v60  ;;  %v4490_v20 = vmul.f32 %v15326_v0, %v15335_v25  ;;  %v4494_v34 = vmul.f32 %v15326_v0, %v15336_v29  ;;  %v4498_v19 = vmul.f32 %v6998_v49, %v15326_v0  ;;  %v15340_v1 = vld [vmem:[#allocation383_spill] sm:$0xff]  ;;  %v15341_v25 = vld [vmem:[#allocation373_spill] sm:$0xff]  ;;  %v13198_v29 = vpop.permute.xlu0 %5190  ;;  %v13207_v55 = vpop.permute.xlu1 %5418  ;;  %v15350_v14 = vld [vmem:[#allocation402_spill] sm:$0xff] }
 0x8f0   :  { %v4489_v11 = vmul.f32 %v15338_v8, %v15337_v36  ;;  %v4493_v30 = vmul.f32 %v15338_v8, %v15339_v10  ;;  %v4502_v61 = vadd.f32 %v4486_v32, %v4422_v56  ;;  %v4497_v18 = vmul.f32 %v15338_v8, %v15340_v1  ;;  %v15342_v54 = vld [vmem:[#allocation387_spill] sm:$0xff]  ;;  %15343 = vst [vmem:[#allocation100_spill] sm:$0xff] %v13198_v29  ;;  %v15344_v49 = vld [vmem:[#allocation377_spill] sm:$0xff]  ;;  %v15346_v56 = vld [vmem:[#allocation370_spill] sm:$0xff] }
 0x8f1   :  { %v4501_v60 = vmul.f32 %v7004_v23, %v15338_v8  ;;  %v4487_v57 = vmul.f32 %v15342_v54, %v15341_v25  ;;  %v4491_v0 = vmul.f32 %v15342_v54, %v15344_v49  ;;  %v15345_v36 = vld [vmem:[#allocation381_spill] sm:$0xff]  ;;  %v4499_v10 = vmul.f32 %v6999_v33, %v15342_v54  ;;  %v15349_v8 = vld [vmem:[#allocation378_spill] sm:$0xff] }
 0x8f2   :  { %v4495_v16 = vmul.f32 %v15342_v54, %v15345_v36  ;;  %v15347_v32 = vld [vmem:[#allocation389_spill] sm:$0xff]  ;;  %v4506_v59 = vadd.f32 %v4490_v20, %v4426_v58  ;;  %v4505_v49 = vadd.f32 %v4489_v11, %v4425_v44  ;;  %v4509_v12 = vadd.f32 %v4493_v30, %v4429_v43  ;;  %v15353_v44 = vld [vmem:[#allocation398_spill] sm:$0xff]  ;;  %v15359_v11 = vld [vmem:[#allocation395_spill] sm:$0xff] }
 0x8f3   :  { %v4488_v1 = vmul.f32 %v15347_v32, %v15346_v56  ;;  %v4492_v23 = vmul.f32 %v15347_v32, %v15348_v7  ;;  %v4496_v25 = vmul.f32 %v15347_v32, %v15349_v8  ;;  %v4500_v29 = vmul.f32 %v7003_v15, %v15347_v32  ;;  %v13216_v21 = vpop.permute.xlu0 %5206  ;;  %v13221_v58 = vpop.permute.xlu1 %5482 }
 0x8f4   :  { %v4510_v63 = vadd.f32 %v4494_v34, %v4430_v47  ;;  %v4514_v36 = vadd.f32 %v4498_v19, %v4434_v3  ;;  %v7011_v54 = vunpack.i.h.bf16 %v15350_v14  ;;  %v4503_v33 = vadd.f32 %v4487_v57, %v13109_v9  ;;  %15351 = vst [vmem:[#allocation13_spill] sm:$0xff] %v13216_v21  ;;  %15352 = vst [vmem:[#allocation107_spill] sm:$0xff] %v13221_v58  ;;  %v15356_v34 = vld [vmem:[#allocation390_spill] sm:$0xff] }
 0x8f5   :  { %v4513_v56 = vadd.f32 %v4497_v18, %v4433_v51  ;;  %v4517_v13 = vadd.f32 %v4501_v60, %v4437_v48  ;;  %v4504_v37 = vadd.f32 %v4488_v1, %v4424_v27  ;;  %v4507_v7 = vadd.f32 %v4491_v0, %v13112_v45  ;;  %v15354_v51 = vld [vmem:[#allocation386_spill] sm:$0xff]  ;;  %v15355_v48 = vld [vmem:[#allocation400_spill] sm:$0xff] }
 0x8f6   :  { %v4511_v8 = vadd.f32 %v4495_v16, %v13118_v50  ;;  %v4515_v15 = vadd.f32 %v4499_v10, %v13122_v40  ;;  %v7016_v47 = vunpack.i.h.bf16 %v15353_v44  ;;  %v4508_v3 = vadd.f32 %v4492_v23, %v4428_v62  ;;  %v15357_v40 = vld [vmem:[#allocation391_spill] sm:$0xff]  ;;  %v15363_v18 = vld [vmem:[#allocation404_spill] sm:$0xff] }
 0x8f7   :  { %v4512_v43 = vadd.f32 %v4496_v25, %v4432_v35  ;;  %v4516_v20 = vadd.f32 %v4500_v29, %v4436_v24  ;;  %v7015_v9 = vunpack.i.l.bf16 %v15353_v44  ;;  %v7010_v57 = vunpack.i.l.bf16 %v15350_v14  ;;  %v15358_v16 = vld [vmem:[#allocation403_spill] sm:$0xff]  ;;  %v15360_v35 = vld [vmem:[#allocation394_spill] sm:$0xff]  ;;  %v13237_v30 = vpop.permute.xlu0 %5226  ;;  %v15362_v14 = vld [vmem:[#allocation393_spill] sm:$0xff]  ;;  %v13246_v23 = vpop.permute.xlu1 %5500 }
 0x8f8   :  { %v4567_v27 = vmul.f32 %v15355_v48, %v15354_v51  ;;  %v4571_v45 = vmul.f32 %v15355_v48, %v15356_v34  ;;  %v4579_v50 = vmul.f32 %v7011_v54, %v15355_v48  ;;  %v4566_v19 = vmul.f32 %v15358_v16, %v15357_v40  ;;  %15361 = vst [vmem:[#allocation110_spill] sm:$0xff] %v13237_v30  ;;  %v15364_v29 = vld [vmem:[#allocation397_spill] sm:$0xff]  ;;  %v15365_v10 = vld [vmem:[#allocation399_spill] sm:$0xff]  ;;  %v15366_v25 = vld [vmem:[#allocation388_spill] sm:$0xff] }
 0x8f9   :  { %v4570_v62 = vmul.f32 %v15358_v16, %v15359_v11  ;;  %v4575_v24 = vmul.f32 %v15355_v48, %v15360_v35  ;;  %v4568_v60 = vmul.f32 %v15363_v18, %v15362_v14  ;;  %v4572_v0 = vmul.f32 %v15363_v18, %v15364_v29  ;;  %v15367_v54 = vld [vmem:[#allocation405_spill] sm:$0xff]  ;;  %v15368_v51 = vld [vmem:[#allocation392_spill] sm:$0xff] }
 0x8fa   :  { %v4574_v32 = vmul.f32 %v15358_v16, %v15365_v10  ;;  %v4578_v1 = vmul.f32 %v7010_v57, %v15358_v16  ;;  %v4569_v44 = vmul.f32 %v15367_v54, %v15366_v25  ;;  %v4573_v48 = vmul.f32 %v15367_v54, %v15368_v51  ;;  %v15369_v34 = vld [vmem:[#allocation401_spill] sm:$0xff]  ;;  %v15370_v29 = vld [vmem:[#allocation396_spill] sm:$0xff] }
 0x8fb   :  { %v4576_v40 = vmul.f32 %v15363_v18, %v15369_v34  ;;  %v4580_v11 = vmul.f32 %v7015_v9, %v15363_v18  ;;  %v4583_v35 = vadd.f32 %v4567_v27, %v4503_v33  ;;  %v4587_v14 = vadd.f32 %v4571_v45, %v4507_v7  ;;  %v13258_v25 = vpop.permute.xlu0 %5246  ;;  %v13260_v34 = vpop.permute.xlu1 %5192  ;;  %v15372_v45 = vld [vmem:[#allocation408_spill] sm:$0xff]  ;;  %v15373_v18 = vld [vmem:[#allocation407_spill] sm:$0xff] }
 0x8fc   :  { %v4577_v10 = vmul.f32 %v15367_v54, %v15370_v29  ;;  %v4581_v57 = vmul.f32 %v7016_v47, %v15367_v54  ;;  %v4582_v16 = vadd.f32 %v4566_v19, %v4502_v61  ;;  %v4586_v30 = vadd.f32 %v4570_v62, %v4506_v59  ;;  %15371 = vst [vmem:[#allocation102_spill] sm:$0xff] %v13260_v34  ;;  %v15374_v61 = vld [vmem:[#allocation410_spill] sm:$0xff]  ;;  %v15375_v59 = vld [vmem:[#allocation409_spill] sm:$0xff] }
 0x8fd   :  { %v4591_v21 = vadd.f32 %v4575_v24, %v4511_v8  ;;  %v4595_v38 = vadd.f32 %v4579_v50, %v4515_v15  ;;  %v4584_v58 = vadd.f32 %v4568_v60, %v4504_v37  ;;  %v4588_v51 = vadd.f32 %v4572_v0, %v4508_v3  ;;  %v15376_v37 = vld [vmem:[#allocation412_spill] sm:$0xff]  ;;  %v15377_v3 = vld [vmem:[#allocation411_spill] sm:$0xff]  ;;  %v15379_v19 = vld [vmem:[#allocation413_spill] sm:$0xff] }
 0x8fe   :  { %v4590_v2 = vadd.f32 %v4574_v32, %v4510_v63  ;;  %v4594_v31 = vadd.f32 %v4578_v1, %v4514_v36  ;;  %v4585_v9 = vadd.f32 %v4569_v44, %v4505_v49  ;;  %v4589_v33 = vadd.f32 %v4573_v48, %v4509_v12  ;;  %v15378_v36 = vld [vmem:[#allocation414_spill] sm:$0xff]  ;;  %v15380_v49 = vld [vmem:[#allocation416_spill] sm:$0xff]  ;;  %v15383_v24 = vld [vmem:[#allocation417_spill] sm:$0xff] }
 0x8ff   :  { %v4592_v7 = vadd.f32 %v4576_v40, %v4512_v43  ;;  %v4596_v27 = vadd.f32 %v4580_v11, %v4516_v20  ;;  %v4774_v47 = vsel %vm2436_vm1, %v15373_v18, %v15372_v45  ;;  %v4775_v8 = vsel %vm2436_vm1, %v15375_v59, %v15374_v61  ;;  %v15381_v43 = vld [vmem:[#allocation415_spill] sm:$0xff]  ;;  %v15382_v62 = vld [vmem:[#allocation418_spill] sm:$0xff]  ;;  %v13280_v0 = vpop.permute.xlu0 %5579  ;;  %v15387_v54 = vld [vmem:[#allocation421_spill] sm:$0xff]  ;;  %v13294_v45 = vpop.permute.xlu1 %5208 }
 0x900   :  { %v4593_v15 = vadd.f32 %v4577_v10, %v4513_v56  ;;  %v4597_v50 = vadd.f32 %v4581_v57, %v4517_v13  ;;  %v4776_v63 = vsel %vm2436_vm1, %v15377_v3, %v15376_v37  ;;  %v4777_v12 = vsel %vm2436_vm1, %v15379_v19, %v15378_v36  ;;  %v15384_v56 = vld [vmem:[#allocation420_spill] sm:$0xff]  ;;  %v15385_v13 = vld [vmem:[#allocation419_spill] sm:$0xff]  ;;  %v15386_v1 = vld [vmem:[#allocation422_spill] sm:$0xff] }
 0x901   :  { %v4778_v20 = vsel %vm2436_vm1, %v15381_v43, %v15380_v49  ;;  %v4779_v60 = vsel %vm2436_vm1, %v15383_v24, %v15382_v62  ;;  %v4780_v32 = vsel %vm2436_vm1, %v15385_v13, %v15384_v56  ;;  %v4781_v44 = vsel %vm2436_vm1, %v15387_v54, %v15386_v1  ;;  %v15388_v48 = vld [vmem:[#allocation424_spill] sm:$0xff]  ;;  %v15389_v40 = vld [vmem:[#allocation423_spill] sm:$0xff]  ;;  %v15390_v29 = vld [vmem:[#allocation426_spill] sm:$0xff] }
 0x902   :  { %v4782_v11 = vsel %vm2436_vm1, %v15389_v40, %v15388_v48  ;;  %v15391_v10 = vld [vmem:[#allocation425_spill] sm:$0xff]  ;;  %v13296_v18 = vadd.f32 %v4774_v47, %v4582_v16  ;;  %v4807_v61 = vadd.f32 %v4775_v8, %v4583_v35  ;;  %v15392_v59 = vld [vmem:[#allocation428_spill] sm:$0xff]  ;;  %v15393_v37 = vld [vmem:[#allocation427_spill] sm:$0xff]  ;;  %v4808_v43 = vadd.f32 %v4776_v63, %v4584_v58 }
 0x903   :  { %v4783_v57 = vsel %vm2436_vm1, %v15391_v10, %v15390_v29  ;;  %v4784_v3 = vsel %vm2436_vm1, %v15393_v37, %v15392_v59  ;;  %v15394_v36 = vld [vmem:[#allocation430_spill] sm:$0xff]  ;;  %v15395_v19 = vld [vmem:[#allocation429_spill] sm:$0xff]  ;;  %v4809_v62 = vadd.f32 %v4777_v12, %v4585_v9  ;;  %v13304_v24 = vadd.f32 %v4778_v20, %v4586_v30  ;;  %v13312_v35 = vpop.permute.xlu0 %5398  ;;  %v15398_v48 = vld [vmem:[#allocation432_spill] sm:$0xff]  ;;  %v13319_v63 = vpop.permute.xlu1 %5228 }
 0x904   :  { %v4785_v49 = vsel %vm2436_vm1, %v15395_v19, %v15394_v36  ;;  %v13306_v56 = vadd.f32 %v4779_v60, %v4587_v14  ;;  %v4812_v13 = vadd.f32 %v4780_v32, %v4588_v51  ;;  %v4813_v1 = vadd.f32 %v4781_v44, %v4589_v33  ;;  %15397 = vst [vmem:[#allocation109_spill] sm:$0xff] %v13312_v35  ;;  %v15399_v40 = vld [vmem:[#allocation431_spill] sm:$0xff]  ;;  %v15401_v9 = vld [vmem:[#allocation454_spill] sm:$0xff]  ;;  %v15404_v51 = vld [vmem:[#allocation433_spill] sm:$0xff] }
 0x905   :  { %v13308_v54 = vadd.f32 %v4782_v11, %v4590_v2  ;;  %v13310_v16 = vadd.f32 %v4783_v57, %v4591_v21  ;;  %v4816_v47 = vadd.f32 %v4784_v3, %v4592_v7  ;;  %v4817_v8 = vadd.f32 %v4785_v49, %v4593_v15  ;;  %v15400_v58 = vld [vmem:[#allocation7_spill] sm:$0xff]  ;;  %15402 = vst [vmem:[#allocation138_spill] sm:$0xff] %v13319_v63  ;;  %v15403_v14 = vld [vmem:[#allocation434_spill] sm:$0xff]  ;;  %v15406_v21 = vld [vmem:[#allocation436_spill] sm:$0xff] }
 0x906   :  { %v4786_v29 = vsel %vm2436_vm1, %v15399_v40, %v15398_v48  ;;  %v5005_v30 = vmul.f32 %v15401_v9, %v15400_v58  ;;  %v4787_v2 = vsel %vm2436_vm1, %v15404_v51, %v15403_v14  ;;  %v15405_v33 = vld [vmem:[#allocation435_spill] sm:$0xff]  ;;  %v15408_v15 = vld [vmem:[#allocation9_spill] sm:$0xff]  ;;  %v15410_v44 = vld [vmem:[#allocation438_spill] sm:$0xff] }
 0x907   :  { %15396 = vst [vmem:[#allocation136_spill] sm:$0xff] %v13308_v54  ;;  %v4788_v12 = vsel %vm2436_vm1, %v15406_v21, %v15405_v33  ;;  %v15407_v20 = vld [vmem:[#allocation11_spill] sm:$0xff]  ;;  %v5009_v60 = vmul.f32 %v15401_v9, %v15408_v15  ;;  %v15409_v32 = vld [vmem:[#allocation437_spill] sm:$0xff]  ;;  %v15411_v10 = vld [vmem:[#allocation4_spill] sm:$0xff]  ;;  %v13340_v48 = vadd.f32 %v4786_v29, %v4594_v31  ;;  %v13348_v15 = vpop.permute.xlu0 %5416  ;;  %v13356_v29 = vpop.permute.xlu1 %5248 }
 0x908   :  { %v5001_v7 = vmul.f32 %v15401_v9, %v15407_v20  ;;  %v4789_v11 = vsel %vm2436_vm1, %v15410_v44, %v15409_v32  ;;  %v15412_v57 = vld [vmem:[#allocation10_spill] sm:$0xff]  ;;  %v15415_v19 = vld [vmem:[#allocation44_spill] sm:$0xff]  ;;  %v15418_v14 = vld [vmem:[#allocation15_spill] sm:$0xff]  ;;  %15421 = vst [vmem:[#allocation103_spill] sm:$0xff] %v13348_v15  ;;  %v13350_v32 = vadd.f32 %v4787_v2, %v4595_v38  ;;  %v13352_v44 = vadd.f32 %v4788_v12, %v4596_v27 }
 0x909   :  { %v5000_v59 = vmul.f32 %v15412_v57, %v15411_v10  ;;  %v15413_v37 = vld [vmem:[#allocation14_spill] sm:$0xff]  ;;  %v5008_v49 = vmul.f32 %v15412_v57, %v15415_v19  ;;  %15416 = vst [vmem:[#allocation111_spill] sm:$0xff] %v13340_v48  ;;  %v15419_v51 = vld [vmem:[#allocation5_spill] sm:$0xff]  ;;  %v15420_v21 = vld [vmem:[#allocation40_spill] sm:$0xff]  ;;  %v5021_v10 = vadd.f32 %v5005_v30, %v4813_v1  ;;  %v4821_v35 = vadd.f32 %v4789_v11, %v4597_v50 }
 0x90a   :  { %v15414_v3 = vld [vmem:[#allocation6_spill] sm:$0xff]  ;;  %v4999_v33 = vmul.f32 %v15419_v51, %v15418_v14  ;;  %15422 = vst [vmem:[#allocation119_spill] sm:$0xff] %v13350_v32  ;;  %v15424_v19 = vld [vmem:[#allocation12_spill] sm:$0xff]  ;;  %v5025_v48 = vadd.f32 %v5009_v60, %v4817_v8  ;;  %v15425_v63 = vld [vmem:[#allocation47_spill] sm:$0xff]  ;;  %v5264_v50 = vsel %vm2917_vm3, %v13034_v46, %v13002_v4 }
 0x90b   :  { %v5085_v36 = vmul.f32 %v15414_v3, %v15413_v37  ;;  %v15417_v40 = vld [vmem:[#allocation18_spill] sm:$0xff]  ;;  %v5081_v20 = vmul.f32 %v15414_v3, %v15420_v21  ;;  %v15423_v37 = vld [vmem:[#allocation39_spill] sm:$0xff]  ;;  %v5089_v14 = vmul.f32 %v15414_v3, %v15425_v63  ;;  %v5016_v34 = vadd.f32 %v5000_v59, %v4808_v43  ;;  %v15426_v15 = vld [vmem:[#allocation24_spill] sm:$0xff] }
 0x90c   :  { %v5004_v58 = vmul.f32 %v15412_v57, %v15417_v40  ;;  %v5088_v31 = vmul.f32 %v15424_v19, %v15423_v37  ;;  %v5017_v40 = vadd.f32 %v5001_v7, %v4809_v62  ;;  %v5024_v54 = vadd.f32 %v5008_v49, %v4816_v47  ;;  %v15427_v38 = vld [vmem:[#allocation26_spill] sm:$0xff]  ;;  %v13368_v62 = vpop.permute.xlu0 %5480  ;;  %v15429_v8 = vld [vmem:[#allocation27_spill] sm:$0xff]  ;;  %v15431_v47 = vld [vmem:[#allocation56_spill] sm:$0xff] }
 0x90d   :  { %v5101_v21 = vadd.f32 %v5085_v36, %v5021_v10  ;;  %v5257_v27 = vsel %vm2917_vm3, %v15427_v38, %v15426_v15  ;;  %v13363_v1 = vadd.f32 %v4999_v33, %v4807_v61  ;;  %15428 = vst [vmem:[#allocation114_spill] sm:$0xff] %v13368_v62  ;;  %v15430_v12 = vld [vmem:[#allocation30_spill] sm:$0xff]  ;;  %v15432_v7 = vld [vmem:[#allocation33_spill] sm:$0xff]  ;;  %v15433_v11 = vld [vmem:[#allocation48_spill] sm:$0xff]  ;;  %v13377_v61 = vpop.permute.xlu1 %5054  ;;  %v5105_v49 = vadd.f32 %v5089_v14, %v5025_v48 }
 0x90e   :  { %v5020_v2 = vadd.f32 %v5004_v58, %v4812_v13  ;;  %v5097_v30 = vadd.f32 %v5081_v20, %v5017_v40  ;;  %v5261_v43 = vsel %vm2917_vm3, %v15430_v12, %v15429_v8  ;;  %v5104_v63 = vadd.f32 %v5088_v31, %v5024_v54  ;;  %15434 = vst [vmem:[#allocation143_spill] sm:$0xff] %v13377_v61  ;;  %v15435_v59 = vld [vmem:[#allocation21_spill] sm:$0xff]  ;;  %v15436_v4 = vld [vmem:[#allocation23_spill] sm:$0xff]  ;;  %v15437_v33 = vld [vmem:[#allocation76_spill] sm:$0xff] }
 0x90f   :  { %v5449_v60 = vmul.f32 %v15432_v7, %v15431_v47  ;;  %v5456_v13 = vmul.f32 %v15433_v11, %v13207_v55  ;;  %v5080_v36 = vmul.f32 %v15424_v19, %v15435_v59  ;;  %v5003_v46 = vmul.f32 %v15419_v51, %v15436_v4  ;;  %v15438_v54 = vld [vmem:[#allocation59_spill] sm:$0xff]  ;;  %v15439_v15 = vld [vmem:[#allocation65_spill] sm:$0xff]  ;;  %v15441_v40 = vld [vmem:[#allocation50_spill] sm:$0xff] }
 0x910   :  { %v5289_v58 = vadd.f32 %v5257_v27, %v5097_v30  ;;  %v5453_v20 = vmul.f32 %v15432_v7, %v15437_v33  ;;  %v5265_v10 = vsel %vm2917_vm3, %v15439_v15, %v15438_v54  ;;  %v15440_v37 = vld [vmem:[#allocation49_spill] sm:$0xff]  ;;  %v5296_v31 = vadd.f32 %v5264_v50, %v5104_v63  ;;  %v15442_v8 = vld [vmem:[#allocation51_spill] sm:$0xff]  ;;  %v5499_v30 = vpop.permute.xlu0 %5498  ;;  %v15443_v4 = vld [vmem:[#allocation28_spill] sm:$0xff] }
 0x911   :  { %v5529_v55 = vmul.f32 %v15440_v37, %v12947_v22  ;;  %v5013_v38 = vmul.f32 %v15401_v9, %v15441_v40  ;;  %v5084_v48 = vmul.f32 %v15424_v19, %v15442_v8  ;;  %v5293_v14 = vadd.f32 %v5261_v43, %v5101_v21  ;;  %v13399_v22 = vpop.permute.xlu1 %5406  ;;  %v15444_v50 = vld [vmem:[#allocation32_spill] sm:$0xff]  ;;  %v15446_v54 = vld [vmem:[#allocation55_spill] sm:$0xff] }
 0x912   :  { %v5457_v27 = vmul.f32 %v15432_v7, %v12893_v28  ;;  %v5465_v12 = vadd.f32 %v5449_v60, %v5289_v58  ;;  %v5533_v47 = vmul.f32 %v15440_v37, %v12915_v41  ;;  %v5472_v59 = vadd.f32 %v5456_v13, %v5296_v31  ;;  %v15445_v63 = vld [vmem:[#allocation16_spill] sm:$0xff]  ;;  %v15447_v15 = vld [vmem:[#allocation3_spill] sm:$0xff]  ;;  %v15448_v31 = vld [vmem:[#allocation74_spill] sm:$0xff] }
 0x913   :  { %v5536_v33 = vmul.f32 %v15443_v4, %v5499_v30  ;;  %v4998_v9 = vmul.f32 %v15445_v63, %v15444_v50  ;;  %v5083_v40 = vmul.f32 %v15447_v15, %v15446_v54  ;;  %v5297_v21 = vadd.f32 %v5265_v10, %v5105_v49  ;;  %v15451_v10 = vld [vmem:[#allocation34_spill] sm:$0xff]  ;;  %v15457_v54 = vld [vmem:[#allocation80_spill] sm:$0xff] }
 0x914   :  { %v5537_v28 = vmul.f32 %v15440_v37, %v13246_v23  ;;  %v5096_v43 = vadd.f32 %v5080_v36, %v5016_v34  ;;  %v5469_v60 = vadd.f32 %v5453_v20, %v5293_v14  ;;  %v5545_v58 = vadd.f32 %v5529_v55, %v5465_v12  ;;  %v13410_v62 = vpop.permute.xlu0 %5222  ;;  %v15450_v20 = vld [vmem:[#allocation53_spill] sm:$0xff]  ;;  %v15455_v12 = vld [vmem:[#allocation62_spill] sm:$0xff] }
 0x915   :  { %v5552_v8 = vadd.f32 %v5536_v33, %v5472_v59  ;;  %v5019_v41 = vadd.f32 %v5003_v46, %v13306_v56  ;;  %v5029_v13 = vadd.f32 %v5013_v38, %v4821_v35  ;;  %v5093_v30 = vmul.f32 %v15414_v3, %v15448_v31  ;;  %v13416_v34 = vpop.permute.xlu1 %5426  ;;  %v15449_v35 = vld [vmem:[#allocation37_spill] sm:$0xff] }
 0x916   :  { %v5473_v61 = vadd.f32 %v5457_v27, %v5297_v21  ;;  %v5100_v50 = vadd.f32 %v5084_v48, %v5020_v2  ;;  %v5549_v32 = vadd.f32 %v5533_v47, %v5469_v60  ;;  %v5259_v49 = vsel %vm2917_vm3, %v13007_v53, %v12957_v42  ;;  %v15452_v48 = vld [vmem:[#allocation45_spill] sm:$0xff]  ;;  %v15454_v27 = vld [vmem:[#allocation60_spill] sm:$0xff] }
 0x917   :  { %v5600_v23 = vadd.f32 %v13054_v39, %v5552_v8  ;;  %v13419_v36 = vadd.f32 %v4998_v9, %v13296_v18  ;;  %v5099_v56 = vadd.f32 %v5083_v40, %v5019_v41  ;;  %v5451_v3 = vmul.f32 %v15449_v35, %v13102_v26  ;;  %v15453_v18 = vld [vmem:[#allocation57_spill] sm:$0xff]  ;;  %v15456_v9 = vld [vmem:[#allocation95_spill] sm:$0xff] }
 0x918   :  { %v5553_v46 = vadd.f32 %v5537_v28, %v5473_v61  ;;  %v5002_v2 = vmul.f32 %v15445_v63, %v15450_v20  ;;  %v5007_v55 = vmul.f32 %v15419_v51, %v15451_v10  ;;  %v5593_v42 = vadd.f32 %v12822_v52, %v5545_v58  ;;  %v13437_v47 = vpop.permute.xlu0 %5242  ;;  %v15458_v60 = vld [vmem:[#allocation81_spill] sm:$0xff] }
 0x919   :  { %v13429_v53 = vadd.f32 %v5600_v23, %v13156_v5  ;;  %v5109_v38 = vadd.f32 %v5093_v30, %v5029_v13  ;;  %v5256_v14 = vsel %vm2917_vm3, %v15453_v18, %v15452_v48  ;;  %v5260_v26 = vsel %vm2917_vm3, %v15455_v12, %v15454_v27  ;;  %v5489_v21 = vpop.permute.xlu1 %5488  ;;  %v15459_v41 = vld [vmem:[#allocation61_spill] sm:$0xff]  ;;  %v15462_v23 = vld [vmem:[#allocation46_spill] sm:$0xff]  ;;  %v15464_v18 = vld [vmem:[#allocation75_spill] sm:$0xff] }
 0x91a   :  { %v5291_v61 = vadd.f32 %v5259_v49, %v5099_v56  ;;  %v5448_v59 = vmul.f32 %v15433_v11, %v12867_v17  ;;  %v5597_v33 = vadd.f32 %v12822_v52, %v5549_v32  ;;  %v5452_v5 = vmul.f32 %v15433_v11, %v12921_v6  ;;  %v15460_v30 = vld [vmem:[#allocation449_spill] sm:$0xff]  ;;  %v15461_v49 = vld [vmem:[#allocation107_spill] sm:$0xff] }
 0x91b   :  { %v5269_v40 = vsel %vm2917_vm3, %v15457_v54, %v15456_v9  ;;  %v5461_v58 = vmul.f32 %v15432_v7, %v15458_v60  ;;  %v5601_v8 = vadd.f32 %v12822_v52, %v5553_v46  ;;  %v5531_v13 = vmul.f32 %v15459_v41, %v5489_v21 }
 0x91c   :  { %v5467_v28 = vadd.f32 %v5451_v3, %v5291_v61  ;;  %v5288_v31 = vadd.f32 %v5256_v14, %v5096_v43  ;;  %v5292_v17 = vadd.f32 %v5260_v26, %v5100_v50  ;;  %v13452_v32 = vadd.f32 %v5593_v42, %v15460_v30  ;;  %v15463_v3 = vld [vmem:[#allocation452_spill] sm:$0xff]  ;;  %v13460_v48 = vpop.permute.xlu0 %5575  ;;  %v15465_v43 = vld [vmem:[#allocation42_spill] sm:$0xff]  ;;  %v15467_v61 = vld [vmem:[#allocation73_spill] sm:$0xff] }
 0x91d   :  { %v5528_v6 = vmul.f32 %v15443_v4, %v15461_v49  ;;  %v5012_v56 = vmul.f32 %v15412_v57, %v15462_v23  ;;  %v5301_v20 = vadd.f32 %v5269_v40, %v5109_v38  ;;  %v5532_v10 = vmul.f32 %v15443_v4, %v15463_v3  ;;  %v15466_v14 = vld [vmem:[#allocation106_spill] sm:$0xff]  ;;  %v5509_v12 = vpop.permute.xlu1 %5508  ;;  %v15468_v40 = vld [vmem:[#allocation52_spill] sm:$0xff] }
 0x91e   :  { %v5547_v7 = vadd.f32 %v5531_v13, %v5467_v28  ;;  %v5464_v46 = vadd.f32 %v5448_v59, %v5288_v31  ;;  %v5082_v50 = vmul.f32 %v15465_v43, %v15464_v18  ;;  %v13465_v42 = vadd.f32 %v5597_v33, %v15466_v14  ;;  %v15469_v28 = vld [vmem:[#allocation79_spill] sm:$0xff]  ;;  %v15473_v49 = vld [vmem:[#allocation64_spill] sm:$0xff] }
 0x91f   :  { %v5468_v27 = vadd.f32 %v5452_v5, %v5292_v17  ;;  %v5477_v26 = vadd.f32 %v5461_v58, %v5301_v20  ;;  %v13468_v9 = vadd.f32 %v5601_v8, %v15467_v61  ;;  %v5541_v38 = vmul.f32 %v15440_v37, %v5509_v12  ;;  %v15470_v5 = vld [vmem:[#allocation13_spill] sm:$0xff]  ;;  %v15471_v8 = vld [vmem:[#allocation94_spill] sm:$0xff]  ;;  %v15476_v12 = vld [vmem:[#allocation87_spill] sm:$0xff] }
 0x920   :  { %v5595_v57 = vadd.f32 %v13280_v0, %v5547_v7  ;;  %v5018_v54 = vadd.f32 %v5002_v2, %v13304_v24  ;;  %v5079_v59 = vmul.f32 %v15447_v15, %v15468_v40  ;;  %v5544_v21 = vadd.f32 %v5528_v6, %v5464_v46  ;;  %v13483_v17 = vpop.permute.xlu0 %5424  ;;  %v15472_v2 = vld [vmem:[#allocation77_spill] sm:$0xff] }
 0x921   :  { %v5625_v33 = vmul.f32 %v15469_v28, %v13452_v32  ;;  %v5548_v60 = vadd.f32 %v5532_v10, %v5468_v27  ;;  %v5258_v58 = vsel %vm2917_vm3, %v15470_v5, %v13294_v45  ;;  %v5557_v31 = vadd.f32 %v5541_v38, %v5477_v26  ;;  %v13490_v23 = vpop.permute.xlu1 %5224 }
 0x922   :  { %v13481_v13 = vadd.f32 %v5595_v57, %v15471_v8  ;;  %v5023_v24 = vadd.f32 %v5007_v55, %v13310_v16  ;;  %v5098_v37 = vadd.f32 %v5082_v50, %v5018_v54  ;;  %v5092_v30 = vmul.f32 %v15424_v19, %v15472_v2  ;;  %v15474_v55 = vld [vmem:[#allocation90_spill] sm:$0xff]  ;;  %v15478_v54 = vld [vmem:[#allocation92_spill] sm:$0xff] }
 0x923   :  { %v5450_v6 = vmul.f32 %v15473_v49, %v13399_v22  ;;  %v5028_v20 = vadd.f32 %v5012_v56, %v13352_v44  ;;  %v5605_v45 = vadd.f32 %v12822_v52, %v5557_v31  ;;  %v5629_v3 = vmul.f32 %v15469_v28, %v13465_v42  ;;  %v15475_v44 = vld [vmem:[#allocation88_spill] sm:$0xff]  ;;  %v15477_v57 = vld [vmem:[#allocation66_spill] sm:$0xff] }
 0x924   :  { %v13498_v10 = vmul.f32 %v15469_v28, %v13468_v9  ;;  %v5095_v16 = vadd.f32 %v5079_v59, %v13363_v1  ;;  %v5006_v19 = vmul.f32 %v15445_v63, %v15474_v55  ;;  %v5592_v22 = vadd.f32 %v13054_v39, %v5544_v21  ;;  %v5487_v18 = vpop.permute.xlu0 %5486  ;;  %v15479_v59 = vld [vmem:[#allocation68_spill] sm:$0xff]  ;;  %v15482_v31 = vld [vmem:[#allocation86_spill] sm:$0xff] }
 0x925   :  { %v5290_v7 = vadd.f32 %v5258_v58, %v5098_v37  ;;  %v5596_v46 = vadd.f32 %v13054_v39, %v5548_v60  ;;  %v5268_v52 = vsel %vm2917_vm3, %v13258_v25, %v13356_v29  ;;  %v13509_v56 = vadd.f32 %v5605_v45, %v15475_v44  ;;  %v13514_v61 = vpop.permute.xlu1 %5244  ;;  %v15480_v60 = vld [vmem:[#allocation84_spill] sm:$0xff]  ;;  %v15484_v45 = vld [vmem:[#allocation70_spill] sm:$0xff] }
 0x926   :  { %v5653_v50 = vadd.f32 %v5629_v3, %v5625_v33  ;;  %v5108_v14 = vadd.f32 %v5092_v30, %v5028_v20  ;;  %v5460_v1 = vmul.f32 %v15433_v11, %v13416_v34  ;;  %v5530_v26 = vmul.f32 %v15476_v12, %v5487_v18  ;;  %v15481_v58 = vld [vmem:[#allocation136_spill] sm:$0xff]  ;;  %v15483_v20 = vld [vmem:[#allocation78_spill] sm:$0xff]  ;;  %v15485_v18 = vld [vmem:[#allocation83_spill] sm:$0xff] }
 0x927   :  { %v5466_v27 = vadd.f32 %v5450_v6, %v5290_v7  ;;  %v5078_v38 = vmul.f32 %v15465_v43, %v15477_v57  ;;  %v5087_v25 = vmul.f32 %v15447_v15, %v15478_v54  ;;  %v5637_v29 = vmul.f32 %v15469_v28, %v13509_v56  ;;  %v15488_v54 = vld [vmem:[#allocation98_spill] sm:$0xff] }
 0x928   :  { %v5654_v40 = vadd.f32 %v5653_v50, %v13498_v10  ;;  %v5011_v21 = vmul.f32 %v15419_v51, %v15479_v59  ;;  %v13526_v11 = vadd.f32 %v5592_v22, %v15480_v60  ;;  %v5300_v34 = vadd.f32 %v5268_v52, %v5108_v14  ;;  %v5507_v2 = vpop.permute.xlu0 %5506  ;;  %v15492_v59 = vld [vmem:[#allocation110_spill] sm:$0xff] }
 0x929   :  { %v5546_v5 = vadd.f32 %v5530_v26, %v5466_v27  ;;  %v5022_v8 = vadd.f32 %v5006_v19, %v15481_v58  ;;  %v13530_v37 = vadd.f32 %v5596_v46, %v15482_v31  ;;  %v5661_v6 = vmul.f32 %v5625_v33, %v13452_v32  ;;  %v5415_v52 = vpop.permute.xlu1 %5414  ;;  %v15486_v33 = vld [vmem:[#allocation119_spill] sm:$0xff]  ;;  %v15487_v27 = vld [vmem:[#allocation101_spill] sm:$0xff]  ;;  %v15493_v58 = vld [vmem:[#allocation72_spill] sm:$0xff] }
 0x92a   :  { %v5655_v30 = vadd.f32 %v5654_v40, %v5637_v29  ;;  %v5255_v55 = vsel %vm2917_vm3, %v15484_v45, %v15483_v20  ;;  %v5476_v7 = vadd.f32 %v5460_v1, %v5300_v34  ;;  %v5540_v22 = vmul.f32 %v15443_v4, %v5507_v2  ;;  %v15491_v40 = vld [vmem:[#allocation138_spill] sm:$0xff]  ;;  %v15494_v2 = vld [vmem:[#allocation111_spill] sm:$0xff] }
 0x92b   :  { %v5594_v51 = vadd.f32 %v13460_v48, %v5546_v5  ;;  %v5094_v44 = vadd.f32 %v5078_v38, %v13419_v36  ;;  %v5103_v19 = vadd.f32 %v5087_v25, %v5023_v24  ;;  %v5010_v46 = vmul.f32 %v15445_v63, %v15485_v18  ;;  %v15489_v38 = vld [vmem:[#allocation102_spill] sm:$0xff]  ;;  %v15490_v25 = vld [vmem:[#allocation100_spill] sm:$0xff]  ;;  %v15499_v18 = vld [vmem:[#allocation85_spill] sm:$0xff] }
 0x92c   :  { %5656 = vadd.xlane.f32.xlu1 %v5655_v30  ;;  %v5665_v50 = vmul.f32 %v5629_v3, %v13465_v42  ;;  %v5027_v14 = vadd.f32 %v5011_v21, %v15486_v33  ;;  %v5556_v1 = vadd.f32 %v5540_v22, %v5476_v7  ;;  %v5624_v57 = vmul.f32 %v15469_v28, %v13526_v11  ;;  %v5241_v34 = vpop.permute.xlu0 %5240  ;;  %v15496_v45 = vld [vmem:[#allocation114_spill] sm:$0xff]  ;;  %v15497_v7 = vld [vmem:[#allocation108_spill] sm:$0xff] }
 0x92d   :  { %v13544_v26 = vadd.f32 %v5594_v51, %v15487_v27  ;;  %v5287_v4 = vadd.f32 %v5255_v55, %v5095_v16  ;;  %v5447_v36 = vmul.f32 %v15449_v35, %v15488_v54  ;;  %v5628_v24 = vmul.f32 %v15469_v28, %v13530_v37  ;;  %v5479_v5 = vpop.permute.xlu1 %5478 }
 0x92e   :  { %v5689_v63 = vadd.f32 %v5665_v50, %v5661_v6  ;;  %v5254_v3 = vsel %vm2917_vm3, %v15490_v25, %v15489_v38  ;;  %v5263_v21 = vsel %vm2917_vm3, %v15492_v59, %v15491_v40  ;;  %v5604_v60 = vadd.f32 %v13054_v39, %v5556_v1  ;;  %v15495_v6 = vld [vmem:[#allocation103_spill] sm:$0xff]  ;;  %v15498_v39 = vld [vmem:[#allocation109_spill] sm:$0xff] }
 0x92f   :  { %v5632_v16 = vmul.f32 %v15469_v28, %v13429_v53  ;;  %v5091_v31 = vmul.f32 %v15447_v15, %v15493_v58  ;;  %v5026_v30 = vadd.f32 %v5010_v46, %v15494_v2  ;;  %v5455_v20 = vmul.f32 %v15449_v35, %v15495_v6 }
 0x930   :  { %v5527_v55 = vmul.f32 %v15459_v41, %v15496_v45  ;;  %v5086_v51 = vmul.f32 %v15465_v43, %v15497_v7  ;;  %v5446_v22 = vmul.f32 %v15473_v49, %v15498_v39  ;;  %v13573_v50 = vadd.f32 %v5604_v60, %v15499_v18 }
 0x931   :  { %v5648_v33 = vadd.f32 %v5628_v24, %v5624_v57  ;;  %v5463_v27 = vadd.f32 %v5447_v36, %v5287_v4  ;;  %v5286_v15 = vadd.f32 %v5254_v3, %v5094_v44  ;;  %v5295_v1 = vadd.f32 %v5263_v21, %v5103_v19  ;;  %v5497_v38 = vpop.permute.xlu1 %5496 }
 0x932   :  { %v5660_v46 = vmul.f32 %v5624_v57, %v13526_v11  ;;  %v5526_v54 = vmul.f32 %v15476_v12, %v5479_v5  ;;  %v5636_v25 = vmul.f32 %v15469_v28, %v13573_v50  ;;  %v5669_v59 = vmul.f32 %v13498_v10, %v13468_v9  ;;  %v5495_v57 = vpop.permute.xlu0 %5494  ;;  %v15500_v5 = vld [vmem:[#allocation143_spill] sm:$0xff] }
 0x933   :  { %v5649_v40 = vadd.f32 %v5648_v33, %v5632_v16  ;;  %v5471_v58 = vadd.f32 %v5455_v20, %v5295_v1  ;;  %v5543_v2 = vadd.f32 %v5527_v55, %v5463_v27  ;;  %v5535_v60 = vmul.f32 %v15459_v41, %v5497_v38  ;;  %v15501_v33 = vld [vmem:[#allocation96_spill] sm:$0xff]  ;;  %v15503_v1 = vld [vmem:[#allocation363_spill] sm:$0xff] }
 0x934   :  { %v5664_v4 = vmul.f32 %v5628_v24, %v13530_v37  ;;  %v5462_v44 = vadd.f32 %v5446_v22, %v5286_v15  ;;  %v5262_v19 = vsel %vm2917_vm3, %v13410_v62, %v13490_v23  ;;  %v5673_v3 = vmul.f32 %v5637_v29, %v13509_v56  ;;  %v15502_v15 = vld [vmem:[#allocation359_spill] sm:$0xff] }
 0x935   :  { %v5650_v36 = vadd.f32 %v5649_v40, %v5636_v25  ;;  %v5102_v21 = vadd.f32 %v5086_v51, %v5022_v8  ;;  %v5090_v6 = vmul.f32 %v15465_v43, %v15500_v5  ;;  %v5454_v10 = vmul.f32 %v15473_v49, %v5415_v52  ;;  %v5239_v55 = vpop.permute.xlu1 %5238  ;;  %v15505_v38 = vld [vmem:[#allocation99_spill] sm:$0xff]  ;;  %v15511_v5 = vld [vmem:[#allocation82_spill] sm:$0xff] }
 0x936   :  { %v5551_v20 = vadd.f32 %v5535_v60, %v5471_v58  ;;  %v5542_v45 = vadd.f32 %v5526_v54, %v5462_v44  ;;  %v5690_v24 = vadd.f32 %v5689_v63, %v5669_v59  ;;  %v5668_v7 = vmul.f32 %v5632_v16, %v13429_v53  ;;  %v15504_v54 = vld [vmem:[#allocation36_spill] sm:$0xff]  ;;  %v15508_v44 = vld [vmem:[#allocation54_spill] sm:$0xff] }
 0x937   :  { %5651 = vadd.xlane.f32.xlu0 %v5650_v36  ;;  %v5684_v39 = vadd.f32 %v5664_v4, %v5660_v46  ;;  %v5591_v62 = vadd.f32 %v13280_v0, %v5543_v2  ;;  %v5294_v23 = vadd.f32 %v5262_v19, %v5102_v21  ;;  %v5534_v22 = vmul.f32 %v15476_v12, %v5495_v57  ;;  %v15507_v2 = vld [vmem:[#allocation91_spill] sm:$0xff]  ;;  %v15509_v19 = vld [vmem:[#allocation89_spill] sm:$0xff] }
 0x938   :  { %v5599_v29 = vadd.f32 %v13280_v0, %v5551_v20  ;;  %v5267_v43 = vsel %vm2917_vm3, %v13437_v47, %v13514_v61  ;;  %v5266_v8 = vsel %vm2917_vm3, %v5239_v55, %v5241_v34  ;;  %v5691_v52 = vadd.f32 %v5690_v24, %v5673_v3  ;;  %v5503_v47 = vpop.permute.xlu0 %5502  ;;  %v15510_v21 = vld [vmem:[#allocation439_spill] sm:$0xff] }
 0x939   :  { %v5672_v51 = vmul.f32 %v5636_v25, %v13573_v50  ;;  %v5107_v63 = vadd.f32 %v5091_v31, %v5027_v14  ;;  %v5106_v18 = vadd.f32 %v5090_v6, %v5026_v30  ;;  %v5470_v16 = vadd.f32 %v5454_v10, %v5294_v23  ;;  %v5423_v61 = vpop.permute.xlu1 %5422  ;;  %v15506_v30 = vld [vmem:[#allocation71_spill] sm:$0xff] }
 0x93a   :  { %v13600_v27 = vadd.f32 %v5599_v29, %v15501_v33  ;;  %v4371_v46 = vmul.f32 %v15503_v1, %v15502_v15  ;;  %v5559_v40 = vadd.f32 %v15505_v38, %v15504_v54  ;;  %v5590_v59 = vadd.f32 %v13460_v48, %v5542_v45  ;;  %v15512_v45 = vld [vmem:[#allocation97_spill] sm:$0xff]  ;;  %v15514_v29 = vld [vmem:[#allocation63_spill] sm:$0xff] }
 0x93b   :  { %5692 = vadd.xlane.f32.xlu0 %v5691_v52  ;;  %v5685_v34 = vadd.f32 %v5684_v39, %v5668_v7  ;;  %v5299_v58 = vadd.f32 %v5267_v43, %v5107_v63  ;;  %v5550_v25 = vadd.f32 %v5534_v22, %v5470_v16  ;;  %v5298_v14 = vadd.f32 %v5266_v8, %v5106_v18  ;;  %v15516_v8 = vld [vmem:[#allocation43_spill] sm:$0xff]  ;;  %v15517_v52 = vld [vmem:[#allocation69_spill] sm:$0xff]  ;;  %v15518_v18 = vld [vmem:[#allocation38_spill] sm:$0xff] }
 0x93c   :  { %v5458_v31 = vmul.f32 %v15473_v49, %v5423_v61  ;;  %v4307_v60 = vadd.f32 %v15507_v2, %v15506_v30  ;;  %v13610_v4 = vadd.f32 %v5591_v62, %v5559_v40  ;;  %v5558_v57 = vadd.f32 %v15509_v19, %v15508_v44  ;;  %v15513_v49 = vld [vmem:[#allocation93_spill] sm:$0xff] }
 0x93d   :  { %v5686_v36 = vadd.f32 %v5685_v34, %v5672_v51  ;;  %v5459_v3 = vmul.f32 %v15449_v35, %v13483_v17  ;;  %v4382_v6 = vadd.f32 %v15511_v5, %v15510_v21  ;;  %v5538_v10 = vmul.f32 %v15476_v12, %v5503_v47  ;;  %v5505_v39 = vpop.permute.xlu1 %5504  ;;  %v15515_v12 = vld [vmem:[#allocation58_spill] sm:$0xff] }
 0x93e   :  { %v5474_v20 = vadd.f32 %v5458_v31, %v5298_v14  ;;  %v4386_v55 = vadd.f32 %v15513_v49, %v15512_v45  ;;  %v13621_v24 = vadd.f32 %v5590_v59, %v5558_v57  ;;  %v4387_v7 = vadd.f32 %v4371_v46, %v4307_v60 }
 0x93f   :  { %5687 = vadd.xlane.f32.xlu0 %v5686_v36  ;;  %v5627_v62 = vmul.f32 %v15469_v28, %v13481_v13  ;;  %v5598_v23 = vadd.f32 %v13460_v48, %v5550_v25  ;;  %v5475_v17 = vadd.f32 %v5459_v3, %v5299_v58  ;;  %v5539_v22 = vmul.f32 %v15459_v41, %v5505_v39  ;;  %v13671_v39 = vld [vmem:[%s14071_s2 + $0x10] sm:$0xff] }
 0x940   :  { %v5554_v35 = vadd.f32 %v5538_v10, %v5474_v20  ;;  %v3218_v43 = vadd.f32 %v15515_v12, %v15514_v29  ;;  %v3219_v51 = vadd.f32 %v15517_v52, %v15516_v8  ;;  %v5623_v63 = vmul.f32 %v15469_v28, %v13610_v4 }
 0x941   :  { %v5566_v16 = vadd.f32 %v4382_v6, %v15518_v18  ;;  %v5555_v15 = vadd.f32 %v5539_v22, %v5475_v17  ;;  %v5631_v1 = vmul.f32 %v15469_v28, %v13600_v27  ;;  %v5663_v46 = vmul.f32 %v5627_v62, %v13481_v13  ;;  %v13687_v17 = vld [vmem:[%s14071_s2] sm:$0xff] }
 0x942   :  { %v5602_v33 = vadd.f32 %v13460_v48, %v5554_v35  ;;  %v5622_v41 = vmul.f32 %v15469_v28, %v13621_v24  ;;  %v5570_v38 = vadd.f32 %v4386_v55, %v3218_v43  ;;  %v5571_v40 = vadd.f32 %v4387_v7, %v3219_v51  ;;  %v13665_v7 = vld [vmem:[%s14071_s2 + $0x18] sm:$0xff]  ;;  %v13679_v35 = vld [vmem:[%s14071_s2 + $0x8] sm:$0xff]  ;;  %v13695_v22 = vld [vmem:[%s14073_s3] sm:$0xff] }
 0x943   :  { %v13640_v54 = vadd.f32 %v5598_v23, %v5566_v16  ;;  %v5603_v59 = vadd.f32 %v13280_v0, %v5555_v15  ;;  %v5659_v47 = vmul.f32 %v5623_v63, %v13610_v4  ;;  %v5626_v48 = vmul.f32 %v15469_v28, %v13544_v26  ;;  %6830 = vmatprep.mubr.msk.f32.mxu0 %vm22_vm0, %v13695_v22 }
 0x944   :  { %v13646_v61 = vadd.f32 %v5602_v33, %v5570_v38  ;;  %v5643_v58 = vadd.f32 %v5627_v62, %v5623_v63  ;;  %v5667_v25 = vmul.f32 %v5631_v1, %v13600_v27  ;;  %v5658_v60 = vmul.f32 %v5622_v41, %v13621_v24  ;;  %6844 = vmatprep.mubr.msk.f32.mxu1 %vm22_vm0, %v13695_v22 }
 0x945   :  { %v13648_v34 = vadd.f32 %v5603_v59, %v5571_v40  ;;  %v5679_v14 = vadd.f32 %v5663_v46, %v5659_v47  ;;  %v5638_v31 = vadd.f32 %v5626_v48, %v5622_v41  ;;  %v5630_v0 = vmul.f32 %v15469_v28, %v13640_v54 }
 0x946   :  { %v5644_v2 = vadd.f32 %v5643_v58, %v5631_v1  ;;  %v5662_v44 = vmul.f32 %v5626_v48, %v13544_v26  ;;  %v5634_v3 = vmul.f32 %v15469_v28, %v13646_v61  ;;  %v7268_v62 = vmov 29  }
 0x947   :  { %v5635_v30 = vmul.f32 %v15469_v28, %v13648_v34  ;;  %v5680_v36 = vadd.f32 %v5679_v14, %v5667_v25  ;;  %v5639_v5 = vadd.f32 %v5638_v31, %v5630_v0  ;;  %v5666_v6 = vmul.f32 %v5630_v0, %v13640_v54 }
 0x948   :  { %v5674_v10 = vadd.f32 %v5662_v44, %v5658_v60  ;;  %v5670_v45 = vmul.f32 %v5634_v3, %v13646_v61  ;;  %v15519_v23 = vmov 28   ;;  %v7269_v29 = vmov 30   ;;  %v15520_v44 = vld [vmem:[#allocation25_spill] sm:$0xff] }
 0x949   :  { %v5645_v19 = vadd.f32 %v5644_v2, %v5635_v30  ;;  %v5671_v57 = vmul.f32 %v5635_v30, %v13648_v34  ;;  %v5640_v20 = vadd.f32 %v5639_v5, %v5634_v3 }
 0x94a   :  { %v5675_v49 = vadd.f32 %v5674_v10, %v5666_v6 }
 0x94b   :  { %5646 = vadd.xlane.f32.xlu1 %v5645_v19  ;;  %v5681_v21 = vadd.f32 %v5680_v36, %v5671_v57  ;;  %v5834_v19 = vadd.s32 24, %v15520_v44 }
 0x94c   :  { %v5676_v55 = vadd.f32 %v5675_v49, %v5670_v45 }
 0x94d   :  { %5682 = vadd.xlane.f32.xlu0 %v5681_v21  ;;  %v5860_v45 = vand.u32 15, %v5834_v19 }
 0x94f   :  { %5641 = vadd.xlane.f32.xlu1 %v5640_v20  ;;  %vm13736_vm5 = vcmp.lt.s32.totalorder %v5860_v45, 9 }
 0x953   :  { %5677 = vadd.xlane.f32.xlu1 %v5676_v55 }
 0x963   :  { %5763 = vperm.xlu0 %7054, %v13665_v7  }
 0x964   :  { %5759 = vperm.xlu1 %7055, %v13671_v39  }
 0x967   :  { %7062 = vset.pattern.permute.xlu0 %v7269_v29 }
 0x968   :  { %7056 = vset.pattern.permute.xlu1 %v7268_v62  ;;  %5920 = vperm.xlu0 %7062, %v13679_v35  }
 0x969   :  { %5795 = vperm.xlu1 %7056, %v13665_v7  }
 0x96d   :  { %7057 = vset.pattern.permute.xlu1 %v15519_v23 }
 0x96e   :  { %5755 = vperm.xlu1 %7057, %v13679_v35  }
 0x972   :  { %7058 = vset.pattern.permute.xlu1 %v7268_v62 }
 0x973   :  { %5791 = vperm.xlu1 %7058, %v13671_v39  }
 0x977   :  { %7059 = vset.pattern.permute.xlu1 %v15519_v23 }
 0x978   :  { %5751 = vperm.xlu1 %7059, %v13687_v17  }
 0x97c   :  { %7060 = vset.pattern.permute.xlu1 %v7268_v62 }
 0x97d   :  { %5787 = vperm.xlu1 %7060, %v13679_v35  }
 0x981   :  { %5783 = vperm.xlu1 %7060, %v13687_v17  }
 0x985   :  { %7061 = vset.pattern.permute.xlu1 %v7269_v29 }
 0x986   :  { %5916 = vperm.xlu1 %7061, %v13687_v17  }
 0x98a   :  { %5924 = vperm.xlu1 %7061, %v13671_v39  }
 0x98e   :  { %5928 = vperm.xlu1 %7061, %v13665_v7  }
 0x9b5   :  { %v5657_v43 = vpop.xlane.xlu1 %5656 }
 0x9b6   :  { %v13705_v8 = vmul.f32 0.00390625, %v5657_v43 }
 0x9b8   :  { %v5705_v63 = vmul.f32 %v13705_v8, %v13705_v8  ;;  %v5713_v3 = vsub.f32 %v13452_v32, %v13705_v8  ;;  %v5717_v21 = vsub.f32 %v13465_v42, %v13705_v8 }
 0x9c0   :  { %v5652_v12 = vpop.xlane.xlu0 %5651 }
 0x9c1   :  { %v13709_v33 = vmul.f32 0.00390625, %v5652_v12 }
 0x9c3   :  { %v5704_v46 = vmul.f32 %v13709_v33, %v13709_v33 }
 0x9c4   :  { %v5693_v52 = vpop.xlane.xlu0 %5692 }
 0x9c5   :  { %v5701_v51 = vmul.f32 0.00390625, %v5693_v52 }
 0x9c7   :  { %v5709_v18 = vsub.f32 %v5701_v51, %v5705_v63  ;;  %v5712_v51 = vsub.f32 %v13526_v11, %v13709_v33  ;;  %v5716_v63 = vsub.f32 %v13530_v37, %v13709_v33 }
 0x9c8   :  { %v5688_v16 = vpop.xlane.xlu0 %5687 }
 0x9c9   :  { %v5729_v15 = vadd.f32 1e-05, %v5709_v18  ;;  %v5700_v1 = vmul.f32 0.00390625, %v5688_v16 }
 0x9cb   :  { %7067 = vrsqrt.f32 %v5729_v15  ;;  %v5708_v41 = vsub.f32 %v5700_v1, %v5704_v46  ;;  %v5832_v46 = vadd.s32 8, %v15520_v44 }
 0x9cd   :  { %v5728_v47 = vadd.f32 1e-05, %v5708_v41 }
 0x9cf   :  { %7069 = vrsqrt.f32 %v5728_v47 }
 0x9d4   :  { %v5647_v38 = vpop.xlane.xlu1 %5646 }
 0x9d5   :  { %v13713_v40 = vmul.f32 0.00390625, %v5647_v38 }
 0x9d6   :  { %v5683_v59 = vpop.xlane.xlu0 %5682 }
 0x9d7   :  { %v5699_v48 = vmul.f32 0.00390625, %v5683_v59  ;;  %v5703_v58 = vmul.f32 %v13713_v40, %v13713_v40  ;;  %v5711_v47 = vsub.f32 %v13610_v4, %v13713_v40 }
 0x9d8   :  { %v5642_v25 = vpop.xlane.xlu1 %5641  ;;  %v7068_v60 = vpop.eup %7067 }
 0x9d9   :  { %v13717_v14 = vmul.f32 0.00390625, %v5642_v25  ;;  %v5707_v31 = vsub.f32 %v5699_v48, %v5703_v58  ;;  %v5737_v10 = vmul.f32 %v7068_v60, %v5713_v3  ;;  %v5741_v20 = vmul.f32 %v7068_v60, %v5717_v21 }
 0x9da   :  { %v5715_v48 = vsub.f32 %v13481_v13, %v13713_v40  ;;  %v5721_v13 = vsub.f32 %v13468_v9, %v13705_v8  ;;  %v5724_v9 = vsub.f32 %v13573_v50, %v13709_v33 }
 0x9db   :  { %v5702_v2 = vmul.f32 %v13717_v14, %v13717_v14  ;;  %v5727_v57 = vadd.f32 1e-05, %v5707_v31  ;;  %v5846_v31 = vand.u32 15, %v5832_v46  ;;  %v5710_v19 = vsub.f32 %v13621_v24, %v13717_v14 }
 0x9dc   :  { %v5678_v30 = vpop.xlane.xlu1 %5677  ;;  %v7070_v52 = vpop.eup %7069  ;;  %v5714_v4 = vsub.f32 %v13544_v26, %v13717_v14  ;;  %v5720_v26 = vsub.f32 %v13429_v53, %v13709_v33 }
 0x9dd   :  { %v5698_v0 = vmul.f32 0.00390625, %v5678_v30  ;;  %7071 = vrsqrt.f32 %v5727_v57  ;;  %v5736_v16 = vmul.f32 %v7070_v52, %v5712_v51  ;;  %v5740_v15 = vmul.f32 %v7070_v52, %v5716_v63 }
 0x9de   :  { %v13726_v5 = vpop.permute.xlu0 %5763  ;;  %v5725_v57 = vsub.f32 %v13509_v56, %v13705_v8  ;;  %vm13775_vm6 = vcmp.lt.s32.totalorder %v5846_v31, 9  ;;  %v5719_v56 = vsub.f32 %v13600_v27, %v13713_v40  ;;  %v5723_v8 = vsub.f32 %v13648_v34, %v13713_v40 }
 0x9df   :  { %v5706_v36 = vsub.f32 %v5698_v0, %v5702_v2  ;;  %v5769_v55 = vmul.f32 %v13726_v5, %v5737_v10  ;;  %v5773_v62 = vmul.f32 %v13726_v5, %v5741_v20  ;;  %v5745_v20 = vmul.f32 %v7068_v60, %v5721_v13 }
 0x9e0   :  { %v13728_v6 = vpop.permute.xlu1 %5759  ;;  %v5749_v45 = vmul.f32 %v7068_v60, %v5725_v57  ;;  %v5718_v60 = vsub.f32 %v13640_v54, %v13717_v14  ;;  %v5722_v40 = vsub.f32 %v13646_v61, %v13717_v14 }
 0x9e1   :  { %v5726_v49 = vadd.f32 1e-05, %v5706_v36  ;;  %v5768_v11 = vmul.f32 %v13728_v6, %v5736_v16  ;;  %v5772_v37 = vmul.f32 %v13728_v6, %v5740_v15 }
 0x9e2   :  { %v5781_v27 = vmul.f32 %v13726_v5, %v5749_v45 }
 0x9e3   :  { %7073 = vrsqrt.f32 %v5726_v49 }
 0x9e4   :  { %v13732_v23 = vpop.permute.xlu1 %5795 }
 0x9e5   :  { %v5801_v32 = vadd.f32 %v13732_v23, %v5769_v55  ;;  %v5805_v29 = vadd.f32 %v13732_v23, %v5773_v62 }
 0x9e7   :  { %v5817_v12 = vmax.f32 %v5801_v32, 0.0  ;;  %v5821_v43 = vmax.f32 %v5805_v29, 0.0  ;;  %v5777_v32 = vmul.f32 %v13726_v5, %v5745_v20  ;;  %v5744_v29 = vmul.f32 %v7070_v52, %v5720_v26 }
 0x9e8   :  { %v5813_v5 = vadd.f32 %v13732_v23, %v5781_v27 }
 0x9e9   :  { %6822 = vmatprep.subr.msk.mxu0 %vm13736_vm5, %v5817_v12  ;;  %6836 = vmatprep.subr.msk.mxu1 %vm13736_vm5, %v5821_v43  ;;  %v13748_v18 = vpop.permute.xlu1 %5755  ;;  %v5776_v51 = vmul.f32 %v13728_v6, %v5744_v29 }
 0x9ea   :  { %6823 = vmatpush3.msk.msra.mxu0 %vm13736_vm5, %v5817_v12  ;;  %6837 = vmatpush3.msk.msra.mxu1 %vm13736_vm5, %v5821_v43  ;;  %v7072_v59 = vpop.eup %7071  ;;  %v5748_v12 = vmul.f32 %v7070_v52, %v5724_v9  ;;  %v5809_v52 = vadd.f32 %v13732_v23, %v5777_v32 }
 0x9eb   :  { %v5735_v30 = vmul.f32 %v7072_v59, %v5711_v47  ;;  %v5739_v2 = vmul.f32 %v7072_v59, %v5715_v48  ;;  %v5743_v15 = vmul.f32 %v7072_v59, %v5719_v56 }
 0x9ec   :  { %v5780_v34 = vmul.f32 %v13728_v6, %v5748_v12 }
 0x9ed   :  { %v5767_v3 = vmul.f32 %v13748_v18, %v5735_v30  ;;  %v5771_v21 = vmul.f32 %v13748_v18, %v5739_v2  ;;  %v5775_v47 = vmul.f32 %v13748_v18, %v5743_v15  ;;  %v5913_v2 = vld [vmem:[%s14073_s3 + $0x10] sm:$0xff] }
 0x9ee   :  { %v13756_v1 = vpop.permute.xlu1 %5791 }
 0x9ef   :  { %v5800_v41 = vadd.f32 %v13756_v1, %v5768_v11  ;;  %v5804_v38 = vadd.f32 %v13756_v1, %v5772_v37  ;;  %v5747_v11 = vmul.f32 %v7072_v59, %v5723_v8  ;;  %v5808_v37 = vadd.f32 %v13756_v1, %v5776_v51 }
 0x9f0   :  { %v7074_v44 = vpop.eup %7073  ;;  %v5812_v23 = vadd.f32 %v13756_v1, %v5780_v34  ;;  %v5829_v59 = vmax.f32 %v5813_v5, 0.0 }
 0x9f1   :  { %v5816_v58 = vmax.f32 %v5800_v41, 0.0  ;;  %v5820_v25 = vmax.f32 %v5804_v38, 0.0  ;;  %v5734_v10 = vmul.f32 %v7074_v44, %v5710_v19  ;;  %v5738_v24 = vmul.f32 %v7074_v44, %v5714_v4  ;;  %v5912_v41 = vld [vmem:[%s14073_s3 + $0x8] sm:$0xff] }
 0x9f2   :  { %v5742_v61 = vmul.f32 %v7074_v44, %v5718_v60  ;;  %v5746_v46 = vmul.f32 %v7074_v44, %v5722_v40  ;;  %v5825_v38 = vmax.f32 %v5809_v52, 0.0  ;;  %v5779_v48 = vmul.f32 %v13748_v18, %v5747_v11 }
 0x9f3   :  { %6824 = vmatprep.subr.mxu0 %v5816_v58  ;;  %6838 = vmatprep.subr.mxu1 %v5820_v25  ;;  %v13765_v0 = vpop.permute.xlu1 %5751  ;;  %v5828_v18 = vmax.f32 %v5812_v23, 0.0 }
 0x9f4   :  { %6825 = vmatpush3.msra.mxu0 %v5816_v58  ;;  %6839 = vmatpush3.msra.mxu1 %v5820_v25  ;;  %v5766_v53 = vmul.f32 %v13765_v0, %v5734_v10  ;;  %v5770_v50 = vmul.f32 %v13765_v0, %v5738_v24  ;;  %v5774_v58 = vmul.f32 %v13765_v0, %v5742_v61  ;;  %v5824_v25 = vmax.f32 %v5808_v37, 0.0 }
 0x9f5   :  { %v5778_v31 = vmul.f32 %v13765_v0, %v5746_v46  ;;  %v5914_v0 = vld [vmem:[%s14073_s3 + $0x18] sm:$0xff] }
 0x9f8   :  { %v5788_v49 = vpop.permute.xlu1 %5787 }
 0x9f9   :  { %v5799_v55 = vadd.f32 %v5788_v49, %v5767_v3  ;;  %v5803_v62 = vadd.f32 %v5788_v49, %v5771_v21  ;;  %v5807_v1 = vadd.f32 %v5788_v49, %v5775_v47  ;;  %v5811_v30 = vadd.f32 %v5788_v49, %v5779_v48  ;;  %v13858_v3 = vpop.permute.xlu0 %5920 }
 0x9fb   :  { %v5815_v33 = vmax.f32 %v5799_v55, 0.0  ;;  %v5819_v43 = vmax.f32 %v5803_v62, 0.0  ;;  %v5823_v4 = vmax.f32 %v5807_v1, 0.0  ;;  %v5827_v13 = vmax.f32 %v5811_v30, 0.0 }
 0x9fc   :  { %v5784_v63 = vpop.permute.xlu1 %5783 }
 0x9fd   :  { %6826 = vmatprep.subr.msk.mxu0 %vm13775_vm6, %v5815_v33  ;;  %6840 = vmatprep.subr.msk.mxu1 %vm13775_vm6, %v5819_v43  ;;  %v5798_v54 = vadd.f32 %v5784_v63, %v5766_v53  ;;  %v5802_v16 = vadd.f32 %v5784_v63, %v5770_v50  ;;  %v5806_v44 = vadd.f32 %v5784_v63, %v5774_v58 }
 0x9fe   :  { %6827 = vmatpush3.msk.msra.mxu0 %vm13775_vm6, %v5815_v33  ;;  %6841 = vmatpush3.msk.msra.mxu1 %vm13775_vm6, %v5819_v43  ;;  %v5810_v19 = vadd.f32 %v5784_v63, %v5778_v31 }
 0x9ff   :  { %v5814_v14 = vmax.f32 %v5798_v54, 0.0  ;;  %v5818_v6 = vmax.f32 %v5802_v16, 0.0  ;;  %v5822_v42 = vmax.f32 %v5806_v44, 0.0 }
 0xa00   :  { %v5826_v57 = vmax.f32 %v5810_v19, 0.0 }
 0xa01   :  { %6828 = vmatprep.subr.mxu0 %v5814_v14  ;;  %6842 = vmatprep.subr.mxu1 %v5818_v6  ;;  %v13856_v36 = vpop.permute.xlu1 %5916 }
 0xa02   :  { %6829 = vmatpush3.msra.mxu0 %v5814_v14  ;;  %6843 = vmatpush3.msra.mxu1 %v5818_v6 }
 0xa03   :  { %6831 = vmatmul.mubr.msk.f32.vlgmr.msra.gmra.mxu0 %vm22_vm0, %v5912_v41  ;;  %6845 = vmatmul.mubr.msk.f32.vlgmr.msra.gmra.mxu1 %vm22_vm0, %v5912_v41 }
 0xa04   :  { %6850 = vmatprep.subr.msk.mxu0 %vm13736_vm5, %v5825_v38  ;;  %6864 = vmatprep.subr.msk.mxu1 %vm13736_vm5, %v5829_v59 }
 0xa05   :  { %6851 = vmatpush3.msk.msra.mxu0 %vm13736_vm5, %v5825_v38  ;;  %6865 = vmatpush3.msk.msra.mxu1 %vm13736_vm5, %v5829_v59  ;;  %v13871_v49 = vpop.permute.xlu1 %5924 }
 0xa06   :  { %6852 = vmatprep.subr.mxu0 %v5824_v25  ;;  %6866 = vmatprep.subr.mxu1 %v5828_v18 }
 0xa07   :  { %6833 = vmatprep.mubr.msk.f32.mxu0 %vm22_vm0, %v5913_v2  ;;  %6847 = vmatprep.mubr.msk.f32.mxu1 %vm22_vm0, %v5913_v2 }
 0xa08   :  { %6853 = vmatpush3.msra.mxu0 %v5824_v25  ;;  %6867 = vmatpush3.msra.mxu1 %v5828_v18 }
 0xa09   :  { %6834 = vmatmul.mubr.msk.f32.gmra.mxu0 %vm22_vm0, %v5914_v0  ;;  %6848 = vmatmul.mubr.msk.f32.gmra.mxu1 %vm22_vm0, %v5914_v0  ;;  %v13883_v53 = vpop.permute.xlu1 %5928 }
 0xa0a   :  { %6854 = vmatprep.subr.msk.mxu0 %vm13775_vm6, %v5823_v4  ;;  %6868 = vmatprep.subr.msk.mxu1 %vm13775_vm6, %v5827_v13 }
 0xa0b   :  { %6855 = vmatpush3.msk.msra.mxu0 %vm13775_vm6, %v5823_v4  ;;  %6869 = vmatpush3.msk.msra.mxu1 %vm13775_vm6, %v5827_v13 }
 0xa0c   :  { %6856 = vmatprep.subr.mxu0 %v5822_v42  ;;  %6870 = vmatprep.subr.mxu1 %v5826_v57 }
 0xa0d   :  { %6857 = vmatpush3.msra.mxu0 %v5822_v42  ;;  %6858 = vmatprep.mubr.msk.f32.mxu0 %vm22_vm0, %v13695_v22 }
 0xa0e   :  { %6871 = vmatpush3.msra.mxu1 %v5826_v57  ;;  %6872 = vmatprep.mubr.msk.f32.mxu1 %vm22_vm0, %v13695_v22 }
 0xa0f   :  { %6859 = vmatmul.mubr.msk.f32.vlgmr.msra.gmra.mxu0 %vm22_vm0, %v5912_v41  ;;  %6873 = vmatmul.mubr.msk.f32.vlgmr.msra.gmra.mxu1 %vm22_vm0, %v5912_v41 }
 0xa10   :  { %6861 = vmatprep.mubr.msk.f32.mxu0 %vm22_vm0, %v5913_v2  ;;  %6875 = vmatprep.mubr.msk.f32.mxu1 %vm22_vm0, %v5913_v2 }
 0xa13   :  { %6862 = vmatmul.mubr.msk.f32.gmra.mxu0 %vm22_vm0, %v5914_v0  ;;  %6876 = vmatmul.mubr.msk.f32.gmra.mxu1 %vm22_vm0, %v5914_v0 }
 0xac3   :  { %v6832_v21 = vpop.f32.mrf.mxu0  ;;  %v6846_v10 = vpop.f32.mrf.mxu1 }
 0xac4   :  { %v13861_v22 = vadd.f32 %v6832_v21, %v13858_v3  ;;  %v13893_v27 = vadd.f32 %v6846_v10, %v13858_v3 }
 0xac5   :  { %v6009_v24 = vpop.f32.mrf.mxu0  ;;  %v6126_v20 = vpop.f32.mrf.mxu1 }
 0xac6   :  { %v13864_v45 = vadd.f32 %v6009_v24, %v13856_v36  ;;  %v13867_v26 = vadd.f32 %v6126_v20, %v13856_v36  ;;  %v6029_v9 = vmul.f32 %v15469_v28, %v13861_v22  ;;  %v6146_v52 = vmul.f32 %v15469_v28, %v13893_v27 }
 0xac8   :  { %6034 = vadd.xlane.f32.xlu1 %v6029_v9  ;;  %v6028_v56 = vmul.f32 %v15469_v28, %v13864_v45  ;;  %v6145_v62 = vmul.f32 %v15469_v28, %v13867_v26  ;;  %v6045_v14 = vmul.f32 %v6029_v9, %v13861_v22  ;;  %v6162_v59 = vmul.f32 %v6146_v52, %v13893_v27 }
 0xac9   :  { %v6835_v8 = vpop.f32.mrf.mxu0  ;;  %v6849_v55 = vpop.f32.mrf.mxu1 }
 0xaca   :  { %6032 = vadd.xlane.f32.xlu0 %v6028_v56  ;;  %v13886_v50 = vadd.f32 %v6835_v8, %v13883_v53  ;;  %v6044_v34 = vmul.f32 %v6028_v56, %v13864_v45  ;;  %v13899_v63 = vadd.f32 %v6849_v55, %v13883_v53  ;;  %v6161_v15 = vmul.f32 %v6145_v62, %v13867_v26 }
 0xacb   :  { %v6019_v32 = vpop.f32.mrf.mxu0  ;;  %v6136_v29 = vpop.f32.mrf.mxu1  ;;  %v7270_v8 = vmov 31  }
 0xacc   :  { %v13878_v12 = vadd.f32 %v6019_v32, %v13871_v49  ;;  %v13881_v60 = vadd.f32 %v6136_v29, %v13871_v49  ;;  %6149 = vadd.xlane.f32.xlu1 %v6145_v62  ;;  %v6031_v51 = vmul.f32 %v15469_v28, %v13886_v50  ;;  %v6148_v5 = vmul.f32 %v15469_v28, %v13899_v63 }
 0xacd   :  { %7063 = vset.pattern.permute.xlu1 %v7270_v8  ;;  %7064 = vset.pattern.permute.xlu0 %v7270_v8 }
 0xace   :  { %v6030_v33 = vmul.f32 %v15469_v28, %v13878_v12  ;;  %v6147_v43 = vmul.f32 %v15469_v28, %v13881_v60  ;;  %v6047_v41 = vmul.f32 %v6031_v51, %v13886_v50  ;;  %v6164_v25 = vmul.f32 %v6148_v5, %v13899_v63 }
 0xacf   :  { %v6860_v40 = vpop.f32.mrf.mxu0  ;;  %v6874_v38 = vpop.f32.mrf.mxu1 }
 0xad0   :  { %6036 = vadd.xlane.f32.xlu0 %v6030_v33  ;;  %6153 = vadd.xlane.f32.xlu1 %v6147_v43  ;;  %v6046_v54 = vmul.f32 %v6030_v33, %v13878_v12  ;;  %v6163_v6 = vmul.f32 %v6147_v43, %v13881_v60  ;;  %v13922_v58 = vadd.f32 %v6860_v40, %v13858_v3 }
 0xad1   :  { %v6243_v16 = vpop.f32.mrf.mxu0  ;;  %v6360_v48 = vpop.f32.mrf.mxu1 }
 0xad2   :  { %v13908_v61 = vadd.f32 %v6243_v16, %v13856_v36  ;;  %v13927_v30 = vadd.f32 %v6360_v48, %v13856_v36  ;;  %v6263_v2 = vmul.f32 %v15469_v28, %v13922_v58  ;;  %v13946_v36 = vadd.f32 %v6874_v38, %v13858_v3 }
 0xad3   :  { %v6863_v11 = vpop.f32.mrf.mxu0  ;;  %v6877_v1 = vpop.f32.mrf.mxu1 }
 0xad4   :  { %6038 = vadd.xlane.f32.xlu0 %v6031_v51  ;;  %6048 = vadd.xlane.f32.xlu1 %v6044_v34  ;;  %v6262_v23 = vmul.f32 %v15469_v28, %v13908_v61  ;;  %v13930_v18 = vadd.f32 %v6863_v11, %v13883_v53  ;;  %v6379_v13 = vmul.f32 %v15469_v28, %v13927_v30 }
 0xad5   :  { %v6253_v37 = vpop.f32.mrf.mxu0  ;;  %v6370_v44 = vpop.f32.mrf.mxu1  ;;  %v6279_v42 = vmul.f32 %v6263_v2, %v13922_v58  ;;  %v13951_v24 = vadd.f32 %v6877_v1, %v13883_v53  ;;  %v6380_v20 = vmul.f32 %v15469_v28, %v13946_v36 }
 0xad6   :  { %v13913_v46 = vadd.f32 %v6253_v37, %v13871_v49  ;;  %v6278_v31 = vmul.f32 %v6262_v23, %v13908_v61  ;;  %v13936_v19 = vadd.f32 %v6370_v44, %v13871_v49  ;;  %v6265_v4 = vmul.f32 %v15469_v28, %v13930_v18 }
 0xad7   :  { %v6395_v10 = vmul.f32 %v6379_v13, %v13927_v30  ;;  %v6382_v3 = vmul.f32 %v15469_v28, %v13951_v24  ;;  %v6396_v49 = vmul.f32 %v6380_v20, %v13946_v36 }
 0xad8   :  { %6151 = vadd.xlane.f32.xlu0 %v6146_v52  ;;  %6052 = vadd.xlane.f32.xlu1 %v6046_v54  ;;  %v6264_v47 = vmul.f32 %v15469_v28, %v13913_v46  ;;  %v6381_v57 = vmul.f32 %v15469_v28, %v13936_v19  ;;  %v6281_v21 = vmul.f32 %v6265_v4, %v13930_v18 }
 0xad9   :  { %v6398_v56 = vmul.f32 %v6382_v3, %v13951_v24 }
 0xada   :  { %v6280_v0 = vmul.f32 %v6264_v47, %v13913_v46  ;;  %v6397_v9 = vmul.f32 %v6381_v57, %v13936_v19 }
 0xadc   :  { %6155 = vadd.xlane.f32.xlu0 %v6148_v5  ;;  %6165 = vadd.xlane.f32.xlu1 %v6161_v15 }
 0xae0   :  { %6050 = vadd.xlane.f32.xlu0 %v6045_v14  ;;  %6169 = vadd.xlane.f32.xlu1 %v6163_v6 }
 0xae4   :  { %6054 = vadd.xlane.f32.xlu0 %v6047_v41  ;;  %6266 = vadd.xlane.f32.xlu1 %v6262_v23 }
 0xae8   :  { %6167 = vadd.xlane.f32.xlu0 %v6162_v59  ;;  %6270 = vadd.xlane.f32.xlu1 %v6264_v47 }
 0xaec   :  { %6171 = vadd.xlane.f32.xlu0 %v6164_v25  ;;  %6282 = vadd.xlane.f32.xlu1 %v6278_v31 }
 0xaf0   :  { %6268 = vadd.xlane.f32.xlu0 %v6263_v2  ;;  %6286 = vadd.xlane.f32.xlu1 %v6280_v0 }
 0xaf4   :  { %6272 = vadd.xlane.f32.xlu0 %v6265_v4  ;;  %6383 = vadd.xlane.f32.xlu1 %v6379_v13 }
 0xaf8   :  { %6284 = vadd.xlane.f32.xlu0 %v6279_v42  ;;  %6387 = vadd.xlane.f32.xlu1 %v6381_v57 }
 0xafc   :  { %6288 = vadd.xlane.f32.xlu0 %v6281_v21  ;;  %6399 = vadd.xlane.f32.xlu1 %v6395_v10 }
 0xb00   :  { %6385 = vadd.xlane.f32.xlu0 %v6380_v20  ;;  %6403 = vadd.xlane.f32.xlu1 %v6397_v9 }
 0xb04   :  { %6389 = vadd.xlane.f32.xlu0 %v6382_v3 }
 0xb08   :  { %6401 = vadd.xlane.f32.xlu0 %v6396_v49 }
 0xb0c   :  { %6405 = vadd.xlane.f32.xlu0 %v6398_v56 }
 0xb51   :  { %v6035_v55 = vpop.xlane.xlu1 %6034 }
 0xb53   :  { %v6033_v62 = vpop.xlane.xlu0 %6032 }
 0xb55   :  { %v6150_v32 = vpop.xlane.xlu1 %6149 }
 0xb56   :  { %v6157_v23 = vadd.f32 %v6150_v32, %v6033_v62 }
 0xb59   :  { %v6037_v29 = vpop.xlane.xlu0 %6036  ;;  %v6154_v53 = vpop.xlane.xlu1 %6153 }
 0xb5a   :  { %v6159_v48 = vadd.f32 %v6154_v53, %v6037_v29 }
 0xb5d   :  { %v6039_v33 = vpop.xlane.xlu0 %6038  ;;  %v6049_v43 = vpop.xlane.xlu1 %6048 }
 0xb61   :  { %v6152_v51 = vpop.xlane.xlu0 %6151  ;;  %v6053_v34 = vpop.xlane.xlu1 %6052 }
 0xb62   :  { %v6158_v20 = vadd.f32 %v6152_v51, %v6035_v55 }
 0xb65   :  { %v6156_v28 = vpop.xlane.xlu0 %6155  ;;  %v6166_v40 = vpop.xlane.xlu1 %6165 }
 0xb66   :  { %v6173_v2 = vadd.f32 %v6166_v40, %v6049_v43  ;;  %v6160_v43 = vadd.f32 %v6156_v28, %v6039_v33 }
 0xb69   :  { %v6051_v52 = vpop.xlane.xlu0 %6050  ;;  %v6170_v54 = vpop.xlane.xlu1 %6169 }
 0xb6a   :  { %v6175_v21 = vadd.f32 %v6170_v54, %v6053_v34 }
 0xb6d   :  { %v6055_v16 = vpop.xlane.xlu0 %6054  ;;  %v6267_v5 = vpop.xlane.xlu1 %6266 }
 0xb6e   :  { %v6274_v47 = vadd.f32 %v6267_v5, %v6157_v23 }
 0xb71   :  { %v6168_v15 = vpop.xlane.xlu0 %6167  ;;  %v6271_v11 = vpop.xlane.xlu1 %6270 }
 0xb72   :  { %v6276_v0 = vadd.f32 %v6271_v11, %v6159_v48  ;;  %v6174_v51 = vadd.f32 %v6168_v15, %v6051_v52 }
 0xb75   :  { %v6172_v14 = vpop.xlane.xlu0 %6171  ;;  %v6283_v6 = vpop.xlane.xlu1 %6282 }
 0xb76   :  { %v6290_v44 = vadd.f32 %v6283_v6, %v6173_v2  ;;  %v6176_v48 = vadd.f32 %v6172_v14, %v6055_v16 }
 0xb79   :  { %v6269_v37 = vpop.xlane.xlu0 %6268  ;;  %v6287_v41 = vpop.xlane.xlu1 %6286 }
 0xb7a   :  { %v6292_v9 = vadd.f32 %v6287_v41, %v6175_v21  ;;  %v6275_v32 = vadd.f32 %v6269_v37, %v6158_v20 }
 0xb7d   :  { %v6273_v38 = vpop.xlane.xlu0 %6272  ;;  %v6384_v59 = vpop.xlane.xlu1 %6383 }
 0xb7e   :  { %v6391_v25 = vadd.f32 %v6384_v59, %v6274_v47  ;;  %v6277_v11 = vadd.f32 %v6273_v38, %v6160_v43 }
 0xb80   :  { %v13960_v4 = vmul.f32 0.00390625, %v6391_v25 }
 0xb81   :  { %v6285_v31 = vpop.xlane.xlu0 %6284  ;;  %v6388_v1 = vpop.xlane.xlu1 %6387 }
 0xb82   :  { %v6393_v13 = vadd.f32 %v6388_v1, %v6276_v0  ;;  %v6419_v49 = vmul.f32 %v13960_v4, %v13960_v4  ;;  %v6291_v41 = vadd.f32 %v6285_v31, %v6174_v51  ;;  %v6516_v43 = vsub.f32 %v13908_v61, %v13960_v4 }
 0xb84   :  { %v13962_v3 = vmul.f32 0.00390625, %v6393_v13 }
 0xb85   :  { %v6289_v42 = vpop.xlane.xlu0 %6288  ;;  %v6400_v57 = vpop.xlane.xlu1 %6399 }
 0xb86   :  { %v6407_v10 = vadd.f32 %v6400_v57, %v6290_v44  ;;  %v6421_v34 = vmul.f32 %v13962_v3, %v13962_v3  ;;  %v6293_v28 = vadd.f32 %v6289_v42, %v6176_v48 }
 0xb88   :  { %v6415_v56 = vmul.f32 0.00390625, %v6407_v10 }
 0xb89   :  { %v6386_v8 = vpop.xlane.xlu0 %6385  ;;  %v6404_v62 = vpop.xlane.xlu1 %6403 }
 0xb8a   :  { %v6423_v29 = vsub.f32 %v6415_v56, %v6419_v49  ;;  %v6409_v53 = vadd.f32 %v6404_v62, %v6292_v9  ;;  %v6392_v5 = vadd.f32 %v6386_v8, %v6275_v32  ;;  %v7271_v56 = vmov 32  }
 0xb8c   :  { %v6427_v40 = vadd.f32 1e-05, %v6423_v29  ;;  %v6417_v54 = vmul.f32 0.00390625, %v6409_v53  ;;  %v13968_v23 = vmul.f32 0.00390625, %v6392_v5  ;;  %v6439_v29 = vsub.f32 %v13864_v45, %v13960_v4 }
 0xb8d   :  { %v6390_v55 = vpop.xlane.xlu0 %6389  ;;  %v6496_v53 = vsub.f32 %v13867_v26, %v13960_v4 }
 0xb8e   :  { %7075 = vrsqrt.f32 %v6427_v40  ;;  %v6425_v6 = vsub.f32 %v6417_v54, %v6421_v34  ;;  %v6394_v47 = vadd.f32 %v6390_v55, %v6277_v11  ;;  %v6420_v2 = vmul.f32 %v13968_v23, %v13968_v23 }
 0xb8f   :  { %v6440_v34 = vsub.f32 %v13861_v22, %v13968_v23  ;;  %v6497_v45 = vsub.f32 %v13893_v27, %v13968_v23  ;;  %v6517_v26 = vsub.f32 %v13922_v58, %v13968_v23  ;;  %v6537_v61 = vsub.f32 %v13946_v36, %v13968_v23 }
 0xb90   :  { %v6429_v59 = vadd.f32 1e-05, %v6425_v6  ;;  %v13970_v25 = vmul.f32 0.00390625, %v6394_v47  ;;  %v6441_v27 = vsub.f32 %v13878_v12, %v13962_v3  ;;  %v6498_v58 = vsub.f32 %v13881_v60, %v13962_v3 }
 0xb91   :  { %v6402_v37 = vpop.xlane.xlu0 %6401  ;;  %v6518_v36 = vsub.f32 %v13913_v46, %v13962_v3  ;;  %v6538_v23 = vsub.f32 %v13936_v19, %v13962_v3 }
 0xb92   :  { %7077 = vrsqrt.f32 %v6429_v59  ;;  %v6408_v33 = vadd.f32 %v6402_v37, %v6291_v41  ;;  %v6422_v31 = vmul.f32 %v13970_v25, %v13970_v25 }
 0xb94   :  { %v6416_v1 = vmul.f32 0.00390625, %v6408_v33 }
 0xb95   :  { %v6406_v52 = vpop.xlane.xlu0 %6405 }
 0xb96   :  { %v6424_v15 = vsub.f32 %v6416_v1, %v6420_v2  ;;  %v6410_v38 = vadd.f32 %v6406_v52, %v6293_v28 }
 0xb98   :  { %v6428_v0 = vadd.f32 1e-05, %v6424_v15  ;;  %v6418_v44 = vmul.f32 0.00390625, %v6410_v38 }
 0xb9a   :  { %7079 = vrsqrt.f32 %v6428_v0  ;;  %v6426_v13 = vsub.f32 %v6418_v44, %v6422_v31  ;;  %v6442_v44 = vsub.f32 %v13886_v50, %v13970_v25 }
 0xb9b   :  { %v7076_v16 = vpop.eup %7075 }
 0xb9c   :  { %v6430_v14 = vadd.f32 1e-05, %v6426_v13  ;;  %v6435_v42 = vmul.f32 %v13687_v17, %v7076_v16  ;;  %v6499_v13 = vsub.f32 %v13899_v63, %v13970_v25  ;;  %v6519_v16 = vsub.f32 %v13930_v18, %v13970_v25 }
 0xb9e   :  { %7081 = vrsqrt.f32 %v6430_v14  ;;  %6445 = vperm.xlu1 %7063, %v6435_v42   ;;  %v6539_v14 = vsub.f32 %v13951_v24, %v13970_v25 }
 0xb9f   :  { %v7078_v57 = vpop.eup %7077 }
 0xba0   :  { %v6437_v21 = vmul.f32 %v13671_v39, %v7078_v57 }
 0xba2   :  { %6455 = vperm.xlu1 %7063, %v6437_v21  }
 0xba7   :  { %v7080_v10 = vpop.eup %7079 }
 0xba8   :  { %v6436_v20 = vmul.f32 %v13679_v35, %v7080_v10 }
 0xbaa   :  { %6450 = vperm.xlu0 %7064, %v6436_v20  }
 0xbab   :  { %v7082_v9 = vpop.eup %7081 }
 0xbac   :  { %v6438_v49 = vmul.f32 %v13665_v7, %v7082_v9 }
 0xbae   :  { %6460 = vperm.xlu1 %7063, %v6438_v49   ;;  %7066 = vset.pattern.permute.xlu0 %v7271_v56 }
 0xbb2   :  { %7065 = vset.pattern.permute.xlu1 %v7271_v56 }
 0xbb3   :  { %6468 = vperm.xlu1 %7065, %v13687_v17  }
 0xbb7   :  { %6472 = vperm.xlu1 %7065, %v13679_v35   ;;  %v6536_v35 = vsub.f32 %v13927_v30, %v13960_v4 }
 0xbbb   :  { %6476 = vperm.xlu1 %7065, %v13671_v39  }
 0xbbf   :  { %6480 = vperm.xlu1 %7065, %v13665_v7  }
 0xc19   :  { %v6446_v8 = vpop.permute.xlu1 %6445 }
 0xc1a   :  { %v6463_v17 = vmul.f32 %v6446_v8, %v6439_v29  ;;  %v6500_v39 = vmul.f32 %v6496_v53, %v6446_v8  ;;  %v6520_v40 = vmul.f32 %v6516_v43, %v6446_v8  ;;  %v6540_v7 = vmul.f32 %v6536_v35, %v6446_v8 }
 0xc1d   :  { %v6456_v62 = vpop.permute.xlu1 %6455 }
 0xc1e   :  { %v6465_v3 = vmul.f32 %v6456_v62, %v6441_v27  ;;  %v6502_v28 = vmul.f32 %v6498_v58, %v6456_v62  ;;  %v6522_v1 = vmul.f32 %v6518_v36, %v6456_v62  ;;  %v6542_v2 = vmul.f32 %v6538_v23, %v6456_v62 }
 0xc25   :  { %v6451_v5 = vpop.permute.xlu0 %6450 }
 0xc26   :  { %v6464_v11 = vmul.f32 %v6451_v5, %v6440_v34  ;;  %v6501_v6 = vmul.f32 %v6497_v45, %v6451_v5  ;;  %v6521_v41 = vmul.f32 %v6517_v26, %v6451_v5  ;;  %v6541_v59 = vmul.f32 %v6537_v61, %v6451_v5 }
 0xc29   :  { %v13984_v32 = vpop.permute.xlu1 %6460 }
 0xc2a   :  { %v6466_v25 = vmul.f32 %v13984_v32, %v6442_v44  ;;  %v6503_v42 = vmul.f32 %v6499_v13, %v13984_v32  ;;  %v6523_v57 = vmul.f32 %v6519_v16, %v13984_v32  ;;  %v6543_v21 = vmul.f32 %v6539_v14, %v13984_v32 }
 0xc2e   :  { %v6469_v54 = vpop.permute.xlu1 %6468 }
 0xc2f   :  { %v6483_v55 = vadd.f32 %v6469_v54, %v6463_v17  ;;  %v6504_v30 = vadd.f32 %v6500_v39, %v6469_v54  ;;  %v6524_v4 = vadd.f32 %v6520_v40, %v6469_v54  ;;  %v6544_v51 = vadd.f32 %v6540_v7, %v6469_v54 }
 0xc31   :  { %v6487_v47 = vmax.f32 %v6483_v55, 0.0  ;;  %v6508_v22 = vmax.f32 %v6504_v30, 0.0  ;;  %v6528_v37 = vmax.f32 %v6524_v4, 0.0  ;;  %v6548_v48 = vmax.f32 %v6544_v51, 0.0 }
 0xc32   :  { %v6473_v33 = vpop.permute.xlu1 %6472 }
 0xc33   :  { %6491 = vst [vmem:[%s14074_s4] sm:$0xff] %v6487_v47  ;;  %6512 = vst [vmem:[%s14074_s4 + $0x8] sm:$0xff] %v6508_v22  ;;  %v6484_v12 = vadd.f32 %v6473_v33, %v6464_v11  ;;  %v6505_v60 = vadd.f32 %v6501_v6, %v6473_v33  ;;  %v6525_v46 = vadd.f32 %v6521_v41, %v6473_v33 }
 0xc34   :  { %6532 = vst [vmem:[%s14074_s4 + $0x10] sm:$0xff] %v6528_v37  ;;  %6552 = vst [vmem:[%s14074_s4 + $0x18] sm:$0xff] %v6548_v48  ;;  %v6545_v19 = vadd.f32 %v6541_v59, %v6473_v33 }
 0xc35   :  { %v6488_v52 = vmax.f32 %v6484_v12, 0.0  ;;  %v6509_v15 = vmax.f32 %v6505_v60, 0.0  ;;  %v6529_v38 = vmax.f32 %v6525_v46, 0.0 }
 0xc36   :  { %v6549_v0 = vmax.f32 %v6545_v19, 0.0  ;;  %v6477_v31 = vpop.permute.xlu1 %6476 }
 0xc37   :  { %6492 = vst [vmem:[%s14074_s4 + $0x20] sm:$0x1] %v6488_v52  ;;  %6513 = vst [vmem:[%s14074_s4 + $0x28] sm:$0x1] %v6509_v15  ;;  %v6485_v50 = vadd.f32 %v6477_v31, %v6465_v3  ;;  %v6506_v63 = vadd.f32 %v6502_v28, %v6477_v31  ;;  %v6526_v18 = vadd.f32 %v6522_v1, %v6477_v31 }
 0xc38   :  { %6533 = vst [vmem:[%s14074_s4 + $0x30] sm:$0x1] %v6529_v38  ;;  %6553 = vst [vmem:[%s14074_s4 + $0x38] sm:$0x1] %v6549_v0  ;;  %v6546_v24 = vadd.f32 %v6542_v2, %v6477_v31 }
 0xc39   :  { %v6489_v10 = vmax.f32 %v6485_v50, 0.0  ;;  %v6510_v20 = vmax.f32 %v6506_v63, 0.0  ;;  %v6530_v9 = vmax.f32 %v6526_v18, 0.0 }
 0xc3a   :  { %v6550_v49 = vmax.f32 %v6546_v24, 0.0  ;;  %v6481_v56 = vpop.permute.xlu1 %6480 }
 0xc3b   :  { %6782 = vst [vmem:[%s14074_s4 + $0x40] sm:$0xff] %v6489_v10  ;;  %6784 = vst [vmem:[%s14074_s4 + $0x48] sm:$0xff] %v6510_v20  ;;  %v6486_v8 = vadd.f32 %v6481_v56, %v6466_v25  ;;  %v6507_v62 = vadd.f32 %v6503_v42, %v6481_v56  ;;  %v6527_v32 = vadd.f32 %v6523_v57, %v6481_v56 }
 0xc3c   :  { %6786 = vst [vmem:[%s14074_s4 + $0x50] sm:$0xff] %v6530_v9  ;;  %6788 = vst [vmem:[%s14074_s4 + $0x58] sm:$0xff] %v6550_v49  ;;  %v6547_v29 = vadd.f32 %v6543_v21, %v6481_v56 }
 0xc3d   :  { %v6490_v53 = vmax.f32 %v6486_v8, 0.0  ;;  %v6511_v43 = vmax.f32 %v6507_v62, 0.0  ;;  %v6531_v35 = vmax.f32 %v6527_v32, 0.0 }
 0xc3e   :  { %v6551_v17 = vmax.f32 %v6547_v29, 0.0 }
 0xc3f   :  { %6783 = vst [vmem:[%s14074_s4 + $0x60] sm:$0x1] %v6490_v53  ;;  %6785 = vst [vmem:[%s14074_s4 + $0x68] sm:$0x1] %v6511_v43 }
 0xc40   :  { %6787 = vst [vmem:[%s14074_s4 + $0x70] sm:$0x1] %v6531_v35  ;;  %6789 = vst [vmem:[%s14074_s4 + $0x78] sm:$0x1] %v6551_v17 }

</bundles_post_ra>
